<compile_context>
chip_gen: v7x
topology: tpu7x:2x2x1
jax: 0.10.0
libtpu: 0.0.40
codegen_flags: <defaults>
</compile_context>

<pallas_src>
import jax
import jax.numpy as jnp
from jax import lax
from jax.experimental import pallas as pl
from jax.experimental.pallas import tpu as pltpu

NUM_POINTS = 128          # module's num_points (small but faithful: lane-dense)
NUM_GLOBAL_FEATS = 256    # module's num_global_feats
C_LOCAL = 64              # channels of the saved local features (output of conv2)
B_TILE = 4                # batch elements processed per grid step

# (C_in, C_out) of the five 1x1 convs, in forward order.
LAYER_DIMS = [(2, 64), (64, 64), (64, 64), (64, 128), (128, NUM_GLOBAL_FEATS)]

# Set to jnp.bfloat16 on v6e/v7x for higher MXU throughput (f32 accumulation is kept either
# way); loosen the feature tolerance in __main__ to ~2e-2 if you do.  f32 is the safe default.
MXU_DTYPE = jnp.float32


def _mxu(a):
    return a if a.dtype == MXU_DTYPE else a.astype(MXU_DTYPE)


def backbone_kernel(x_ref,
                    w1, b1, w2, b2, w3, b3, w4, b4, w5, b5,
                    feat_ref, crit_ref):
    """PointNetBackbone forward for B_TILE batch elements, entirely in VMEM (NCL layout)."""
    x = x_ref[...]                                # (B_TILE, 2, N)

    # Hoist weight loads and the lane-index iota out of the per-batch unroll
    # (JAX does not CSE broadcasts/iotas inside loops).
    w1v = w1[...]                                 # (64, 2)
    w1c0, w1c1 = w1v[:, 0:1], w1v[:, 1:2]         # (64, 1) each
    bias1 = b1[...]                               # (64, 1)
    w2v, b2v = _mxu(w2[...]), b2[...]
    w3v, b3v = _mxu(w3[...]), b3[...]
    w4v, b4v = _mxu(w4[...]), b4[...]
    w5v, b5v = _mxu(w5[...]), b5[...]
    lane_idx = lax.broadcasted_iota(jnp.int32, (NUM_GLOBAL_FEATS, NUM_POINTS), 1)

    def conv(h, w, b):                            # (C_out, C_in) @ (C_in, N) + bias, tanh
        return jnp.tanh(jnp.dot(w, _mxu(h), preferred_element_type=jnp.float32) + b)

    for bb in range(B_TILE):                      # static unroll over the batch tile
        # conv1 (C_in=2): pure VPU - two broadcast multiplies, no K=2 MXU pass.
        h = jnp.tanh(w1c0 * x[bb, 0:1, :] + w1c1 * x[bb, 1:2, :] + bias1)   # (64, N)
        # conv2; its output is the local feature map -> store straight into the output.
        h = conv(h, w2v, b2v)                                               # (64, N)
        feat_ref[bb, 0:C_LOCAL, :] = h
        # conv3 .. conv5
        h = conv(h, w3v, b3v)                                               # (64, N)
        h = conv(h, w4v, b4v)                                               # (128, N)
        h = conv(h, w5v, b5v)                                               # (G, N)
        # Global feature: max over points (lane reduce), repeated back over points
        # (lane broadcast) into channels [64, 64+G) of the output.
        g = jnp.max(h, axis=1, keepdims=True)                               # (G, 1)
        feat_ref[bb, C_LOCAL:, :] = jnp.broadcast_to(g, (NUM_GLOBAL_FEATS, NUM_POINTS))
        # Critical indexes = first point index attaining the max (MaxPool1d return_indices).
        # Output is tiny (G int32 per batch), so the lane-1 store is negligible.
        cand = jnp.where(h == g, lane_idx, NUM_POINTS)
        crit_ref[bb, :, :] = jnp.min(cand, axis=1, keepdims=True)           # (G, 1) int32


def _const_spec(shape):
    # Whole-array block with a constant index map: the pipeline only re-issues a copy when the
    # block index changes, so weights are DMA'd once and stay VMEM-resident across the grid.
    return pl.BlockSpec(shape, lambda i: (0, 0))


def pointnet_backbone(x, params, *, b_tile=B_TILE):
    """x: (bs, 2, NUM_POINTS) float32 (PyTorch NCL layout).
    Returns (features (bs, 64+G, N) f32, critical_indexes (bs, G) int32, A_feat=None)."""
    bs, cin, n = x.shape
    assert cin == 2 and n == NUM_POINTS
    pad = (-bs) % b_tile
    if pad:                                        # ragged last tile: pad batch, slice outputs
        x = jnp.concatenate([x, jnp.zeros((pad, cin, n), x.dtype)], axis=0)
    bs_p = bs + pad

    flat_args = [x]
    in_specs = [pl.BlockSpec((b_tile, 2, NUM_POINTS), lambda i: (i, 0, 0))]
    for w, b in params:
        flat_args += [w, b]
        in_specs += [_const_spec(w.shape), _const_spec(b.shape)]

    feats, crit = pl.pallas_call(
        backbone_kernel,
        grid=(bs_p // b_tile,),
        in_specs=in_specs,
        out_specs=(
            pl.BlockSpec((b_tile, C_LOCAL + NUM_GLOBAL_FEATS, NUM_POINTS), lambda i: (i, 0, 0)),
            pl.BlockSpec((b_tile, NUM_GLOBAL_FEATS, 1), lambda i: (i, 0, 0)),
        ),
        out_shape=(
            jax.ShapeDtypeStruct((bs_p, C_LOCAL + NUM_GLOBAL_FEATS, NUM_POINTS), jnp.float32),
            jax.ShapeDtypeStruct((bs_p, NUM_GLOBAL_FEATS, 1), jnp.int32),
        ),
        compiler_params=pltpu.CompilerParams(dimension_semantics=("parallel",)),
    )(*flat_args)

    feats = feats[:bs]
    crit = crit[:bs, :, 0]
    return feats, crit, None                       # A_feat is None (use_tnet=False)


def init_params(key):
    """Synthetic init: conv weights stored as (C_out, C_in), biases as (C_out, 1)."""
    params = []
    keys = jax.random.split(key, 2 * len(LAYER_DIMS))
    for i, (cin, cout) in enumerate(LAYER_DIMS):
        std = (2.0 / (cin + cout)) ** 0.5
        w = std * jax.random.normal(keys[2 * i], (cout, cin), jnp.float32)
        b = 0.1 * jax.random.normal(keys[2 * i + 1], (cout, 1), jnp.float32)
        params.append((w, b))
    return params


def reference_forward(x, params):
    """Pure-JAX reference matching PointNetBackbone.forward (use_tnet=False, local_feat=True)."""
    (w1, b1), (w2, b2), (w3, b3), (w4, b4), (w5, b5) = params
    hp = lax.Precision.HIGHEST

    def conv(h, w, b):
        return jnp.tanh(jnp.einsum("oc,bcn->bon", w, h, precision=hp) + b[None, :, :])

    h = conv(x, w1, b1)
    h = conv(h, w2, b2)
    local = h
    h = conv(h, w3, b3)
    h = conv(h, w4, b4)
    h = conv(h, w5, b5)                                        # (bs, G, N)
    g = jnp.max(h, axis=2)                                     # (bs, G)
    crit = jnp.argmax(h, axis=2).astype(jnp.int32)             # (bs, G), first max index
    feats = jnp.concatenate(
        [local, jnp.broadcast_to(g[:, :, None],
                                 (x.shape[0], NUM_GLOBAL_FEATS, NUM_POINTS))], axis=1)
    return feats, crit, None


if __name__ == "__main__":
    key = jax.random.PRNGKey(0)
    kx, kp = jax.random.split(key)

    bs = 6  # not a multiple of B_TILE on purpose: exercises the ragged-batch padding path
    x = jax.random.normal(kx, (bs, 2, NUM_POINTS), jnp.float32)
    params = init_params(kp)

    feats, crit, a_feat = pointnet_backbone(x, params)
    feats = jax.block_until_ready(feats)
    crit = jax.block_until_ready(crit)

    f_ref, c_ref, _ = reference_forward(x, params)

    assert a_feat is None
    assert feats.shape == (bs, C_LOCAL + NUM_GLOBAL_FEATS, NUM_POINTS)
    assert crit.shape == (bs, NUM_GLOBAL_FEATS)
    assert jnp.allclose(feats, f_ref, atol=5e-4, rtol=5e-4), "features mismatch vs JAX reference"
    # Argmax indexes can legitimately flip on fp-noise-level ties; require >=99.5% agreement.
    match = jnp.mean((crit == c_ref).astype(jnp.float32))
    assert float(match) >= 0.995, f"critical index agreement too low: {float(match)}"

    print("KERNEL_OK")
</pallas_src>

<mosaic_0001>
module attributes {stable_mosaic.version = 11 : i64} {
  func.func @backbone_kernel(%arg0: i32, %arg1: memref<4x2x128xf32, #tpu.memory_space<vmem>>, %arg2: memref<64x2xf32, #tpu.memory_space<vmem>>, %arg3: memref<64x1xf32, #tpu.memory_space<vmem>>, %arg4: memref<64x64xf32, #tpu.memory_space<vmem>>, %arg5: memref<64x1xf32, #tpu.memory_space<vmem>>, %arg6: memref<64x64xf32, #tpu.memory_space<vmem>>, %arg7: memref<64x1xf32, #tpu.memory_space<vmem>>, %arg8: memref<128x64xf32, #tpu.memory_space<vmem>>, %arg9: memref<128x1xf32, #tpu.memory_space<vmem>>, %arg10: memref<256x128xf32, #tpu.memory_space<vmem>>, %arg11: memref<256x1xf32, #tpu.memory_space<vmem>>, %arg12: memref<4x320x128xf32, #tpu.memory_space<vmem>>, %arg13: memref<4x256x1xi32, #tpu.memory_space<vmem>>) attributes {dimension_semantics = [#tpu.dimension_semantics<parallel>], iteration_bounds = array<i64: 2>, scalar_prefetch = 0 : i64, scratch_operands = 0 : i64, tpu.core_type = #tpu.core_type<tc>, window_params = [{transform_indices = @transform_0, window_bounds = array<i64: 4, 2, 128>}, {pipeline_mode = #tpu.pipeline_mode<synchronous>, transform_indices = @transform_1, window_bounds = array<i64: 64, 2>}, {pipeline_mode = #tpu.pipeline_mode<synchronous>, transform_indices = @transform_2, window_bounds = array<i64: 64, 1>}, {pipeline_mode = #tpu.pipeline_mode<synchronous>, transform_indices = @transform_3, window_bounds = array<i64: 64, 64>}, {pipeline_mode = #tpu.pipeline_mode<synchronous>, transform_indices = @transform_4, window_bounds = array<i64: 64, 1>}, {pipeline_mode = #tpu.pipeline_mode<synchronous>, transform_indices = @transform_5, window_bounds = array<i64: 64, 64>}, {pipeline_mode = #tpu.pipeline_mode<synchronous>, transform_indices = @transform_6, window_bounds = array<i64: 64, 1>}, {pipeline_mode = #tpu.pipeline_mode<synchronous>, transform_indices = @transform_7, window_bounds = array<i64: 128, 64>}, {pipeline_mode = #tpu.pipeline_mode<synchronous>, transform_indices = @transform_8, window_bounds = array<i64: 128, 1>}, {pipeline_mode = #tpu.pipeline_mode<synchronous>, transform_indices = @transform_9, window_bounds = array<i64: 256, 128>}, {pipeline_mode = #tpu.pipeline_mode<synchronous>, transform_indices = @transform_10, window_bounds = array<i64: 256, 1>}, {transform_indices = @transform_11, window_bounds = array<i64: 4, 320, 128>}, {transform_indices = @transform_12, window_bounds = array<i64: 4, 256, 1>}]} {
    %c0 = arith.constant 0 : index
    %c0_0 = arith.constant 0 : index
    %c0_1 = arith.constant 0 : index
    %0 = vector.load %arg1[%c0, %c0_0, %c0_1] : memref<4x2x128xf32, #tpu.memory_space<vmem>>, vector<4x2x128xf32>
    %c0_2 = arith.constant 0 : index
    %c0_3 = arith.constant 0 : index
    %1 = vector.load %arg2[%c0_2, %c0_3] : memref<64x2xf32, #tpu.memory_space<vmem>>, vector<64x2xf32>
    %2 = vector.extract_strided_slice %1 {offsets = [0, 0], sizes = [64, 1], strides = [1, 1]} : vector<64x2xf32> to vector<64x1xf32>
    %3 = vector.extract_strided_slice %1 {offsets = [0, 1], sizes = [64, 1], strides = [1, 1]} : vector<64x2xf32> to vector<64x1xf32>
    %c0_4 = arith.constant 0 : index
    %c0_5 = arith.constant 0 : index
    %4 = vector.load %arg3[%c0_4, %c0_5] : memref<64x1xf32, #tpu.memory_space<vmem>>, vector<64x1xf32>
    %c0_6 = arith.constant 0 : index
    %c0_7 = arith.constant 0 : index
    %5 = vector.load %arg4[%c0_6, %c0_7] : memref<64x64xf32, #tpu.memory_space<vmem>>, vector<64x64xf32>
    %c0_8 = arith.constant 0 : index
    %c0_9 = arith.constant 0 : index
    %6 = vector.load %arg5[%c0_8, %c0_9] : memref<64x1xf32, #tpu.memory_space<vmem>>, vector<64x1xf32>
    %c0_10 = arith.constant 0 : index
    %c0_11 = arith.constant 0 : index
    %7 = vector.load %arg6[%c0_10, %c0_11] : memref<64x64xf32, #tpu.memory_space<vmem>>, vector<64x64xf32>
    %c0_12 = arith.constant 0 : index
    %c0_13 = arith.constant 0 : index
    %8 = vector.load %arg7[%c0_12, %c0_13] : memref<64x1xf32, #tpu.memory_space<vmem>>, vector<64x1xf32>
    %c0_14 = arith.constant 0 : index
    %c0_15 = arith.constant 0 : index
    %9 = vector.load %arg8[%c0_14, %c0_15] : memref<128x64xf32, #tpu.memory_space<vmem>>, vector<128x64xf32>
    %c0_16 = arith.constant 0 : index
    %c0_17 = arith.constant 0 : index
    %10 = vector.load %arg9[%c0_16, %c0_17] : memref<128x1xf32, #tpu.memory_space<vmem>>, vector<128x1xf32>
    %c0_18 = arith.constant 0 : index
    %c0_19 = arith.constant 0 : index
    %11 = vector.load %arg10[%c0_18, %c0_19] : memref<256x128xf32, #tpu.memory_space<vmem>>, vector<256x128xf32>
    %c0_20 = arith.constant 0 : index
    %c0_21 = arith.constant 0 : index
    %12 = vector.load %arg11[%c0_20, %c0_21] : memref<256x1xf32, #tpu.memory_space<vmem>>, vector<256x1xf32>
    %13 = tpu.iota {dimensions = array<i32: 1>} : vector<256x128xi32>
    %14 = vector.extract_strided_slice %0 {offsets = [0, 0, 0], sizes = [1, 1, 128], strides = [1, 1, 1]} : vector<4x2x128xf32> to vector<1x1x128xf32>
    %15 = vector.shape_cast %14 : vector<1x1x128xf32> to vector<1x128xf32>
    %16 = vector.broadcast %2 : vector<64x1xf32> to vector<64x128xf32>
    %17 = vector.broadcast %15 : vector<1x128xf32> to vector<64x128xf32>
    %18 = arith.mulf %16, %17 : vector<64x128xf32>
    %19 = vector.extract_strided_slice %0 {offsets = [0, 1, 0], sizes = [1, 1, 128], strides = [1, 1, 1]} : vector<4x2x128xf32> to vector<1x1x128xf32>
    %20 = vector.shape_cast %19 : vector<1x1x128xf32> to vector<1x128xf32>
    %21 = vector.broadcast %3 : vector<64x1xf32> to vector<64x128xf32>
    %22 = vector.broadcast %20 : vector<1x128xf32> to vector<64x128xf32>
    %23 = arith.mulf %21, %22 : vector<64x128xf32>
    %24 = arith.addf %18, %23 : vector<64x128xf32>
    %25 = vector.broadcast %4 : vector<64x1xf32> to vector<64x128xf32>
    %26 = arith.addf %24, %25 : vector<64x128xf32>
    %27 = math.tanh %26 : vector<64x128xf32>
    %cst = arith.constant dense<0.000000e+00> : vector<64x128xf32>
    %28 = tpu.matmul %5, %27, %cst {dimension_numbers = #tpu.dot_dimension_numbers<[1], [0], [0], [1], [0, 0, 1, 1], [], []>} : vector<64x64xf32>, vector<64x128xf32>, vector<64x128xf32> -> vector<64x128xf32>
    %29 = vector.broadcast %6 : vector<64x1xf32> to vector<64x128xf32>
    %30 = arith.addf %28, %29 : vector<64x128xf32>
    %31 = math.tanh %30 : vector<64x128xf32>
    %c0_22 = arith.constant 0 : index
    %c0_23 = arith.constant 0 : index
    %c0_24 = arith.constant 0 : index
    %32 = vector.load %arg12[%c0_22, %c0_23, %c0_24] : memref<4x320x128xf32, #tpu.memory_space<vmem>>, vector<1x64x128xf32>
    %33 = vector.shape_cast %32 : vector<1x64x128xf32> to vector<64x128xf32>
    %34 = vector.shape_cast %31 : vector<64x128xf32> to vector<1x64x128xf32>
    tpu.vector_store %arg12[%c0_22, %c0_23, %c0_24], %34 {strides = array<i32>} : memref<4x320x128xf32, #tpu.memory_space<vmem>>, vector<1x64x128xf32>,
    %cst_25 = arith.constant dense<0.000000e+00> : vector<64x128xf32>
    %35 = tpu.matmul %7, %31, %cst_25 {dimension_numbers = #tpu.dot_dimension_numbers<[1], [0], [0], [1], [0, 0, 1, 1], [], []>} : vector<64x64xf32>, vector<64x128xf32>, vector<64x128xf32> -> vector<64x128xf32>
    %36 = vector.broadcast %8 : vector<64x1xf32> to vector<64x128xf32>
    %37 = arith.addf %35, %36 : vector<64x128xf32>
    %38 = math.tanh %37 : vector<64x128xf32>
    %cst_26 = arith.constant dense<0.000000e+00> : vector<128x128xf32>
    %39 = tpu.matmul %9, %38, %cst_26 {dimension_numbers = #tpu.dot_dimension_numbers<[1], [0], [0], [1], [0, 0, 1, 1], [], []>} : vector<128x64xf32>, vector<64x128xf32>, vector<128x128xf32> -> vector<128x128xf32>
    %40 = vector.broadcast %10 : vector<128x1xf32> to vector<128x128xf32>
    %41 = arith.addf %39, %40 : vector<128x128xf32>
    %42 = math.tanh %41 : vector<128x128xf32>
    %cst_27 = arith.constant dense<0.000000e+00> : vector<256x128xf32>
    %43 = tpu.matmul %11, %42, %cst_27 {dimension_numbers = #tpu.dot_dimension_numbers<[1], [0], [0], [1], [0, 0, 1, 1], [], []>} : vector<256x128xf32>, vector<128x128xf32>, vector<256x128xf32> -> vector<256x128xf32>
    %44 = vector.broadcast %12 : vector<256x1xf32> to vector<256x128xf32>
    %45 = arith.addf %43, %44 : vector<256x128xf32>
    %46 = math.tanh %45 : vector<256x128xf32>
    %cst_28 = arith.constant dense<0xFF800000> : vector<256xf32>
    %47 = vector.multi_reduction <maximumf>, %46, %cst_28 [1] : vector<256x128xf32> to vector<256xf32>
    %48 = vector.shape_cast %47 : vector<256xf32> to vector<256x1xf32>
    %49 = vector.shape_cast %48 : vector<256x1xf32> to vector<256x1xf32>
    %50 = vector.broadcast %49 : vector<256x1xf32> to vector<256x128xf32>
    %c0_29 = arith.constant 0 : index
    %c64 = arith.constant 64 : index
    %c0_30 = arith.constant 0 : index
    %51 = vector.load %arg12[%c0_29, %c64, %c0_30] : memref<4x320x128xf32, #tpu.memory_space<vmem>>, vector<1x256x128xf32>
    %52 = vector.shape_cast %51 : vector<1x256x128xf32> to vector<256x128xf32>
    %53 = vector.shape_cast %50 : vector<256x128xf32> to vector<1x256x128xf32>
    tpu.vector_store %arg12[%c0_29, %c64, %c0_30], %53 {strides = array<i32>} : memref<4x320x128xf32, #tpu.memory_space<vmem>>, vector<1x256x128xf32>,
    %54 = vector.broadcast %48 : vector<256x1xf32> to vector<256x128xf32>
    %55 = arith.cmpf oeq, %46, %54 : vector<256x128xf32>
    %c128_i32 = arith.constant 128 : i32
    %56 = vector.broadcast %c128_i32 : i32 to vector<256x128xi32>
    %57 = arith.select %55, %13, %56 : vector<256x128xi1>, vector<256x128xi32>
    %cst_31 = arith.constant dense<2147483647> : vector<256xi32>
    %58 = vector.multi_reduction <minsi>, %57, %cst_31 [1] : vector<256x128xi32> to vector<256xi32>
    %59 = vector.shape_cast %58 : vector<256xi32> to vector<256x1xi32>
    %c0_32 = arith.constant 0 : index
    %c0_33 = arith.constant 0 : index
    %c0_34 = arith.constant 0 : index
    %60 = vector.load %arg13[%c0_32, %c0_33, %c0_34] : memref<4x256x1xi32, #tpu.memory_space<vmem>>, vector<1x256x1xi32>
    %61 = vector.shape_cast %60 : vector<1x256x1xi32> to vector<256x1xi32>
    %62 = vector.shape_cast %59 : vector<256x1xi32> to vector<1x256x1xi32>
    tpu.vector_store %arg13[%c0_32, %c0_33, %c0_34], %62 {strides = array<i32>} : memref<4x256x1xi32, #tpu.memory_space<vmem>>, vector<1x256x1xi32>,
    %63 = vector.extract_strided_slice %0 {offsets = [1, 0, 0], sizes = [1, 1, 128], strides = [1, 1, 1]} : vector<4x2x128xf32> to vector<1x1x128xf32>
    %64 = vector.shape_cast %63 : vector<1x1x128xf32> to vector<1x128xf32>
    %65 = vector.broadcast %2 : vector<64x1xf32> to vector<64x128xf32>
    %66 = vector.broadcast %64 : vector<1x128xf32> to vector<64x128xf32>
    %67 = arith.mulf %65, %66 : vector<64x128xf32>
    %68 = vector.extract_strided_slice %0 {offsets = [1, 1, 0], sizes = [1, 1, 128], strides = [1, 1, 1]} : vector<4x2x128xf32> to vector<1x1x128xf32>
    %69 = vector.shape_cast %68 : vector<1x1x128xf32> to vector<1x128xf32>
    %70 = vector.broadcast %3 : vector<64x1xf32> to vector<64x128xf32>
    %71 = vector.broadcast %69 : vector<1x128xf32> to vector<64x128xf32>
    %72 = arith.mulf %70, %71 : vector<64x128xf32>
    %73 = arith.addf %67, %72 : vector<64x128xf32>
    %74 = vector.broadcast %4 : vector<64x1xf32> to vector<64x128xf32>
    %75 = arith.addf %73, %74 : vector<64x128xf32>
    %76 = math.tanh %75 : vector<64x128xf32>
    %cst_35 = arith.constant dense<0.000000e+00> : vector<64x128xf32>
    %77 = tpu.matmul %5, %76, %cst_35 {dimension_numbers = #tpu.dot_dimension_numbers<[1], [0], [0], [1], [0, 0, 1, 1], [], []>} : vector<64x64xf32>, vector<64x128xf32>, vector<64x128xf32> -> vector<64x128xf32>
    %78 = vector.broadcast %6 : vector<64x1xf32> to vector<64x128xf32>
    %79 = arith.addf %77, %78 : vector<64x128xf32>
    %80 = math.tanh %79 : vector<64x128xf32>
    %c1 = arith.constant 1 : index
    %c0_36 = arith.constant 0 : index
    %c0_37 = arith.constant 0 : index
    %81 = vector.load %arg12[%c1, %c0_36, %c0_37] : memref<4x320x128xf32, #tpu.memory_space<vmem>>, vector<1x64x128xf32>
    %82 = vector.shape_cast %81 : vector<1x64x128xf32> to vector<64x128xf32>
    %83 = vector.shape_cast %80 : vector<64x128xf32> to vector<1x64x128xf32>
    tpu.vector_store %arg12[%c1, %c0_36, %c0_37], %83 {strides = array<i32>} : memref<4x320x128xf32, #tpu.memory_space<vmem>>, vector<1x64x128xf32>,
    %cst_38 = arith.constant dense<0.000000e+00> : vector<64x128xf32>
    %84 = tpu.matmul %7, %80, %cst_38 {dimension_numbers = #tpu.dot_dimension_numbers<[1], [0], [0], [1], [0, 0, 1, 1], [], []>} : vector<64x64xf32>, vector<64x128xf32>, vector<64x128xf32> -> vector<64x128xf32>
    %85 = vector.broadcast %8 : vector<64x1xf32> to vector<64x128xf32>
    %86 = arith.addf %84, %85 : vector<64x128xf32>
    %87 = math.tanh %86 : vector<64x128xf32>
    %cst_39 = arith.constant dense<0.000000e+00> : vector<128x128xf32>
    %88 = tpu.matmul %9, %87, %cst_39 {dimension_numbers = #tpu.dot_dimension_numbers<[1], [0], [0], [1], [0, 0, 1, 1], [], []>} : vector<128x64xf32>, vector<64x128xf32>, vector<128x128xf32> -> vector<128x128xf32>
    %89 = vector.broadcast %10 : vector<128x1xf32> to vector<128x128xf32>
    %90 = arith.addf %88, %89 : vector<128x128xf32>
    %91 = math.tanh %90 : vector<128x128xf32>
    %cst_40 = arith.constant dense<0.000000e+00> : vector<256x128xf32>
    %92 = tpu.matmul %11, %91, %cst_40 {dimension_numbers = #tpu.dot_dimension_numbers<[1], [0], [0], [1], [0, 0, 1, 1], [], []>} : vector<256x128xf32>, vector<128x128xf32>, vector<256x128xf32> -> vector<256x128xf32>
    %93 = vector.broadcast %12 : vector<256x1xf32> to vector<256x128xf32>
    %94 = arith.addf %92, %93 : vector<256x128xf32>
    %95 = math.tanh %94 : vector<256x128xf32>
    %cst_41 = arith.constant dense<0xFF800000> : vector<256xf32>
    %96 = vector.multi_reduction <maximumf>, %95, %cst_41 [1] : vector<256x128xf32> to vector<256xf32>
    %97 = vector.shape_cast %96 : vector<256xf32> to vector<256x1xf32>
    %98 = vector.shape_cast %97 : vector<256x1xf32> to vector<256x1xf32>
    %99 = vector.broadcast %98 : vector<256x1xf32> to vector<256x128xf32>
    %c1_42 = arith.constant 1 : index
    %c64_43 = arith.constant 64 : index
    %c0_44 = arith.constant 0 : index
    %100 = vector.load %arg12[%c1_42, %c64_43, %c0_44] : memref<4x320x128xf32, #tpu.memory_space<vmem>>, vector<1x256x128xf32>
    %101 = vector.shape_cast %100 : vector<1x256x128xf32> to vector<256x128xf32>
    %102 = vector.shape_cast %99 : vector<256x128xf32> to vector<1x256x128xf32>
    tpu.vector_store %arg12[%c1_42, %c64_43, %c0_44], %102 {strides = array<i32>} : memref<4x320x128xf32, #tpu.memory_space<vmem>>, vector<1x256x128xf32>,
    %103 = vector.broadcast %97 : vector<256x1xf32> to vector<256x128xf32>
    %104 = arith.cmpf oeq, %95, %103 : vector<256x128xf32>
    %c128_i32_45 = arith.constant 128 : i32
    %105 = vector.broadcast %c128_i32_45 : i32 to vector<256x128xi32>
    %106 = arith.select %104, %13, %105 : vector<256x128xi1>, vector<256x128xi32>
    %cst_46 = arith.constant dense<2147483647> : vector<256xi32>
    %107 = vector.multi_reduction <minsi>, %106, %cst_46 [1] : vector<256x128xi32> to vector<256xi32>
    %108 = vector.shape_cast %107 : vector<256xi32> to vector<256x1xi32>
    %c1_47 = arith.constant 1 : index
    %c0_48 = arith.constant 0 : index
    %c0_49 = arith.constant 0 : index
    %109 = vector.load %arg13[%c1_47, %c0_48, %c0_49] : memref<4x256x1xi32, #tpu.memory_space<vmem>>, vector<1x256x1xi32>
    %110 = vector.shape_cast %109 : vector<1x256x1xi32> to vector<256x1xi32>
    %111 = vector.shape_cast %108 : vector<256x1xi32> to vector<1x256x1xi32>
    tpu.vector_store %arg13[%c1_47, %c0_48, %c0_49], %111 {strides = array<i32>} : memref<4x256x1xi32, #tpu.memory_space<vmem>>, vector<1x256x1xi32>,
    %112 = vector.extract_strided_slice %0 {offsets = [2, 0, 0], sizes = [1, 1, 128], strides = [1, 1, 1]} : vector<4x2x128xf32> to vector<1x1x128xf32>
    %113 = vector.shape_cast %112 : vector<1x1x128xf32> to vector<1x128xf32>
    %114 = vector.broadcast %2 : vector<64x1xf32> to vector<64x128xf32>
    %115 = vector.broadcast %113 : vector<1x128xf32> to vector<64x128xf32>
    %116 = arith.mulf %114, %115 : vector<64x128xf32>
    %117 = vector.extract_strided_slice %0 {offsets = [2, 1, 0], sizes = [1, 1, 128], strides = [1, 1, 1]} : vector<4x2x128xf32> to vector<1x1x128xf32>
    %118 = vector.shape_cast %117 : vector<1x1x128xf32> to vector<1x128xf32>
    %119 = vector.broadcast %3 : vector<64x1xf32> to vector<64x128xf32>
    %120 = vector.broadcast %118 : vector<1x128xf32> to vector<64x128xf32>
    %121 = arith.mulf %119, %120 : vector<64x128xf32>
    %122 = arith.addf %116, %121 : vector<64x128xf32>
    %123 = vector.broadcast %4 : vector<64x1xf32> to vector<64x128xf32>
    %124 = arith.addf %122, %123 : vector<64x128xf32>
    %125 = math.tanh %124 : vector<64x128xf32>
    %cst_50 = arith.constant dense<0.000000e+00> : vector<64x128xf32>
    %126 = tpu.matmul %5, %125, %cst_50 {dimension_numbers = #tpu.dot_dimension_numbers<[1], [0], [0], [1], [0, 0, 1, 1], [], []>} : vector<64x64xf32>, vector<64x128xf32>, vector<64x128xf32> -> vector<64x128xf32>
    %127 = vector.broadcast %6 : vector<64x1xf32> to vector<64x128xf32>
    %128 = arith.addf %126, %127 : vector<64x128xf32>
    %129 = math.tanh %128 : vector<64x128xf32>
    %c2 = arith.constant 2 : index
    %c0_51 = arith.constant 0 : index
    %c0_52 = arith.constant 0 : index
    %130 = vector.load %arg12[%c2, %c0_51, %c0_52] : memref<4x320x128xf32, #tpu.memory_space<vmem>>, vector<1x64x128xf32>
    %131 = vector.shape_cast %130 : vector<1x64x128xf32> to vector<64x128xf32>
    %132 = vector.shape_cast %129 : vector<64x128xf32> to vector<1x64x128xf32>
    tpu.vector_store %arg12[%c2, %c0_51, %c0_52], %132 {strides = array<i32>} : memref<4x320x128xf32, #tpu.memory_space<vmem>>, vector<1x64x128xf32>,
    %cst_53 = arith.constant dense<0.000000e+00> : vector<64x128xf32>
    %133 = tpu.matmul %7, %129, %cst_53 {dimension_numbers = #tpu.dot_dimension_numbers<[1], [0], [0], [1], [0, 0, 1, 1], [], []>} : vector<64x64xf32>, vector<64x128xf32>, vector<64x128xf32> -> vector<64x128xf32>
    %134 = vector.broadcast %8 : vector<64x1xf32> to vector<64x128xf32>
    %135 = arith.addf %133, %134 : vector<64x128xf32>
    %136 = math.tanh %135 : vector<64x128xf32>
    %cst_54 = arith.constant dense<0.000000e+00> : vector<128x128xf32>
    %137 = tpu.matmul %9, %136, %cst_54 {dimension_numbers = #tpu.dot_dimension_numbers<[1], [0], [0], [1], [0, 0, 1, 1], [], []>} : vector<128x64xf32>, vector<64x128xf32>, vector<128x128xf32> -> vector<128x128xf32>
    %138 = vector.broadcast %10 : vector<128x1xf32> to vector<128x128xf32>
    %139 = arith.addf %137, %138 : vector<128x128xf32>
    %140 = math.tanh %139 : vector<128x128xf32>
    %cst_55 = arith.constant dense<0.000000e+00> : vector<256x128xf32>
    %141 = tpu.matmul %11, %140, %cst_55 {dimension_numbers = #tpu.dot_dimension_numbers<[1], [0], [0], [1], [0, 0, 1, 1], [], []>} : vector<256x128xf32>, vector<128x128xf32>, vector<256x128xf32> -> vector<256x128xf32>
    %142 = vector.broadcast %12 : vector<256x1xf32> to vector<256x128xf32>
    %143 = arith.addf %141, %142 : vector<256x128xf32>
    %144 = math.tanh %143 : vector<256x128xf32>
    %cst_56 = arith.constant dense<0xFF800000> : vector<256xf32>
    %145 = vector.multi_reduction <maximumf>, %144, %cst_56 [1] : vector<256x128xf32> to vector<256xf32>
    %146 = vector.shape_cast %145 : vector<256xf32> to vector<256x1xf32>
    %147 = vector.shape_cast %146 : vector<256x1xf32> to vector<256x1xf32>
    %148 = vector.broadcast %147 : vector<256x1xf32> to vector<256x128xf32>
    %c2_57 = arith.constant 2 : index
    %c64_58 = arith.constant 64 : index
    %c0_59 = arith.constant 0 : index
    %149 = vector.load %arg12[%c2_57, %c64_58, %c0_59] : memref<4x320x128xf32, #tpu.memory_space<vmem>>, vector<1x256x128xf32>
    %150 = vector.shape_cast %149 : vector<1x256x128xf32> to vector<256x128xf32>
    %151 = vector.shape_cast %148 : vector<256x128xf32> to vector<1x256x128xf32>
    tpu.vector_store %arg12[%c2_57, %c64_58, %c0_59], %151 {strides = array<i32>} : memref<4x320x128xf32, #tpu.memory_space<vmem>>, vector<1x256x128xf32>,
    %152 = vector.broadcast %146 : vector<256x1xf32> to vector<256x128xf32>
    %153 = arith.cmpf oeq, %144, %152 : vector<256x128xf32>
    %c128_i32_60 = arith.constant 128 : i32
    %154 = vector.broadcast %c128_i32_60 : i32 to vector<256x128xi32>
    %155 = arith.select %153, %13, %154 : vector<256x128xi1>, vector<256x128xi32>
    %cst_61 = arith.constant dense<2147483647> : vector<256xi32>
    %156 = vector.multi_reduction <minsi>, %155, %cst_61 [1] : vector<256x128xi32> to vector<256xi32>
    %157 = vector.shape_cast %156 : vector<256xi32> to vector<256x1xi32>
    %c2_62 = arith.constant 2 : index
    %c0_63 = arith.constant 0 : index
    %c0_64 = arith.constant 0 : index
    %158 = vector.load %arg13[%c2_62, %c0_63, %c0_64] : memref<4x256x1xi32, #tpu.memory_space<vmem>>, vector<1x256x1xi32>
    %159 = vector.shape_cast %158 : vector<1x256x1xi32> to vector<256x1xi32>
    %160 = vector.shape_cast %157 : vector<256x1xi32> to vector<1x256x1xi32>
    tpu.vector_store %arg13[%c2_62, %c0_63, %c0_64], %160 {strides = array<i32>} : memref<4x256x1xi32, #tpu.memory_space<vmem>>, vector<1x256x1xi32>,
    %161 = vector.extract_strided_slice %0 {offsets = [3, 0, 0], sizes = [1, 1, 128], strides = [1, 1, 1]} : vector<4x2x128xf32> to vector<1x1x128xf32>
    %162 = vector.shape_cast %161 : vector<1x1x128xf32> to vector<1x128xf32>
    %163 = vector.broadcast %2 : vector<64x1xf32> to vector<64x128xf32>
    %164 = vector.broadcast %162 : vector<1x128xf32> to vector<64x128xf32>
    %165 = arith.mulf %163, %164 : vector<64x128xf32>
    %166 = vector.extract_strided_slice %0 {offsets = [3, 1, 0], sizes = [1, 1, 128], strides = [1, 1, 1]} : vector<4x2x128xf32> to vector<1x1x128xf32>
    %167 = vector.shape_cast %166 : vector<1x1x128xf32> to vector<1x128xf32>
    %168 = vector.broadcast %3 : vector<64x1xf32> to vector<64x128xf32>
    %169 = vector.broadcast %167 : vector<1x128xf32> to vector<64x128xf32>
    %170 = arith.mulf %168, %169 : vector<64x128xf32>
    %171 = arith.addf %165, %170 : vector<64x128xf32>
    %172 = vector.broadcast %4 : vector<64x1xf32> to vector<64x128xf32>
    %173 = arith.addf %171, %172 : vector<64x128xf32>
    %174 = math.tanh %173 : vector<64x128xf32>
    %cst_65 = arith.constant dense<0.000000e+00> : vector<64x128xf32>
    %175 = tpu.matmul %5, %174, %cst_65 {dimension_numbers = #tpu.dot_dimension_numbers<[1], [0], [0], [1], [0, 0, 1, 1], [], []>} : vector<64x64xf32>, vector<64x128xf32>, vector<64x128xf32> -> vector<64x128xf32>
    %176 = vector.broadcast %6 : vector<64x1xf32> to vector<64x128xf32>
    %177 = arith.addf %175, %176 : vector<64x128xf32>
    %178 = math.tanh %177 : vector<64x128xf32>
    %c3 = arith.constant 3 : index
    %c0_66 = arith.constant 0 : index
    %c0_67 = arith.constant 0 : index
    %179 = vector.load %arg12[%c3, %c0_66, %c0_67] : memref<4x320x128xf32, #tpu.memory_space<vmem>>, vector<1x64x128xf32>
    %180 = vector.shape_cast %179 : vector<1x64x128xf32> to vector<64x128xf32>
    %181 = vector.shape_cast %178 : vector<64x128xf32> to vector<1x64x128xf32>
    tpu.vector_store %arg12[%c3, %c0_66, %c0_67], %181 {strides = array<i32>} : memref<4x320x128xf32, #tpu.memory_space<vmem>>, vector<1x64x128xf32>,
    %cst_68 = arith.constant dense<0.000000e+00> : vector<64x128xf32>
    %182 = tpu.matmul %7, %178, %cst_68 {dimension_numbers = #tpu.dot_dimension_numbers<[1], [0], [0], [1], [0, 0, 1, 1], [], []>} : vector<64x64xf32>, vector<64x128xf32>, vector<64x128xf32> -> vector<64x128xf32>
    %183 = vector.broadcast %8 : vector<64x1xf32> to vector<64x128xf32>
    %184 = arith.addf %182, %183 : vector<64x128xf32>
    %185 = math.tanh %184 : vector<64x128xf32>
    %cst_69 = arith.constant dense<0.000000e+00> : vector<128x128xf32>
    %186 = tpu.matmul %9, %185, %cst_69 {dimension_numbers = #tpu.dot_dimension_numbers<[1], [0], [0], [1], [0, 0, 1, 1], [], []>} : vector<128x64xf32>, vector<64x128xf32>, vector<128x128xf32> -> vector<128x128xf32>
    %187 = vector.broadcast %10 : vector<128x1xf32> to vector<128x128xf32>
    %188 = arith.addf %186, %187 : vector<128x128xf32>
    %189 = math.tanh %188 : vector<128x128xf32>
    %cst_70 = arith.constant dense<0.000000e+00> : vector<256x128xf32>
    %190 = tpu.matmul %11, %189, %cst_70 {dimension_numbers = #tpu.dot_dimension_numbers<[1], [0], [0], [1], [0, 0, 1, 1], [], []>} : vector<256x128xf32>, vector<128x128xf32>, vector<256x128xf32> -> vector<256x128xf32>
    %191 = vector.broadcast %12 : vector<256x1xf32> to vector<256x128xf32>
    %192 = arith.addf %190, %191 : vector<256x128xf32>
    %193 = math.tanh %192 : vector<256x128xf32>
    %cst_71 = arith.constant dense<0xFF800000> : vector<256xf32>
    %194 = vector.multi_reduction <maximumf>, %193, %cst_71 [1] : vector<256x128xf32> to vector<256xf32>
    %195 = vector.shape_cast %194 : vector<256xf32> to vector<256x1xf32>
    %196 = vector.shape_cast %195 : vector<256x1xf32> to vector<256x1xf32>
    %197 = vector.broadcast %196 : vector<256x1xf32> to vector<256x128xf32>
    %c3_72 = arith.constant 3 : index
    %c64_73 = arith.constant 64 : index
    %c0_74 = arith.constant 0 : index
    %198 = vector.load %arg12[%c3_72, %c64_73, %c0_74] : memref<4x320x128xf32, #tpu.memory_space<vmem>>, vector<1x256x128xf32>
    %199 = vector.shape_cast %198 : vector<1x256x128xf32> to vector<256x128xf32>
    %200 = vector.shape_cast %197 : vector<256x128xf32> to vector<1x256x128xf32>
    tpu.vector_store %arg12[%c3_72, %c64_73, %c0_74], %200 {strides = array<i32>} : memref<4x320x128xf32, #tpu.memory_space<vmem>>, vector<1x256x128xf32>,
    %201 = vector.broadcast %195 : vector<256x1xf32> to vector<256x128xf32>
    %202 = arith.cmpf oeq, %193, %201 : vector<256x128xf32>
    %c128_i32_75 = arith.constant 128 : i32
    %203 = vector.broadcast %c128_i32_75 : i32 to vector<256x128xi32>
    %204 = arith.select %202, %13, %203 : vector<256x128xi1>, vector<256x128xi32>
    %cst_76 = arith.constant dense<2147483647> : vector<256xi32>
    %205 = vector.multi_reduction <minsi>, %204, %cst_76 [1] : vector<256x128xi32> to vector<256xi32>
    %206 = vector.shape_cast %205 : vector<256xi32> to vector<256x1xi32>
    %c3_77 = arith.constant 3 : index
    %c0_78 = arith.constant 0 : index
    %c0_79 = arith.constant 0 : index
    %207 = vector.load %arg13[%c3_77, %c0_78, %c0_79] : memref<4x256x1xi32, #tpu.memory_space<vmem>>, vector<1x256x1xi32>
    %208 = vector.shape_cast %207 : vector<1x256x1xi32> to vector<256x1xi32>
    %209 = vector.shape_cast %206 : vector<256x1xi32> to vector<1x256x1xi32>
    tpu.vector_store %arg13[%c3_77, %c0_78, %c0_79], %209 {strides = array<i32>} : memref<4x256x1xi32, #tpu.memory_space<vmem>>, vector<1x256x1xi32>,
    return
  }
  func.func @transform_0(%arg0: i32) -> (i32, i32, i32) {
    %c0_i32 = arith.constant 0 : i32
    %c0_i32_0 = arith.constant 0 : i32
    %c0_i32_1 = arith.constant 0 : i32
    return %arg0, %c0_i32, %c0_i32_0 : i32, i32, i32
  }
  func.func @transform_1(%arg0: i32) -> (i32, i32) {
    %c0_i32 = arith.constant 0 : i32
    %c0_i32_0 = arith.constant 0 : i32
    %c0_i32_1 = arith.constant 0 : i32
    return %c0_i32, %c0_i32_0 : i32, i32
  }
  func.func @transform_2(%arg0: i32) -> (i32, i32) {
    %c0_i32 = arith.constant 0 : i32
    %c0_i32_0 = arith.constant 0 : i32
    %c0_i32_1 = arith.constant 0 : i32
    return %c0_i32, %c0_i32_0 : i32, i32
  }
  func.func @transform_3(%arg0: i32) -> (i32, i32) {
    %c0_i32 = arith.constant 0 : i32
    %c0_i32_0 = arith.constant 0 : i32
    %c0_i32_1 = arith.constant 0 : i32
    return %c0_i32, %c0_i32_0 : i32, i32
  }
  func.func @transform_4(%arg0: i32) -> (i32, i32) {
    %c0_i32 = arith.constant 0 : i32
    %c0_i32_0 = arith.constant 0 : i32
    %c0_i32_1 = arith.constant 0 : i32
    return %c0_i32, %c0_i32_0 : i32, i32
  }
  func.func @transform_5(%arg0: i32) -> (i32, i32) {
    %c0_i32 = arith.constant 0 : i32
    %c0_i32_0 = arith.constant 0 : i32
    %c0_i32_1 = arith.constant 0 : i32
    return %c0_i32, %c0_i32_0 : i32, i32
  }
  func.func @transform_6(%arg0: i32) -> (i32, i32) {
    %c0_i32 = arith.constant 0 : i32
    %c0_i32_0 = arith.constant 0 : i32
    %c0_i32_1 = arith.constant 0 : i32
    return %c0_i32, %c0_i32_0 : i32, i32
  }
  func.func @transform_7(%arg0: i32) -> (i32, i32) {
    %c0_i32 = arith.constant 0 : i32
    %c0_i32_0 = arith.constant 0 : i32
    %c0_i32_1 = arith.constant 0 : i32
    return %c0_i32, %c0_i32_0 : i32, i32
  }
  func.func @transform_8(%arg0: i32) -> (i32, i32) {
    %c0_i32 = arith.constant 0 : i32
    %c0_i32_0 = arith.constant 0 : i32
    %c0_i32_1 = arith.constant 0 : i32
    return %c0_i32, %c0_i32_0 : i32, i32
  }
  func.func @transform_9(%arg0: i32) -> (i32, i32) {
    %c0_i32 = arith.constant 0 : i32
    %c0_i32_0 = arith.constant 0 : i32
    %c0_i32_1 = arith.constant 0 : i32
    return %c0_i32, %c0_i32_0 : i32, i32
  }
  func.func @transform_10(%arg0: i32) -> (i32, i32) {
    %c0_i32 = arith.constant 0 : i32
    %c0_i32_0 = arith.constant 0 : i32
    %c0_i32_1 = arith.constant 0 : i32
    return %c0_i32, %c0_i32_0 : i32, i32
  }
  func.func @transform_11(%arg0: i32) -> (i32, i32, i32) {
    %c0_i32 = arith.constant 0 : i32
    %c0_i32_0 = arith.constant 0 : i32
    %c0_i32_1 = arith.constant 0 : i32
    return %arg0, %c0_i32, %c0_i32_0 : i32, i32, i32
  }
  func.func @transform_12(%arg0: i32) -> (i32, i32, i32) {
    %c0_i32 = arith.constant 0 : i32
    %c0_i32_0 = arith.constant 0 : i32
    %c0_i32_1 = arith.constant 0 : i32
    return %arg0, %c0_i32, %c0_i32_0 : i32, i32, i32
  }
}

</mosaic_0001>

<bundles_post_ra>
// kernel: tpu_custom_call.1
= control target key start
LH: loop header
LB: loop body
LE: loop exit
PB: predicated region body
PF: predicated region fallthrough
CT: control target
= control target key end

     0   :  { %s13935_s0 = inlined_call_operand.hbm [shape: f32[8,2,128], index: 0, kind: input, shape index: {}]   ;;  %s13936_s1 = inlined_call_operand.vmem [shape: f32[64,2], index: 1, kind: input, shape index: {}]   ;;  %s13937_s2 = inlined_call_operand.vmem [shape: f32[64,1], index: 2, kind: input, shape index: {}]   ;;  %s13938_s3 = inlined_call_operand.hbm [shape: f32[64,64], index: 3, kind: input, shape index: {}]   ;;  %s13939_s4 = inlined_call_operand.vmem [shape: f32[64,1], index: 4, kind: input, shape index: {}]   ;;  %s13940_s5 = inlined_call_operand.hbm [shape: f32[64,64], index: 5, kind: input, shape index: {}]   ;;  %s13941_s6 = inlined_call_operand.vmem [shape: f32[64,1], index: 6, kind: input, shape index: {}]   ;;  %s13942_s7 = inlined_call_operand.vmem [shape: f32[128,64], index: 7, kind: input, shape index: {}]   ;;  %s13943_s8 = inlined_call_operand.vmem [shape: f32[128,1], index: 8, kind: input, shape index: {}]   ;;  %s13944_s9 = inlined_call_operand.hbm [shape: f32[256,128], index: 9, kind: input, shape index: {}]   ;;  %s13945_s10 = inlined_call_operand.vmem [shape: f32[256,1], index: 10, kind: input, shape index: {}]   ;;  %s13946_s11 = inlined_call_operand.hbm [shape: f32[8,320,128], index: 11, kind: output, shape index: {0}]   ;;  %s13947_s12 = inlined_call_operand.vmem [shape: s32[8,256,1], index: 12, kind: output, shape index: {1}]  }
   0x1   :  { %14188 = sst [smem:[#allocation105_spill]] %s13942_s7 }
   0x2   :  { %14189 = sst [smem:[#allocation106_spill]] %s13945_s10 }
   0x3   :  { %14190 = sst [smem:[#allocation107_spill]] %s13946_s11 }
   0x4   :  { %14191 = sst [smem:[#allocation108_spill]] %s13947_s12 }
   0x5   :  { %18 = vsyncpa [#allocation3], 0 }
   0x6   :  { %20 = vsyncpa [#allocation3 + $0x1], 0 }
   0x7   :  { %21 = vsyncpa [#allocation6], 0 }
   0x8   :  { %22 = vsyncpa [#allocation9], 0 }
   0x9   :  { %23 = vsyncpa [#allocation4], 0 }
   0xa   :  { %25 = vsyncpa [#allocation4 + $0x1], 0  ;;  %s9647_s21 = smov 0   ;;  %s9649_s22 = smov 0  }
   0xb   :  { %s9651_s23 = smov 0   ;;  %s9653_s24 = smov 0  }
   0xc LB: > { %14192 = sst [smem:[#allocation15_spill]] %s9555_s21  ;;  %s9668_s25 = sadd.s32 4294967295, %s9567_s24   ;;  %s9567_s24 = sphi %s9653_s24, %s14616_s24   ;;  %s9563_s23 = sphi %s9651_s23, %s14615_s23   ;;  %s9559_s22 = sphi %s9649_s22, %s14614_s22   ;;  %s9555_s21 = sphi %s9647_s21, %s14613_s21  }
   0xd   : > { %s6693_s26 = sadd.s32 4294967294, %s9567_s24   ;;  %p51_p0 = scmp.ne.s32.totalorder %s9559_s22, %s9555_s21 }
   0xe   : > { %p13950_p1 = scmp.eq.s32.totalorder %s9668_s25, 0  ;;  %p291_p3 = scmp.eq.s32.totalorder %s6693_s26, 1 }
   0xf   : > { %p6694_p5 = scmp.ge.s32.totalorder %s9567_s24, 1  ;;  %p324_p7 = scmp.lt.s32.totalorder %s9567_s24, 3 }
  0x10   : > { %p9677_p4 = por %p13950_p1, %p51_p0  ;;  %p9682_p6 = por %p291_p3, %p51_p0 }
  0x11   : > { %p9687_p8 = pnand %p6694_p5, %p324_p7  ;;  %s9569_s30 = smov [#allocation5]  }
  0x12   : > { %s14193_s27 = scalar_select %p9677_p4, 1, 0 }
  0x13   : > { %s14194_s28 = scalar_select %p9682_p6, 1, 0 }
  0x14   : > { %s14196_s29 = scalar_select %p9687_p8, 1, 0 }
  0x15   : > { %14195 = sst [smem:[#allocation16_spill]] %s14194_s28  ;;  %s342_s13 = sshll.u32 %s9569_s30, 4  ;;  %s9691_s13 = int_to_ptr.vmem [resolvable:$true] %s342_s13 }
  0x16   : > { %p8535_p9 = pneg %p9687_p8  ;;  %s9570_s15 = smov [#allocation7]  }
  0x17   : > { %s358_s16 = sshll.u32 %s9570_s15, 4  ;;  %s9571_s17 = smov [#allocation8]   ;;  %s9702_s16 = int_to_ptr.vmem [resolvable:$true] %s358_s16 }
  0x18   : > { %p9698_p11 = pnand %p8535_p9, %p13950_p1  ;;  %s9704_s18 = sshll.u32 %s9571_s17, 4  ;;  %s381_s18 = int_to_ptr.vmem [resolvable:$true] %s9704_s18 }
  0x19   : > { %s9379_s26 = scalar_lea.hbm %s13938_s3, 1024 }
  0x1a   : > { %p9380_p12 = scmp.ne.s32.totalorder %s13938_s3, %s9379_s26  ;;  %p9714_p13 = pneg %p9698_p11 }
  0x1b   : > { %p9386_p5 = scmp.lt.u32.totalorder %s9379_s26, %s13938_s3 }
  0x1c   : > { %p9382_p0 = pnand %p9714_p13, %p9380_p12 }
  0x1e   : > { %p9383_p3 = pneg %p9382_p0 }
  0x20   : > { %p9388_p7 = pnand %p9386_p5, %p9383_p3 }
  0x22   : > { %9391 = shalt.err (!%p9388_p7)
}
  0x23   : > { %s9392_s28 = scalar_lea.vmem %s9691_s13, 1024  ;;  %p9400_p2 = scmp.lt.s32.totalorder %s9691_s13, %s9691_s13 }
  0x24   : > { %p9393_p9 = scmp.ne.s32.totalorder %s9691_s13, %s9392_s28  ;;  %p9401_p6 = scmp.lt.s32.totalorder %s9392_s28, %s9392_s28 }
  0x26   : > { %p9395_p10 = pnand %p9393_p9, %p9714_p13  ;;  %p9402_p12 = por %p9401_p6, %p9400_p2 }
  0x28   : > { %p9396_p1 = pneg %p9395_p10 }
  0x2a   : > { %p9403_p0 = pnand %p9402_p12, %p9396_p1 }
  0x2c   : > { %9406 = shalt.err (!%p9403_p0)
}
  0x2d   : > { %s9572_s19 = smov 128   ;;  %s9573_s20 = smov 8  }
  0x2e   : > { %8538 = dma.hbm_to_vmem [thread:$0]  (!%p9698_p11), %s13938_s3, 1024, %s9691_s13, [#allocation6], %s9572_s19, %s9572_s19, %s9573_s20  }
  0x2f   : > { %s9407_s28 = scalar_lea.hbm %s13940_s5, 1024 }
  0x30   : > { %p9408_p1 = scmp.ne.s32.totalorder %s13940_s5, %s9407_s28  ;;  %p9414_p10 = scmp.lt.u32.totalorder %s9407_s28, %s13940_s5 }
  0x32   : > { %p9410_p2 = pnand %p9408_p1, %p9714_p13 }
  0x34   : > { %p9411_p6 = pneg %p9410_p2 }
  0x36   : > { %p9416_p3 = pnand %p9414_p10, %p9411_p6 }
  0x38   : > { %9419 = shalt.err (!%p9416_p3)
}
  0x39   : > { %s9420_s13 = scalar_lea.vmem %s9702_s16, 1024  ;;  %p9428_p12 = scmp.lt.s32.totalorder %s9702_s16, %s9702_s16 }
  0x3a   : > { %p9421_p5 = scmp.ne.s32.totalorder %s9702_s16, %s9420_s13  ;;  %p9429_p0 = scmp.lt.s32.totalorder %s9420_s13, %s9420_s13 }
  0x3c   : > { %p9423_p7 = pnand %p9421_p5, %p9714_p13  ;;  %p9430_p1 = por %p9429_p0, %p9428_p12 }
  0x3e   : > { %p9424_p9 = pneg %p9423_p7 }
  0x40   : > { %p9431_p2 = pnand %p9430_p1, %p9424_p9 }
  0x42   : > { %9434 = shalt.err (!%p9431_p2)
}
  0x43   : > { %8541 = dma.hbm_to_vmem [thread:$0]  (!%p9698_p11), %s13940_s5, 1024, %s9702_s16, [#allocation6], %s9572_s19, %s9572_s19, %s9573_s20  }
  0x44   : > { %s9435_s26 = scalar_lea.hbm %s13944_s9, 4096 }
  0x45   : > { %p9436_p6 = scmp.ne.s32.totalorder %s13944_s9, %s9435_s26  ;;  %p9442_p5 = scmp.lt.u32.totalorder %s9435_s26, %s13944_s9 }
  0x47   : > { %p9438_p10 = pnand %p9436_p6, %p9714_p13 }
  0x49   : > { %p9439_p3 = pneg %p9438_p10 }
  0x4b   : > { %p9444_p7 = pnand %p9442_p5, %p9439_p3 }
  0x4d   : > { %9447 = shalt.err (!%p9444_p7)
}
  0x4e   : > { %s9448_s13 = scalar_lea.vmem %s381_s18, 4096  ;;  %p9456_p1 = scmp.lt.s32.totalorder %s381_s18, %s381_s18 }
  0x4f   : > { %p9449_p9 = scmp.ne.s32.totalorder %s381_s18, %s9448_s13  ;;  %p9457_p2 = scmp.lt.s32.totalorder %s9448_s13, %s9448_s13 }
  0x51   : > { %p9451_p12 = pnand %p9449_p9, %p9714_p13  ;;  %p9458_p4 = por %p9457_p2, %p9456_p1 }
  0x53   : > { %p9452_p0 = pneg %p9451_p12 }
  0x55   : > { %p9459_p8 = pnand %p9458_p4, %p9452_p0 }
  0x57   : > { %9462 = shalt.err (!%p9459_p8)
}
  0x58   : > { %8544 = dma.hbm_to_vmem [thread:$0]  (!%p9698_p11), %s13944_s9, 4096, %s381_s18, [#allocation9], %s9572_s19, %s9572_s19, %s9573_s20  }
  0x59   : > { %s9787_s21 = sadd.s32 1, %s9567_s24   ;;  %s38_s10 = sadd.s32 1, %s9563_s23 }
  0x5a   : > { %s35_s14 = ssub.s32 %s9567_s24, %s9787_s21  ;;  %p45_p8 = scmp.ne.s32.totalorder %s9563_s23, %s9559_s22 }
  0x5b   : > { %p36_p4 = scmp.eq.s32.totalorder %s35_s14, 0  ;;  %p46_p13 = scmp.eq.s32.totalorder %s9567_s24, 0 }
  0x5c   : > { %p8556_p6 = scmp.lt.s32.totalorder %s9567_s24, 2  ;;  %p14199_p3 = scmp.eq.s32.totalorder %s9668_s25, 1 }
  0x5d   : > { %s9797_s11 = scalar_select %p36_p4, %s9563_s23, %s38_s10  }
  0x5e   : > { %p47_p10 = por %p46_p13, %p45_p8  ;;  %p9801_p5 = por %p14199_p3, %p45_p8 }
  0x5f   : > { %s397_s26 = sand.u32 1, %s9563_s23   ;;  %s7059_s30 = sshll.u32 %s9567_s24, 7 }
  0x60   : > { %s6699_s18 = sshll.u32 %s397_s26, 3  ;;  %s9810_s15 = scalar_lea.hbm %s13935_s0, %s7059_s30 }
  0x61   : > { %s401_s17 = scalar_lea.vmem [#allocation2], %s6699_s18  ;;  %p9812_p11 = pnand %p8556_p6, %p47_p10 }
  0x62   : > { %s408_s28 = sshll.u32 %s401_s17, 4  ;;  %s9818_s16 = scalar_lea.sflag [#allocation3], %s397_s26  ;;  %s9816_s28 = int_to_ptr.vmem [resolvable:$true] %s408_s28 }
  0x63   : > { %s9463_s7 = scalar_lea.hbm %s9810_s15, 128  ;;  %p9465_p9 = pneg %p9812_p11 }
  0x64   : > { %p9464_p7 = scmp.ne.s32.totalorder %s9810_s15, %s9463_s7  ;;  %s9468_s30 = scalar_lea.hbm %s13935_s0, 256 }
  0x65   : > { %p9469_p1 = scmp.lt.u32.totalorder %s9810_s15, %s13935_s0  ;;  %p9470_p2 = scmp.lt.u32.totalorder %s9468_s30, %s9463_s7 }
  0x66   : > { %p9466_p12 = pnand %p9465_p9, %p9464_p7  ;;  %p9472_p8 = scmp.lt.u32.totalorder %s9463_s7, %s9810_s15 }
  0x67   : > { %p9471_p4 = por %p9470_p2, %p9469_p1 }
  0x68   : > { %p9467_p0 = pneg %p9466_p12 }
  0x69   : > { %p9473_p13 = por %p9472_p8, %p9471_p4 }
  0x6b   : > { %p9474_p6 = pnand %p9473_p13, %p9467_p0 }
  0x6d   : > { %9477 = shalt.err (!%p9474_p6)
}
  0x6e   : > { %s9478_s26 = scalar_lea.vmem %s9816_s28, 128  ;;  %s9574_s20 = smov [#allocation2]  }
  0x6f   : > { %p9479_p10 = scmp.ne.s32.totalorder %s9816_s28, %s9478_s26  ;;  %s9483_s17 = sshll.u32 %s9574_s20, 4  ;;  %s9484_s17 = int_to_ptr.vmem [resolvable:$false] %s9483_s17 }
  0x70   : > { %s9485_s14 = scalar_lea.vmem %s9484_s17, 256  ;;  %p9486_p12 = scmp.lt.s32.totalorder %s9816_s28, %s9484_s17 }
  0x71   : > { %p9481_p3 = pnand %p9479_p10, %p9465_p9  ;;  %p9487_p1 = scmp.lt.s32.totalorder %s9485_s14, %s9478_s26 }
  0x73   : > { %p9482_p7 = pneg %p9481_p3  ;;  %p9488_p2 = por %p9487_p1, %p9486_p12 }
  0x75   : > { %p9489_p4 = pnand %p9488_p2, %p9482_p7 }
  0x77   : > { %9492 = shalt.err (!%p9489_p4)
}
  0x78   : > { %s9575_s7 = smov 32   ;;  %s9576_s10 = smov 2  }
  0x79   : > { %8548 = dma.hbm_to_vmem [thread:$0]  (!%p9812_p11), %s9810_s15, 128, %s9816_s28, %s9818_s16, %s9575_s7, %s9575_s7, %s9576_s10  }
  0x7a   : > { %p14202_p9 = scmp.ne.s32.totalorder %s14196_s29, 0 }
  0x7c   : > { %420 = sbr.rel (%p14202_p9) target bundleno = 3646 (0xe3e), region = 64 }
  0x83   : > { %s9849_s30 = sand.u32 1, %s9559_s22   ;;  %p14203_p0 = scmp.ne.s32.totalorder %s14193_s27, 0 }
  0x84   : > { %s6703_s18 = sshll.u32 %s9849_s30, 3  ;;  %s423_s19 = scalar_lea.sflag [#allocation3], %s9849_s30 }
  0x85   : > { %s9853_s26 = scalar_lea.vmem [#allocation2], %s6703_s18 }
  0x86   : > { %9538 = dma.done.wait (%p14203_p0), %s423_s19, 128  }
  0x87   : > { %9540 = vsyncadd (%p14203_p0), %s423_s19, 4294967168  ;;  %p14204_p11 = scmp.eq.s32.totalorder %s9668_s25, 0 }
  0x89   : > { %9542 = dma.done.wait (%p14204_p11), [#allocation6], 2048   ;;  %p14205_p8 = pmov %p14204_p11 }
  0x8b   : > { %9544 = vsyncadd (%p14205_p8), [#allocation6], 4294965248  ;;  %p14206_p13 = pmov %p14205_p8 }
  0x8c   : > { %p14207_p6 = pmov %p14205_p8 }
  0x8d   : > { %9546 = dma.done.wait (%p14206_p13), [#allocation9], 4096  }
  0x8e   : > { %9548 = vsyncadd (%p14207_p6), [#allocation9], 4294963200  ;;  %v9577_v0 = vmov 1   ;;  %v500_v1 = vld [vmem:[%s13936_s1 + $0x10] sm:$0xff]  ;;  %v498_v2 = vld [vmem:[%s13936_s1] sm:$0xff]  ;;  %v9578_v7 = vmov 0   ;;  %v13956_v57 = vlaneseq }
  0x8f   : > { %8606 = vset.pattern.permute.xlu0 %v9577_v0  ;;  %8604 = vset.pattern.permute.xlu1 %v9577_v0  ;;  %v502_v3 = vld [vmem:[%s13936_s1 + $0x20] sm:$0xff]  ;;  %v499_v4 = vld [vmem:[%s13936_s1 + $0x8] sm:$0xff]  ;;  %v504_v5 = vld [vmem:[%s13936_s1 + $0x30] sm:$0xff]  ;;  %vm844_vm0 = vcmask 523264   ;;  %s14208_s20 = sld [smem:[#allocation106_spill]]  ;;  %s8517_s14 = smul.u32 1280, %s9849_s30 }
  0x90   : > { %705 = vperm.xlu0 %8606, %v500_v1   ;;  %697 = vperm.xlu1 %8604, %v498_v2   ;;  %v501_v6 = vld [vmem:[%s13936_s1 + $0x18] sm:$0xff]  ;;  %v506_v8 = vld [vmem:[%s13937_s2] sm:$0xff]  ;;  %v507_v9 = vld [vmem:[%s13937_s2 + $0x8] sm:$0xff]  ;;  %v685_v60 = vshrl.u32 %v13956_v57, 7  ;;  %s14221_s18 = sld [smem:[#allocation105_spill]]  ;;  %s6707_s17 = sshll.u32 %s9668_s25, 2 }
  0x91   : > { %v503_v10 = vld [vmem:[%s13936_s1 + $0x28] sm:$0xff]  ;;  %v509_v11 = vld [vmem:[%s13937_s2 + $0x18] sm:$0xff]  ;;  %v522_v13 = vld [vmem:[%s13939_s4] sm:$0xff]  ;;  %s10360_s7 = scalar_lea.vmem [#allocation10], %s8517_s14  ;;  %p488_p10 = scmp.lt.s32.totalorder %s6707_s17, 7 }
  0x92   : > { %v511_v12 = vld [vmem:[%s13937_s2 + $0x28] sm:$0xff]  ;;  %v508_v14 = vld [vmem:[%s13937_s2 + $0x10] sm:$0xff]  ;;  %v526_v16 = vld [vmem:[%s13939_s4 + $0x20] sm:$0xff]  ;;  %s14318_s19 = sld [smem:[#allocation108_spill]]  ;;  %s8518_s16 = smul.u32 20480, %s9668_s25 }
  0x93   : > { %v524_v15 = vld [vmem:[%s13939_s4 + $0x10] sm:$0xff]  ;;  %v505_v17 = vld [vmem:[%s13936_s1 + $0x38] sm:$0xff]  ;;  %v538_v19 = vld [vmem:[%s13941_s6] sm:$0xff]  ;;  %s14618_s17 = smov (!%p488_p10, %s6707_s17), 7  ;;  %s6541_s15 = scalar_lea.sflag [#allocation4], %s9849_s30 }
  0x94   : > { %713 = vperm.xlu0 %8606, %v502_v3   ;;  %701 = vperm.xlu1 %8604, %v499_v4   ;;  %v528_v18 = vld [vmem:[%s13939_s4 + $0x30] sm:$0xff]  ;;  %v510_v20 = vld [vmem:[%s13937_s2 + $0x20] sm:$0xff]  ;;  %v513_v24 = vld [vmem:[%s13937_s2 + $0x38] sm:$0xff]  ;;  %s7060_s14 = sshll.u32 %s14618_s17, 8  ;;  %s6561_s17 = sshll.u32 %s10360_s7, 4  ;;  %s13795_s17 = int_to_ptr.vmem [resolvable:$true] %s6561_s17 }
  0x95   : > { %v540_v21 = vld [vmem:[%s13941_s6 + $0x10] sm:$0xff]  ;;  %v542_v23 = vld [vmem:[%s13941_s6 + $0x20] sm:$0xff]  ;;  %v523_v26 = vld [vmem:[%s13939_s4 + $0x8] sm:$0xff]  ;;  %s9493_s27 = scalar_lea.vmem %s13795_s17, 20480  ;;  %s9579_s28 = smov [#allocation10]  }
  0x96   : > { %v512_v22 = vld [vmem:[%s13937_s2 + $0x30] sm:$0xff]  ;;  %v562_v27 = vld [vmem:[%s13943_s8] sm:$0xff]  ;;  %v525_v28 = vld [vmem:[%s13939_s4 + $0x18] sm:$0xff]  ;;  %p9494_p3 = scmp.ne.s32.totalorder %s13795_s17, %s9493_s27  ;;  %s9497_s13 = sshll.u32 %s9579_s28, 4  ;;  %s9498_s13 = int_to_ptr.vmem [resolvable:$false] %s9497_s13 }
  0x97   : > { %v544_v25 = vld [vmem:[%s13941_s6 + $0x30] sm:$0xff]  ;;  %v527_v30 = vld [vmem:[%s13939_s4 + $0x28] sm:$0xff]  ;;  %v566_v31 = vld [vmem:[%s13943_s8 + $0x20] sm:$0xff]  ;;  %s9499_s25 = scalar_lea.vmem %s9498_s13, 40960  ;;  %p9500_p1 = scmp.lt.s32.totalorder %s13795_s17, %s9498_s13 }
  0x98   : > { %721 = vperm.xlu0 %8606, %v504_v5   ;;  %8605 = vset.pattern.permute.xlu1 %v9578_v7  ;;  %v564_v29 = vld [vmem:[%s13943_s8 + $0x10] sm:$0xff]  ;;  %v529_v32 = vld [vmem:[%s13939_s4 + $0x38] sm:$0xff]  ;;  %v539_v34 = vld [vmem:[%s13941_s6 + $0x8] sm:$0xff]  ;;  %s11399_s29 = scalar_lea.vmem %s14318_s19, %s7060_s14  ;;  %p9495_p7 = pnand %p9494_p3, %p9801_p5 }
  0x99   : > { %661 = vperm.xlu1 %8605, %v501_v6   ;;  %v568_v33 = vld [vmem:[%s13943_s8 + $0x30] sm:$0xff]  ;;  %v570_v36 = vld [vmem:[%s13943_s8 + $0x40] sm:$0xff]  ;;  %v541_v37 = vld [vmem:[%s13941_s6 + $0x18] sm:$0xff]  ;;  %p9501_p2 = scmp.lt.s32.totalorder %s9499_s25, %s9493_s27 }
  0x9a   : > { %v514_v35 = vld [vmem:[#allocation5] sm:$0xff]  ;;  %v543_v39 = vld [vmem:[%s13941_s6 + $0x28] sm:$0xff]  ;;  %v574_v40 = vld [vmem:[%s13943_s8 + $0x60] sm:$0xff]  ;;  %p9496_p12 = pneg %p9495_p7 }
  0x9b   : > { %7493 = vmatprep.mubr.msk.f32.mxu0 %vm844_vm0, %v514_v35  ;;  %v572_v38 = vld [vmem:[%s13943_s8 + $0x50] sm:$0xff]  ;;  %v545_v41 = vld [vmem:[%s13941_s6 + $0x38] sm:$0xff]  ;;  %v563_v43 = vld [vmem:[%s13943_s8 + $0x8] sm:$0xff]  ;;  %p9502_p4 = por %p9501_p2, %p9500_p1 }
  0x9c   : > { %8611 = vset.pattern.permute.xlu0 %v9578_v7  ;;  %v576_v42 = vld [vmem:[%s13943_s8 + $0x70] sm:$0xff]  ;;  %v610_v44 = vld [vmem:[%s14208_s20] sm:$0xff]  ;;  %v565_v45 = vld [vmem:[%s13943_s8 + $0x18] sm:$0xff] }
  0x9d   : > { %646 = vperm.xlu0 %8611, %v498_v2   ;;  %8607 = vset.pattern.permute.xlu1 %v9577_v0  ;;  %v612_v46 = vld [vmem:[%s14208_s20 + $0x10] sm:$0xff]  ;;  %v567_v47 = vld [vmem:[%s13943_s8 + $0x28] sm:$0xff]  ;;  %v614_v48 = vld [vmem:[%s14208_s20 + $0x20] sm:$0xff]  ;;  %p9503_p9 = pnand %p9502_p4, %p9496_p12 }
  0x9e   : > { %709 = vperm.xlu1 %8607, %v501_v6   ;;  %v569_v49 = vld [vmem:[%s13943_s8 + $0x38] sm:$0xff]  ;;  %v616_v50 = vld [vmem:[%s14208_s20 + $0x30] sm:$0xff]  ;;  %v571_v51 = vld [vmem:[%s13943_s8 + $0x48] sm:$0xff]  ;;  %v686_v6 = vsub.s32 0, %v685_v60 }
  0x9f   : > { %v618_v52 = vld [vmem:[%s14208_s20 + $0x40] sm:$0xff]  ;;  %v573_v53 = vld [vmem:[%s13943_s8 + $0x58] sm:$0xff]  ;;  %v620_v54 = vld [vmem:[%s14208_s20 + $0x50] sm:$0xff] }
  0xa0   : > { %v575_v55 = vld [vmem:[%s13943_s8 + $0x68] sm:$0xff]  ;;  %v622_v56 = vld [vmem:[%s14208_s20 + $0x60] sm:$0xff]  ;;  %v577_v58 = vld [vmem:[%s13943_s8 + $0x78] sm:$0xff] }
  0xa1   : > { %651 = vperm.xlu0 %8611, %v499_v4   ;;  %v624_v59 = vld [vmem:[%s14208_s20 + $0x70] sm:$0xff]  ;;  %v611_v63 = vld [vmem:[%s14208_s20 + $0x8] sm:$0xff] }
  0xa2   : > { %8608 = vset.pattern.permute.xlu1 %v9578_v7  ;;  %v495_v4 = vld [vmem:[%s9853_s26 + $0x2] sm:$0x3] }
  0xa3   : > { %750 = vperm.xlu1 %8608, %v506_v8   ;;  %v497_v8 = vld [vmem:[%s9853_s26 + $0x6] sm:$0x3] }
  0xa5   : > { %656 = vperm.xlu0 %8611, %v500_v1   ;;  %v730_v1 = vsub.s32 1, %v685_v60 }
  0xa7   : > { %666 = vperm.xlu1 %8608, %v502_v3  }
  0xa9   : > { %755 = vperm.xlu0 %8611, %v507_v9   ;;  %v628_v9 = vld [vmem:[%s14208_s20 + $0x90] sm:$0xff] }
  0xab   : > { %671 = vperm.xlu1 %8608, %v503_v10  }
  0xad   : > { %765 = vperm.xlu0 %8611, %v509_v11  }
  0xaf   : > { %8609 = vset.pattern.permute.xlu1 %v9577_v0 }
  0xb0   : > { %717 = vperm.xlu1 %8609, %v503_v10   ;;  %v10058_v10 = vrot.slane %v495_v4, %v730_v1 }
  0xb1   : > { %775 = vperm.xlu0 %8611, %v511_v12   ;;  %v494_v12 = vld [vmem:[%s9853_s26] sm:$0x3] }
  0xb4   : > { %8610 = vset.pattern.permute.xlu1 %v9578_v7 }
  0xb5   : > { %806 = vperm.xlu0 %8611, %v522_v13   ;;  %760 = vperm.xlu1 %8610, %v508_v14   ;;  %v10065_v14 = vrot.slane %v497_v8, %v730_v1 }
  0xb9   : > { %816 = vperm.xlu0 %8611, %v524_v15   ;;  %676 = vperm.xlu1 %8610, %v504_v5   ;;  %v613_v5 = vld [vmem:[%s14208_s20 + $0x18] sm:$0xff] }
  0xbd   : > { %826 = vperm.xlu0 %8611, %v526_v16   ;;  %681 = vperm.xlu1 %8610, %v505_v17   ;;  %v10069_v16 = vrot.slane %v495_v4, %v686_v6  ;;  %v621_v4 = vld [vmem:[%s14208_s20 + $0x58] sm:$0xff] }
  0xc1   : > { %836 = vperm.xlu0 %8611, %v528_v18   ;;  %8612 = vset.pattern.permute.xlu1 %v9577_v0  ;;  %v626_v0 = vld [vmem:[%s14208_s20 + $0x80] sm:$0xff]  ;;  %v615_v18 = vld [vmem:[%s14208_s20 + $0x28] sm:$0xff] }
  0xc2   : > { %725 = vperm.xlu1 %8612, %v505_v17  }
  0xc5   : > { %992 = vperm.xlu0 %8611, %v538_v19   ;;  %v10076_v19 = vrot.slane %v497_v8, %v686_v6 }
  0xc6   : > { %8613 = vset.pattern.permute.xlu1 %v9578_v7  ;;  %v496_v7 = vld [vmem:[%s9853_s26 + $0x4] sm:$0x3]  ;;  %s14607_s26 = sld [smem:[#allocation107_spill]] }
  0xc7   : > { %770 = vperm.xlu1 %8613, %v510_v20   ;;  %v10063_v13 = vrot.slane %v496_v7, %v730_v1  ;;  %v10071_v17 = vrot.slane %v496_v7, %v686_v6  ;;  %v630_v20 = vld [vmem:[%s14208_s20 + $0xa0] sm:$0xff] }
  0xc9   : > { %1002 = vperm.xlu0 %8611, %v540_v21   ;;  %v10081_v21 = vrot.slane %v494_v12, %v730_v1 }
  0xcb   : > { %780 = vperm.xlu1 %8613, %v512_v22  }
  0xcc   : > { %s13793_s19 = scalar_lea.hbm %s14607_s26, %s8518_s16 }
  0xcd   : > { %1012 = vperm.xlu0 %8611, %v542_v23   ;;  %v10084_v23 = vrot.slane %v494_v12, %v686_v6 }
  0xcf   : > { %785 = vperm.xlu1 %8613, %v513_v24  }
  0xd1   : > { %1022 = vperm.xlu0 %8611, %v544_v25  }
  0xd3   : > { %811 = vperm.xlu1 %8613, %v523_v26  }
  0xd5   : > { %1169 = vperm.xlu0 %8611, %v562_v27  }
  0xd7   : > { %821 = vperm.xlu1 %8613, %v525_v28  }
  0xd9   : > { %1179 = vperm.xlu0 %8611, %v564_v29   ;;  %v617_v29 = vld [vmem:[%s14208_s20 + $0x38] sm:$0xff] }
  0xdb   : > { %831 = vperm.xlu1 %8613, %v527_v30  }
  0xdd   : > { %1189 = vperm.xlu0 %8611, %v566_v31  }
  0xdf   : > { %841 = vperm.xlu1 %8613, %v529_v32  }
  0xe1   : > { %1199 = vperm.xlu0 %8611, %v568_v33  }
  0xe3   : > { %997 = vperm.xlu1 %8613, %v539_v34  }
  0xe5   : > { %1209 = vperm.xlu0 %8611, %v570_v36  }
  0xe7   : > { %1007 = vperm.xlu1 %8613, %v541_v37  }
  0xe9   : > { %1219 = vperm.xlu0 %8611, %v572_v38  }
  0xeb   : > { %1017 = vperm.xlu1 %8613, %v543_v39   ;;  %v632_v39 = vld [vmem:[%s14208_s20 + $0xb0] sm:$0xff] }
  0xed   : > { %1229 = vperm.xlu0 %8611, %v574_v40  }
  0xef   : > { %1027 = vperm.xlu1 %8613, %v545_v41  }
  0xf1   : > { %1239 = vperm.xlu0 %8611, %v576_v42  }
  0xf3   : > { %1174 = vperm.xlu1 %8613, %v563_v43  }
  0xf5   : > { %1458 = vperm.xlu0 %8611, %v610_v44  }
  0xf7   : > { %1184 = vperm.xlu1 %8613, %v565_v45   ;;  %v619_v45 = vld [vmem:[%s14208_s20 + $0x48] sm:$0xff] }
  0xf9   : > { %1468 = vperm.xlu0 %8611, %v612_v46  }
  0xfb   : > { %1194 = vperm.xlu1 %8613, %v567_v47  }
  0xfd   : > { %1478 = vperm.xlu0 %8611, %v614_v48  }
  0xff   : > { %1204 = vperm.xlu1 %8613, %v569_v49  }
 0x101   : > { %1488 = vperm.xlu0 %8611, %v616_v50  }
 0x103   : > { %1214 = vperm.xlu1 %8613, %v571_v51  }
 0x105   : > { %1498 = vperm.xlu0 %8611, %v618_v52  }
 0x107   : > { %1224 = vperm.xlu1 %8613, %v573_v53  }
 0x109   : > { %1508 = vperm.xlu0 %8611, %v620_v54  }
 0x10b   : > { %1234 = vperm.xlu1 %8613, %v575_v55  }
 0x10d   : > { %1518 = vperm.xlu0 %8611, %v622_v56  }
 0x10f   : > { %1244 = vperm.xlu1 %8613, %v577_v58   ;;  %v698_v61 = vpop.permute.xlu1 %697  ;;  %v10037_v62 = vpop.permute.xlu0 %705  ;;  %v634_v58 = vld [vmem:[%s14208_s20 + $0xc0] sm:$0xff] }
 0x110   : > { %v2530_v22 = vmul.f32 %v10058_v10, %v698_v61  ;;  %v3872_v24 = vmul.f32 %v10063_v13, %v698_v61  ;;  %v5214_v25 = vmul.f32 %v10065_v14, %v698_v61  ;;  %v732_v40 = vmul.f32 %v10081_v21, %v698_v61 }
 0x111   : > { %1528 = vperm.xlu0 %8611, %v624_v59   ;;  %v2532_v59 = vmul.f32 %v10058_v10, %v10037_v62  ;;  %v3874_v60 = vmul.f32 %v10063_v13, %v10037_v62  ;;  %v5216_v8 = vmul.f32 %v10065_v14, %v10037_v62 }
 0x113   : > { %1463 = vperm.xlu1 %8613, %v611_v63   ;;  %v10045_v2 = vpop.permute.xlu1 %701  ;;  %v10047_v3 = vpop.permute.xlu0 %713 }
 0x114   : > { %v2531_v53 = vmul.f32 %v10058_v10, %v10045_v2  ;;  %v3873_v54 = vmul.f32 %v10063_v13, %v10045_v2  ;;  %v5215_v55 = vmul.f32 %v10065_v14, %v10045_v2 }
 0x115   : > { %1538 = vperm.xlu0 %8611, %v626_v0  }
 0x117   : > { %1473 = vperm.xlu1 %8613, %v613_v5   ;;  %v10060_v11 = vpop.permute.xlu0 %721 }
 0x118   : > { %v10067_v15 = vpop.permute.xlu1 %661 }
 0x119   : > { %1548 = vperm.xlu0 %8611, %v628_v9   ;;  %v2521_v26 = vmul.f32 %v10069_v16, %v10067_v15  ;;  %v3863_v27 = vmul.f32 %v10071_v17, %v10067_v15  ;;  %v5205_v35 = vmul.f32 %v10076_v19, %v10067_v15  ;;  %v733_v9 = vmul.f32 %v10081_v21, %v10045_v2  ;;  %v636_v2 = vld [vmem:[%s14208_s20 + $0xd0] sm:$0xff] }
 0x11b   : > { %1483 = vperm.xlu1 %8613, %v615_v18  }
 0x11c   : > { %v647_v28 = vpop.permute.xlu0 %646 }
 0x11d   : > { %v688_v30 = vmul.f32 %v10084_v23, %v647_v28  ;;  %v2518_v31 = vmul.f32 %v10069_v16, %v647_v28  ;;  %v3860_v32 = vmul.f32 %v10071_v17, %v647_v28  ;;  %v5202_v33 = vmul.f32 %v10076_v19, %v647_v28  ;;  %1558 = vperm.xlu0 %8611, %v630_v20   ;;  %v10099_v34 = vpop.permute.xlu1 %709 }
 0x11e   : > { %v2533_v36 = vmul.f32 %v10058_v10, %v10099_v34  ;;  %v3875_v37 = vmul.f32 %v10063_v13, %v10099_v34  ;;  %v5217_v38 = vmul.f32 %v10065_v14, %v10099_v34  ;;  %v2534_v20 = vmul.f32 %v10058_v10, %v10047_v3 }
 0x11f   : > { %1493 = vperm.xlu1 %8613, %v617_v29   ;;  %v2538_v41 = vadd.f32 %v2530_v22, %v2518_v31  ;;  %v3880_v42 = vadd.f32 %v3872_v24, %v3860_v32  ;;  %v5222_v43 = vadd.f32 %v5214_v25, %v5202_v33  ;;  %v740_v52 = vadd.f32 %v732_v40, %v688_v30  ;;  %v623_v33 = vld [vmem:[%s14208_s20 + $0x68] sm:$0xff] }
 0x120   : > { %v652_v44 = vpop.permute.xlu0 %651  ;;  %v10116_v46 = vadd.f32 %v2533_v36, %v2521_v26  ;;  %v10118_v47 = vadd.f32 %v3875_v37, %v3863_v27  ;;  %v10120_v48 = vadd.f32 %v5217_v38, %v5205_v35  ;;  %v3876_v22 = vmul.f32 %v10063_v13, %v10047_v3 }
 0x121   : > { %v2519_v49 = vmul.f32 %v10069_v16, %v652_v44  ;;  %v3861_v50 = vmul.f32 %v10071_v17, %v652_v44  ;;  %v5203_v51 = vmul.f32 %v10076_v19, %v652_v44  ;;  %1568 = vperm.xlu0 %8611, %v632_v39   ;;  %v689_v61 = vmul.f32 %v10084_v23, %v652_v44 }
 0x122   : > { %v751_v56 = vpop.permute.xlu1 %750  ;;  %v5218_v27 = vmul.f32 %v10065_v14, %v10047_v3 }
 0x123   : > { %v788_v63 = vadd.f32 %v751_v56, %v740_v52  ;;  %1503 = vperm.xlu1 %8613, %v619_v45   ;;  %v2546_v0 = vadd.f32 %v2538_v41, %v751_v56  ;;  %v2539_v5 = vadd.f32 %v2531_v53, %v2519_v49  ;;  %v3881_v6 = vadd.f32 %v3873_v54, %v3861_v50  ;;  %v638_v41 = vld [vmem:[%s14208_s20 + $0xe0] sm:$0xff] }
 0x124   : > { %v657_v1 = vpop.permute.xlu0 %656  ;;  %v5223_v7 = vadd.f32 %v5215_v55, %v5203_v51  ;;  %v3888_v12 = vadd.f32 %v3880_v42, %v751_v56  ;;  %v741_v29 = vadd.f32 %v733_v9, %v689_v61  ;;  %v735_v49 = vmul.f32 %v10081_v21, %v10099_v34  ;;  %v625_v51 = vld [vmem:[%s14208_s20 + $0x78] sm:$0xff]  ;;  %v640_v34 = vld [vmem:[%s14208_s20 + $0xf0] sm:$0xff] }
 0x125   : > { %v2520_v18 = vmul.f32 %v10069_v16, %v657_v1  ;;  %1578 = vperm.xlu0 %8611, %v634_v58   ;;  %v3862_v24 = vmul.f32 %v10071_v17, %v657_v1  ;;  %v5204_v25 = vmul.f32 %v10076_v19, %v657_v1  ;;  %8614 = vtanh.f32 %v788_v63 }
 0x126   : > { %v10153_v26 = vpop.permute.xlu1 %666  ;;  %8616 = vtanh.f32 %v2546_v0  ;;  %v5230_v50 = vadd.f32 %v5222_v43, %v751_v56  ;;  %v691_v54 = vmul.f32 %v10084_v23, %v10067_v15  ;;  %v734_v43 = vmul.f32 %v10081_v21, %v10037_v62  ;;  %v627_v62 = vld [vmem:[%s14208_s20 + $0x88] sm:$0xff] }
 0x127   : > { %v2522_v28 = vmul.f32 %v10069_v16, %v10153_v26  ;;  %1513 = vperm.xlu1 %8613, %v621_v4   ;;  %v3864_v30 = vmul.f32 %v10071_v17, %v10153_v26  ;;  %v5206_v31 = vmul.f32 %v10076_v19, %v10153_v26  ;;  %v10169_v35 = vadd.f32 %v2532_v59, %v2520_v18 }
 0x128   : > { %v756_v32 = vpop.permute.xlu0 %755  ;;  %8618 = vtanh.f32 %v3888_v12  ;;  %v3882_v42 = vadd.f32 %v3874_v60, %v3862_v24  ;;  %v10176_v44 = vadd.f32 %v5216_v8, %v5204_v25  ;;  %v690_v55 = vmul.f32 %v10084_v23, %v657_v1  ;;  %v629_v25 = vld [vmem:[%s14208_s20 + $0x98] sm:$0xff] }
 0x129   : > { %v789_v36 = vadd.f32 %v756_v32, %v741_v29  ;;  %v2547_v37 = vadd.f32 %v2539_v5, %v756_v32  ;;  %v3889_v38 = vadd.f32 %v3881_v6, %v756_v32  ;;  %1588 = vperm.xlu0 %8611, %v636_v2   ;;  %v5231_v39 = vadd.f32 %v5223_v7, %v756_v32 }
 0x12a   : > { %v10171_v40 = vpop.permute.xlu1 %671  ;;  %v10178_v45 = vadd.f32 %v2534_v20, %v2522_v28  ;;  %v10185_v52 = vadd.f32 %v3876_v22, %v3864_v30  ;;  %v10187_v53 = vadd.f32 %v5218_v27, %v5206_v31  ;;  %v743_v58 = vadd.f32 %v735_v49, %v691_v54 }
 0x12b   : > { %8620 = vtanh.f32 %v789_v36  ;;  %1523 = vperm.xlu1 %8613, %v623_v33   ;;  %v2523_v15 = vmul.f32 %v10069_v16, %v10171_v40  ;;  %v3865_v60 = vmul.f32 %v10071_v17, %v10171_v40  ;;  %v5207_v1 = vmul.f32 %v10076_v19, %v10171_v40 }
 0x12c   : > { %8622 = vtanh.f32 %v2547_v37  ;;  %v766_v56 = vpop.permute.xlu0 %765  ;;  %v742_v24 = vadd.f32 %v734_v43, %v690_v55  ;;  %v2536_v29 = vmul.f32 %v10058_v10, %v10060_v11  ;;  %v693_v43 = vmul.f32 %v10084_v23, %v10171_v40 }
 0x12d   : > { %8624 = vtanh.f32 %v3889_v38  ;;  %1598 = vperm.xlu0 %8611, %v638_v41   ;;  %v791_v6 = vadd.f32 %v766_v56, %v743_v58  ;;  %v2549_v12 = vadd.f32 %v10116_v46, %v766_v56  ;;  %v3891_v20 = vadd.f32 %v10118_v47, %v766_v56  ;;  %v633_v58 = vld [vmem:[%s14208_s20 + $0xb8] sm:$0xff] }
 0x12e   : > { %8626 = vtanh.f32 %v5231_v39  ;;  %v5233_v27 = vadd.f32 %v10120_v48, %v766_v56  ;;  %v3878_v47 = vmul.f32 %v10063_v13, %v10060_v11  ;;  %v631_v39 = vld [vmem:[%s14208_s20 + $0xa8] sm:$0xff]  ;;  %v736_v40 = vmul.f32 %v10081_v21, %v10047_v3 }
 0x12f   : > { %8628 = vtanh.f32 %v5230_v50  ;;  %1533 = vperm.xlu1 %8613, %v625_v51   ;;  %v718_v59 = vpop.permute.xlu1 %717  ;;  %v8615_v0 = vpop.eup %8614 }
 0x130   : > { %v2535_v61 = vmul.f32 %v10058_v10, %v718_v59  ;;  %v3877_v63 = vmul.f32 %v10063_v13, %v718_v59  ;;  %v5219_v4 = vmul.f32 %v10065_v14, %v718_v59  ;;  %v8617_v5 = vpop.eup %8616  ;;  %8630 = vtanh.f32 %v791_v6 }
 0x131   : > { %1608 = vperm.xlu0 %8611, %v640_v34   ;;  %8632 = vtanh.f32 %v2549_v12  ;;  %v737_v48 = vmul.f32 %v10081_v21, %v718_v59 }
 0x132   : > { %v2543_v7 = vadd.f32 %v2535_v61, %v2523_v15  ;;  %v10209_v8 = vadd.f32 %v3877_v63, %v3865_v60  ;;  %v8619_v9 = vpop.eup %8618  ;;  %v10212_v18 = vadd.f32 %v5219_v4, %v5207_v1  ;;  %8634 = vtanh.f32 %v3891_v20  ;;  %v776_v63 = vpop.permute.xlu0 %775 }
 0x133   : > { %1543 = vperm.xlu1 %8613, %v627_v62   ;;  %8636 = vtanh.f32 %v5233_v27  ;;  %v745_v15 = vadd.f32 %v737_v48, %v693_v43  ;;  %v692_v61 = vmul.f32 %v10084_v23, %v10153_v26  ;;  %v635_v62 = vld [vmem:[%s14208_s20 + $0xc8] sm:$0xff] }
 0x134   : > { %v761_v22 = vpop.permute.xlu1 %760  ;;  %v2551_v4 = vadd.f32 %v2543_v7, %v776_v63  ;;  %v5235_v7 = vadd.f32 %v10212_v18, %v776_v63 }
 0x135   : > { %v8621_v2 = vpop.eup %8620  ;;  %v790_v46 = vadd.f32 %v761_v22, %v742_v24  ;;  %v2548_v32 = vadd.f32 %v10169_v35, %v761_v22  ;;  %v3890_v37 = vadd.f32 %v3882_v42, %v761_v22  ;;  %v5232_v35 = vadd.f32 %v10176_v44, %v761_v22 }
 0x136   : > { %v8623_v28 = vpop.eup %8622  ;;  %v8181_v30 = vpack.c.bf16 %v8621_v2, %v8615_v0  ;;  %v5220_v42 = vmul.f32 %v10065_v14, %v10060_v11  ;;  %v793_v1 = vadd.f32 %v776_v63, %v745_v15 }
 0x137   : > { %v8625_v31 = vpop.eup %8624  ;;  %1553 = vperm.xlu1 %8613, %v629_v25   ;;  %v10224_v33 = vpack.c.bf16 %v8623_v28, %v8617_v5  ;;  %8638 = vtanh.f32 %v790_v46  ;;  %v3893_v25 = vadd.f32 %v10209_v8, %v776_v63  ;;  %v738_v8 = vmul.f32 %v10081_v21, %v10060_v11 }
 0x138   : > { %v8627_v36 = vpop.eup %8626  ;;  %v677_v38 = vpop.permute.xlu1 %676  ;;  %8182 = vmatprep.subr.bf16.mxu0 %v8181_v30  ;;  %v10230_v41 = vpack.c.bf16 %v8625_v31, %v8619_v9  ;;  %8640 = vtanh.f32 %v2548_v32 }
 0x139   : > { %v8629_v49 = vpop.eup %8628  ;;  %v2524_v50 = vmul.f32 %v10069_v16, %v677_v38  ;;  %v3866_v51 = vmul.f32 %v10071_v17, %v677_v38  ;;  %8184 = vmatpush3.bf16.msra.mxu0 %v8181_v30  ;;  %v5208_v54 = vmul.f32 %v10076_v19, %v677_v38  ;;  %8642 = vtanh.f32 %v3890_v37 }
 0x13a   : > { %v10238_v34 = vpack.c.bf16 %v8627_v36, %v8629_v49  ;;  %8644 = vtanh.f32 %v5232_v35  ;;  %v8631_v60 = vpop.eup %8630 }
 0x13b   : > { %1563 = vperm.xlu1 %8613, %v631_v39   ;;  %v10242_v55 = vadd.f32 %v2536_v29, %v2524_v50  ;;  %v10244_v44 = vadd.f32 %v3878_v47, %v3866_v51  ;;  %v10249_v59 = vadd.f32 %v5220_v42, %v5208_v54  ;;  %v8633_v0 = vpop.eup %8632  ;;  %8646 = vtanh.f32 %v793_v1  ;;  %v639_v39 = vld [vmem:[%s14208_s20 + $0xe8] sm:$0xff]  ;;  %v641_v51 = vld [vmem:[%s14208_s20 + $0xf8] sm:$0xff] }
 0x13c   : > { %14209 = vst [vmem:[#allocation17_spill] sm:$0xff] %v10238_v34  ;;  %v682_v56 = vpop.permute.xlu1 %681  ;;  %v8635_v12 = vpop.eup %8634  ;;  %8648 = vtanh.f32 %v2551_v4 }
 0x13d   : > { %v2525_v5 = vmul.f32 %v10069_v16, %v682_v56  ;;  %v3867_v6 = vmul.f32 %v10071_v17, %v682_v56  ;;  %v5209_v20 = vmul.f32 %v10076_v19, %v682_v56  ;;  %v8637_v24 = vpop.eup %8636  ;;  %v694_v19 = vmul.f32 %v10084_v23, %v677_v38 }
 0x13e   : > { %8650 = vtanh.f32 %v3893_v25 }
 0x13f   : > { %1573 = vperm.xlu1 %8613, %v633_v58   ;;  %8652 = vtanh.f32 %v5235_v7  ;;  %v746_v38 = vadd.f32 %v738_v8, %v694_v19  ;;  %v10322_v19 = vld [vmem:[#allocation5 + $0x30] sm:$0xff] }
 0x141   : > { %v726_v9 = vpop.permute.xlu1 %725  ;;  %v8639_v2 = vpop.eup %8638 }
 0x142   : > { %v2537_v3 = vmul.f32 %v10058_v10, %v726_v9  ;;  %v3879_v26 = vmul.f32 %v10063_v13, %v726_v9  ;;  %v5221_v22 = vmul.f32 %v10065_v14, %v726_v9  ;;  %v8641_v28 = vpop.eup %8640  ;;  %v8185_v29 = vpack.c.bf16 %v8631_v60, %v8639_v2  ;;  %v637_v13 = vld [vmem:[%s14208_s20 + $0xd8] sm:$0xff] }
 0x143   : > { %1583 = vperm.xlu1 %8613, %v635_v62   ;;  %v744_v10 = vadd.f32 %v736_v40, %v692_v61  ;;  %v8643_v14 = vpop.eup %8642  ;;  %v10272_v18 = vpack.c.bf16 %v8633_v0, %v8641_v28  ;;  %v739_v37 = vmul.f32 %v10081_v21, %v726_v9  ;;  %v10302_v2 = vld [vmem:[#allocation5 + $0x8] sm:$0xff] }
 0x144   : > { %v2545_v16 = vadd.f32 %v2537_v3, %v2525_v5  ;;  %v3887_v27 = vadd.f32 %v3879_v26, %v3867_v6  ;;  %v5229_v17 = vadd.f32 %v5221_v22, %v5209_v20  ;;  %v8645_v30 = vpop.eup %8644  ;;  %8186 = vmatprep.subr.bf16.mxu0 %v8185_v29  ;;  %v10277_v48 = vpack.c.bf16 %v8635_v12, %v8643_v14  ;;  %v10320_v28 = vld [vmem:[#allocation5 + $0x28] sm:$0xff]  ;;  %v10338_v14 = vpop.permute.xlu0 %806 }
 0x145   : > { %8188 = vmatpush3.bf16.msra.mxu0 %v8185_v29  ;;  %v10279_v11 = vpack.c.bf16 %v8637_v24, %v8645_v30  ;;  %v8647_v42 = vpop.eup %8646  ;;  %v10328_v29 = vld [vmem:[#allocation5 + $0x38] sm:$0xff]  ;;  %14214 = vst [vmem:[#allocation22_spill] sm:$0xff] %v10338_v14 }
 0x146   : > { %v771_v46 = vpop.permute.xlu1 %770 }
 0x147   : > { %v792_v31 = vadd.f32 %v771_v46, %v744_v10  ;;  %v2550_v47 = vadd.f32 %v10178_v45, %v771_v46  ;;  %v3892_v32 = vadd.f32 %v10185_v52, %v771_v46  ;;  %v5234_v36 = vadd.f32 %v10187_v53, %v771_v46  ;;  %1593 = vperm.xlu1 %8613, %v637_v13   ;;  %v10332_v10 = vld [vmem:[#allocation7] sm:$0xff] }
 0x148   : > { %14210 = vst [vmem:[#allocation18_spill] sm:$0xff] %v10279_v11  ;;  %v695_v45 = vmul.f32 %v10084_v23, %v682_v56  ;;  %7521 = vmatprep.mubr.msk.f32.mxu1 %vm844_vm0, %v10332_v10  ;;  %v10342_v30 = vpop.permute.xlu0 %816 }
 0x149   : > { %8654 = vtanh.f32 %v792_v31  ;;  %14216 = vst [vmem:[#allocation24_spill] sm:$0xff] %v10342_v30 }
 0x14a   : > { %8656 = vtanh.f32 %v2550_v47  ;;  %v781_v52 = vpop.permute.xlu1 %780  ;;  %v747_v21 = vadd.f32 %v739_v37, %v695_v45 }
 0x14b   : > { %8658 = vtanh.f32 %v3892_v32  ;;  %v794_v49 = vadd.f32 %v781_v52, %v746_v38  ;;  %v2552_v53 = vadd.f32 %v10242_v55, %v781_v52  ;;  %v3894_v35 = vadd.f32 %v10244_v44, %v781_v52  ;;  %1603 = vperm.xlu1 %8613, %v639_v39   ;;  %v8649_v55 = vpop.eup %8648 }
 0x14c   : > { %8660 = vtanh.f32 %v5234_v36  ;;  %v5236_v50 = vadd.f32 %v10249_v59, %v781_v52  ;;  %v8651_v58 = vpop.eup %8650  ;;  %v10350_v52 = vpop.permute.xlu0 %826 }
 0x14d   : > { %8662 = vtanh.f32 %v794_v49  ;;  %v8653_v59 = vpop.eup %8652  ;;  %14218 = vst [vmem:[#allocation26_spill] sm:$0xff] %v10350_v52 }
 0x14e   : > { %8664 = vtanh.f32 %v2552_v53  ;;  %v786_v23 = vpop.permute.xlu1 %785 }
 0x14f   : > { %8666 = vtanh.f32 %v3894_v35  ;;  %v795_v54 = vadd.f32 %v786_v23, %v747_v21  ;;  %v2553_v43 = vadd.f32 %v2545_v16, %v786_v23  ;;  %v3895_v56 = vadd.f32 %v3887_v27, %v786_v23  ;;  %1613 = vperm.xlu1 %8613, %v641_v51   ;;  %v10306_v16 = vld [vmem:[#allocation5 + $0x10] sm:$0xff]  ;;  %v10312_v27 = vld [vmem:[#allocation5 + $0x18] sm:$0xff] }
 0x150   : > { %8668 = vtanh.f32 %v5236_v50  ;;  %v5237_v44 = vadd.f32 %v5229_v17, %v786_v23  ;;  %v10314_v17 = vld [vmem:[#allocation5 + $0x20] sm:$0xff] }
 0x151   : > { %8670 = vtanh.f32 %v795_v54 }
 0x152   : > { %8672 = vtanh.f32 %v2553_v43  ;;  %v10336_v13 = vpop.permute.xlu1 %811 }
 0x153   : > { %v8655_v15 = vpop.eup %8654  ;;  %8674 = vtanh.f32 %v3895_v56  ;;  %14213 = vst [vmem:[#allocation21_spill] sm:$0xff] %v10336_v13 }
 0x154   : > { %v8657_v60 = vpop.eup %8656  ;;  %8676 = vtanh.f32 %v5237_v44  ;;  %v8189_v40 = vpack.c.bf16 %v8647_v42, %v8655_v15  ;;  %v10357_v42 = vpop.permute.xlu0 %836 }
 0x155   : > { %v8659_v61 = vpop.eup %8658  ;;  %v10292_v63 = vpack.c.bf16 %v8649_v55, %v8657_v60  ;;  %14220 = vst [vmem:[#allocation28_spill] sm:$0xff] %v10357_v42 }
 0x156   : > { %v8661_v62 = vpop.eup %8660  ;;  %8190 = vmatprep.subr.bf16.mxu0 %v8189_v40  ;;  %v10294_v0 = vpack.c.bf16 %v8651_v58, %v8659_v61  ;;  %v10340_v8 = vpop.permute.xlu1 %821 }
 0x157   : > { %v8663_v1 = vpop.eup %8662  ;;  %8192 = vmatpush3.bf16.msra.mxu0 %v8189_v40  ;;  %v10296_v4 = vpack.c.bf16 %v8653_v59, %v8661_v62  ;;  %14215 = vst [vmem:[#allocation23_spill] sm:$0xff] %v10340_v8 }
 0x158   : > { %v8665_v5 = vpop.eup %8664 }
 0x159   : > { %14211 = vst [vmem:[#allocation19_spill] sm:$0xff] %v10296_v4  ;;  %v8667_v6 = vpop.eup %8666 }
 0x15a   : > { %v8669_v9 = vpop.eup %8668  ;;  %v10347_v39 = vpop.permute.xlu1 %831 }
 0x15b   : > { %v8671_v12 = vpop.eup %8670  ;;  %14217 = vst [vmem:[#allocation25_spill] sm:$0xff] %v10347_v39 }
 0x15c   : > { %v8673_v20 = vpop.eup %8672  ;;  %v8193_v3 = vpack.c.bf16 %v8671_v12, %v8663_v1  ;;  %v533_v12 = vld [vmem:[#allocation7 + $0x18] sm:$0xff] }
 0x15d   : > { %v8675_v26 = vpop.eup %8674  ;;  %v10298_v22 = vpack.c.bf16 %v8673_v20, %v8665_v5  ;;  %v534_v20 = vld [vmem:[#allocation7 + $0x20] sm:$0xff] }
 0x15e   : > { %v8677_v24 = vpop.eup %8676  ;;  %8194 = vmatprep.subr.bf16.mxu0 %v8193_v3  ;;  %v10300_v25 = vpack.c.bf16 %v8675_v26, %v8667_v6  ;;  %v10355_v21 = vpop.permute.xlu1 %841  ;;  %v531_v6 = vld [vmem:[#allocation7 + $0x8] sm:$0xff]  ;;  %v536_v26 = vld [vmem:[#allocation7 + $0x30] sm:$0xff] }
 0x15f   : > { %8196 = vmatpush3.bf16.msra.mxu0 %v8193_v3  ;;  %v10304_v7 = vpack.c.bf16 %v8677_v24, %v8669_v9  ;;  %14219 = vst [vmem:[#allocation27_spill] sm:$0xff] %v10355_v21  ;;  %v532_v9 = vld [vmem:[#allocation7 + $0x10] sm:$0xff]  ;;  %v535_v3 = vld [vmem:[#allocation7 + $0x28] sm:$0xff]  ;;  %v537_v24 = vld [vmem:[#allocation7 + $0x38] sm:$0xff] }
 0x161   : > { %14212 = vst [vmem:[#allocation20_spill] sm:$0xff] %v10304_v7 }
 0x162   : > { %7494 = vmatmul.mubr.msk.f32.vlgmr.msra.gmra.mrb[0].mxu0 %vm844_vm0, %v10302_v2 }
 0x163   : > { %7496 = vmatprep.mubr.msk.f32.mxu0 %vm844_vm0, %v10306_v16 }
 0x166   : > { %7497 = vmatmul.mubr.msk.f32.gmra.mrb[2].mxu0 %vm844_vm0, %v10312_v27 }
 0x167   : > { %7499 = vmatprep.mubr.msk.f32.mxu0 %vm844_vm0, %v10314_v17 }
 0x16a   : > { %7500 = vmatmul.mubr.msk.f32.gmra.mrb[4].mxu0 %vm844_vm0, %v10320_v28 }
 0x16b   : > { %7502 = vmatprep.mubr.msk.f32.mxu0 %vm844_vm0, %v10322_v19 }
 0x16e   : > { %7503 = vmatmul.mubr.msk.f32.gmra.mrb[6].mxu0 %vm844_vm0, %v10328_v29 }
 0x235   : > { %v7495_v46 = vpop.f32.mrb[0].mxu0 }
 0x236   : > { %v941_v31 = vadd.f32 %v7495_v46, %v10336_v13  ;;  %v935_v47 = vpop.f32.mrb[1].mxu0  ;;  %v546_v46 = vld [vmem:[%s14221_s18] sm:$0xff] }
 0x237   : > { %v936_v32 = vadd.f32 %v935_v47, %v10338_v14  ;;  %7549 = vmatprep.mubr.msk.f32.mxu0 %vm844_vm0, %v546_v46  ;;  %v10384_v47 = vpop.permute.xlu0 %992 }
 0x238   : > { %8678 = vtanh.f32 %v941_v31  ;;  %v10382_v31 = vpop.permute.xlu1 %997  ;;  %14223 = vst [vmem:[#allocation30_spill] sm:$0xff] %v10384_v47 }
 0x239   : > { %8680 = vtanh.f32 %v936_v32  ;;  %v7498_v36 = vpop.f32.mrb[2].mxu0  ;;  %14222 = vst [vmem:[#allocation29_spill] sm:$0xff] %v10382_v31 }
 0x23a   : > { %v951_v37 = vadd.f32 %v7498_v36, %v10340_v8  ;;  %v945_v38 = vpop.f32.mrb[3].mxu0 }
 0x23b   : > { %v946_v45 = vadd.f32 %v945_v38, %v10342_v30 }
 0x23c   : > { %8682 = vtanh.f32 %v951_v37  ;;  %v10386_v32 = vpop.permute.xlu1 %1007  ;;  %v10388_v37 = vpop.permute.xlu0 %1002 }
 0x23d   : > { %8684 = vtanh.f32 %v946_v45  ;;  %v7501_v49 = vpop.f32.mrb[4].mxu0  ;;  %14224 = vst [vmem:[#allocation31_spill] sm:$0xff] %v10386_v32  ;;  %14225 = vst [vmem:[#allocation32_spill] sm:$0xff] %v10388_v37 }
 0x23e   : > { %v961_v53 = vadd.f32 %v7501_v49, %v10347_v39  ;;  %v955_v35 = vpop.f32.mrb[5].mxu0 }
 0x23f   : > { %v956_v50 = vadd.f32 %v955_v35, %v10350_v52 }
 0x240   : > { %8686 = vtanh.f32 %v961_v53 }
 0x241   : > { %8688 = vtanh.f32 %v956_v50  ;;  %v7504_v51 = vpop.f32.mrb[6].mxu0 }
 0x242   : > { %v8679_v23 = vpop.eup %8678  ;;  %v971_v54 = vadd.f32 %v7504_v51, %v10355_v21  ;;  %v965_v43 = vpop.f32.mrb[7].mxu0 }
 0x243   : > { %v8681_v56 = vpop.eup %8680  ;;  %983 = vst [vmem:[%s10360_s7 + $0x8] sm:$0xff] %v8679_v23  ;;  %v966_v55 = vadd.f32 %v965_v43, %v10357_v42  ;;  %v10393_v51 = vpop.permute.xlu1 %1017 }
 0x244   : > { %982 = vst [vmem:[%s10360_s7] sm:$0xff] %v8681_v56  ;;  %8690 = vtanh.f32 %v971_v54  ;;  %v8197_v44 = vpack.c.bf16 %v8679_v23, %v8681_v56  ;;  %14226 = vst [vmem:[#allocation33_spill] sm:$0xff] %v10393_v51  ;;  %v10396_v54 = vpop.permute.xlu0 %1012 }
 0x245   : > { %8692 = vtanh.f32 %v966_v55  ;;  %14227 = vst [vmem:[#allocation34_spill] sm:$0xff] %v10396_v54 }
 0x246   : > { %v8683_v58 = vpop.eup %8682  ;;  %8198 = vmatprep.subr.bf16.mxu1 %v8197_v44 }
 0x247   : > { %v8685_v59 = vpop.eup %8684  ;;  %985 = vst [vmem:[%s10360_s7 + $0x18] sm:$0xff] %v8683_v58  ;;  %8200 = vmatpush3.bf16.msra.mxu1 %v8197_v44 }
 0x248   : > { %984 = vst [vmem:[%s10360_s7 + $0x10] sm:$0xff] %v8685_v59  ;;  %v8201_v15 = vpack.c.bf16 %v8683_v58, %v8685_v59  ;;  %v10400_v58 = vpop.permute.xlu1 %1027 }
 0x249   : > { %14228 = vst [vmem:[#allocation35_spill] sm:$0xff] %v10400_v58 }
 0x24a   : > { %v8687_v60 = vpop.eup %8686  ;;  %8202 = vmatprep.subr.bf16.mxu1 %v8201_v15 }
 0x24b   : > { %v8689_v40 = vpop.eup %8688  ;;  %987 = vst [vmem:[%s10360_s7 + $0x28] sm:$0xff] %v8687_v60  ;;  %8204 = vmatpush3.bf16.msra.mxu1 %v8201_v15 }
 0x24c   : > { %986 = vst [vmem:[%s10360_s7 + $0x20] sm:$0xff] %v8689_v40  ;;  %v8205_v61 = vpack.c.bf16 %v8687_v60, %v8689_v40  ;;  %v10402_v60 = vpop.permute.xlu0 %1022 }
 0x24d   : > { %14229 = vst [vmem:[#allocation36_spill] sm:$0xff] %v10402_v60 }
 0x24e   : > { %v8691_v62 = vpop.eup %8690  ;;  %8206 = vmatprep.subr.bf16.mxu1 %v8205_v61 }
 0x24f   : > { %v8693_v1 = vpop.eup %8692  ;;  %989 = vst [vmem:[%s10360_s7 + $0x38] sm:$0xff] %v8691_v62  ;;  %8208 = vmatpush3.bf16.msra.mxu1 %v8205_v61 }
 0x250   : > { %988 = vst [vmem:[%s10360_s7 + $0x30] sm:$0xff] %v8693_v1  ;;  %v8209_v5 = vpack.c.bf16 %v8691_v62, %v8693_v1 }
 0x252   : > { %8210 = vmatprep.subr.bf16.mxu1 %v8209_v5 }
 0x253   : > { %8212 = vmatpush3.bf16.msra.mxu1 %v8209_v5 }
 0x256   : > { %7522 = vmatmul.mubr.msk.f32.vlgmr.msra.gmra.mrb[0].mxu1 %vm844_vm0, %v531_v6 }
 0x257   : > { %7524 = vmatprep.mubr.msk.f32.mxu1 %vm844_vm0, %v532_v9 }
 0x25a   : > { %7525 = vmatmul.mubr.msk.f32.gmra.mrb[2].mxu1 %vm844_vm0, %v533_v12 }
 0x25b   : > { %7527 = vmatprep.mubr.msk.f32.mxu1 %vm844_vm0, %v534_v20 }
 0x25e   : > { %7528 = vmatmul.mubr.msk.f32.gmra.mrb[4].mxu1 %vm844_vm0, %v535_v3 }
 0x25f   : > { %7530 = vmatprep.mubr.msk.f32.mxu1 %vm844_vm0, %v536_v26 }
 0x262   : > { %7531 = vmatmul.mubr.msk.f32.gmra.mrb[6].mxu1 %vm844_vm0, %v537_v24 }
 0x329   : > { %v7523_v36 = vpop.f32.mrb[0].mxu1 }
 0x32a   : > { %v1126_v38 = vadd.f32 %v7523_v36, %v10382_v31  ;;  %v1120_v45 = vpop.f32.mrb[1].mxu1 }
 0x32b   : > { %v1121_v49 = vadd.f32 %v1120_v45, %v10384_v47  ;;  %v548_v45 = vld [vmem:[%s14221_s18 + $0x10] sm:$0xff] }
 0x32c   : > { %8694 = vtanh.f32 %v1126_v38  ;;  %v547_v38 = vld [vmem:[%s14221_s18 + $0x8] sm:$0xff] }
 0x32d   : > { %8696 = vtanh.f32 %v1121_v49  ;;  %v7526_v53 = vpop.f32.mrb[2].mxu1  ;;  %v549_v49 = vld [vmem:[%s14221_s18 + $0x18] sm:$0xff] }
 0x32e   : > { %v1136_v35 = vadd.f32 %v7526_v53, %v10386_v32  ;;  %v1130_v50 = vpop.f32.mrb[3].mxu1  ;;  %v550_v53 = vld [vmem:[%s14221_s18 + $0x20] sm:$0xff] }
 0x32f   : > { %v1131_v23 = vadd.f32 %v1130_v50, %v10388_v37  ;;  %v552_v50 = vld [vmem:[%s14221_s18 + $0x30] sm:$0xff] }
 0x330   : > { %8698 = vtanh.f32 %v1136_v35  ;;  %v551_v35 = vld [vmem:[%s14221_s18 + $0x28] sm:$0xff] }
 0x331   : > { %8700 = vtanh.f32 %v1131_v23  ;;  %v7529_v43 = vpop.f32.mrb[4].mxu1  ;;  %v553_v23 = vld [vmem:[%s14221_s18 + $0x38] sm:$0xff] }
 0x332   : > { %v1146_v56 = vadd.f32 %v7529_v43, %v10393_v51  ;;  %v1140_v55 = vpop.f32.mrb[5].mxu1  ;;  %v554_v43 = vld [vmem:[%s14221_s18 + $0x40] sm:$0xff] }
 0x333   : > { %v1141_v44 = vadd.f32 %v1140_v55, %v10396_v54  ;;  %v556_v55 = vld [vmem:[%s14221_s18 + $0x50] sm:$0xff] }
 0x334   : > { %8702 = vtanh.f32 %v1146_v56  ;;  %v555_v56 = vld [vmem:[%s14221_s18 + $0x48] sm:$0xff] }
 0x335   : > { %8704 = vtanh.f32 %v1141_v44  ;;  %v7532_v59 = vpop.f32.mrb[6].mxu1  ;;  %v557_v44 = vld [vmem:[%s14221_s18 + $0x58] sm:$0xff] }
 0x336   : > { %v8695_v15 = vpop.eup %8694  ;;  %v1156_v40 = vadd.f32 %v7532_v59, %v10400_v58  ;;  %v1150_v61 = vpop.f32.mrb[7].mxu1  ;;  %v558_v59 = vld [vmem:[%s14221_s18 + $0x60] sm:$0xff] }
 0x337   : > { %v8697_v62 = vpop.eup %8696  ;;  %v1151_v1 = vadd.f32 %v1150_v61, %v10402_v60  ;;  %v561_v61 = vld [vmem:[%s14221_s18 + $0x78] sm:$0xff] }
 0x338   : > { %8706 = vtanh.f32 %v1156_v40  ;;  %v8213_v5 = vpack.c.bf16 %v8695_v15, %v8697_v62  ;;  %v559_v15 = vld [vmem:[%s14221_s18 + $0x68] sm:$0xff]  ;;  %v560_v40 = vld [vmem:[%s14221_s18 + $0x70] sm:$0xff] }
 0x339   : > { %8708 = vtanh.f32 %v1151_v1  ;;  %v10466_v62 = vld [vmem:[#allocation8] sm:$0xff] }
 0x33a   : > { %v8699_v6 = vpop.eup %8698  ;;  %8214 = vmatprep.subr.bf16.mxu0 %v8213_v5  ;;  %v590_v1 = vld [vmem:[#allocation8 + $0x60] sm:$0xff] }
 0x33b   : > { %v8701_v9 = vpop.eup %8700  ;;  %8216 = vmatpush3.bf16.msra.mxu0 %v8213_v5  ;;  %7623 = vmatprep.mubr.f32.mxu1 %v590_v1  ;;  %v10469_v5 = vpop.permute.xlu1 %1174 }
 0x33c   : > { %v8217_v12 = vpack.c.bf16 %v8699_v6, %v8701_v9  ;;  %14230 = vst [vmem:[#allocation37_spill] sm:$0xff] %v10469_v5  ;;  %v10471_v6 = vpop.permute.xlu0 %1169 }
 0x33d   : > { %14231 = vst [vmem:[#allocation38_spill] sm:$0xff] %v10471_v6 }
 0x33e   : > { %v8703_v20 = vpop.eup %8702  ;;  %8218 = vmatprep.subr.bf16.mxu0 %v8217_v12 }
 0x33f   : > { %v8705_v3 = vpop.eup %8704  ;;  %8220 = vmatpush3.bf16.msra.mxu0 %v8217_v12  ;;  %v10473_v9 = vpop.permute.xlu1 %1184 }
 0x340   : > { %v8221_v26 = vpack.c.bf16 %v8703_v20, %v8705_v3  ;;  %14232 = vst [vmem:[#allocation39_spill] sm:$0xff] %v10473_v9  ;;  %v10475_v12 = vpop.permute.xlu0 %1179 }
 0x341   : > { %14233 = vst [vmem:[#allocation40_spill] sm:$0xff] %v10475_v12 }
 0x342   : > { %v8707_v24 = vpop.eup %8706  ;;  %8222 = vmatprep.subr.bf16.mxu0 %v8221_v26 }
 0x343   : > { %v8709_v46 = vpop.eup %8708  ;;  %8224 = vmatpush3.bf16.msra.mxu0 %v8221_v26  ;;  %v10477_v20 = vpop.permute.xlu1 %1194 }
 0x344   : > { %v8225_v36 = vpack.c.bf16 %v8707_v24, %v8709_v46  ;;  %14234 = vst [vmem:[#allocation41_spill] sm:$0xff] %v10477_v20  ;;  %v10479_v3 = vpop.permute.xlu0 %1189 }
 0x345   : > { %14235 = vst [vmem:[#allocation42_spill] sm:$0xff] %v10479_v3 }
 0x346   : > { %8226 = vmatprep.subr.bf16.mxu0 %v8225_v36 }
 0x347   : > { %8228 = vmatpush3.bf16.msra.mxu0 %v8225_v36 }
 0x34a   : > { %7550 = vmatmul.mubr.msk.f32.vlgmr.msra.gmra.mrb[8].mxu0 %vm844_vm0, %v547_v38  ;;  %v10483_v38 = vpop.permute.xlu1 %1204 }
 0x34b   : > { %7552 = vmatprep.mubr.msk.f32.mxu0 %vm844_vm0, %v548_v45  ;;  %14236 = vst [vmem:[#allocation43_spill] sm:$0xff] %v10483_v38 }
 0x34e   : > { %7553 = vmatmul.mubr.msk.f32.gmra.mrb[10].mxu0 %vm844_vm0, %v549_v49  ;;  %v10485_v49 = vpop.permute.xlu0 %1199 }
 0x34f   : > { %7555 = vmatprep.mubr.msk.f32.mxu0 %vm844_vm0, %v550_v53  ;;  %14237 = vst [vmem:[#allocation44_spill] sm:$0xff] %v10485_v49 }
 0x352   : > { %7556 = vmatmul.mubr.msk.f32.gmra.mrb[12].mxu0 %vm844_vm0, %v551_v35 }
 0x353   : > { %7558 = vmatprep.mubr.msk.f32.mxu0 %vm844_vm0, %v552_v50 }
 0x356   : > { %7559 = vmatmul.mubr.msk.f32.gmra.mrb[14].mxu0 %vm844_vm0, %v553_v23 }
 0x357   : > { %7561 = vmatprep.mubr.msk.f32.mxu0 %vm844_vm0, %v554_v43 }
 0x35a   : > { %7562 = vmatmul.mubr.msk.f32.gmra.mrb[16].mxu0 %vm844_vm0, %v555_v56 }
 0x35b   : > { %7564 = vmatprep.mubr.msk.f32.mxu0 %vm844_vm0, %v556_v55  ;;  %v10490_v55 = vpop.permute.xlu1 %1214 }
 0x35c   : > { %14238 = vst [vmem:[#allocation45_spill] sm:$0xff] %v10490_v55 }
 0x35e   : > { %7565 = vmatmul.mubr.msk.f32.gmra.mrb[18].mxu0 %vm844_vm0, %v557_v44 }
 0x35f   : > { %7567 = vmatprep.mubr.msk.f32.mxu0 %vm844_vm0, %v558_v59  ;;  %v10493_v59 = vpop.permute.xlu0 %1209 }
 0x360   : > { %14239 = vst [vmem:[#allocation46_spill] sm:$0xff] %v10493_v59 }
 0x362   : > { %7568 = vmatmul.mubr.msk.f32.gmra.mrb[20].mxu0 %vm844_vm0, %v559_v15 }
 0x363   : > { %7570 = vmatprep.mubr.msk.f32.mxu0 %vm844_vm0, %v560_v40 }
 0x366   : > { %7571 = vmatmul.mubr.msk.f32.gmra.mrb[22].mxu0 %vm844_vm0, %v561_v61 }
 0x367   : > { %7605 = vmatprep.mubr.f32.mxu0 %v10466_v62 }
 0x41d   : > { %v7551_v26 = vpop.f32.mrb[8].mxu0 }
 0x41e   : > { %v1367_v24 = vadd.f32 %v7551_v26, %v10469_v5  ;;  %v1361_v46 = vpop.f32.mrb[9].mxu0 }
 0x41f   : > { %v1362_v36 = vadd.f32 %v1361_v46, %v10471_v6 }
 0x420   : > { %8710 = vtanh.f32 %v1367_v24 }
 0x421   : > { %8712 = vtanh.f32 %v1362_v36  ;;  %v7554_v45 = vpop.f32.mrb[10].mxu0  ;;  %v10497_v36 = vpop.permute.xlu1 %1224 }
 0x422   : > { %v1377_v53 = vadd.f32 %v7554_v45, %v10473_v9  ;;  %v1371_v35 = vpop.f32.mrb[11].mxu0  ;;  %14240 = vst [vmem:[#allocation47_spill] sm:$0xff] %v10497_v36 }
 0x423   : > { %v1372_v50 = vadd.f32 %v1371_v35, %v10475_v12  ;;  %v10499_v35 = vpop.permute.xlu0 %1219 }
 0x424   : > { %8714 = vtanh.f32 %v1377_v53  ;;  %14241 = vst [vmem:[#allocation48_spill] sm:$0xff] %v10499_v35 }
 0x425   : > { %8716 = vtanh.f32 %v1372_v50  ;;  %v7557_v23 = vpop.f32.mrb[12].mxu0 }
 0x426   : > { %v1387_v43 = vadd.f32 %v7557_v23, %v10477_v20  ;;  %v1381_v56 = vpop.f32.mrb[13].mxu0 }
 0x427   : > { %v1382_v44 = vadd.f32 %v1381_v56, %v10479_v3 }
 0x428   : > { %8718 = vtanh.f32 %v1387_v43 }
 0x429   : > { %8720 = vtanh.f32 %v1382_v44  ;;  %v7560_v15 = vpop.f32.mrb[14].mxu0 }
 0x42a   : > { %v8711_v40 = vpop.eup %8710  ;;  %v1397_v61 = vadd.f32 %v7560_v15, %v10483_v38  ;;  %v1391_v1 = vpop.f32.mrb[15].mxu0 }
 0x42b   : > { %v8713_v26 = vpop.eup %8712  ;;  %v1392_v24 = vadd.f32 %v1391_v1, %v10485_v49 }
 0x42c   : > { %8722 = vtanh.f32 %v1397_v61  ;;  %v8229_v46 = vpack.c.bf16 %v8711_v40, %v8713_v26 }
 0x42d   : > { %8724 = vtanh.f32 %v1392_v24  ;;  %v7563_v45 = vpop.f32.mrb[16].mxu0  ;;  %v10504_v24 = vpop.permute.xlu1 %1234 }
 0x42e   : > { %v8715_v53 = vpop.eup %8714  ;;  %v1407_v50 = vadd.f32 %v7563_v45, %v10490_v55  ;;  %v1401_v23 = vpop.f32.mrb[17].mxu0  ;;  %8230 = vmatprep.subr.bf16.mxu0 %v8229_v46  ;;  %8501 = vmatprep.subr.bf16.mxu1 %v8229_v46  ;;  %14242 = vst [vmem:[#allocation49_spill] sm:$0xff] %v10504_v24 }
 0x42f   : > { %v8717_v43 = vpop.eup %8716  ;;  %v1402_v56 = vadd.f32 %v1401_v23, %v10493_v59  ;;  %8232 = vmatpush3.bf16.msra.mxu0 %v8229_v46  ;;  %8509 = vmatpush3.bf16.msra.mxu1 %v8229_v46  ;;  %v10507_v23 = vpop.permute.xlu0 %1229 }
 0x430   : > { %8726 = vtanh.f32 %v1407_v50  ;;  %v8233_v44 = vpack.c.bf16 %v8715_v53, %v8717_v43  ;;  %14243 = vst [vmem:[#allocation50_spill] sm:$0xff] %v10507_v23 }
 0x431   : > { %8728 = vtanh.f32 %v1402_v56  ;;  %v7566_v15 = vpop.f32.mrb[18].mxu0 }
 0x432   : > { %v8719_v40 = vpop.eup %8718  ;;  %v1417_v61 = vadd.f32 %v7566_v15, %v10497_v36  ;;  %v1411_v1 = vpop.f32.mrb[19].mxu0  ;;  %8234 = vmatprep.subr.bf16.mxu0 %v8233_v44  ;;  %8502 = vmatprep.subr.bf16.mxu1 %v8233_v44 }
 0x433   : > { %v8721_v26 = vpop.eup %8720  ;;  %v1412_v45 = vadd.f32 %v1411_v1, %v10499_v35  ;;  %8236 = vmatpush3.bf16.msra.mxu0 %v8233_v44  ;;  %8510 = vmatpush3.bf16.msra.mxu1 %v8233_v44  ;;  %v10511_v44 = vpop.permute.xlu1 %1244 }
 0x434   : > { %8730 = vtanh.f32 %v1417_v61  ;;  %v8237_v46 = vpack.c.bf16 %v8719_v40, %v8721_v26  ;;  %14244 = vst [vmem:[#allocation51_spill] sm:$0xff] %v10511_v44  ;;  %v10513_v26 = vpop.permute.xlu0 %1239 }
 0x435   : > { %8732 = vtanh.f32 %v1412_v45  ;;  %v7569_v53 = vpop.f32.mrb[20].mxu0  ;;  %14245 = vst [vmem:[#allocation52_spill] sm:$0xff] %v10513_v26 }
 0x436   : > { %v8723_v50 = vpop.eup %8722  ;;  %v1427_v43 = vadd.f32 %v7569_v53, %v10504_v24  ;;  %v1421_v56 = vpop.f32.mrb[21].mxu0  ;;  %8238 = vmatprep.subr.bf16.mxu0 %v8237_v46  ;;  %8503 = vmatprep.subr.bf16.mxu1 %v8237_v46 }
 0x437   : > { %v8725_v15 = vpop.eup %8724  ;;  %v1422_v57 = vadd.f32 %v1421_v56, %v10507_v23  ;;  %8240 = vmatpush3.bf16.msra.mxu0 %v8237_v46  ;;  %8511 = vmatpush3.bf16.msra.mxu1 %v8237_v46 }
 0x438   : > { %8734 = vtanh.f32 %v1427_v43  ;;  %v8241_v1 = vpack.c.bf16 %v8723_v50, %v8725_v15 }
 0x439   : > { %8736 = vtanh.f32 %v1422_v57  ;;  %v7572_v61 = vpop.f32.mrb[22].mxu0 }
 0x43a   : > { %v8727_v40 = vpop.eup %8726  ;;  %v1437_v45 = vadd.f32 %v7572_v61, %v10511_v44  ;;  %v1431_v53 = vpop.f32.mrb[23].mxu0  ;;  %8242 = vmatprep.subr.bf16.mxu0 %v8241_v1  ;;  %8504 = vmatprep.subr.bf16.mxu1 %v8241_v1 }
 0x43b   : > { %v8729_v7 = vpop.eup %8728  ;;  %v1432_v4 = vadd.f32 %v1431_v53, %v10513_v26  ;;  %8244 = vmatpush3.bf16.msra.mxu0 %v8241_v1  ;;  %8512 = vmatpush3.bf16.msra.mxu1 %v8241_v1 }
 0x43c   : > { %8738 = vtanh.f32 %v1437_v45  ;;  %v8245_v46 = vpack.c.bf16 %v8727_v40, %v8729_v7  ;;  %v579_v7 = vld [vmem:[#allocation8 + $0x8] sm:$0xff]  ;;  %v580_v45 = vld [vmem:[#allocation8 + $0x10] sm:$0xff] }
 0x43d   : > { %8740 = vtanh.f32 %v1432_v4  ;;  %v591_v40 = vld [vmem:[#allocation8 + $0x68] sm:$0xff] }
 0x43e   : > { %v8731_v50 = vpop.eup %8730  ;;  %8246 = vmatprep.subr.bf16.mxu0 %v8245_v46  ;;  %8505 = vmatprep.subr.bf16.mxu1 %v8245_v46 }
 0x43f   : > { %v8733_v57 = vpop.eup %8732  ;;  %8248 = vmatpush3.bf16.msra.mxu0 %v8245_v46  ;;  %8513 = vmatpush3.bf16.msra.mxu1 %v8245_v46  ;;  %v592_v46 = vld [vmem:[#allocation8 + $0x70] sm:$0xff] }
 0x440   : > { %v8249_v43 = vpack.c.bf16 %v8731_v50, %v8733_v57  ;;  %v581_v50 = vld [vmem:[#allocation8 + $0x18] sm:$0xff] }
 0x441   : > { %v593_v57 = vld [vmem:[#allocation8 + $0x78] sm:$0xff] }
 0x442   : > { %v8735_v56 = vpop.eup %8734  ;;  %8250 = vmatprep.subr.bf16.mxu0 %v8249_v43  ;;  %8506 = vmatprep.subr.bf16.mxu1 %v8249_v43 }
 0x443   : > { %v8737_v15 = vpop.eup %8736  ;;  %8252 = vmatpush3.bf16.msra.mxu0 %v8249_v43  ;;  %8514 = vmatpush3.bf16.msra.mxu1 %v8249_v43  ;;  %v582_v43 = vld [vmem:[#allocation8 + $0x20] sm:$0xff] }
 0x444   : > { %v8253_v61 = vpack.c.bf16 %v8735_v56, %v8737_v15  ;;  %v594_v56 = vld [vmem:[#allocation8 + $0x80] sm:$0xff]  ;;  %v583_v15 = vld [vmem:[#allocation8 + $0x28] sm:$0xff] }
 0x446   : > { %v8739_v53 = vpop.eup %8738  ;;  %8254 = vmatprep.subr.bf16.mxu0 %v8253_v61  ;;  %8507 = vmatprep.subr.bf16.mxu1 %v8253_v61 }
 0x447   : > { %v8741_v1 = vpop.eup %8740  ;;  %8256 = vmatpush3.bf16.msra.mxu0 %v8253_v61  ;;  %8515 = vmatpush3.bf16.msra.mxu1 %v8253_v61  ;;  %v595_v61 = vld [vmem:[#allocation8 + $0x88] sm:$0xff] }
 0x448   : > { %v8257_v4 = vpack.c.bf16 %v8739_v53, %v8741_v1  ;;  %v584_v53 = vld [vmem:[#allocation8 + $0x30] sm:$0xff]  ;;  %v585_v1 = vld [vmem:[#allocation8 + $0x38] sm:$0xff] }
 0x44a   : > { %8258 = vmatprep.subr.bf16.mxu0 %v8257_v4  ;;  %8508 = vmatprep.subr.bf16.mxu1 %v8257_v4 }
 0x44b   : > { %8260 = vmatpush3.bf16.msra.mxu0 %v8257_v4  ;;  %8516 = vmatpush3.bf16.msra.mxu1 %v8257_v4  ;;  %v597_v4 = vld [vmem:[#allocation8 + $0x98] sm:$0xff] }
 0x44c   : > { %8262 = vmatprep.subr.bf16.mxu0 %v10224_v33 }
 0x44e   : > { %7606 = vmatmul.mubr.f32.vlgmr.msra.gmra.mrb[24].mxu0 %v579_v7  ;;  %7624 = vmatmul.mubr.f32.vlgmr.msra.gmra.mrb[8].mxu1 %v591_v40  ;;  %v586_v7 = vld [vmem:[#allocation8 + $0x40] sm:$0xff]  ;;  %v587_v40 = vld [vmem:[#allocation8 + $0x48] sm:$0xff] }
 0x44f   : > { %8264 = vmatpush3.bf16.msra.mxu0 %v10224_v33  ;;  %7608 = vmatprep.mubr.f32.mxu0 %v580_v45  ;;  %v596_v33 = vld [vmem:[#allocation8 + $0x90] sm:$0xff]  ;;  %v599_v45 = vld [vmem:[#allocation8 + $0xa8] sm:$0xff] }
 0x450   : > { %8266 = vmatprep.subr.bf16.mxu0 %v10272_v18  ;;  %7626 = vmatprep.mubr.f32.mxu1 %v592_v46  ;;  %v588_v46 = vld [vmem:[#allocation8 + $0x50] sm:$0xff] }
 0x452   : > { %7609 = vmatmul.mubr.f32.gmra.mrb[26].mxu0 %v581_v50  ;;  %7627 = vmatmul.mubr.f32.gmra.mrb[10].mxu1 %v593_v57  ;;  %v600_v50 = vld [vmem:[#allocation8 + $0xb0] sm:$0xff]  ;;  %v601_v57 = vld [vmem:[#allocation8 + $0xb8] sm:$0xff] }
 0x453   : > { %8268 = vmatpush3.bf16.msra.mxu0 %v10272_v18  ;;  %7611 = vmatprep.mubr.f32.mxu0 %v582_v43  ;;  %v598_v18 = vld [vmem:[#allocation8 + $0xa0] sm:$0xff] }
 0x454   : > { %8270 = vmatprep.subr.bf16.mxu0 %v10292_v63  ;;  %7629 = vmatprep.mubr.f32.mxu1 %v594_v56  ;;  %v602_v43 = vld [vmem:[#allocation8 + $0xc0] sm:$0xff] }
 0x455   : > { %v9190_v56 = vld [vmem:[#allocation5] sm:$0xff] }
 0x456   : > { %7612 = vmatmul.mubr.f32.gmra.mrb[28].mxu0 %v583_v15  ;;  %7630 = vmatmul.mubr.f32.gmra.mrb[12].mxu1 %v595_v61  ;;  %v604_v15 = vld [vmem:[#allocation8 + $0xd0] sm:$0xff]  ;;  %v605_v61 = vld [vmem:[#allocation8 + $0xd8] sm:$0xff] }
 0x457   : > { %8272 = vmatpush3.bf16.msra.mxu0 %v10292_v63  ;;  %7614 = vmatprep.mubr.f32.mxu0 %v584_v53  ;;  %v589_v63 = vld [vmem:[#allocation8 + $0x58] sm:$0xff]  ;;  %v606_v53 = vld [vmem:[#allocation8 + $0xe0] sm:$0xff] }
 0x458   : > { %8274 = vmatprep.subr.bf16.mxu0 %v10298_v22  ;;  %7632 = vmatprep.mubr.f32.mxu1 %v596_v33  ;;  %v607_v33 = vld [vmem:[#allocation8 + $0xe8] sm:$0xff] }
 0x45a   : > { %7615 = vmatmul.mubr.f32.gmra.mrb[30].mxu0 %v585_v1  ;;  %7633 = vmatmul.mubr.f32.gmra.mrb[14].mxu1 %v597_v4  ;;  %v608_v1 = vld [vmem:[#allocation8 + $0xf0] sm:$0xff] }
 0x45b   : > { %8276 = vmatpush3.bf16.msra.mxu0 %v10298_v22  ;;  %7617 = vmatprep.mubr.f32.mxu0 %v586_v7  ;;  %v603_v22 = vld [vmem:[#allocation8 + $0xc8] sm:$0xff] }
 0x45c   : > { %7635 = vmatprep.mubr.f32.mxu1 %v598_v18 }
 0x45e   : > { %7618 = vmatmul.mubr.f32.gmra.mrb[32].mxu0 %v587_v40  ;;  %7636 = vmatmul.mubr.f32.gmra.mrb[16].mxu1 %v599_v45 }
 0x45f   : > { %7620 = vmatprep.mubr.f32.mxu0 %v588_v46  ;;  %7638 = vmatprep.mubr.f32.mxu1 %v600_v50 }
 0x462   : > { %7621 = vmatmul.mubr.f32.gmra.mrb[34].mxu0 %v589_v63  ;;  %7639 = vmatmul.mubr.f32.gmra.mrb[18].mxu1 %v601_v57 }
 0x463   : > { %7641 = vmatprep.mubr.f32.mxu1 %v602_v43  ;;  %7669 = vmatprep.mubr.msk.f32.mxu0 %vm844_vm0, %v9190_v56 }
 0x466   : > { %7642 = vmatmul.mubr.f32.gmra.mrb[20].mxu1 %v603_v22  ;;  %7670 = vmatmul.mubr.msk.f32.vlgmr.msra.gmra.mrb[36].mxu0 %vm844_vm0, %v10302_v2  ;;  %v609_v2 = vld [vmem:[#allocation8 + $0xf8] sm:$0xff] }
 0x467   : > { %7644 = vmatprep.mubr.f32.mxu1 %v604_v15  ;;  %7672 = vmatprep.mubr.msk.f32.mxu0 %vm844_vm0, %v10306_v16  ;;  %v10543_v16 = vpop.permute.xlu0 %1458 }
 0x468   : > { %14246 = vst [vmem:[#allocation53_spill] sm:$0xff] %v10543_v16 }
 0x46a   : > { %7645 = vmatmul.mubr.f32.gmra.mrb[22].mxu1 %v605_v61  ;;  %7673 = vmatmul.mubr.msk.f32.gmra.mrb[38].mxu0 %vm844_vm0, %v10312_v27 }
 0x46b   : > { %7647 = vmatprep.mubr.f32.mxu1 %v606_v53  ;;  %7675 = vmatprep.mubr.msk.f32.mxu0 %vm844_vm0, %v10314_v17  ;;  %v10545_v27 = vpop.permute.xlu0 %1468  ;;  %v10547_v17 = vpop.permute.xlu1 %1463 }
 0x46c   : > { %14247 = vst [vmem:[#allocation54_spill] sm:$0xff] %v10545_v27  ;;  %14248 = vst [vmem:[#allocation55_spill] sm:$0xff] %v10547_v17 }
 0x46e   : > { %7648 = vmatmul.mubr.f32.gmra.mrb[24].mxu1 %v607_v33  ;;  %7676 = vmatmul.mubr.msk.f32.gmra.mrb[40].mxu0 %vm844_vm0, %v10320_v28 }
 0x46f   : > { %7650 = vmatprep.mubr.f32.mxu1 %v608_v1  ;;  %7678 = vmatprep.mubr.msk.f32.mxu0 %vm844_vm0, %v10322_v19  ;;  %v10549_v28 = vpop.permute.xlu0 %1478  ;;  %v10551_v4 = vpop.permute.xlu1 %1473 }
 0x470   : > { %14249 = vst [vmem:[#allocation56_spill] sm:$0xff] %v10549_v28  ;;  %14250 = vst [vmem:[#allocation57_spill] sm:$0xff] %v10551_v4 }
 0x472   : > { %7651 = vmatmul.mubr.f32.gmra.mrb[26].mxu1 %v609_v2  ;;  %7679 = vmatmul.mubr.msk.f32.gmra.mrb[42].mxu0 %vm844_vm0, %v10328_v29 }
 0x473   : > { %7697 = vmatprep.mubr.msk.f32.mxu0 %vm844_vm0, %v10332_v10  ;;  %7781 = vmatprep.mubr.f32.mxu1 %v10466_v62  ;;  %v10553_v19 = vpop.permute.xlu0 %1488  ;;  %v10555_v7 = vpop.permute.xlu1 %1483 }
 0x474   : > { %14251 = vst [vmem:[#allocation58_spill] sm:$0xff] %v10553_v19  ;;  %14252 = vst [vmem:[#allocation59_spill] sm:$0xff] %v10555_v7 }
 0x477   : > { %v10557_v29 = vpop.permute.xlu0 %1498  ;;  %v10559_v18 = vpop.permute.xlu1 %1493 }
 0x478   : > { %14253 = vst [vmem:[#allocation60_spill] sm:$0xff] %v10557_v29  ;;  %14254 = vst [vmem:[#allocation61_spill] sm:$0xff] %v10559_v18 }
 0x47b   : > { %v10561_v10 = vpop.permute.xlu0 %1508  ;;  %v10563_v62 = vpop.permute.xlu1 %1503 }
 0x47c   : > { %14255 = vst [vmem:[#allocation62_spill] sm:$0xff] %v10561_v10  ;;  %14256 = vst [vmem:[#allocation63_spill] sm:$0xff] %v10563_v62 }
 0x47f   : > { %v10565_v40 = vpop.permute.xlu0 %1518  ;;  %v10567_v45 = vpop.permute.xlu1 %1513 }
 0x480   : > { %14257 = vst [vmem:[#allocation64_spill] sm:$0xff] %v10565_v40  ;;  %14258 = vst [vmem:[#allocation65_spill] sm:$0xff] %v10567_v45 }
 0x483   : > { %v10569_v46 = vpop.permute.xlu0 %1528  ;;  %v10571_v50 = vpop.permute.xlu1 %1523 }
 0x484   : > { %14259 = vst [vmem:[#allocation66_spill] sm:$0xff] %v10569_v46  ;;  %14260 = vst [vmem:[#allocation67_spill] sm:$0xff] %v10571_v50 }
 0x487   : > { %v10575_v61 = vpop.permute.xlu0 %1538  ;;  %v10579_v26 = vpop.permute.xlu1 %1533 }
 0x488   : > { %14261 = vst [vmem:[#allocation68_spill] sm:$0xff] %v10575_v61  ;;  %14262 = vst [vmem:[#allocation69_spill] sm:$0xff] %v10579_v26 }
 0x521   : > { %v7607_v63 = vpop.f32.mrb[24].mxu0  ;;  %v7625_v57 = vpop.f32.mrb[8].mxu1 }
 0x522   : > { %v1688_v43 = vadd.f32 %v7607_v63, %v10547_v17  ;;  %v1748_v56 = vadd.f32 %v7625_v57, %v10571_v50  ;;  %v1682_v22 = vpop.f32.mrb[25].mxu0  ;;  %v1742_v15 = vpop.f32.mrb[9].mxu1 }
 0x523   : > { %v1743_v53 = vadd.f32 %v1742_v15, %v10565_v40  ;;  %v1683_v33 = vadd.f32 %v1682_v22, %v10543_v16  ;;  %v10583_v15 = vpop.permute.xlu0 %1548 }
 0x524   : > { %8742 = vtanh.f32 %v1688_v43  ;;  %14263 = vst [vmem:[#allocation70_spill] sm:$0xff] %v10583_v15 }
 0x525   : > { %8744 = vtanh.f32 %v1748_v56  ;;  %v7610_v1 = vpop.f32.mrb[26].mxu0  ;;  %v7628_v2 = vpop.f32.mrb[10].mxu1 }
 0x526   : > { %v1692_v11 = vpop.f32.mrb[27].mxu0  ;;  %v1752_v34 = vpop.f32.mrb[11].mxu1  ;;  %8746 = vtanh.f32 %v1743_v53  ;;  %v1698_v57 = vadd.f32 %v7610_v1, %v10551_v4  ;;  %v1758_v22 = vadd.f32 %v7628_v2, %v10579_v26 }
 0x527   : > { %v1753_v63 = vadd.f32 %v1752_v34, %v10569_v46  ;;  %8748 = vtanh.f32 %v1683_v33  ;;  %v10592_v1 = vpop.permute.xlu1 %1543  ;;  %v1693_v2 = vadd.f32 %v1692_v11, %v10545_v27 }
 0x528   : > { %14264 = vst [vmem:[#allocation71_spill] sm:$0xff] %v10592_v1 }
 0x529   : > { %v7613_v50 = vpop.f32.mrb[28].mxu0  ;;  %v7631_v17 = vpop.f32.mrb[12].mxu1  ;;  %8750 = vtanh.f32 %v1753_v63 }
 0x52a   : > { %v1702_v43 = vpop.f32.mrb[29].mxu0  ;;  %v1762_v44 = vpop.f32.mrb[13].mxu1  ;;  %8752 = vtanh.f32 %v1698_v57  ;;  %v1708_v11 = vadd.f32 %v7613_v50, %v10555_v7 }
 0x52b   : > { %v1703_v56 = vadd.f32 %v1702_v43, %v10549_v28  ;;  %v1763_v63 = vadd.f32 %v1762_v44, %v10575_v61 }
 0x52d   : > { %v7616_v40 = vpop.f32.mrb[30].mxu0  ;;  %v7634_v16 = vpop.f32.mrb[14].mxu1  ;;  %8754 = vtanh.f32 %v1703_v56 }
 0x52e   : > { %v10587_v53 = vpop.eup %8742  ;;  %v1712_v34 = vpop.f32.mrb[31].mxu0  ;;  %8756 = vtanh.f32 %v1758_v22  ;;  %v1718_v59 = vadd.f32 %v7616_v40, %v10559_v18 }
 0x52f   : > { %v1772_v33 = vpop.f32.mrb[15].mxu1  ;;  %v10589_v46 = vpop.eup %8744  ;;  %1875 = vmax.xlane.f32.xlu1 %v10587_v53  ;;  %8758 = vtanh.f32 %v1763_v63  ;;  %v1713_v44 = vadd.f32 %v1712_v34, %v10553_v19  ;;  %v1768_v63 = vadd.f32 %v7631_v17, %v10592_v1 }
 0x530   : > { %1899 = vmax.xlane.f32.xlu0 %v10589_v46  ;;  %v10601_v26 = vpop.eup %8746  ;;  %v10606_v56 = vpop.permute.xlu0 %1558  ;;  %8760 = vtanh.f32 %v1693_v2  ;;  %v1773_v50 = vadd.f32 %v1772_v33, %v10583_v15 }
 0x531   : > { %v10597_v57 = vpop.f32.mrb[32].mxu0  ;;  %v10599_v43 = vpop.f32.mrb[16].mxu1  ;;  %14265 = vst [vmem:[#allocation72_spill] sm:$0xff] %v10606_v56  ;;  %8762 = vtanh.f32 %v1713_v44 }
 0x532   : > { %v1722_v28 = vpop.f32.mrb[33].mxu0  ;;  %v1782_v4 = vpop.f32.mrb[17].mxu1  ;;  %8764 = vtanh.f32 %v1708_v11 }
 0x533   : > { %v10603_v23 = vpop.eup %8748  ;;  %1897 = vmax.xlane.f32.xlu1 %v10601_v26  ;;  %v10623_v34 = vpop.permute.xlu1 %1553  ;;  %8766 = vtanh.f32 %v1768_v63  ;;  %v1723_v11 = vadd.f32 %v1722_v28, %v10557_v29 }
 0x534   : > { %1873 = vmax.xlane.f32.xlu0 %v10603_v23  ;;  %v10615_v27 = vpop.eup %8750  ;;  %14266 = vst [vmem:[#allocation73_spill] sm:$0xff] %v10623_v34  ;;  %v10639_v44 = vpop.permute.xlu0 %1568  ;;  %8768 = vtanh.f32 %v1773_v50  ;;  %v1778_v63 = vadd.f32 %v7634_v16, %v10623_v34  ;;  %v1783_v50 = vadd.f32 %v1782_v4, %v10606_v56 }
 0x535   : > { %v10611_v22 = vpop.f32.mrb[34].mxu0  ;;  %v10613_v61 = vpop.f32.mrb[18].mxu1  ;;  %14267 = vst [vmem:[#allocation74_spill] sm:$0xff] %v10639_v44 }
 0x536   : > { %v1732_v24 = vpop.f32.mrb[35].mxu0  ;;  %v10617_v35 = vpop.f32.mrb[19].mxu1 }
 0x537   : > { %v10619_v36 = vpop.eup %8752  ;;  %1901 = vmax.xlane.f32.xlu1 %v10615_v27 }
 0x538   : > { %1879 = vmax.xlane.f32.xlu0 %v10619_v36  ;;  %v10629_v7 = vpop.eup %8754 }
 0x539   : > { %v10627_v2 = vpop.f32.mrb[20].mxu1  ;;  %v7671_v19 = vpop.f32.mrb[36].mxu0 }
 0x53a   : > { %v2634_v55 = vadd.f32 %v7671_v19, %v10336_v13  ;;  %v10633_v17 = vpop.f32.mrb[21].mxu1  ;;  %v2628_v1 = vpop.f32.mrb[37].mxu0 }
 0x53b   : > { %v10635_v49 = vpop.eup %8756  ;;  %v2629_v33 = vadd.f32 %v2628_v1, %v10338_v14  ;;  %1881 = vmax.xlane.f32.xlu1 %v10629_v7 }
 0x53c   : > { %1903 = vmax.xlane.f32.xlu0 %v10635_v49  ;;  %8770 = vtanh.f32 %v2634_v55  ;;  %v10645_v15 = vpop.eup %8758  ;;  %v10655_v55 = vpop.permute.xlu1 %1563 }
 0x53d   : > { %v10643_v40 = vpop.f32.mrb[22].mxu1  ;;  %v7674_v19 = vpop.f32.mrb[38].mxu0  ;;  %8772 = vtanh.f32 %v1718_v59  ;;  %14268 = vst [vmem:[#allocation75_spill] sm:$0xff] %v10655_v55 }
 0x53e   : > { %v2644_v1 = vadd.f32 %v7674_v19, %v10340_v8  ;;  %v10649_v18 = vpop.f32.mrb[23].mxu1  ;;  %v2638_v14 = vpop.f32.mrb[39].mxu0  ;;  %8774 = vtanh.f32 %v2629_v33  ;;  %v1728_v33 = vadd.f32 %v10597_v57, %v10563_v62 }
 0x53f   : > { %v10651_v13 = vpop.eup %8760  ;;  %v2639_v28 = vadd.f32 %v2638_v14, %v10342_v30  ;;  %1905 = vmax.xlane.f32.xlu1 %v10645_v15  ;;  %8776 = vtanh.f32 %v1723_v11 }
 0x540   : > { %1877 = vmax.xlane.f32.xlu0 %v10651_v13  ;;  %8778 = vtanh.f32 %v2644_v1  ;;  %v10661_v19 = vpop.eup %8762  ;;  %v10672_v1 = vpop.permute.xlu0 %1578 }
 0x541   : > { %v10659_v59 = vpop.f32.mrb[24].mxu1  ;;  %v7677_v16 = vpop.f32.mrb[40].mxu0  ;;  %8780 = vtanh.f32 %v1778_v63  ;;  %14269 = vst [vmem:[#allocation76_spill] sm:$0xff] %v10672_v1  ;;  %v1733_v63 = vadd.f32 %v1732_v24, %v10561_v10 }
 0x542   : > { %v2654_v14 = vadd.f32 %v7677_v16, %v10347_v39  ;;  %v10666_v34 = vpop.f32.mrb[25].mxu1  ;;  %v2648_v29 = vpop.f32.mrb[41].mxu0  ;;  %8782 = vtanh.f32 %v2639_v28 }
 0x543   : > { %v10668_v11 = vpop.eup %8764  ;;  %v2649_v4 = vadd.f32 %v2648_v29, %v10350_v52  ;;  %1885 = vmax.xlane.f32.xlu1 %v10661_v19  ;;  %8784 = vtanh.f32 %v1783_v50  ;;  %v10689_v10 = vpop.permute.xlu1 %1573 }
 0x544   : > { %1883 = vmax.xlane.f32.xlu0 %v10668_v11  ;;  %v10676_v57 = vpop.eup %8766  ;;  %8786 = vtanh.f32 %v2654_v14  ;;  %14270 = vst [vmem:[#allocation77_spill] sm:$0xff] %v10689_v10  ;;  %v10700_v39 = vpop.permute.xlu0 %1588 }
 0x545   : > { %v10678_v16 = vpop.f32.mrb[26].mxu1  ;;  %v7680_v56 = vpop.f32.mrb[42].mxu0  ;;  %8788 = vtanh.f32 %v1728_v33  ;;  %v1793_v33 = vadd.f32 %v10617_v35, %v10639_v44  ;;  %14271 = vst [vmem:[#allocation78_spill] sm:$0xff] %v10700_v39 }
 0x546   : > { %v10680_v62 = vpop.eup %8768  ;;  %v2664_v29 = vadd.f32 %v7680_v56, %v10355_v21  ;;  %v10683_v28 = vpop.f32.mrb[27].mxu1  ;;  %8790 = vtanh.f32 %v2649_v4  ;;  %v1788_v4 = vadd.f32 %v10599_v43, %v10655_v55 }
 0x547   : > { %v2658_v50 = vpop.f32.mrb[43].mxu0  ;;  %v8771_v52 = vpop.eup %8770  ;;  %1909 = vmax.xlane.f32.xlu1 %v10680_v62  ;;  %8792 = vtanh.f32 %v1733_v63  ;;  %v1803_v63 = vadd.f32 %v10633_v17, %v10672_v1 }
 0x548   : > { %v2659_v24 = vadd.f32 %v2658_v50, %v10357_v42  ;;  %v10687_v14 = vpop.eup %8772  ;;  %6751 = vst [vmem:[%s10360_s7 + $0x148] sm:$0xff] %v8771_v52  ;;  %1907 = vmax.xlane.f32.xlu0 %v10676_v57  ;;  %8794 = vtanh.f32 %v2664_v29 }
 0x549   : > { %v8775_v56 = vpop.eup %8774 }
 0x54a   : > { %v10697_v50 = vpop.eup %8776  ;;  %6750 = vst [vmem:[%s10360_s7 + $0x140] sm:$0xff] %v8775_v56  ;;  %v8277_v42 = vpack.c.bf16 %v8771_v52, %v8775_v56  ;;  %8796 = vtanh.f32 %v2659_v24  ;;  %v1738_v52 = vadd.f32 %v10611_v22, %v10567_v45  ;;  %v10713_v24 = vpop.permute.xlu1 %1583 }
 0x54b   : > { %v8779_v21 = vpop.eup %8778  ;;  %1889 = vmax.xlane.f32.xlu1 %v10697_v50  ;;  %8798 = vtanh.f32 %v1793_v33  ;;  %14272 = vst [vmem:[#allocation79_spill] sm:$0xff] %v10713_v24  ;;  %v10723_v22 = vpop.permute.xlu0 %1598 }
 0x54c   : > { %v10703_v35 = vpop.eup %8780  ;;  %6753 = vst [vmem:[%s10360_s7 + $0x158] sm:$0xff] %v8779_v21  ;;  %8278 = vmatprep.subr.bf16.mxu0 %v8277_v42  ;;  %1887 = vmax.xlane.f32.xlu0 %v10687_v14  ;;  %8800 = vtanh.f32 %v1788_v4  ;;  %v1813_v4 = vadd.f32 %v10649_v18, %v10700_v39  ;;  %14273 = vst [vmem:[#allocation80_spill] sm:$0xff] %v10723_v22  ;;  %v1823_v39 = vadd.f32 %v10666_v34, %v10723_v22 }
 0x54d   : > { %v8783_v43 = vpop.eup %8782  ;;  %8280 = vmatpush3.bf16.msra.mxu0 %v8277_v42  ;;  %8802 = vtanh.f32 %v1803_v63 }
 0x54e   : > { %v10711_v29 = vpop.eup %8784  ;;  %6752 = vst [vmem:[%s10360_s7 + $0x150] sm:$0xff] %v8783_v43  ;;  %v8281_v33 = vpack.c.bf16 %v8779_v21, %v8783_v43  ;;  %8804 = vtanh.f32 %v1738_v52  ;;  %v1798_v21 = vadd.f32 %v10613_v61, %v10689_v10  ;;  %v10731_v18 = vpop.permute.xlu1 %1593  ;;  %v1808_v52 = vadd.f32 %v10627_v2, %v10713_v24 }
 0x54f   : > { %v8787_v56 = vpop.eup %8786  ;;  %1913 = vmax.xlane.f32.xlu1 %v10711_v29  ;;  %14274 = vst [vmem:[#allocation81_spill] sm:$0xff] %v10731_v18  ;;  %8806 = vtanh.f32 %v1813_v4  ;;  %v10744_v4 = vpop.permute.xlu0 %1608  ;;  %v1818_v2 = vadd.f32 %v10643_v40, %v10731_v18  ;;  %v9192_v40 = vld [vmem:[#allocation7 + $0x10] sm:$0xff] }
 0x550   : > { %v10717_v17 = vpop.eup %8788  ;;  %6755 = vst [vmem:[%s10360_s7 + $0x168] sm:$0xff] %v8787_v56  ;;  %8282 = vmatprep.subr.bf16.mxu0 %v8281_v33  ;;  %1911 = vmax.xlane.f32.xlu0 %v10703_v35  ;;  %8808 = vtanh.f32 %v1798_v21  ;;  %14275 = vst [vmem:[#allocation82_spill] sm:$0xff] %v10744_v4  ;;  %v1833_v34 = vadd.f32 %v10683_v28, %v10744_v4  ;;  %v9195_v4 = vld [vmem:[#allocation7 + $0x28] sm:$0xff] }
 0x551   : > { %v8791_v42 = vpop.eup %8790  ;;  %8284 = vmatpush3.bf16.msra.mxu0 %v8281_v33  ;;  %8810 = vtanh.f32 %v1823_v39  ;;  %v9191_v39 = vld [vmem:[#allocation7 + $0x8] sm:$0xff] }
 0x552   : > { %v10727_v43 = vpop.eup %8792  ;;  %6754 = vst [vmem:[%s10360_s7 + $0x160] sm:$0xff] %v8791_v42  ;;  %v8285_v63 = vpack.c.bf16 %v8787_v56, %v8791_v42  ;;  %8812 = vtanh.f32 %v1808_v52 }
 0x553   : > { %v8795_v1 = vpop.eup %8794  ;;  %1893 = vmax.xlane.f32.xlu1 %v10727_v43  ;;  %8814 = vtanh.f32 %v1833_v34  ;;  %v9193_v34 = vld [vmem:[#allocation7 + $0x18] sm:$0xff] }
 0x554   : > { %6757 = vst [vmem:[%s10360_s7 + $0x178] sm:$0xff] %v8795_v1  ;;  %8286 = vmatprep.subr.bf16.mxu0 %v8285_v63  ;;  %1891 = vmax.xlane.f32.xlu0 %v10717_v17  ;;  %v8797_v61 = vpop.eup %8796  ;;  %8816 = vtanh.f32 %v1818_v2  ;;  %v9194_v2 = vld [vmem:[#allocation7 + $0x20] sm:$0xff] }
 0x555   : > { %8288 = vmatpush3.bf16.msra.mxu0 %v8285_v63  ;;  %v10739_v33 = vpop.eup %8798  ;;  %6756 = vst [vmem:[%s10360_s7 + $0x170] sm:$0xff] %v8797_v61  ;;  %v8289_v56 = vpack.c.bf16 %v8795_v1, %v8797_v61  ;;  %v10754_v1 = vpop.permute.xlu1 %1603 }
 0x556   : > { %v10742_v42 = vpop.eup %8800  ;;  %14276 = vst [vmem:[#allocation83_spill] sm:$0xff] %v10754_v1  ;;  %v1828_v28 = vadd.f32 %v10659_v59, %v10754_v1 }
 0x557   : > { %1917 = vmax.xlane.f32.xlu1 %v10739_v33  ;;  %8290 = vmatprep.subr.bf16.mxu0 %v8289_v56  ;;  %v10752_v21 = vpop.eup %8802 }
 0x558   : > { %1915 = vmax.xlane.f32.xlu0 %v10742_v42  ;;  %v10756_v63 = vpop.eup %8804  ;;  %8818 = vtanh.f32 %v1828_v28 }
 0x559   : > { %8292 = vmatpush3.bf16.msra.mxu0 %v8289_v56  ;;  %v10764_v61 = vpop.eup %8806  ;;  %v10769_v56 = vpop.permute.xlu1 %1613 }
 0x55a   : > { %v10766_v52 = vpop.eup %8808  ;;  %14277 = vst [vmem:[#allocation84_spill] sm:$0xff] %v10769_v56  ;;  %v1838_v59 = vadd.f32 %v10678_v16, %v10769_v56  ;;  %v14278_v56 = vlaneseq }
 0x55b   : > { %1921 = vmax.xlane.f32.xlu1 %v10752_v21 }
 0x55c   : > { %7698 = vmatmul.mubr.msk.f32.vlgmr.msra.gmra.mrb[44].mxu0 %vm844_vm0, %v9191_v39  ;;  %1895 = vmax.xlane.f32.xlu0 %v10756_v63  ;;  %v10776_v39 = vpop.eup %8810  ;;  %8820 = vtanh.f32 %v1838_v59 }
 0x55d   : > { %7700 = vmatprep.mubr.msk.f32.mxu0 %vm844_vm0, %v9192_v40  ;;  %v10778_v40 = vpop.eup %8812 }
 0x55e   : > { %v10784_v16 = vpop.eup %8814 }
 0x55f   : > { %1925 = vmax.xlane.f32.xlu1 %v10764_v61  ;;  %v10786_v28 = vpop.eup %8816 }
 0x560   : > { %7701 = vmatmul.mubr.msk.f32.gmra.mrb[46].mxu0 %vm844_vm0, %v9193_v34  ;;  %1919 = vmax.xlane.f32.xlu0 %v10766_v52  ;;  %v9196_v34 = vld [vmem:[#allocation7 + $0x30] sm:$0xff] }
 0x561   : > { %7703 = vmatprep.mubr.msk.f32.mxu0 %vm844_vm0, %v9194_v2  ;;  %v9197_v2 = vld [vmem:[#allocation7 + $0x38] sm:$0xff] }
 0x562   : > { %v10795_v59 = vpop.eup %8818 }
 0x563   : > { %1929 = vmax.xlane.f32.xlu1 %v10776_v39 }
 0x564   : > { %7704 = vmatmul.mubr.msk.f32.gmra.mrb[48].mxu0 %vm844_vm0, %v9195_v4  ;;  %1923 = vmax.xlane.f32.xlu0 %v10778_v40  ;;  %v9198_v4 = vld [vmem:[%s14221_s18] sm:$0xff] }
 0x565   : > { %7706 = vmatprep.mubr.msk.f32.mxu0 %vm844_vm0, %v9196_v34 }
 0x566   : > { %v10798_v34 = vpop.eup %8820 }
 0x567   : > { %1933 = vmax.xlane.f32.xlu1 %v10784_v16 }
 0x568   : > { %7707 = vmatmul.mubr.msk.f32.gmra.mrb[50].mxu0 %vm844_vm0, %v9197_v2  ;;  %1927 = vmax.xlane.f32.xlu0 %v10786_v28  ;;  %v10802_v2 = vand.u32 127, %v14278_v56 }
 0x569   : > { %7725 = vmatprep.mubr.msk.f32.mxu0 %vm844_vm0, %v9198_v4 }
 0x56a   : > { %14279 = vst [vmem:[#allocation85_spill] sm:$0xff] %v10802_v2 }
 0x56c   : > { %1931 = vmax.xlane.f32.xlu0 %v10795_v59 }
 0x570   : > { %1935 = vmax.xlane.f32.xlu0 %v10798_v34 }
 0x5bc   : > { %v1876_v22 = vpop.xlane.xlu1 %1875 }
 0x5bd   : > { %v1900_v1 = vpop.xlane.xlu0 %1899  ;;  %1938 = vst [vmem:[%s10360_s7 + $0x48] sm:$0xff] %v1876_v22  ;;  %vm1970_vm1 = vcmp.eq.f32.partialorder %v10587_v53, %v1876_v22 }
 0x5be   : > { %1950 = vst [vmem:[%s10360_s7 + $0xa8] sm:$0xff] %v1900_v1  ;;  %vm1982_vm2 = vcmp.eq.f32.partialorder %v10589_v46, %v1900_v1  ;;  %v10809_v4 = vsel %vm1970_vm1, %v10802_v2, 128 }
 0x5bf   : > { %v10812_v18 = vsel %vm1982_vm2, %v10802_v2, 128  ;;  %v2048_v24 = vshra.s32 %v10809_v4, 16 }
 0x5c0   : > { %v1898_v44 = vpop.xlane.xlu1 %1897  ;;  %v2216_v53 = vshra.s32 %v10812_v18, 16 }
 0x5c1   : > { %1949 = vst [vmem:[%s10360_s7 + $0xa0] sm:$0xff] %v1898_v44  ;;  %v1874_v56 = vpop.xlane.xlu0 %1873  ;;  %v10816_v10 = vcvt.s32.f32 %v2048_v24  ;;  %vm1981_vm4 = vcmp.eq.f32.partialorder %v10601_v26, %v1898_v44 }
 0x5c2   : > { %1937 = vst [vmem:[%s10360_s7 + $0x40] sm:$0xff] %v1874_v56  ;;  %vm1969_vm3 = vcmp.eq.f32.partialorder %v10603_v23, %v1874_v56  ;;  %v10827_v55 = vcvt.s32.f32 %v2216_v53  ;;  %v10831_v45 = vsel %vm1981_vm4, %v10802_v2, 128 }
 0x5c3   : > { %v10823_v46 = vsel %vm1969_vm3, %v10802_v2, 128  ;;  %2051 = vmin.xlane.f32.xlu1 %v10816_v10  ;;  %v2202_v56 = vshra.s32 %v10831_v45, 16 }
 0x5c4   : > { %v1902_v22 = vpop.xlane.xlu1 %1901  ;;  %v2034_v24 = vshra.s32 %v10823_v46, 16 }
 0x5c5   : > { %1951 = vst [vmem:[%s10360_s7 + $0xb0] sm:$0xff] %v1902_v22  ;;  %v1880_v1 = vpop.xlane.xlu0 %1879  ;;  %v10847_v30 = vcvt.s32.f32 %v2202_v56  ;;  %vm1983_vm8 = vcmp.eq.f32.partialorder %v10615_v27, %v1902_v22 }
 0x5c6   : > { %1940 = vst [vmem:[%s10360_s7 + $0x58] sm:$0xff] %v1880_v1  ;;  %vm1972_vm5 = vcmp.eq.f32.partialorder %v10619_v36, %v1880_v1  ;;  %v10837_v44 = vcvt.s32.f32 %v2034_v24  ;;  %v10877_v12 = vsel %vm1983_vm8, %v10802_v2, 128 }
 0x5c7   : > { %2219 = vmin.xlane.f32.xlu1 %v10827_v55  ;;  %v10841_v53 = vsel %vm1972_vm5, %v10802_v2, 128  ;;  %14280 = vst [vmem:[#allocation86_spill] sm:$0xff] %v10877_v12 }
 0x5c8   : > { %v1882_v23 = vpop.xlane.xlu1 %1881  ;;  %v2076_v24 = vshra.s32 %v10841_v53, 16 }
 0x5c9   : > { %1941 = vst [vmem:[%s10360_s7 + $0x60] sm:$0xff] %v1882_v23  ;;  %v1904_v26 = vpop.xlane.xlu0 %1903  ;;  %vm1973_vm11 = vcmp.eq.f32.partialorder %v10629_v7, %v1882_v23 }
 0x5ca   : > { %1952 = vst [vmem:[%s10360_s7 + $0xb8] sm:$0xff] %v1904_v26  ;;  %vm1984_vm6 = vcmp.eq.f32.partialorder %v10635_v49, %v1904_v26  ;;  %v10860_v38 = vcvt.s32.f32 %v2076_v24 }
 0x5cb   : > { %2037 = vmin.xlane.f32.xlu1 %v10837_v44  ;;  %v10851_v8 = vsel %vm1984_vm6, %v10802_v2, 128 }
 0x5cc   : > { %v1906_v36 = vpop.xlane.xlu1 %1905  ;;  %v2244_v56 = vshra.s32 %v10851_v8, 16 }
 0x5cd   : > { %1953 = vst [vmem:[%s10360_s7 + $0xc0] sm:$0xff] %v1906_v36  ;;  %v1878_v1 = vpop.xlane.xlu0 %1877  ;;  %vm1985_vm12 = vcmp.eq.f32.partialorder %v10645_v15, %v1906_v36 }
 0x5ce   : > { %1939 = vst [vmem:[%s10360_s7 + $0x50] sm:$0xff] %v1878_v1  ;;  %vm1971_vm7 = vcmp.eq.f32.partialorder %v10651_v13, %v1878_v1  ;;  %v10873_v20 = vcvt.s32.f32 %v2244_v56  ;;  %v2230_v56 = vshra.s32 %v10877_v12, 16 }
 0x5cf   : > { %2205 = vmin.xlane.f32.xlu1 %v10847_v30  ;;  %v10864_v3 = vsel %vm1971_vm7, %v10802_v2, 128 }
 0x5d0   : > { %v10856_v49 = vpop.xlane.xlu1 %1885  ;;  %v2062_v24 = vshra.s32 %v10864_v3, 16  ;;  %v10899_v5 = vcvt.s32.f32 %v2230_v56 }
 0x5d1   : > { %1943 = vst [vmem:[%s10360_s7 + $0x70] sm:$0xff] %v10856_v49  ;;  %v1884_v26 = vpop.xlane.xlu0 %1883  ;;  %vm1975_vm15 = vcmp.eq.f32.partialorder %v10661_v19, %v10856_v49 }
 0x5d2   : > { %1942 = vst [vmem:[%s10360_s7 + $0x68] sm:$0xff] %v1884_v26  ;;  %vm1974_vm9 = vcmp.eq.f32.partialorder %v10668_v11, %v1884_v26  ;;  %v10886_v9 = vcvt.s32.f32 %v2062_v24  ;;  %14283 = vst [vmem:[#allocation89_spill] sm:$0xff] %v10899_v5 }
 0x5d3   : > { %2079 = vmin.xlane.f32.xlu1 %v10860_v38  ;;  %v10890_v6 = vsel %vm1974_vm9, %v10802_v2, 128 }
 0x5d4   : > { %v10869_v13 = vpop.xlane.xlu1 %1909  ;;  %14281 = vst [vmem:[#allocation87_spill] sm:$0xff] %v10886_v9  ;;  %14282 = vst [vmem:[#allocation88_spill] sm:$0xff] %v10890_v6  ;;  %v2104_v24 = vshra.s32 %v10890_v6, 16  ;;  %v10916_v6 = vsel %vm1973_vm11, %v10802_v2, 128 }
 0x5d5   : > { %1955 = vst [vmem:[%s10360_s7 + $0xd0] sm:$0xff] %v10869_v13  ;;  %v1908_v1 = vpop.xlane.xlu0 %1907  ;;  %14286 = vst [vmem:[#allocation92_spill] sm:$0xff] %v10916_v6  ;;  %vm1987_vm1 = vcmp.eq.f32.partialorder %v10680_v62, %v10869_v13 }
 0x5d6   : > { %1954 = vst [vmem:[%s10360_s7 + $0xc8] sm:$0xff] %v1908_v1  ;;  %vm1986_vm10 = vcmp.eq.f32.partialorder %v10676_v57, %v1908_v1 }
 0x5d7   : > { %2247 = vmin.xlane.f32.xlu1 %v10873_v20  ;;  %v10903_v12 = vsel %vm1986_vm10, %v10802_v2, 128 }
 0x5d8   : > { %v10882_v27 = vpop.xlane.xlu1 %1889  ;;  %14284 = vst [vmem:[#allocation90_spill] sm:$0xff] %v10903_v12  ;;  %v2272_v56 = vshra.s32 %v10903_v12, 16  ;;  %v10929_v12 = vsel %vm1985_vm12, %v10802_v2, 128 }
 0x5d9   : > { %1945 = vst [vmem:[%s10360_s7 + $0x80] sm:$0xff] %v10882_v27  ;;  %v1888_v22 = vpop.xlane.xlu0 %1887  ;;  %14288 = vst [vmem:[#allocation94_spill] sm:$0xff] %v10929_v12  ;;  %vm1977_vm4 = vcmp.eq.f32.partialorder %v10697_v50, %v10882_v27 }
 0x5da   : > { %1944 = vst [vmem:[%s10360_s7 + $0x78] sm:$0xff] %v1888_v22  ;;  %vm1976_vm13 = vcmp.eq.f32.partialorder %v10687_v14, %v1888_v22 }
 0x5db   : > { %2065 = vmin.xlane.f32.xlu1 %v10886_v9  ;;  %v10912_v9 = vcvt.s32.f32 %v2104_v24  ;;  %v2090_v24 = vshra.s32 %v10916_v6, 16  ;;  %v10942_v6 = vsel %vm1976_vm13, %v10802_v2, 128 }
 0x5dc   : > { %v10895_v11 = vpop.xlane.xlu1 %1913  ;;  %14290 = vst [vmem:[#allocation96_spill] sm:$0xff] %v10942_v6 }
 0x5dd   : > { %1957 = vst [vmem:[%s10360_s7 + $0xe0] sm:$0xff] %v10895_v11  ;;  %v1912_v26 = vpop.xlane.xlu0 %1911  ;;  %14285 = vst [vmem:[#allocation91_spill] sm:$0xff] %v10912_v9  ;;  %vm1989_vm5 = vcmp.eq.f32.partialorder %v10711_v29, %v10895_v11 }
 0x5de   : > { %1956 = vst [vmem:[%s10360_s7 + $0xd8] sm:$0xff] %v1912_v26  ;;  %vm1988_vm14 = vcmp.eq.f32.partialorder %v10703_v35, %v1912_v26  ;;  %v11032_v50 = vsel %vm1989_vm5, %v10802_v2, 128 }
 0x5df   : > { %2233 = vmin.xlane.f32.xlu1 %v10899_v5  ;;  %v10925_v5 = vcvt.s32.f32 %v2272_v56  ;;  %v2258_v56 = vshra.s32 %v10929_v12, 16  ;;  %v10955_v12 = vsel %vm1988_vm14, %v10802_v2, 128 }
 0x5e0   : > { %v10908_v57 = vpop.xlane.xlu1 %1893  ;;  %14292 = vst [vmem:[#allocation98_spill] sm:$0xff] %v10955_v12 }
 0x5e1   : > { %1947 = vst [vmem:[%s10360_s7 + $0x90] sm:$0xff] %v10908_v57  ;;  %v1892_v1 = vpop.xlane.xlu0 %1891  ;;  %14287 = vst [vmem:[#allocation93_spill] sm:$0xff] %v10925_v5  ;;  %vm1979_vm8 = vcmp.eq.f32.partialorder %v10727_v43, %v10908_v57 }
 0x5e2   : > { %1946 = vst [vmem:[%s10360_s7 + $0x88] sm:$0xff] %v1892_v1  ;;  %vm1978_vm2 = vcmp.eq.f32.partialorder %v10717_v17, %v1892_v1 }
 0x5e3   : > { %2107 = vmin.xlane.f32.xlu1 %v10912_v9  ;;  %v10938_v9 = vcvt.s32.f32 %v2090_v24  ;;  %v2132_v24 = vshra.s32 %v10942_v6, 16  ;;  %v2300_v6 = vshra.s32 %v10955_v12, 16 }
 0x5e4   : > { %v10921_v7 = vpop.xlane.xlu1 %1917 }
 0x5e5   : > { %1959 = vst [vmem:[%s10360_s7 + $0xf0] sm:$0xff] %v10921_v7  ;;  %v1916_v23 = vpop.xlane.xlu0 %1915  ;;  %14289 = vst [vmem:[#allocation95_spill] sm:$0xff] %v10938_v9  ;;  %vm1991_vm9 = vcmp.eq.f32.partialorder %v10739_v33, %v10921_v7 }
 0x5e6   : > { %1958 = vst [vmem:[%s10360_s7 + $0xe8] sm:$0xff] %v1916_v23  ;;  %vm1990_vm3 = vcmp.eq.f32.partialorder %v10742_v42, %v1916_v23  ;;  %v11023_v23 = vsel %vm1977_vm4, %v10802_v2, 128  ;;  %v11066_v43 = vsel %vm1991_vm9, %v10802_v2, 128 }
 0x5e7   : > { %2275 = vmin.xlane.f32.xlu1 %v10925_v5  ;;  %v10951_v5 = vcvt.s32.f32 %v2258_v56  ;;  %v10967_v56 = vcvt.s32.f32 %v2132_v24  ;;  %v10984_v24 = vcvt.s32.f32 %v2300_v6  ;;  %v11000_v6 = vsel %vm1978_vm2, %v10802_v2, 128 }
 0x5e8   : > { %v10934_v15 = vpop.xlane.xlu1 %1921  ;;  %14296 = vst [vmem:[#allocation102_spill] sm:$0xff] %v11000_v6  ;;  %v2160_v1 = vshra.s32 %v11000_v6, 16  ;;  %v2146_v6 = vshra.s32 %v11023_v23, 16 }
 0x5e9   : > { %1961 = vst [vmem:[%s10360_s7 + $0x100] sm:$0xff] %v10934_v15  ;;  %v1896_v36 = vpop.xlane.xlu0 %1895  ;;  %14291 = vst [vmem:[#allocation97_spill] sm:$0xff] %v10951_v5  ;;  %vm1993_vm11 = vcmp.eq.f32.partialorder %v10752_v21, %v10934_v15 }
 0x5ea   : > { %1948 = vst [vmem:[%s10360_s7 + $0x98] sm:$0xff] %v1896_v36  ;;  %14293 = vst [vmem:[#allocation99_spill] sm:$0xff] %v10967_v56  ;;  %vm1980_vm6 = vcmp.eq.f32.partialorder %v10756_v63, %v1896_v36  ;;  %v11036_v27 = vcvt.s32.f32 %v2146_v6 }
 0x5eb   : > { %2093 = vmin.xlane.f32.xlu1 %v10938_v9  ;;  %v10971_v9 = vsel %vm1975_vm15, %v10802_v2, 128 }
 0x5ec   : > { %v10947_v14 = vpop.xlane.xlu1 %1925  ;;  %14294 = vst [vmem:[#allocation100_spill] sm:$0xff] %v10971_v9  ;;  %v2118_v12 = vshra.s32 %v10971_v9, 16 }
 0x5ed   : > { %1963 = vst [vmem:[%s10360_s7 + $0x110] sm:$0xff] %v10947_v14  ;;  %v1920_v22 = vpop.xlane.xlu0 %1919  ;;  %vm1995_vm13 = vcmp.eq.f32.partialorder %v10764_v61, %v10947_v14 }
 0x5ee   : > { %1960 = vst [vmem:[%s10360_s7 + $0xf8] sm:$0xff] %v1920_v22  ;;  %v10996_v13 = vcvt.s32.f32 %v2118_v12  ;;  %v11012_v12 = vsel %vm1990_vm3, %v10802_v2, 128  ;;  %vm1992_vm7 = vcmp.eq.f32.partialorder %v10766_v52, %v1920_v22  ;;  %v11057_v52 = vsel %vm1979_vm8, %v10802_v2, 128 }
 0x5ef   : > { %2261 = vmin.xlane.f32.xlu1 %v10951_v5  ;;  %v10988_v5 = vsel %vm1987_vm1, %v10802_v2, 128  ;;  %14297 = vst [vmem:[#allocation103_spill] sm:$0xff] %v11012_v12  ;;  %v2328_v42 = vshra.s32 %v11012_v12, 16  ;;  %v11040_v12 = vsel %vm1980_vm6, %v10802_v2, 128  ;;  %v2174_v6 = vshra.s32 %v11057_v52, 16 }
 0x5f0   : > { %v10961_v35 = vpop.xlane.xlu1 %1929  ;;  %14295 = vst [vmem:[#allocation101_spill] sm:$0xff] %v10988_v5  ;;  %v2188_v11 = vshra.s32 %v11040_v12, 16 }
 0x5f1   : > { %1965 = vst [vmem:[%s10360_s7 + $0x120] sm:$0xff] %v10961_v35  ;;  %v10965_v26 = vpop.xlane.xlu0 %1923  ;;  %v11071_v57 = vcvt.s32.f32 %v2174_v6  ;;  %vm1997_vm15 = vcmp.eq.f32.partialorder %v10776_v39, %v10961_v35 }
 0x5f2   : > { %1962 = vst [vmem:[%s10360_s7 + $0x108] sm:$0xff] %v10965_v26  ;;  %v11053_v63 = vcvt.s32.f32 %v2188_v11  ;;  %vm1994_vm10 = vcmp.eq.f32.partialorder %v10778_v40, %v10965_v26  ;;  %v11084_v40 = vsel %vm1993_vm11, %v10802_v2, 128 }
 0x5f3   : > { %2135 = vmin.xlane.f32.xlu1 %v10967_v56  ;;  %v2286_v56 = vshra.s32 %v10988_v5, 16  ;;  %v11019_v5 = vcvt.s32.f32 %v2160_v1  ;;  %v2314_v1 = vshra.s32 %v11032_v50, 16  ;;  %v11075_v33 = vsel %vm1994_vm10, %v10802_v2, 128 }
 0x5f4   : > { %v10978_v19 = vpop.xlane.xlu1 %1933  ;;  %v2384_v11 = vshra.s32 %v11075_v33, 16 }
 0x5f5   : > { %1967 = vst [vmem:[%s10360_s7 + $0x130] sm:$0xff] %v10978_v19  ;;  %v10982_v49 = vpop.xlane.xlu0 %1927  ;;  %v11008_v17 = vcvt.s32.f32 %v2286_v56  ;;  %v11028_v56 = vcvt.s32.f32 %v2328_v42  ;;  %v11044_v29 = vcvt.s32.f32 %v2314_v1  ;;  %v11048_v42 = vsel %vm1992_vm7, %v10802_v2, 128 }
 0x5f6   : > { %1964 = vst [vmem:[%s10360_s7 + $0x118] sm:$0xff] %v10982_v49  ;;  %v2356_v36 = vshra.s32 %v11048_v42, 16  ;;  %v2342_v1 = vshra.s32 %v11066_v43, 16  ;;  %vm1996_vm12 = vcmp.eq.f32.partialorder %v10786_v28, %v10982_v49  ;;  %v11089_v26 = vcvt.s32.f32 %v2384_v11 }
 0x5f7   : > { %2303 = vmin.xlane.f32.xlu1 %v10984_v24  ;;  %v11093_v21 = vsel %vm1996_vm12, %v10802_v2, 128  ;;  %v11102_v28 = vsel %vm1995_vm13, %v10802_v2, 128  ;;  %vm1999_vm2 = vcmp.eq.f32.partialorder %v10784_v16, %v10978_v19 }
 0x5f8   : > { %v11062_v22 = vcvt.s32.f32 %v2356_v36  ;;  %v11080_v7 = vcvt.s32.f32 %v2342_v1  ;;  %v2370_v36 = vshra.s32 %v11084_v40, 16  ;;  %v2412_v6 = vshra.s32 %v11093_v21, 16 }
 0x5f9   : > { %v10994_v62 = vpop.xlane.xlu0 %1931  ;;  %v2398_v1 = vshra.s32 %v11102_v28, 16 }
 0x5fa   : > { %1966 = vst [vmem:[%s10360_s7 + $0x128] sm:$0xff] %v10994_v62  ;;  %v11098_v15 = vcvt.s32.f32 %v2370_v36  ;;  %vm1998_vm14 = vcmp.eq.f32.partialorder %v10795_v59, %v10994_v62  ;;  %v11107_v49 = vcvt.s32.f32 %v2412_v6  ;;  %v11120_v59 = vsel %vm1997_vm15, %v10802_v2, 128 }
 0x5fb   : > { %2121 = vmin.xlane.f32.xlu1 %v10996_v13  ;;  %v11111_v61 = vsel %vm1998_vm14, %v10802_v2, 128  ;;  %v11116_v14 = vcvt.s32.f32 %v2398_v1  ;;  %v2426_v1 = vshra.s32 %v11120_v59, 16 }
 0x5fc   : > { %14298 = vst [vmem:[#allocation104_spill] sm:$0xff] %v11111_v61  ;;  %v2440_v11 = vshra.s32 %v11111_v61, 16 }
 0x5fd   : > { %v11006_v9 = vpop.xlane.xlu0 %1935 }
 0x5fe   : > { %1968 = vst [vmem:[%s10360_s7 + $0x138] sm:$0xff] %v11006_v9  ;;  %vm2000_vm1 = vcmp.eq.f32.partialorder %v10798_v34, %v11006_v9  ;;  %v11127_v35 = vcvt.s32.f32 %v2440_v11  ;;  %v11138_v11 = vcvt.s32.f32 %v2426_v1 }
 0x5ff   : > { %2289 = vmin.xlane.f32.xlu1 %v11008_v17  ;;  %v11131_v61 = vsel %vm2000_vm1, %v10802_v2, 128 }
 0x603   : > { %2163 = vmin.xlane.f32.xlu1 %v11019_v5 }
 0x607   : > { %2331 = vmin.xlane.f32.xlu1 %v11028_v56 }
 0x60b   : > { %2149 = vmin.xlane.f32.xlu1 %v11036_v27 }
 0x60f   : > { %2317 = vmin.xlane.f32.xlu1 %v11044_v29 }
 0x613   : > { %2191 = vmin.xlane.f32.xlu1 %v11053_v63 }
 0x617   : > { %2359 = vmin.xlane.f32.xlu1 %v11062_v22 }
 0x61b   : > { %2177 = vmin.xlane.f32.xlu1 %v11071_v57 }
 0x61f   : > { %2345 = vmin.xlane.f32.xlu1 %v11080_v7 }
 0x623   : > { %2387 = vmin.xlane.f32.xlu1 %v11089_v26 }
 0x627   : > { %2373 = vmin.xlane.f32.xlu1 %v11098_v15 }
 0x62b   : > { %2415 = vmin.xlane.f32.xlu1 %v11107_v49 }
 0x62f   : > { %v7699_v62 = vpop.f32.mrb[44].mxu0  ;;  %2401 = vmin.xlane.f32.xlu1 %v11116_v14 }
 0x630   : > { %v2756_v36 = vadd.f32 %v7699_v62, %v10382_v31  ;;  %v2750_v6 = vpop.f32.mrb[45].mxu0  ;;  %v11142_v31 = vsel %vm1999_vm2, %v10802_v2, 128 }
 0x631   : > { %v2751_v39 = vadd.f32 %v2750_v6, %v10384_v47  ;;  %v2468_v47 = vshra.s32 %v11131_v61, 16  ;;  %v2454_v1 = vshra.s32 %v11142_v31, 16 }
 0x632   : > { %8822 = vtanh.f32 %v2756_v36 }
 0x633   : > { %8824 = vtanh.f32 %v2751_v39  ;;  %v7702_v9 = vpop.f32.mrb[46].mxu0  ;;  %2443 = vmin.xlane.f32.xlu1 %v11127_v35 }
 0x634   : > { %v2766_v34 = vadd.f32 %v7702_v9, %v10386_v32  ;;  %v2760_v62 = vpop.f32.mrb[47].mxu0  ;;  %v11147_v9 = vcvt.s32.f32 %v2468_v47 }
 0x635   : > { %v2761_v6 = vadd.f32 %v2760_v62, %v10388_v37 }
 0x636   : > { %8826 = vtanh.f32 %v2766_v34 }
 0x637   : > { %8828 = vtanh.f32 %v2761_v6  ;;  %v7705_v36 = vpop.f32.mrb[48].mxu0  ;;  %2429 = vmin.xlane.f32.xlu1 %v11138_v11 }
 0x638   : > { %v2776_v16 = vadd.f32 %v7705_v36, %v10393_v51  ;;  %v2770_v19 = vpop.f32.mrb[49].mxu0  ;;  %v11153_v36 = vcvt.s32.f32 %v2454_v1 }
 0x639   : > { %v2771_v39 = vadd.f32 %v2770_v19, %v10396_v54 }
 0x63a   : > { %8830 = vtanh.f32 %v2776_v16 }
 0x63b   : > { %8832 = vtanh.f32 %v2771_v39  ;;  %v7708_v62 = vpop.f32.mrb[50].mxu0  ;;  %2471 = vmin.xlane.f32.xlu1 %v11147_v9 }
 0x63c   : > { %v8823_v2 = vpop.eup %8822  ;;  %v2786_v34 = vadd.f32 %v7708_v62, %v10400_v58  ;;  %v2780_v6 = vpop.f32.mrb[51].mxu0 }
 0x63d   : > { %v8825_v37 = vpop.eup %8824  ;;  %v2781_v32 = vadd.f32 %v2780_v6, %v10402_v60 }
 0x63e   : > { %8834 = vtanh.f32 %v2786_v34  ;;  %v8293_v19 = vpack.c.bf16 %v8823_v2, %v8825_v37  ;;  %v9199_v37 = vld [vmem:[%s14221_s18 + $0x8] sm:$0xff]  ;;  %v9201_v34 = vld [vmem:[%s14221_s18 + $0x18] sm:$0xff] }
 0x63f   : > { %8836 = vtanh.f32 %v2781_v32  ;;  %2457 = vmin.xlane.f32.xlu1 %v11153_v36  ;;  %v2047_v32 = vand.u32 65535, %v10809_v4 }
 0x640   : > { %v8827_v47 = vpop.eup %8826  ;;  %8294 = vmatprep.subr.bf16.mxu0 %v8293_v19 }
 0x641   : > { %v8829_v16 = vpop.eup %8828  ;;  %8296 = vmatpush3.bf16.msra.mxu0 %v8293_v19  ;;  %v2033_v19 = vand.u32 65535, %v10823_v46 }
 0x642   : > { %v8297_v39 = vpack.c.bf16 %v8827_v47, %v8829_v16  ;;  %v9203_v16 = vld [vmem:[%s14221_s18 + $0x28] sm:$0xff] }
 0x643   : > { %v2035_v46 = vcvt.s32.f32 %v2033_v19  ;;  %v9211_v19 = vld [vmem:[%s14221_s18 + $0x68] sm:$0xff] }
 0x644   : > { %v8831_v54 = vpop.eup %8830  ;;  %8298 = vmatprep.subr.bf16.mxu0 %v8297_v39 }
 0x645   : > { %v8833_v51 = vpop.eup %8832  ;;  %8300 = vmatpush3.bf16.msra.mxu0 %v8297_v39  ;;  %v2201_v39 = vand.u32 65535, %v10831_v45 }
 0x646   : > { %v8301_v62 = vpack.c.bf16 %v8831_v54, %v8833_v51  ;;  %v2049_v51 = vcvt.s32.f32 %v2047_v32  ;;  %v2215_v54 = vand.u32 65535, %v10812_v18 }
 0x647   : > { %v2203_v45 = vcvt.s32.f32 %v2201_v39 }
 0x648   : > { %v8835_v58 = vpop.eup %8834  ;;  %8302 = vmatprep.subr.bf16.mxu0 %v8301_v62  ;;  %v2217_v18 = vcvt.s32.f32 %v2215_v54  ;;  %v9208_v54 = vld [vmem:[%s14221_s18 + $0x50] sm:$0xff] }
 0x649   : > { %v8837_v6 = vpop.eup %8836  ;;  %8304 = vmatpush3.bf16.msra.mxu0 %v8301_v62 }
 0x64a   : > { %v8305_v1 = vpack.c.bf16 %v8835_v58, %v8837_v6  ;;  %v9200_v58 = vld [vmem:[%s14221_s18 + $0x10] sm:$0xff]  ;;  %v9205_v6 = vld [vmem:[%s14221_s18 + $0x38] sm:$0xff] }
 0x64c   : > { %8306 = vmatprep.subr.bf16.mxu0 %v8305_v1 }
 0x64d   : > { %8308 = vmatpush3.bf16.msra.mxu0 %v8305_v1  ;;  %v2075_v1 = vand.u32 65535, %v10841_v53 }
 0x64e   : > { %8342 = vmatprep.subr.bf16.mxu0 %v10230_v41 }
 0x650   : > { %7726 = vmatmul.mubr.msk.f32.vlgmr.msra.gmra.mrb[52].mxu0 %vm844_vm0, %v9199_v37  ;;  %v11162_v2 = vpop.xlane.xlu1 %2051  ;;  %v9207_v37 = vld [vmem:[%s14221_s18 + $0x48] sm:$0xff] }
 0x651   : > { %8344 = vmatpush3.bf16.msra.mxu0 %v10230_v41  ;;  %7728 = vmatprep.mubr.msk.f32.mxu0 %vm844_vm0, %v9200_v58  ;;  %vm2053_vm3 = vcmp.eq.f32.partialorder %v10816_v10, %v11162_v2  ;;  %v9202_v10 = vld [vmem:[%s14221_s18 + $0x20] sm:$0xff]  ;;  %v9209_v58 = vld [vmem:[%s14221_s18 + $0x58] sm:$0xff] }
 0x652   : > { %8346 = vmatprep.subr.bf16.mxu0 %v10277_v48  ;;  %v2054_v4 = vsel %vm2053_vm3, %v2049_v51, inf  ;;  %v2243_v51 = vand.u32 65535, %v10851_v8 }
 0x653   : > { %2055 = vmin.xlane.f32.xlu0 %v2054_v4 }
 0x654   : > { %7729 = vmatmul.mubr.msk.f32.gmra.mrb[54].mxu0 %vm844_vm0, %v9201_v34  ;;  %v11177_v41 = vpop.xlane.xlu1 %2219  ;;  %v2245_v8 = vcvt.s32.f32 %v2243_v51  ;;  %v2061_v34 = vand.u32 65535, %v10864_v3 }
 0x655   : > { %8348 = vmatpush3.bf16.msra.mxu0 %v10277_v48  ;;  %7731 = vmatprep.mubr.msk.f32.mxu0 %vm844_vm0, %v9202_v10  ;;  %vm2221_vm4 = vcmp.eq.f32.partialorder %v10827_v55, %v11177_v41  ;;  %v9204_v55 = vld [vmem:[%s14221_s18 + $0x30] sm:$0xff] }
 0x656   : > { %8350 = vmatprep.subr.bf16.mxu0 %v10294_v0  ;;  %v2222_v47 = vsel %vm2221_vm4, %v2217_v18, inf  ;;  %v9210_v18 = vld [vmem:[%s14221_s18 + $0x60] sm:$0xff]  ;;  %v2063_v3 = vcvt.s32.f32 %v2061_v34 }
 0x657   : > { %2223 = vmin.xlane.f32.xlu0 %v2222_v47  ;;  %v14299_v47 = vld [vmem:[#allocation86_spill] sm:$0xff]  ;;  %v14304_v34 = vld [vmem:[#allocation91_spill] sm:$0xff] }
 0x658   : > { %7732 = vmatmul.mubr.msk.f32.gmra.mrb[56].mxu0 %vm844_vm0, %v9203_v16  ;;  %v11192_v48 = vpop.xlane.xlu1 %2037  ;;  %v2229_v16 = vand.u32 65535, %v14299_v47  ;;  %v14305_v47 = vld [vmem:[#allocation92_spill] sm:$0xff] }
 0x659   : > { %8352 = vmatpush3.bf16.msra.mxu0 %v10294_v0  ;;  %7734 = vmatprep.mubr.msk.f32.mxu0 %vm844_vm0, %v9204_v55  ;;  %vm2039_vm5 = vcmp.eq.f32.partialorder %v10837_v44, %v11192_v48  ;;  %v9206_v44 = vld [vmem:[%s14221_s18 + $0x40] sm:$0xff]  ;;  %v9213_v55 = vld [vmem:[%s14221_s18 + $0x78] sm:$0xff] }
 0x65a   : > { %8354 = vmatprep.subr.bf16.mxu0 %v10300_v25  ;;  %v2040_v62 = vsel %vm2039_vm5, %v2035_v46, inf  ;;  %v9212_v46 = vld [vmem:[%s14221_s18 + $0x70] sm:$0xff] }
 0x65b   : > { %2041 = vmin.xlane.f32.xlu0 %v2040_v62 }
 0x65c   : > { %7735 = vmatmul.mubr.msk.f32.gmra.mrb[58].mxu0 %vm844_vm0, %v9205_v6  ;;  %v11207_v0 = vpop.xlane.xlu1 %2205  ;;  %v2231_v6 = vcvt.s32.f32 %v2229_v16  ;;  %v2089_v16 = vand.u32 65535, %v14305_v47 }
 0x65d   : > { %8356 = vmatpush3.bf16.msra.mxu0 %v10300_v25  ;;  %7737 = vmatprep.mubr.msk.f32.mxu0 %vm844_vm0, %v9206_v44  ;;  %vm2207_vm6 = vcmp.eq.f32.partialorder %v10847_v30, %v11207_v0  ;;  %v2077_v25 = vcvt.s32.f32 %v2075_v1  ;;  %v9214_v44 = vld [vmem:[#allocation5] sm:$0xff] }
 0x65e   : > { %v2208_v32 = vsel %vm2207_vm6, %v2203_v45, inf  ;;  %v14301_v45 = vld [vmem:[#allocation88_spill] sm:$0xff] }
 0x65f   : > { %2209 = vmin.xlane.f32.xlu0 %v2208_v32  ;;  %v2103_v1 = vand.u32 65535, %v14301_v45  ;;  %v14302_v32 = vld [vmem:[#allocation89_spill] sm:$0xff]  ;;  %v2091_v45 = vcvt.s32.f32 %v2089_v16 }
 0x660   : > { %7738 = vmatmul.mubr.msk.f32.gmra.mrb[60].mxu0 %vm844_vm0, %v9207_v37  ;;  %v11221_v53 = vpop.xlane.xlu1 %2079 }
 0x661   : > { %7740 = vmatprep.mubr.msk.f32.mxu0 %vm844_vm0, %v9208_v54  ;;  %vm2081_vm7 = vcmp.eq.f32.partialorder %v10860_v38, %v11221_v53  ;;  %v2105_v54 = vcvt.s32.f32 %v2103_v1  ;;  %v14307_v1 = vld [vmem:[#allocation94_spill] sm:$0xff] }
 0x662   : > { %v2082_v30 = vsel %vm2081_vm7, %v2077_v25, inf  ;;  %v9215_v25 = vld [vmem:[#allocation5 + $0x8] sm:$0xff] }
 0x663   : > { %2083 = vmin.xlane.f32.xlu0 %v2082_v30  ;;  %v14303_v30 = vld [vmem:[#allocation90_spill] sm:$0xff] }
 0x664   : > { %7741 = vmatmul.mubr.msk.f32.gmra.mrb[62].mxu0 %vm844_vm0, %v9209_v58  ;;  %v11234_v4 = vpop.xlane.xlu1 %2247  ;;  %v2271_v58 = vand.u32 65535, %v14303_v30 }
 0x665   : > { %7743 = vmatprep.mubr.msk.f32.mxu0 %vm844_vm0, %v9210_v18  ;;  %vm2249_vm8 = vcmp.eq.f32.partialorder %v10873_v20, %v11234_v4  ;;  %v14300_v20 = vld [vmem:[#allocation87_spill] sm:$0xff] }
 0x666   : > { %v2250_v38 = vsel %vm2249_vm8, %v2245_v8, inf  ;;  %v9216_v8 = vld [vmem:[#allocation5 + $0x10] sm:$0xff] }
 0x667   : > { %2251 = vmin.xlane.f32.xlu0 %v2250_v38  ;;  %v9217_v38 = vld [vmem:[#allocation5 + $0x18] sm:$0xff] }
 0x668   : > { %7744 = vmatmul.mubr.msk.f32.gmra.mrb[64].mxu0 %vm844_vm0, %v9211_v19  ;;  %v11247_v10 = vpop.xlane.xlu1 %2065 }
 0x669   : > { %7746 = vmatprep.mubr.msk.f32.mxu0 %vm844_vm0, %v9212_v46  ;;  %vm2067_vm9 = vcmp.eq.f32.partialorder %v14300_v20, %v11247_v10  ;;  %v9218_v46 = vld [vmem:[#allocation5 + $0x20] sm:$0xff] }
 0x66a   : > { %v2068_v39 = vsel %vm2067_vm9, %v2063_v3, inf  ;;  %v2273_v3 = vcvt.s32.f32 %v2271_v58  ;;  %v14306_v20 = vld [vmem:[#allocation93_spill] sm:$0xff] }
 0x66b   : > { %2069 = vmin.xlane.f32.xlu0 %v2068_v39 }
 0x66c   : > { %7747 = vmatmul.mubr.msk.f32.gmra.mrb[66].mxu0 %vm844_vm0, %v9213_v55  ;;  %v11260_v62 = vpop.xlane.xlu1 %2233  ;;  %v9219_v55 = vld [vmem:[#allocation5 + $0x28] sm:$0xff] }
 0x66d   : > { %7845 = vmatprep.mubr.msk.f32.mxu0 %vm844_vm0, %v9214_v44  ;;  %vm2235_vm10 = vcmp.eq.f32.partialorder %v14302_v32, %v11260_v62  ;;  %v2257_v44 = vand.u32 65535, %v14307_v1  ;;  %v9220_v32 = vld [vmem:[#allocation5 + $0x30] sm:$0xff] }
 0x66e   : > { %v2236_v37 = vsel %vm2235_vm10, %v2231_v6, inf }
 0x66f   : > { %2237 = vmin.xlane.f32.xlu0 %v2236_v37  ;;  %v14308_v37 = vld [vmem:[#allocation95_spill] sm:$0xff]  ;;  %v2259_v58 = vcvt.s32.f32 %v2257_v44  ;;  %v14313_v44 = vld [vmem:[#allocation100_spill] sm:$0xff] }
 0x670   : > { %7846 = vmatmul.mubr.msk.f32.vlgmr.msra.gmra.mrb[68].mxu0 %vm844_vm0, %v9215_v25  ;;  %v11267_v51 = vpop.xlane.xlu1 %2107 }
 0x671   : > { %7848 = vmatprep.mubr.msk.f32.mxu0 %vm844_vm0, %v9216_v8  ;;  %vm2109_vm11 = vcmp.eq.f32.partialorder %v14304_v34, %v11267_v51  ;;  %v14309_v8 = vld [vmem:[#allocation96_spill] sm:$0xff] }
 0x672   : > { %v2110_v18 = vsel %vm2109_vm11, %v2105_v54, inf  ;;  %v9221_v54 = vld [vmem:[#allocation5 + $0x38] sm:$0xff]  ;;  %v2131_v34 = vand.u32 65535, %v14309_v8 }
 0x673   : > { %2111 = vmin.xlane.f32.xlu0 %v2110_v18  ;;  %v14310_v18 = vld [vmem:[#allocation97_spill] sm:$0xff] }
 0x674   : > { %7849 = vmatmul.mubr.msk.f32.gmra.mrb[70].mxu0 %vm844_vm0, %v9217_v38  ;;  %v11274_v19 = vpop.xlane.xlu1 %2275  ;;  %v9222_v38 = vld [vmem:[#allocation7] sm:$0xff]  ;;  %v2133_v16 = vcvt.s32.f32 %v2131_v34 }
 0x675   : > { %7851 = vmatprep.mubr.msk.f32.mxu0 %vm844_vm0, %v9218_v46  ;;  %vm2277_vm12 = vcmp.eq.f32.partialorder %v14306_v20, %v11274_v19  ;;  %v14311_v46 = vld [vmem:[#allocation98_spill] sm:$0xff] }
 0x676   : > { %v2278_v39 = vsel %vm2277_vm12, %v2273_v3, inf  ;;  %v2299_v20 = vand.u32 65535, %v14311_v46 }
 0x677   : > { %2279 = vmin.xlane.f32.xlu0 %v2278_v39  ;;  %v14312_v39 = vld [vmem:[#allocation99_spill] sm:$0xff] }
 0x678   : > { %7852 = vmatmul.mubr.msk.f32.gmra.mrb[72].mxu0 %vm844_vm0, %v9219_v55  ;;  %v11281_v6 = vpop.xlane.xlu1 %2093  ;;  %v2301_v1 = vcvt.s32.f32 %v2299_v20 }
 0x679   : > { %7854 = vmatprep.mubr.msk.f32.mxu0 %vm844_vm0, %v9220_v32  ;;  %vm2095_vm13 = vcmp.eq.f32.partialorder %v14308_v37, %v11281_v6  ;;  %v2117_v32 = vand.u32 65535, %v14313_v44 }
 0x67a   : > { %v2096_v25 = vsel %vm2095_vm13, %v2091_v45, inf }
 0x67b   : > { %2097 = vmin.xlane.f32.xlu0 %v2096_v25 }
 0x67c   : > { %7855 = vmatmul.mubr.msk.f32.gmra.mrb[74].mxu0 %vm844_vm0, %v9221_v54  ;;  %v11288_v30 = vpop.xlane.xlu1 %2261  ;;  %v2119_v54 = vcvt.s32.f32 %v2117_v32  ;;  %v2145_v32 = vand.u32 65535, %v11023_v23  ;;  %v2187_v23 = vand.u32 65535, %v11040_v12  ;;  %v2173_v12 = vand.u32 65535, %v11057_v52 }
 0x67d   : > { %vm2263_vm14 = vcmp.eq.f32.partialorder %v14310_v18, %v11288_v30  ;;  %7873 = vmatprep.mubr.msk.f32.mxu0 %vm844_vm0, %v9222_v38  ;;  %v2383_v52 = vand.u32 65535, %v11075_v33  ;;  %v2411_v33 = vand.u32 65535, %v11093_v21 }
 0x67e   : > { %v2264_v3 = vsel %vm2263_vm14, %v2259_v58, inf  ;;  %v14314_v58 = vld [vmem:[#allocation101_spill] sm:$0xff] }
 0x67f   : > { %2265 = vmin.xlane.f32.xlu0 %v2264_v3  ;;  %v2285_v8 = vand.u32 65535, %v14314_v58  ;;  %v14315_v3 = vld [vmem:[#allocation102_spill] sm:$0xff]  ;;  %v2313_v58 = vand.u32 65535, %v11032_v50  ;;  %v2355_v50 = vand.u32 65535, %v11048_v42  ;;  %v2341_v42 = vand.u32 65535, %v11066_v43 }
 0x680   : > { %v11294_v47 = vpop.xlane.xlu1 %2135  ;;  %v2369_v43 = vand.u32 65535, %v11084_v40  ;;  %v2397_v40 = vand.u32 65535, %v11102_v28  ;;  %v2425_v28 = vand.u32 65535, %v11120_v59  ;;  %v2453_v59 = vand.u32 65535, %v11142_v31 }
 0x681   : > { %vm2137_vm15 = vcmp.eq.f32.partialorder %v14312_v39, %v11294_v47  ;;  %v2287_v38 = vcvt.s32.f32 %v2285_v8  ;;  %v14316_v39 = vld [vmem:[#allocation103_spill] sm:$0xff] }
 0x682   : > { %v2138_v55 = vsel %vm2137_vm15, %v2133_v16, inf  ;;  %v2159_v16 = vand.u32 65535, %v14315_v3  ;;  %v2189_v3 = vcvt.s32.f32 %v2187_v23  ;;  %v2399_v23 = vcvt.s32.f32 %v2397_v40 }
 0x683   : > { %2139 = vmin.xlane.f32.xlu0 %v2138_v55  ;;  %v2327_v55 = vand.u32 65535, %v14316_v39  ;;  %v2175_v39 = vcvt.s32.f32 %v2173_v12  ;;  %v2467_v12 = vand.u32 65535, %v11131_v61 }
 0x684   : > { %v11299_v45 = vpop.xlane.xlu1 %2303  ;;  %v2161_v20 = vcvt.s32.f32 %v2159_v16 }
 0x685   : > { %vm2305_vm1 = vcmp.eq.f32.partialorder %v10984_v24, %v11299_v45  ;;  %v2329_v44 = vcvt.s32.f32 %v2327_v55 }
 0x686   : > { %v2306_v37 = vsel %vm2305_vm1, %v2301_v1, inf }
 0x687   : > { %2307 = vmin.xlane.f32.xlu0 %v2306_v37 }
 0x688   : > { %v11304_v25 = vpop.xlane.xlu1 %2121 }
 0x689   : > { %vm2123_vm2 = vcmp.eq.f32.partialorder %v10996_v13, %v11304_v25 }
 0x68a   : > { %v2124_v34 = vsel %vm2123_vm2, %v2119_v54, inf  ;;  %v2147_v54 = vcvt.s32.f32 %v2145_v32  ;;  %v2385_v32 = vcvt.s32.f32 %v2383_v52 }
 0x68b   : > { %2125 = vmin.xlane.f32.xlu0 %v2124_v34  ;;  %v2315_v34 = vcvt.s32.f32 %v2313_v58 }
 0x68c   : > { %v11309_v18 = vpop.xlane.xlu1 %2289 }
 0x68d   : > { %vm2291_vm3 = vcmp.eq.f32.partialorder %v11008_v17, %v11309_v18 }
 0x68e   : > { %v2292_v24 = vsel %vm2291_vm3, %v2287_v38, inf }
 0x68f   : > { %2293 = vmin.xlane.f32.xlu0 %v2292_v24  ;;  %v2357_v24 = vcvt.s32.f32 %v2355_v50 }
 0x690   : > { %v11314_v46 = vpop.xlane.xlu1 %2163 }
 0x691   : > { %vm2165_vm4 = vcmp.eq.f32.partialorder %v11019_v5, %v11314_v46 }
 0x692   : > { %v2166_v13 = vsel %vm2165_vm4, %v2161_v20, inf }
 0x693   : > { %2167 = vmin.xlane.f32.xlu0 %v2166_v13  ;;  %v2343_v13 = vcvt.s32.f32 %v2341_v42 }
 0x694   : > { %v11319_v1 = vpop.xlane.xlu1 %2331 }
 0x695   : > { %vm2333_vm5 = vcmp.eq.f32.partialorder %v11028_v56, %v11319_v1 }
 0x696   : > { %v2334_v17 = vsel %vm2333_vm5, %v2329_v44, inf  ;;  %vm2481_vm5 = vcmask 7168  }
 0x697   : > { %2335 = vmin.xlane.f32.xlu0 %v2334_v17 }
 0x698   : > { %v11324_v37 = vpop.xlane.xlu1 %2149 }
 0x699   : > { %vm2151_vm6 = vcmp.eq.f32.partialorder %v11036_v27, %v11324_v37 }
 0x69a   : > { %v2152_v5 = vsel %vm2151_vm6, %v2147_v54, inf  ;;  %v2371_v54 = vcvt.s32.f32 %v2369_v43 }
 0x69b   : > { %2153 = vmin.xlane.f32.xlu0 %v2152_v5  ;;  %v2413_v5 = vcvt.s32.f32 %v2411_v33  ;;  %v2212_v33 = vcvt.f32.s32 %v11207_v0 }
 0x69c   : > { %v11329_v8 = vpop.xlane.xlu1 %2317 }
 0x69d   : > { %vm2319_vm7 = vcmp.eq.f32.partialorder %v11044_v29, %v11329_v8 }
 0x69e   : > { %v2320_v56 = vsel %vm2319_vm7, %v2315_v34, inf }
 0x69f   : > { %2321 = vmin.xlane.f32.xlu0 %v2320_v56  ;;  %v14317_v56 = vld [vmem:[#allocation104_spill] sm:$0xff] }
 0x6a0   : > { %v11334_v38 = vpop.xlane.xlu1 %2191  ;;  %v2439_v21 = vand.u32 65535, %v14317_v56 }
 0x6a1   : > { %vm2193_vm8 = vcmp.eq.f32.partialorder %v11053_v63, %v11334_v38 }
 0x6a2   : > { %v2194_v27 = vsel %vm2193_vm8, %v2189_v3, inf  ;;  %v2441_v50 = vcvt.s32.f32 %v2439_v21 }
 0x6a3   : > { %2195 = vmin.xlane.f32.xlu0 %v2194_v27 }
 0x6a4   : > { %v11339_v16 = vpop.xlane.xlu1 %2359 }
 0x6a5   : > { %vm2361_vm9 = vcmp.eq.f32.partialorder %v11062_v22, %v11339_v16 }
 0x6a6   : > { %v2362_v29 = vsel %vm2361_vm9, %v2357_v24, inf  ;;  %v2427_v24 = vcvt.s32.f32 %v2425_v28 }
 0x6a7   : > { %2363 = vmin.xlane.f32.xlu0 %v2362_v29 }
 0x6a8   : > { %v11344_v20 = vpop.xlane.xlu1 %2177 }
 0x6a9   : > { %vm2179_vm10 = vcmp.eq.f32.partialorder %v11071_v57, %v11344_v20 }
 0x6aa   : > { %v2180_v63 = vsel %vm2179_vm10, %v2175_v39, inf  ;;  %v2469_v39 = vcvt.s32.f32 %v2467_v12  ;;  %v2072_v12 = vcvt.f32.s32 %v11247_v10 }
 0x6ab   : > { %2181 = vmin.xlane.f32.xlu0 %v2180_v63  ;;  %v2455_v63 = vcvt.s32.f32 %v2453_v59 }
 0x6ac   : > { %v11349_v55 = vpop.xlane.xlu1 %2345  ;;  %v2073_v59 = vshll.u32 %v2072_v12, 16 }
 0x6ad   : > { %vm2347_vm11 = vcmp.eq.f32.partialorder %v11080_v7, %v11349_v55 }
 0x6ae   : > { %v2348_v22 = vsel %vm2347_vm11, %v2343_v13, inf }
 0x6af   : > { %2349 = vmin.xlane.f32.xlu0 %v2348_v22 }
 0x6b0   : > { %v11354_v44 = vpop.xlane.xlu1 %2387 }
 0x6b1   : > { %vm2389_vm12 = vcmp.eq.f32.partialorder %v11089_v26, %v11354_v44 }
 0x6b2   : > { %v2390_v57 = vsel %vm2389_vm12, %v2385_v32, inf }
 0x6b3   : > { %2391 = vmin.xlane.f32.xlu0 %v2390_v57 }
 0x6b4   : > { %v11359_v17 = vpop.xlane.xlu1 %2373 }
 0x6b5   : > { %vm2375_vm13 = vcmp.eq.f32.partialorder %v11098_v15, %v11359_v17 }
 0x6b6   : > { %v2376_v7 = vsel %vm2375_vm13, %v2371_v54, inf }
 0x6b7   : > { %2377 = vmin.xlane.f32.xlu0 %v2376_v7 }
 0x6b8   : > { %v11364_v58 = vpop.xlane.xlu1 %2415 }
 0x6b9   : > { %vm2417_vm14 = vcmp.eq.f32.partialorder %v11107_v49, %v11364_v58 }
 0x6ba   : > { %v2418_v26 = vsel %vm2417_vm14, %v2413_v5, inf }
 0x6bb   : > { %2419 = vmin.xlane.f32.xlu0 %v2418_v26  ;;  %v2213_v26 = vshll.u32 %v2212_v33, 16  ;;  %v2268_v33 = vcvt.f32.s32 %v11288_v30 }
 0x6bc   : > { %v11369_v34 = vpop.xlane.xlu1 %2401 }
 0x6bd   : > { %vm2403_vm15 = vcmp.eq.f32.partialorder %v11116_v14, %v11369_v34 }
 0x6be   : > { %v2404_v15 = vsel %vm2403_vm15, %v2399_v23, inf  ;;  %v2086_v23 = vcvt.f32.s32 %v11221_v53 }
 0x6bf   : > { %2405 = vmin.xlane.f32.xlu0 %v2404_v15 }
 0x6c0   : > { %v11374_v3 = vpop.xlane.xlu1 %2443  ;;  %v2087_v15 = vshll.u32 %v2086_v23, 16 }
 0x6c1   : > { %vm2445_vm1 = vcmp.eq.f32.partialorder %v11127_v35, %v11374_v3 }
 0x6c2   : > { %v2446_v49 = vsel %vm2445_vm1, %v2441_v50, inf  ;;  %v2254_v50 = vcvt.f32.s32 %v11234_v4 }
 0x6c3   : > { %2447 = vmin.xlane.f32.xlu0 %v2446_v49 }
 0x6c4   : > { %v11379_v27 = vpop.xlane.xlu1 %2429 }
 0x6c5   : > { %vm2431_vm2 = vcmp.eq.f32.partialorder %v11138_v11, %v11379_v27  ;;  %v2058_v11 = vcvt.f32.s32 %v11162_v2  ;;  %v2044_v2 = vcvt.f32.s32 %v11192_v48 }
 0x6c6   : > { %v2432_v14 = vsel %vm2431_vm2, %v2427_v24, inf  ;;  %v2255_v24 = vshll.u32 %v2254_v50, 16 }
 0x6c7   : > { %2433 = vmin.xlane.f32.xlu0 %v2432_v14  ;;  %v2059_v13 = vshll.u32 %v2058_v11, 16  ;;  %v2045_v54 = vshll.u32 %v2044_v2, 16 }
 0x6c8   : > { %v11384_v29 = vpop.xlane.xlu1 %2471 }
 0x6c9   : > { %vm2473_vm3 = vcmp.eq.f32.partialorder %v11147_v9, %v11384_v29  ;;  %v2226_v9 = vcvt.f32.s32 %v11177_v41 }
 0x6ca   : > { %v2474_v35 = vsel %vm2473_vm3, %v2469_v39, inf }
 0x6cb   : > { %2475 = vmin.xlane.f32.xlu0 %v2474_v35  ;;  %v2227_v32 = vshll.u32 %v2226_v9, 16  ;;  %v2240_v35 = vcvt.f32.s32 %v11260_v62 }
 0x6cc   : > { %v11389_v42 = vpop.xlane.xlu1 %2457 }
 0x6cd   : > { %vm2459_vm4 = vcmp.eq.f32.partialorder %v11153_v36, %v11389_v42  ;;  %v2241_v11 = vshll.u32 %v2240_v35, 16  ;;  %v2170_v35 = vcvt.f32.s32 %v11314_v46 }
 0x6ce   : > { %v2460_v61 = vsel %vm2459_vm4, %v2455_v63, inf }
 0x6cf   : > { %2461 = vmin.xlane.f32.xlu0 %v2460_v61 }
 0x6e0   : > { %v2056_v31 = vpop.xlane.xlu0 %2055 }
 0x6e1   : > { %v2057_v52 = vcvt.f32.s32 %v2056_v31  ;;  %v2114_v31 = vcvt.f32.s32 %v11267_v51 }
 0x6e3   : > { %v2060_v36 = vadd.s32 %v2059_v13, %v2057_v52  ;;  %v2115_v52 = vshll.u32 %v2114_v31, 16 }
 0x6e4   : > { %v2224_v22 = vpop.xlane.xlu0 %2223 }
 0x6e5   : > { %2483 = vst.msk [vmem:[%s11399_s29 + $0x8] sm:$0xff] %vm2481_vm5, %v2060_v36  ;;  %v2225_v43 = vcvt.f32.s32 %v2224_v22  ;;  %v2282_v36 = vcvt.f32.s32 %v11274_v19 }
 0x6e7   : > { %v2228_v57 = vadd.s32 %v2227_v32, %v2225_v43  ;;  %v2283_v2 = vshll.u32 %v2282_v36, 16  ;;  %v2100_v43 = vcvt.f32.s32 %v11281_v6 }
 0x6e8   : > { %v2042_v41 = vpop.xlane.xlu0 %2041 }
 0x6e9   : > { %2495 = vst.msk [vmem:[%s11399_s29 + $0x68] sm:$0xff] %vm2481_vm5, %v2228_v57  ;;  %v2043_v7 = vcvt.f32.s32 %v2042_v41 }
 0x6eb   : > { %v2046_v5 = vadd.s32 %v2045_v54, %v2043_v7  ;;  %v2101_v54 = vshll.u32 %v2100_v43, 16 }
 0x6ec   : > { %v2210_v40 = vpop.xlane.xlu0 %2209 }
 0x6ed   : > { %2482 = vst.msk [vmem:[%s11399_s29] sm:$0xff] %vm2481_vm5, %v2046_v5  ;;  %v2211_v48 = vcvt.f32.s32 %v2210_v40  ;;  %v2269_v40 = vshll.u32 %v2268_v33, 16 }
 0x6ef   : > { %v2214_v56 = vadd.s32 %v2213_v26, %v2211_v48  ;;  %v2142_v26 = vcvt.f32.s32 %v11294_v47 }
 0x6f0   : > { %v2084_v21 = vpop.xlane.xlu0 %2083 }
 0x6f1   : > { %2494 = vst.msk [vmem:[%s11399_s29 + $0x60] sm:$0xff] %vm2481_vm5, %v2214_v56  ;;  %v2085_v0 = vcvt.f32.s32 %v2084_v21  ;;  %v2143_v56 = vshll.u32 %v2142_v26, 16  ;;  %v2310_v21 = vcvt.f32.s32 %v11299_v45 }
 0x6f3   : > { %v2088_v28 = vadd.s32 %v2087_v15, %v2085_v0  ;;  %v2311_v0 = vshll.u32 %v2310_v21, 16 }
 0x6f4   : > { %v2252_v49 = vpop.xlane.xlu0 %2251 }
 0x6f5   : > { %2485 = vst.msk [vmem:[%s11399_s29 + $0x18] sm:$0xff] %vm2481_vm5, %v2088_v28  ;;  %v2253_v53 = vcvt.f32.s32 %v2252_v49  ;;  %v2128_v28 = vcvt.f32.s32 %v11304_v25 }
 0x6f7   : > { %v2256_v14 = vadd.s32 %v2255_v24, %v2253_v53  ;;  %v2129_v12 = vshll.u32 %v2128_v28, 16  ;;  %v2296_v53 = vcvt.f32.s32 %v11309_v18 }
 0x6f8   : > { %v2070_v39 = vpop.xlane.xlu0 %2069 }
 0x6f9   : > { %2497 = vst.msk [vmem:[%s11399_s29 + $0x78] sm:$0xff] %vm2481_vm5, %v2256_v14  ;;  %v2071_v4 = vcvt.f32.s32 %v2070_v39 }
 0x6fb   : > { %v2074_v63 = vadd.s32 %v2073_v59, %v2071_v4  ;;  %v2297_v59 = vshll.u32 %v2296_v53, 16 }
 0x6fc   : > { %v2238_v61 = vpop.xlane.xlu0 %2237 }
 0x6fd   : > { %2484 = vst.msk [vmem:[%s11399_s29 + $0x10] sm:$0xff] %vm2481_vm5, %v2074_v63  ;;  %v2239_v10 = vcvt.f32.s32 %v2238_v61  ;;  %v2171_v61 = vshll.u32 %v2170_v35, 16 }
 0x6ff   : > { %v2242_v13 = vadd.s32 %v2241_v11, %v2239_v10  ;;  %v2338_v11 = vcvt.f32.s32 %v11319_v1 }
 0x700   : > { %v2112_v9 = vpop.xlane.xlu0 %2111 }
 0x701   : > { %2496 = vst.msk [vmem:[%s11399_s29 + $0x70] sm:$0xff] %vm2481_vm5, %v2242_v13  ;;  %v2113_v62 = vcvt.f32.s32 %v2112_v9  ;;  %v14319_v13 = vld [vmem:[#allocation37_spill] sm:$0xff]  ;;  %v2339_v46 = vshll.u32 %v2338_v11, 16 }
 0x702   : > { %v14327_v11 = vld [vmem:[#allocation45_spill] sm:$0xff] }
 0x703   : > { %v2116_v22 = vadd.s32 %v2115_v52, %v2113_v62  ;;  %v2156_v62 = vcvt.f32.s32 %v11324_v37  ;;  %v14322_v37 = vld [vmem:[#allocation40_spill] sm:$0xff] }
 0x704   : > { %v2280_v32 = vpop.xlane.xlu0 %2279 }
 0x705   : > { %2487 = vst.msk [vmem:[%s11399_s29 + $0x28] sm:$0xff] %vm2481_vm5, %v2116_v22  ;;  %v2281_v51 = vcvt.f32.s32 %v2280_v32  ;;  %v14320_v22 = vld [vmem:[#allocation38_spill] sm:$0xff]  ;;  %v2157_v33 = vshll.u32 %v2156_v62, 16 }
 0x707   : > { %v2284_v57 = vadd.s32 %v2283_v2, %v2281_v51  ;;  %v14321_v51 = vld [vmem:[#allocation39_spill] sm:$0xff] }
 0x708   : > { %v2098_v41 = vpop.xlane.xlu0 %2097 }
 0x709   : > { %2499 = vst.msk [vmem:[%s11399_s29 + $0x88] sm:$0xff] %vm2481_vm5, %v2284_v57  ;;  %v2099_v19 = vcvt.f32.s32 %v2098_v41 }
 0x70b   : > { %v2102_v7 = vadd.s32 %v2101_v54, %v2099_v19  ;;  %v2324_v19 = vcvt.f32.s32 %v11329_v8  ;;  %v14324_v8 = vld [vmem:[#allocation42_spill] sm:$0xff] }
 0x70c   : > { %v2266_v5 = vpop.xlane.xlu0 %2265 }
 0x70d   : > { %2486 = vst.msk [vmem:[%s11399_s29 + $0x20] sm:$0xff] %vm2481_vm5, %v2102_v7  ;;  %v2267_v6 = vcvt.f32.s32 %v2266_v5  ;;  %v2325_v21 = vshll.u32 %v2324_v19, 16 }
 0x70f   : > { %v2270_v23 = vadd.s32 %v2269_v40, %v2267_v6  ;;  %v14323_v6 = vld [vmem:[#allocation41_spill] sm:$0xff] }
 0x710   : > { %v2140_v48 = vpop.xlane.xlu0 %2139 }
 0x711   : > { %2498 = vst.msk [vmem:[%s11399_s29 + $0x80] sm:$0xff] %vm2481_vm5, %v2270_v23  ;;  %v2141_v30 = vcvt.f32.s32 %v2140_v48 }
 0x713   : > { %v2144_v15 = vadd.s32 %v2143_v56, %v2141_v30  ;;  %v2198_v30 = vcvt.f32.s32 %v11334_v38  ;;  %v14326_v38 = vld [vmem:[#allocation44_spill] sm:$0xff] }
 0x714   : > { %v2308_v50 = vpop.xlane.xlu0 %2307 }
 0x715   : > { %2489 = vst.msk [vmem:[%s11399_s29 + $0x38] sm:$0xff] %vm2481_vm5, %v2144_v15  ;;  %v2309_v47 = vcvt.f32.s32 %v2308_v50 }
 0x717   : > { %v2312_v49 = vadd.s32 %v2311_v0, %v2309_v47 }
 0x718   : > { %v2126_v24 = vpop.xlane.xlu0 %2125 }
 0x719   : > { %2501 = vst.msk [vmem:[%s11399_s29 + $0x98] sm:$0xff] %vm2481_vm5, %v2312_v49  ;;  %v2127_v45 = vcvt.f32.s32 %v2126_v24  ;;  %v14325_v49 = vld [vmem:[#allocation43_spill] sm:$0xff] }
 0x71b   : > { %v2130_v14 = vadd.s32 %v2129_v12, %v2127_v45 }
 0x71c   : > { %v2294_v39 = vpop.xlane.xlu0 %2293 }
 0x71d   : > { %2488 = vst.msk [vmem:[%s11399_s29 + $0x30] sm:$0xff] %vm2481_vm5, %v2130_v14  ;;  %v2295_v25 = vcvt.f32.s32 %v2294_v39  ;;  %v2199_v14 = vshll.u32 %v2198_v30, 16  ;;  %v2366_v39 = vcvt.f32.s32 %v11339_v16  ;;  %v2184_v16 = vcvt.f32.s32 %v11344_v20  ;;  %v14331_v30 = vld [vmem:[#allocation49_spill] sm:$0xff] }
 0x71f   : > { %v2298_v4 = vadd.s32 %v2297_v59, %v2295_v25  ;;  %v2185_v20 = vshll.u32 %v2184_v16, 16 }
 0x720   : > { %v2168_v63 = vpop.xlane.xlu0 %2167 }
 0x721   : > { %2500 = vst.msk [vmem:[%s11399_s29 + $0x90] sm:$0xff] %vm2481_vm5, %v2298_v4  ;;  %v2169_v18 = vcvt.f32.s32 %v2168_v63 }
 0x723   : > { %v2172_v31 = vadd.s32 %v2171_v61, %v2169_v18  ;;  %v7727_v10 = vpop.f32.mrb[52].mxu0 }
 0x724   : > { %v2869_v9 = vadd.f32 %v7727_v10, %v14319_v13  ;;  %v2863_v52 = vpop.f32.mrb[53].mxu0  ;;  %v2336_v36 = vpop.xlane.xlu0 %2335 }
 0x725   : > { %2491 = vst.msk [vmem:[%s11399_s29 + $0x48] sm:$0xff] %vm2481_vm5, %v2172_v31  ;;  %v2864_v32 = vadd.f32 %v2863_v52, %v14320_v22  ;;  %v2337_v2 = vcvt.f32.s32 %v2336_v36  ;;  %v2367_v52 = vshll.u32 %v2366_v39, 16  ;;  %v14328_v36 = vld [vmem:[#allocation46_spill] sm:$0xff] }
 0x726   : > { %8838 = vtanh.f32 %v2869_v9 }
 0x727   : > { %8840 = vtanh.f32 %v2864_v32  ;;  %v2340_v1 = vadd.s32 %v2339_v46, %v2337_v2  ;;  %v7730_v43 = vpop.f32.mrb[54].mxu0 }
 0x728   : > { %v2879_v57 = vadd.f32 %v7730_v43, %v14321_v51  ;;  %v2873_v41 = vpop.f32.mrb[55].mxu0  ;;  %v2154_v54 = vpop.xlane.xlu0 %2153 }
 0x729   : > { %2503 = vst.msk [vmem:[%s11399_s29 + $0xa8] sm:$0xff] %vm2481_vm5, %v2340_v1  ;;  %v2874_v7 = vadd.f32 %v2873_v41, %v14322_v37  ;;  %v2155_v5 = vcvt.f32.s32 %v2154_v54 }
 0x72a   : > { %8842 = vtanh.f32 %v2879_v57  ;;  %v14329_v57 = vld [vmem:[#allocation47_spill] sm:$0xff] }
 0x72b   : > { %8844 = vtanh.f32 %v2874_v7  ;;  %v2158_v40 = vadd.s32 %v2157_v33, %v2155_v5  ;;  %v7733_v26 = vpop.f32.mrb[56].mxu0  ;;  %v2352_v7 = vcvt.f32.s32 %v11349_v55  ;;  %v14330_v5 = vld [vmem:[#allocation48_spill] sm:$0xff] }
 0x72c   : > { %v2889_v23 = vadd.f32 %v7733_v26, %v14323_v6  ;;  %v2883_v48 = vpop.f32.mrb[57].mxu0  ;;  %v2322_v56 = vpop.xlane.xlu0 %2321 }
 0x72d   : > { %2490 = vst.msk [vmem:[%s11399_s29 + $0x40] sm:$0xff] %vm2481_vm5, %v2158_v40  ;;  %v2884_v15 = vadd.f32 %v2883_v48, %v14324_v8  ;;  %v2323_v50 = vcvt.f32.s32 %v2322_v56  ;;  %v2353_v55 = vshll.u32 %v2352_v7, 16 }
 0x72e   : > { %8846 = vtanh.f32 %v2889_v23 }
 0x72f   : > { %8848 = vtanh.f32 %v2884_v15  ;;  %v2326_v0 = vadd.s32 %v2325_v21, %v2323_v50  ;;  %v7736_v28 = vpop.f32.mrb[58].mxu0 }
 0x730   : > { %v8839_v47 = vpop.eup %8838  ;;  %v2899_v24 = vadd.f32 %v7736_v28, %v14325_v49  ;;  %v2893_v12 = vpop.f32.mrb[59].mxu0 }
 0x731   : > { %v2196_v53 = vpop.xlane.xlu0 %2195  ;;  %v8841_v45 = vpop.eup %8840  ;;  %2502 = vst.msk [vmem:[%s11399_s29 + $0xa0] sm:$0xff] %vm2481_vm5, %v2326_v0  ;;  %v2894_v59 = vadd.f32 %v2893_v12, %v14326_v38 }
 0x732   : > { %v2197_v35 = vcvt.f32.s32 %v2196_v53  ;;  %8850 = vtanh.f32 %v2899_v24  ;;  %v8309_v25 = vpack.c.bf16 %v8839_v47, %v8841_v45  ;;  %v2394_v47 = vcvt.f32.s32 %v11354_v44  ;;  %v14332_v24 = vld [vmem:[#allocation50_spill] sm:$0xff] }
 0x733   : > { %8852 = vtanh.f32 %v2894_v59  ;;  %v7739_v63 = vpop.f32.mrb[60].mxu0 }
 0x734   : > { %v2200_v4 = vadd.s32 %v2199_v14, %v2197_v35  ;;  %v8843_v61 = vpop.eup %8842  ;;  %v2909_v18 = vadd.f32 %v7739_v63, %v14327_v11  ;;  %v2903_v31 = vpop.f32.mrb[61].mxu0  ;;  %8310 = vmatprep.subr.bf16.mxu1 %v8309_v25  ;;  %v14333_v35 = vld [vmem:[#allocation51_spill] sm:$0xff]  ;;  %v2395_v44 = vshll.u32 %v2394_v47, 16 }
 0x735   : > { %v2364_v10 = vpop.xlane.xlu0 %2363  ;;  %v8845_v9 = vpop.eup %8844  ;;  %v2904_v46 = vadd.f32 %v2903_v31, %v14328_v36  ;;  %8312 = vmatpush3.bf16.msra.mxu1 %v8309_v25  ;;  %v14334_v31 = vld [vmem:[#allocation52_spill] sm:$0xff] }
 0x736   : > { %2493 = vst.msk [vmem:[%s11399_s29 + $0x58] sm:$0xff] %vm2481_vm5, %v2200_v4  ;;  %v2365_v62 = vcvt.f32.s32 %v2364_v10  ;;  %8854 = vtanh.f32 %v2909_v18  ;;  %v8313_v32 = vpack.c.bf16 %v8843_v61, %v8845_v9  ;;  %v2380_v18 = vcvt.f32.s32 %v11359_v17 }
 0x737   : > { %8856 = vtanh.f32 %v2904_v46  ;;  %v7742_v1 = vpop.f32.mrb[62].mxu0 }
 0x738   : > { %v2368_v2 = vadd.s32 %v2367_v52, %v2365_v62  ;;  %v8847_v43 = vpop.eup %8846  ;;  %v2919_v41 = vadd.f32 %v7742_v1, %v14329_v57  ;;  %v2913_v54 = vpop.f32.mrb[63].mxu0  ;;  %8314 = vmatprep.subr.bf16.mxu1 %v8313_v32  ;;  %v2381_v17 = vshll.u32 %v2380_v18, 16 }
 0x739   : > { %v2182_v33 = vpop.xlane.xlu0 %2181  ;;  %v8849_v19 = vpop.eup %8848  ;;  %v2914_v40 = vadd.f32 %v2913_v54, %v14330_v5  ;;  %8316 = vmatpush3.bf16.msra.mxu1 %v8313_v32  ;;  %v14335_v32 = vld [vmem:[#allocation21_spill] sm:$0xff]  ;;  %v2422_v54 = vcvt.f32.s32 %v11364_v58 }
 0x73a   : > { %2505 = vst.msk [vmem:[%s11399_s29 + $0xb8] sm:$0xff] %vm2481_vm5, %v2368_v2  ;;  %v2183_v26 = vcvt.f32.s32 %v2182_v33  ;;  %8858 = vtanh.f32 %v2919_v41  ;;  %v8317_v23 = vpack.c.bf16 %v8847_v43, %v8849_v19  ;;  %v14336_v33 = vld [vmem:[#allocation22_spill] sm:$0xff] }
 0x73b   : > { %8860 = vtanh.f32 %v2914_v40  ;;  %v7745_v56 = vpop.f32.mrb[64].mxu0  ;;  %v2423_v58 = vshll.u32 %v2422_v54, 16  ;;  %v14342_v54 = vld [vmem:[#allocation28_spill] sm:$0xff] }
 0x73c   : > { %v2186_v48 = vadd.s32 %v2185_v20, %v2183_v26  ;;  %v8851_v21 = vpop.eup %8850  ;;  %v2929_v15 = vadd.f32 %v7745_v56, %v14331_v30  ;;  %v2923_v50 = vpop.f32.mrb[65].mxu0  ;;  %8318 = vmatprep.subr.bf16.mxu1 %v8317_v23 }
 0x73d   : > { %v2350_v0 = vpop.xlane.xlu0 %2349  ;;  %v8853_v28 = vpop.eup %8852  ;;  %v2924_v12 = vadd.f32 %v2923_v50, %v14332_v24  ;;  %8320 = vmatpush3.bf16.msra.mxu1 %v8317_v23 }
 0x73e   : > { %2492 = vst.msk [vmem:[%s11399_s29 + $0x50] sm:$0xff] %vm2481_vm5, %v2186_v48  ;;  %v2351_v53 = vcvt.f32.s32 %v2350_v0  ;;  %8862 = vtanh.f32 %v2929_v15  ;;  %v8321_v45 = vpack.c.bf16 %v8851_v21, %v8853_v28  ;;  %v14337_v48 = vld [vmem:[#allocation23_spill] sm:$0xff]  ;;  %v2408_v0 = vcvt.f32.s32 %v11369_v34  ;;  %v14338_v28 = vld [vmem:[#allocation24_spill] sm:$0xff] }
 0x73f   : > { %8864 = vtanh.f32 %v2924_v12  ;;  %v7748_v39 = vpop.f32.mrb[66].mxu0 }
 0x740   : > { %v2354_v14 = vadd.s32 %v2353_v55, %v2351_v53  ;;  %v8855_v59 = vpop.eup %8854  ;;  %v2939_v25 = vadd.f32 %v7748_v39, %v14333_v35  ;;  %v2933_v4 = vpop.f32.mrb[67].mxu0  ;;  %8322 = vmatprep.subr.bf16.mxu1 %v8321_v45  ;;  %v14339_v39 = vld [vmem:[#allocation25_spill] sm:$0xff]  ;;  %v2409_v34 = vshll.u32 %v2408_v0, 16 }
 0x741   : > { %v2392_v63 = vpop.xlane.xlu0 %2391  ;;  %v8857_v61 = vpop.eup %8856  ;;  %v2934_v10 = vadd.f32 %v2933_v4, %v14334_v31  ;;  %8324 = vmatpush3.bf16.msra.mxu1 %v8321_v45 }
 0x742   : > { %2504 = vst.msk [vmem:[%s11399_s29 + $0xb0] sm:$0xff] %vm2481_vm5, %v2354_v14  ;;  %v2393_v9 = vcvt.f32.s32 %v2392_v63  ;;  %8866 = vtanh.f32 %v2939_v25  ;;  %v8325_v52 = vpack.c.bf16 %v8855_v59, %v8857_v61  ;;  %v2450_v61 = vcvt.f32.s32 %v11374_v3 }
 0x743   : > { %8868 = vtanh.f32 %v2934_v10  ;;  %v7847_v46 = vpop.f32.mrb[68].mxu0 }
 0x744   : > { %v2396_v16 = vadd.s32 %v2395_v44, %v2393_v9  ;;  %v8859_v62 = vpop.eup %8858  ;;  %v3976_v2 = vadd.f32 %v7847_v46, %v14335_v32  ;;  %8326 = vmatprep.subr.bf16.mxu1 %v8325_v52  ;;  %v3970_v1 = vpop.f32.mrb[69].mxu0  ;;  %v14340_v44 = vld [vmem:[#allocation26_spill] sm:$0xff] }
 0x745   : > { %v2378_v43 = vpop.xlane.xlu0 %2377  ;;  %v8861_v41 = vpop.eup %8860  ;;  %v3971_v19 = vadd.f32 %v3970_v1, %v14336_v33  ;;  %8328 = vmatpush3.bf16.msra.mxu1 %v8325_v52 }
 0x746   : > { %2507 = vst.msk [vmem:[%s11399_s29 + $0xc8] sm:$0xff] %vm2481_vm5, %v2396_v16  ;;  %v2379_v20 = vcvt.f32.s32 %v2378_v43  ;;  %8870 = vtanh.f32 %v3976_v2  ;;  %v8329_v7 = vpack.c.bf16 %v8859_v62, %v8861_v41  ;;  %v14341_v62 = vld [vmem:[#allocation27_spill] sm:$0xff]  ;;  %v2451_v41 = vshll.u32 %v2450_v61, 16  ;;  %v9227_v61 = vld [vmem:[#allocation8 + $0x28] sm:$0xff] }
 0x747   : > { %8872 = vtanh.f32 %v3971_v19  ;;  %v7850_v26 = vpop.f32.mrb[70].mxu0 }
 0x748   : > { %v2382_v40 = vadd.s32 %v2381_v17, %v2379_v20  ;;  %v8863_v23 = vpop.eup %8862  ;;  %v3986_v56 = vadd.f32 %v7850_v26, %v14337_v48  ;;  %8330 = vmatprep.subr.bf16.mxu1 %v8329_v7  ;;  %v3980_v21 = vpop.f32.mrb[71].mxu0  ;;  %v2436_v17 = vcvt.f32.s32 %v11379_v27 }
 0x749   : > { %v2420_v15 = vpop.xlane.xlu0 %2419  ;;  %v8865_v50 = vpop.eup %8864  ;;  %v3981_v55 = vadd.f32 %v3980_v21, %v14338_v28  ;;  %8332 = vmatpush3.bf16.msra.mxu1 %v8329_v7 }
 0x74a   : > { %2506 = vst.msk [vmem:[%s11399_s29 + $0xc0] sm:$0xff] %vm2481_vm5, %v2382_v40  ;;  %v2421_v47 = vcvt.f32.s32 %v2420_v15  ;;  %8874 = vtanh.f32 %v3986_v56  ;;  %v8333_v12 = vpack.c.bf16 %v8863_v23, %v8865_v50  ;;  %v9223_v23 = vld [vmem:[#allocation8 + $0x8] sm:$0xff]  ;;  %v2437_v21 = vshll.u32 %v2436_v17, 16  ;;  %v9234_v17 = vld [vmem:[#allocation7 + $0x10] sm:$0xff] }
 0x74b   : > { %8876 = vtanh.f32 %v3981_v55  ;;  %v7853_v45 = vpop.f32.mrb[72].mxu0  ;;  %v2478_v15 = vcvt.f32.s32 %v11384_v29 }
 0x74c   : > { %v2424_v53 = vadd.s32 %v2423_v58, %v2421_v47  ;;  %v8867_v14 = vpop.eup %8866  ;;  %v3996_v59 = vadd.f32 %v7853_v45, %v14339_v39  ;;  %8334 = vmatprep.subr.bf16.mxu1 %v8333_v12  ;;  %v3990_v25 = vpop.f32.mrb[73].mxu0  ;;  %v9224_v58 = vld [vmem:[#allocation8 + $0x10] sm:$0xff] }
 0x74d   : > { %v2406_v4 = vpop.xlane.xlu0 %2405  ;;  %v8869_v63 = vpop.eup %8868  ;;  %v3991_v18 = vadd.f32 %v3990_v25, %v14340_v44  ;;  %8336 = vmatpush3.bf16.msra.mxu1 %v8333_v12  ;;  %v9225_v12 = vld [vmem:[#allocation8 + $0x18] sm:$0xff]  ;;  %v2479_v29 = vshll.u32 %v2478_v15, 16  ;;  %v9226_v25 = vld [vmem:[#allocation8 + $0x20] sm:$0xff] }
 0x74e   : > { %2509 = vst.msk [vmem:[%s11399_s29 + $0xd8] sm:$0xff] %vm2481_vm5, %v2424_v53  ;;  %v2407_v10 = vcvt.f32.s32 %v2406_v4  ;;  %8878 = vtanh.f32 %v3996_v59  ;;  %v8337_v9 = vpack.c.bf16 %v8867_v14, %v8869_v63  ;;  %v2464_v14 = vcvt.f32.s32 %v11389_v42  ;;  %v9244_v15 = vld [vmem:[#allocation7 + $0x38] sm:$0xff] }
 0x74f   : > { %8880 = vtanh.f32 %v3991_v18  ;;  %v7856_v16 = vpop.f32.mrb[74].mxu0 }
 0x750   : > { %v2410_v52 = vadd.s32 %v2409_v34, %v2407_v10  ;;  %v8871_v46 = vpop.eup %8870  ;;  %v4006_v2 = vadd.f32 %v7856_v16, %v14341_v62  ;;  %8338 = vmatprep.subr.bf16.mxu1 %v8337_v9  ;;  %v4000_v1 = vpop.f32.mrb[75].mxu0  ;;  %v2465_v10 = vshll.u32 %v2464_v14, 16  ;;  %v9254_v14 = vld [vmem:[#allocation8 + $0xc0] sm:$0xff] }
 0x751   : > { %v2448_v3 = vpop.xlane.xlu0 %2447  ;;  %v8873_v43 = vpop.eup %8872  ;;  %6855 = vst [vmem:[%s10360_s7 + $0x288] sm:$0xff] %v8871_v46  ;;  %v4001_v19 = vadd.f32 %v4000_v1, %v14342_v54  ;;  %8340 = vmatpush3.bf16.msra.mxu1 %v8337_v9  ;;  %v9230_v1 = vld [vmem:[#allocation8 + $0x40] sm:$0xff] }
 0x752   : > { %2508 = vst.msk [vmem:[%s11399_s29 + $0xd0] sm:$0xff] %vm2481_vm5, %v2410_v52  ;;  %v2449_v20 = vcvt.f32.s32 %v2448_v3  ;;  %6854 = vst [vmem:[%s10360_s7 + $0x280] sm:$0xff] %v8873_v43  ;;  %8882 = vtanh.f32 %v4006_v2  ;;  %v8357_v7 = vpack.c.bf16 %v8871_v46, %v8873_v43  ;;  %v9228_v52 = vld [vmem:[#allocation8 + $0x30] sm:$0xff]  ;;  %v9229_v2 = vld [vmem:[#allocation8 + $0x38] sm:$0xff] }
 0x753   : > { %8884 = vtanh.f32 %v4001_v19  ;;  %v9231_v3 = vld [vmem:[#allocation8 + $0x48] sm:$0xff]  ;;  %v9235_v19 = vld [vmem:[#allocation8 + $0x58] sm:$0xff] }
 0x754   : > { %v2452_v40 = vadd.s32 %v2451_v41, %v2449_v20  ;;  %v8875_v26 = vpop.eup %8874  ;;  %7782 = vmatmul.mubr.f32.vlgmr.msra.gmra.mrb[28].mxu1 %v9223_v23  ;;  %8358 = vmatprep.subr.bf16.mxu0 %v8357_v7  ;;  %v9232_v43 = vld [vmem:[#allocation7 + $0x8] sm:$0xff]  ;;  %v9233_v41 = vld [vmem:[#allocation8 + $0x50] sm:$0xff]  ;;  %v9236_v20 = vld [vmem:[#allocation7 + $0x18] sm:$0xff] }
 0x755   : > { %v2434_v27 = vpop.xlane.xlu0 %2433  ;;  %v8877_v56 = vpop.eup %8876  ;;  %6857 = vst [vmem:[%s10360_s7 + $0x298] sm:$0xff] %v8875_v26  ;;  %8360 = vmatpush3.bf16.msra.mxu0 %v8357_v7  ;;  %7784 = vmatprep.mubr.f32.mxu1 %v9224_v58  ;;  %v9237_v7 = vld [vmem:[#allocation8 + $0x60] sm:$0xff]  ;;  %v9240_v23 = vld [vmem:[#allocation7 + $0x28] sm:$0xff]  ;;  %v9246_v58 = vld [vmem:[%s14221_s18] sm:$0xff] }
 0x756   : > { %2511 = vst.msk [vmem:[%s11399_s29 + $0xe8] sm:$0xff] %vm2481_vm5, %v2452_v40  ;;  %v2435_v50 = vcvt.f32.s32 %v2434_v27  ;;  %6856 = vst [vmem:[%s10360_s7 + $0x290] sm:$0xff] %v8877_v56  ;;  %v8361_v0 = vpack.c.bf16 %v8875_v26, %v8877_v56  ;;  %v9238_v40 = vld [vmem:[#allocation7 + $0x20] sm:$0xff]  ;;  %v9239_v26 = vld [vmem:[#allocation8 + $0x68] sm:$0xff] }
 0x757   : > { %v9241_v27 = vld [vmem:[#allocation8 + $0x70] sm:$0xff] }
 0x758   : > { %v2438_v55 = vadd.s32 %v2437_v21, %v2435_v50  ;;  %v8879_v47 = vpop.eup %8878  ;;  %7785 = vmatmul.mubr.f32.gmra.mrb[30].mxu1 %v9225_v12  ;;  %8362 = vmatprep.subr.bf16.mxu0 %v8361_v0  ;;  %v9242_v56 = vld [vmem:[#allocation7 + $0x30] sm:$0xff]  ;;  %v9243_v21 = vld [vmem:[#allocation8 + $0x78] sm:$0xff]  ;;  %v9245_v50 = vld [vmem:[#allocation8 + $0x80] sm:$0xff] }
 0x759   : > { %v2476_v53 = vpop.xlane.xlu0 %2475  ;;  %v8881_v45 = vpop.eup %8880  ;;  %6859 = vst [vmem:[%s10360_s7 + $0x2a8] sm:$0xff] %v8879_v47  ;;  %8364 = vmatpush3.bf16.msra.mxu0 %v8361_v0  ;;  %7787 = vmatprep.mubr.f32.mxu1 %v9226_v25  ;;  %v9247_v0 = vld [vmem:[#allocation8 + $0x88] sm:$0xff]  ;;  %v9250_v12 = vld [vmem:[#allocation8 + $0xa0] sm:$0xff]  ;;  %v9256_v25 = vld [vmem:[#allocation8 + $0xd0] sm:$0xff] }
 0x75a   : > { %2510 = vst.msk [vmem:[%s11399_s29 + $0xe0] sm:$0xff] %vm2481_vm5, %v2438_v55  ;;  %v2477_v59 = vcvt.f32.s32 %v2476_v53  ;;  %6858 = vst [vmem:[%s10360_s7 + $0x2a0] sm:$0xff] %v8881_v45  ;;  %v8365_v4 = vpack.c.bf16 %v8879_v47, %v8881_v45  ;;  %v9248_v55 = vld [vmem:[#allocation8 + $0x90] sm:$0xff]  ;;  %v9249_v47 = vld [vmem:[#allocation8 + $0x98] sm:$0xff] }
 0x75b   : > { %v9251_v53 = vld [vmem:[#allocation8 + $0xa8] sm:$0xff]  ;;  %v9252_v45 = vld [vmem:[#allocation8 + $0xb0] sm:$0xff] }
 0x75c   : > { %v2480_v63 = vadd.s32 %v2479_v29, %v2477_v59  ;;  %v8883_v34 = vpop.eup %8882  ;;  %7788 = vmatmul.mubr.f32.gmra.mrb[32].mxu1 %v9227_v61  ;;  %8366 = vmatprep.subr.bf16.mxu0 %v8365_v4  ;;  %v9253_v29 = vld [vmem:[#allocation8 + $0xb8] sm:$0xff]  ;;  %v9255_v59 = vld [vmem:[#allocation8 + $0xc8] sm:$0xff]  ;;  %v9260_v61 = vld [vmem:[#allocation8 + $0xf0] sm:$0xff] }
 0x75d   : > { %v2462_v18 = vpop.xlane.xlu0 %2461  ;;  %v8885_v42 = vpop.eup %8884  ;;  %6861 = vst [vmem:[%s10360_s7 + $0x2b8] sm:$0xff] %v8883_v34  ;;  %8368 = vmatpush3.bf16.msra.mxu0 %v8365_v4  ;;  %7790 = vmatprep.mubr.f32.mxu1 %v9228_v52  ;;  %v9257_v4 = vld [vmem:[#allocation8 + $0xd8] sm:$0xff] }
 0x75e   : > { %2513 = vst.msk [vmem:[%s11399_s29 + $0xf8] sm:$0xff] %vm2481_vm5, %v2480_v63  ;;  %v2463_v9 = vcvt.f32.s32 %v2462_v18  ;;  %6860 = vst [vmem:[%s10360_s7 + $0x2b0] sm:$0xff] %v8885_v42  ;;  %v8369_v16 = vpack.c.bf16 %v8883_v34, %v8885_v42  ;;  %v9258_v63 = vld [vmem:[#allocation8 + $0xe0] sm:$0xff]  ;;  %v9259_v34 = vld [vmem:[#allocation8 + $0xe8] sm:$0xff] }
 0x75f   : > { %v9261_v18 = vld [vmem:[#allocation8 + $0xf8] sm:$0xff]  ;;  %v9262_v42 = vld [vmem:[#allocation8] sm:$0xff] }
 0x760   : > { %v2466_v46 = vadd.s32 %v2465_v10, %v2463_v9  ;;  %7791 = vmatmul.mubr.f32.gmra.mrb[34].mxu1 %v9229_v2  ;;  %8370 = vmatprep.subr.bf16.mxu0 %v8369_v16  ;;  %v14343_v9 = vld [vmem:[#allocation55_spill] sm:$0xff] }
 0x761   : > { %8372 = vmatpush3.bf16.msra.mxu0 %v8369_v16  ;;  %7793 = vmatprep.mubr.f32.mxu1 %v9230_v1 }
 0x762   : > { %2512 = vst.msk [vmem:[%s11399_s29 + $0xf0] sm:$0xff] %vm2481_vm5, %v2466_v46  ;;  %v14344_v46 = vld [vmem:[#allocation53_spill] sm:$0xff] }
 0x764   : > { %7794 = vmatmul.mubr.f32.gmra.mrb[36].mxu1 %v9231_v3  ;;  %7874 = vmatmul.mubr.msk.f32.vlgmr.msra.gmra.mrb[76].mxu0 %vm844_vm0, %v9232_v43  ;;  %v14345_v3 = vld [vmem:[#allocation57_spill] sm:$0xff] }
 0x765   : > { %7796 = vmatprep.mubr.f32.mxu1 %v9233_v41  ;;  %7876 = vmatprep.mubr.msk.f32.mxu0 %vm844_vm0, %v9234_v17  ;;  %v14346_v17 = vld [vmem:[#allocation54_spill] sm:$0xff] }
 0x768   : > { %7797 = vmatmul.mubr.f32.gmra.mrb[38].mxu1 %v9235_v19  ;;  %7877 = vmatmul.mubr.msk.f32.gmra.mrb[78].mxu0 %vm844_vm0, %v9236_v20 }
 0x769   : > { %7799 = vmatprep.mubr.f32.mxu1 %v9237_v7  ;;  %7879 = vmatprep.mubr.msk.f32.mxu0 %vm844_vm0, %v9238_v40  ;;  %v14347_v7 = vld [vmem:[#allocation59_spill] sm:$0xff] }
 0x76c   : > { %7800 = vmatmul.mubr.f32.gmra.mrb[40].mxu1 %v9239_v26  ;;  %7880 = vmatmul.mubr.msk.f32.gmra.mrb[80].mxu0 %vm844_vm0, %v9240_v23  ;;  %v14348_v23 = vld [vmem:[#allocation56_spill] sm:$0xff] }
 0x76d   : > { %7802 = vmatprep.mubr.f32.mxu1 %v9241_v27  ;;  %7882 = vmatprep.mubr.msk.f32.mxu0 %vm844_vm0, %v9242_v56 }
 0x770   : > { %7803 = vmatmul.mubr.f32.gmra.mrb[42].mxu1 %v9243_v21  ;;  %7883 = vmatmul.mubr.msk.f32.gmra.mrb[82].mxu0 %vm844_vm0, %v9244_v15  ;;  %v14349_v15 = vld [vmem:[#allocation61_spill] sm:$0xff] }
 0x771   : > { %7805 = vmatprep.mubr.f32.mxu1 %v9245_v50  ;;  %7901 = vmatprep.mubr.msk.f32.mxu0 %vm844_vm0, %v9246_v58 }
 0x774   : > { %7806 = vmatmul.mubr.f32.gmra.mrb[44].mxu1 %v9247_v0 }
 0x775   : > { %7808 = vmatprep.mubr.f32.mxu1 %v9248_v55  ;;  %v14350_v55 = vld [vmem:[#allocation58_spill] sm:$0xff] }
 0x778   : > { %7809 = vmatmul.mubr.f32.gmra.mrb[46].mxu1 %v9249_v47 }
 0x779   : > { %7811 = vmatprep.mubr.f32.mxu1 %v9250_v12 }
 0x77c   : > { %7812 = vmatmul.mubr.f32.gmra.mrb[48].mxu1 %v9251_v53 }
 0x77d   : > { %7814 = vmatprep.mubr.f32.mxu1 %v9252_v45 }
 0x780   : > { %7815 = vmatmul.mubr.f32.gmra.mrb[50].mxu1 %v9253_v29  ;;  %v14351_v29 = vld [vmem:[#allocation63_spill] sm:$0xff] }
 0x781   : > { %7817 = vmatprep.mubr.f32.mxu1 %v9254_v14 }
 0x784   : > { %7818 = vmatmul.mubr.f32.gmra.mrb[52].mxu1 %v9255_v59  ;;  %v14352_v59 = vld [vmem:[#allocation29_spill] sm:$0xff] }
 0x785   : > { %7820 = vmatprep.mubr.f32.mxu1 %v9256_v25 }
 0x788   : > { %7821 = vmatmul.mubr.f32.gmra.mrb[54].mxu1 %v9257_v4 }
 0x789   : > { %7823 = vmatprep.mubr.f32.mxu1 %v9258_v63 }
 0x78c   : > { %7824 = vmatmul.mubr.f32.gmra.mrb[56].mxu1 %v9259_v34 }
 0x78d   : > { %7826 = vmatprep.mubr.f32.mxu1 %v9260_v61  ;;  %v14353_v61 = vld [vmem:[#allocation60_spill] sm:$0xff] }
 0x790   : > { %7827 = vmatmul.mubr.f32.gmra.mrb[58].mxu1 %v9261_v18 }
 0x791   : > { %7957 = vmatprep.mubr.f32.mxu1 %v9262_v42  ;;  %v14354_v42 = vld [vmem:[#allocation30_spill] sm:$0xff] }
 0x827   : > { %v7783_v10 = vpop.f32.mrb[28].mxu1 }
 0x828   : > { %v3030_v52 = vadd.f32 %v7783_v10, %v14343_v9  ;;  %v3024_v16 = vpop.f32.mrb[29].mxu1 }
 0x829   : > { %v3025_v2 = vadd.f32 %v3024_v16, %v14344_v46  ;;  %v9283_v46 = vld [vmem:[#allocation5 + $0x28] sm:$0xff] }
 0x82a   : > { %8886 = vtanh.f32 %v3030_v52 }
 0x82b   : > { %8888 = vtanh.f32 %v3025_v2  ;;  %v7786_v1 = vpop.f32.mrb[30].mxu1 }
 0x82c   : > { %v3040_v43 = vadd.f32 %v7786_v1, %v14345_v3  ;;  %v3034_v41 = vpop.f32.mrb[31].mxu1  ;;  %v14355_v1 = vld [vmem:[#allocation65_spill] sm:$0xff]  ;;  %v9281_v3 = vld [vmem:[#allocation5 + $0x18] sm:$0xff] }
 0x82d   : > { %v3035_v19 = vadd.f32 %v3034_v41, %v14346_v17  ;;  %v14356_v41 = vld [vmem:[#allocation31_spill] sm:$0xff]  ;;  %v9279_v17 = vld [vmem:[#allocation5 + $0x8] sm:$0xff] }
 0x82e   : > { %8890 = vtanh.f32 %v3040_v43 }
 0x82f   : > { %8892 = vtanh.f32 %v3035_v19  ;;  %v7789_v20 = vpop.f32.mrb[32].mxu1 }
 0x830   : > { %v3050_v40 = vadd.f32 %v7789_v20, %v14347_v7  ;;  %v3044_v26 = vpop.f32.mrb[33].mxu1  ;;  %v9278_v7 = vld [vmem:[#allocation5] sm:$0xff] }
 0x831   : > { %v3045_v27 = vadd.f32 %v3044_v26, %v14348_v23  ;;  %v9269_v23 = vld [vmem:[%s14221_s18 + $0x38] sm:$0xff] }
 0x832   : > { %8894 = vtanh.f32 %v3050_v40 }
 0x833   : > { %8896 = vtanh.f32 %v3045_v27  ;;  %v7792_v56 = vpop.f32.mrb[34].mxu1  ;;  %v14357_v27 = vld [vmem:[#allocation62_spill] sm:$0xff] }
 0x834   : > { %v11544_v21 = vpop.eup %8886  ;;  %v3060_v50 = vadd.f32 %v7792_v56, %v14349_v15  ;;  %v3054_v58 = vpop.f32.mrb[35].mxu1 }
 0x835   : > { %v11547_v0 = vpop.eup %8888  ;;  %v3055_v47 = vadd.f32 %v3054_v58, %v14350_v55  ;;  %3217 = vmax.xlane.f32.xlu0 %v11544_v21  ;;  %v9267_v55 = vld [vmem:[%s14221_s18 + $0x28] sm:$0xff] }
 0x836   : > { %8898 = vtanh.f32 %v3060_v50  ;;  %3215 = vmax.xlane.f32.xlu1 %v11547_v0  ;;  %v14358_v50 = vld [vmem:[#allocation32_spill] sm:$0xff] }
 0x837   : > { %8900 = vtanh.f32 %v3055_v47  ;;  %v7795_v12 = vpop.f32.mrb[36].mxu1  ;;  %v7875_v53 = vpop.f32.mrb[76].mxu0 }
 0x838   : > { %v11552_v45 = vpop.eup %8890  ;;  %v3070_v14 = vadd.f32 %v7795_v12, %v14351_v29  ;;  %v4098_v25 = vadd.f32 %v7875_v53, %v14352_v59  ;;  %v3064_v4 = vpop.f32.mrb[37].mxu1  ;;  %v14376_v59 = vld [vmem:[#allocation76_spill] sm:$0xff] }
 0x839   : > { %v4092_v63 = vpop.f32.mrb[77].mxu0  ;;  %v11556_v34 = vpop.eup %8892  ;;  %v3065_v18 = vadd.f32 %v3064_v4, %v14353_v61  ;;  %3221 = vmax.xlane.f32.xlu0 %v11552_v45  ;;  %v14360_v4 = vld [vmem:[#allocation33_spill] sm:$0xff] }
 0x83a   : > { %v4093_v10 = vadd.f32 %v4092_v63, %v14354_v42  ;;  %8902 = vtanh.f32 %v3070_v14  ;;  %3219 = vmax.xlane.f32.xlu1 %v11556_v34  ;;  %v14359_v14 = vld [vmem:[#allocation67_spill] sm:$0xff] }
 0x83b   : > { %8904 = vtanh.f32 %v4098_v25  ;;  %v7798_v52 = vpop.f32.mrb[38].mxu1  ;;  %v7878_v16 = vpop.f32.mrb[78].mxu0 }
 0x83c   : > { %v11562_v2 = vpop.eup %8894  ;;  %8906 = vtanh.f32 %v3065_v18  ;;  %v3080_v43 = vadd.f32 %v7798_v52, %v14355_v1  ;;  %v4108_v19 = vadd.f32 %v7878_v16, %v14356_v41  ;;  %v3074_v20 = vpop.f32.mrb[39].mxu1  ;;  %v14361_v16 = vld [vmem:[#allocation64_spill] sm:$0xff] }
 0x83d   : > { %v4102_v40 = vpop.f32.mrb[79].mxu0  ;;  %v11566_v26 = vpop.eup %8896  ;;  %8908 = vtanh.f32 %v4093_v10  ;;  %v3075_v56 = vadd.f32 %v3074_v20, %v14357_v27  ;;  %3225 = vmax.xlane.f32.xlu0 %v11562_v2 }
 0x83e   : > { %v4103_v58 = vadd.f32 %v4102_v40, %v14358_v50  ;;  %8910 = vtanh.f32 %v3080_v43  ;;  %3223 = vmax.xlane.f32.xlu1 %v11566_v26  ;;  %v14362_v43 = vld [vmem:[#allocation34_spill] sm:$0xff] }
 0x83f   : > { %8912 = vtanh.f32 %v4108_v19  ;;  %v7801_v47 = vpop.f32.mrb[40].mxu1  ;;  %v7881_v12 = vpop.f32.mrb[80].mxu0 }
 0x840   : > { %v11572_v53 = vpop.eup %8898  ;;  %8914 = vtanh.f32 %v3075_v56  ;;  %v3090_v25 = vadd.f32 %v7801_v47, %v14359_v14  ;;  %v4118_v63 = vadd.f32 %v7881_v12, %v14360_v4  ;;  %v3084_v18 = vpop.f32.mrb[41].mxu1  ;;  %v14363_v12 = vld [vmem:[#allocation69_spill] sm:$0xff]  ;;  %v14364_v14 = vld [vmem:[#allocation35_spill] sm:$0xff] }
 0x841   : > { %v4112_v10 = vpop.f32.mrb[81].mxu0  ;;  %v11576_v52 = vpop.eup %8900  ;;  %8916 = vtanh.f32 %v4103_v58  ;;  %v3085_v20 = vadd.f32 %v3084_v18, %v14361_v16  ;;  %3229 = vmax.xlane.f32.xlu0 %v11572_v53 }
 0x842   : > { %v4113_v40 = vadd.f32 %v4112_v10, %v14362_v43  ;;  %8918 = vtanh.f32 %v3090_v25  ;;  %3227 = vmax.xlane.f32.xlu1 %v11576_v52  ;;  %v14365_v10 = vld [vmem:[#allocation66_spill] sm:$0xff] }
 0x843   : > { %8920 = vtanh.f32 %v4118_v63  ;;  %v7804_v19 = vpop.f32.mrb[42].mxu1  ;;  %v7884_v56 = vpop.f32.mrb[82].mxu0 }
 0x844   : > { %v11582_v47 = vpop.eup %8902  ;;  %8922 = vtanh.f32 %v3085_v20  ;;  %v3100_v4 = vadd.f32 %v7804_v19, %v14363_v12  ;;  %v4128_v50 = vadd.f32 %v7884_v56, %v14364_v14  ;;  %v3094_v58 = vpop.f32.mrb[43].mxu1  ;;  %v14366_v56 = vld [vmem:[#allocation71_spill] sm:$0xff] }
 0x845   : > { %v4122_v27 = vpop.f32.mrb[83].mxu0  ;;  %v8905_v18 = vpop.eup %8904  ;;  %8924 = vtanh.f32 %v4113_v40  ;;  %v3095_v43 = vadd.f32 %v3094_v58, %v14365_v10  ;;  %3233 = vmax.xlane.f32.xlu0 %v11582_v47 }
 0x846   : > { %v4123_v25 = vadd.f32 %v4122_v27, %v10402_v60  ;;  %v11589_v63 = vpop.eup %8906  ;;  %8926 = vtanh.f32 %v3100_v4  ;;  %v14367_v27 = vld [vmem:[#allocation68_spill] sm:$0xff] }
 0x847   : > { %v8909_v16 = vpop.eup %8908  ;;  %8928 = vtanh.f32 %v4128_v50  ;;  %3231 = vmax.xlane.f32.xlu1 %v11589_v63  ;;  %v7807_v20 = vpop.f32.mrb[44].mxu1 }
 0x848   : > { %v11592_v19 = vpop.eup %8910  ;;  %8930 = vtanh.f32 %v3095_v43  ;;  %v3110_v14 = vadd.f32 %v7807_v20, %v14366_v56  ;;  %v3104_v40 = vpop.f32.mrb[45].mxu1  ;;  %v8373_v12 = vpack.c.bf16 %v8905_v18, %v8909_v16  ;;  %v14368_v20 = vld [vmem:[#allocation73_spill] sm:$0xff] }
 0x849   : > { %v8913_v58 = vpop.eup %8912  ;;  %8932 = vtanh.f32 %v4123_v25  ;;  %v3105_v60 = vadd.f32 %v3104_v40, %v14367_v27  ;;  %3237 = vmax.xlane.f32.xlu0 %v11592_v19  ;;  %v14369_v40 = vld [vmem:[#allocation70_spill] sm:$0xff] }
 0x84a   : > { %v11597_v10 = vpop.eup %8914  ;;  %8934 = vtanh.f32 %v3110_v14  ;;  %8374 = vmatprep.subr.bf16.mxu0 %v8373_v12 }
 0x84b   : > { %v8917_v50 = vpop.eup %8916  ;;  %8936 = vtanh.f32 %v3105_v60  ;;  %8376 = vmatpush3.bf16.msra.mxu0 %v8373_v12  ;;  %3235 = vmax.xlane.f32.xlu1 %v11597_v10  ;;  %v7810_v4 = vpop.f32.mrb[46].mxu1 }
 0x84c   : > { %v11600_v43 = vpop.eup %8918  ;;  %v3120_v16 = vadd.f32 %v7810_v4, %v14368_v20  ;;  %v3114_v18 = vpop.f32.mrb[47].mxu1  ;;  %v8377_v25 = vpack.c.bf16 %v8913_v58, %v8917_v50  ;;  %v14370_v4 = vld [vmem:[#allocation75_spill] sm:$0xff] }
 0x84d   : > { %v8921_v56 = vpop.eup %8920  ;;  %v3115_v27 = vadd.f32 %v3114_v18, %v14369_v40  ;;  %3241 = vmax.xlane.f32.xlu0 %v11600_v43  ;;  %v14371_v18 = vld [vmem:[#allocation72_spill] sm:$0xff] }
 0x84e   : > { %v11605_v41 = vpop.eup %8922  ;;  %8938 = vtanh.f32 %v3120_v16  ;;  %8378 = vmatprep.subr.bf16.mxu0 %v8377_v25 }
 0x84f   : > { %v8925_v60 = vpop.eup %8924  ;;  %8940 = vtanh.f32 %v3115_v27  ;;  %8380 = vmatpush3.bf16.msra.mxu0 %v8377_v25  ;;  %3239 = vmax.xlane.f32.xlu1 %v11605_v41  ;;  %v7813_v14 = vpop.f32.mrb[48].mxu1 }
 0x850   : > { %v11608_v12 = vpop.eup %8926  ;;  %v3130_v20 = vadd.f32 %v7813_v14, %v14370_v4  ;;  %v3124_v58 = vpop.f32.mrb[49].mxu1  ;;  %v8381_v50 = vpack.c.bf16 %v8921_v56, %v8925_v60  ;;  %v14372_v14 = vld [vmem:[#allocation77_spill] sm:$0xff] }
 0x851   : > { %v8929_v1 = vpop.eup %8928  ;;  %v3125_v40 = vadd.f32 %v3124_v58, %v14371_v18  ;;  %3245 = vmax.xlane.f32.xlu0 %v11608_v12  ;;  %v14373_v58 = vld [vmem:[#allocation74_spill] sm:$0xff] }
 0x852   : > { %v11613_v42 = vpop.eup %8930  ;;  %8942 = vtanh.f32 %v3130_v20  ;;  %8382 = vmatprep.subr.bf16.mxu0 %v8381_v50 }
 0x853   : > { %v8933_v27 = vpop.eup %8932  ;;  %8944 = vtanh.f32 %v3125_v40  ;;  %8384 = vmatpush3.bf16.msra.mxu0 %v8381_v50  ;;  %3243 = vmax.xlane.f32.xlu1 %v11613_v42  ;;  %v7816_v16 = vpop.f32.mrb[50].mxu1  ;;  %v14374_v50 = vld [vmem:[#allocation17_spill] sm:$0xff] }
 0x854   : > { %v11616_v25 = vpop.eup %8934  ;;  %v3140_v4 = vadd.f32 %v7816_v16, %v14372_v14  ;;  %v3134_v56 = vpop.f32.mrb[51].mxu1  ;;  %v8385_v60 = vpack.c.bf16 %v8929_v1, %v8933_v27  ;;  %v14375_v16 = vld [vmem:[#allocation79_spill] sm:$0xff] }
 0x855   : > { %v11619_v61 = vpop.eup %8936  ;;  %v3135_v18 = vadd.f32 %v3134_v56, %v14373_v58  ;;  %3249 = vmax.xlane.f32.xlu0 %v11616_v25  ;;  %v9265_v58 = vld [vmem:[%s14221_s18 + $0x18] sm:$0xff] }
 0x856   : > { %8946 = vtanh.f32 %v3140_v4  ;;  %8386 = vmatprep.subr.bf16.mxu0 %v8385_v60  ;;  %v9263_v4 = vld [vmem:[%s14221_s18 + $0x8] sm:$0xff] }
 0x857   : > { %8948 = vtanh.f32 %v3135_v18  ;;  %8388 = vmatpush3.bf16.msra.mxu0 %v8385_v60  ;;  %3247 = vmax.xlane.f32.xlu1 %v11619_v61  ;;  %v7819_v20 = vpop.f32.mrb[52].mxu1 }
 0x858   : > { %v11624_v40 = vpop.eup %8938  ;;  %8422 = vmatprep.subr.bf16.mxu0 %v14374_v50  ;;  %v3150_v14 = vadd.f32 %v7819_v20, %v14375_v16  ;;  %v3144_v1 = vpop.f32.mrb[53].mxu1  ;;  %v14377_v20 = vld [vmem:[#allocation18_spill] sm:$0xff] }
 0x859   : > { %v11628_v27 = vpop.eup %8940  ;;  %v3145_v56 = vadd.f32 %v3144_v1, %v14376_v59  ;;  %3253 = vmax.xlane.f32.xlu0 %v11624_v40  ;;  %v14378_v1 = vld [vmem:[#allocation81_spill] sm:$0xff] }
 0x85a   : > { %8950 = vtanh.f32 %v3150_v14  ;;  %7902 = vmatmul.mubr.msk.f32.vlgmr.msra.gmra.mrb[84].mxu0 %vm844_vm0, %v9263_v4  ;;  %v9264_v14 = vld [vmem:[%s14221_s18 + $0x10] sm:$0xff] }
 0x85b   : > { %8952 = vtanh.f32 %v3145_v56  ;;  %8424 = vmatpush3.bf16.msra.mxu0 %v14374_v50  ;;  %3251 = vmax.xlane.f32.xlu1 %v11628_v27  ;;  %v7822_v18 = vpop.f32.mrb[54].mxu1  ;;  %v14379_v56 = vld [vmem:[#allocation78_spill] sm:$0xff] }
 0x85c   : > { %v11638_v60 = vpop.eup %8942  ;;  %8426 = vmatprep.subr.bf16.mxu0 %v14377_v20  ;;  %v3160_v59 = vadd.f32 %v7822_v18, %v14378_v1  ;;  %7904 = vmatprep.mubr.msk.f32.mxu0 %vm844_vm0, %v9264_v14  ;;  %v3154_v16 = vpop.f32.mrb[55].mxu1  ;;  %v14380_v1 = vld [vmem:[#allocation19_spill] sm:$0xff] }
 0x85d   : > { %v11646_v4 = vpop.eup %8944  ;;  %v3155_v50 = vadd.f32 %v3154_v16, %v14379_v56  ;;  %3257 = vmax.xlane.f32.xlu0 %v11638_v60  ;;  %v14381_v16 = vld [vmem:[#allocation83_spill] sm:$0xff] }
 0x85e   : > { %8954 = vtanh.f32 %v3160_v59  ;;  %7905 = vmatmul.mubr.msk.f32.gmra.mrb[86].mxu0 %vm844_vm0, %v9265_v58  ;;  %v9266_v59 = vld [vmem:[%s14221_s18 + $0x20] sm:$0xff] }
 0x85f   : > { %8956 = vtanh.f32 %v3155_v50  ;;  %8428 = vmatpush3.bf16.msra.mxu0 %v14377_v20  ;;  %3255 = vmax.xlane.f32.xlu1 %v11646_v4  ;;  %v7825_v18 = vpop.f32.mrb[56].mxu1  ;;  %v14382_v50 = vld [vmem:[#allocation80_spill] sm:$0xff] }
 0x860   : > { %v11656_v14 = vpop.eup %8946  ;;  %8430 = vmatprep.subr.bf16.mxu0 %v14380_v1  ;;  %v3170_v56 = vadd.f32 %v7825_v18, %v14381_v16  ;;  %7907 = vmatprep.mubr.msk.f32.mxu0 %vm844_vm0, %v9266_v59  ;;  %v3164_v29 = vpop.f32.mrb[57].mxu1  ;;  %v14383_v16 = vld [vmem:[#allocation20_spill] sm:$0xff] }
 0x861   : > { %v11664_v58 = vpop.eup %8948  ;;  %v3165_v20 = vadd.f32 %v3164_v29, %v14382_v50  ;;  %3261 = vmax.xlane.f32.xlu0 %v11656_v14  ;;  %v14384_v29 = vld [vmem:[#allocation84_spill] sm:$0xff] }
 0x862   : > { %8958 = vtanh.f32 %v3170_v56  ;;  %7908 = vmatmul.mubr.msk.f32.gmra.mrb[88].mxu0 %vm844_vm0, %v9267_v55  ;;  %v9268_v56 = vld [vmem:[%s14221_s18 + $0x30] sm:$0xff] }
 0x863   : > { %8960 = vtanh.f32 %v3165_v20  ;;  %8432 = vmatpush3.bf16.msra.mxu0 %v14380_v1  ;;  %3259 = vmax.xlane.f32.xlu1 %v11664_v58  ;;  %v7828_v18 = vpop.f32.mrb[58].mxu1  ;;  %v14385_v20 = vld [vmem:[#allocation82_spill] sm:$0xff] }
 0x864   : > { %v11674_v59 = vpop.eup %8950  ;;  %8434 = vmatprep.subr.bf16.mxu0 %v14383_v16  ;;  %v3180_v50 = vadd.f32 %v7828_v18, %v14384_v29  ;;  %7910 = vmatprep.mubr.msk.f32.mxu0 %vm844_vm0, %v9268_v56  ;;  %v3174_v15 = vpop.f32.mrb[59].mxu1  ;;  %v9275_v29 = vld [vmem:[%s14221_s18 + $0x68] sm:$0xff] }
 0x865   : > { %v11682_v55 = vpop.eup %8952  ;;  %v3175_v1 = vadd.f32 %v3174_v15, %v14385_v20  ;;  %3265 = vmax.xlane.f32.xlu0 %v11674_v59  ;;  %v9270_v15 = vld [vmem:[%s14221_s18 + $0x40] sm:$0xff] }
 0x866   : > { %8962 = vtanh.f32 %v3180_v50  ;;  %7911 = vmatmul.mubr.msk.f32.gmra.mrb[90].mxu0 %vm844_vm0, %v9269_v23  ;;  %v9271_v23 = vld [vmem:[%s14221_s18 + $0x48] sm:$0xff] }
 0x867   : > { %8964 = vtanh.f32 %v3175_v1  ;;  %8436 = vmatpush3.bf16.msra.mxu0 %v14383_v16  ;;  %3263 = vmax.xlane.f32.xlu1 %v11682_v55  ;;  %v9272_v16 = vld [vmem:[%s14221_s18 + $0x50] sm:$0xff] }
 0x868   : > { %v11692_v18 = vpop.eup %8954  ;;  %7913 = vmatprep.mubr.msk.f32.mxu0 %vm844_vm0, %v9270_v15  ;;  %v9273_v15 = vld [vmem:[%s14221_s18 + $0x58] sm:$0xff] }
 0x869   : > { %v11698_v50 = vpop.eup %8956  ;;  %3269 = vmax.xlane.f32.xlu0 %v11692_v18 }
 0x86a   : > { %7914 = vmatmul.mubr.msk.f32.gmra.mrb[92].mxu0 %vm844_vm0, %v9271_v23  ;;  %v9274_v23 = vld [vmem:[%s14221_s18 + $0x60] sm:$0xff] }
 0x86b   : > { %3267 = vmax.xlane.f32.xlu1 %v11698_v50  ;;  %7916 = vmatprep.mubr.msk.f32.mxu0 %vm844_vm0, %v9272_v16 }
 0x86c   : > { %v11710_v56 = vpop.eup %8958 }
 0x86d   : > { %v11712_v1 = vpop.eup %8960  ;;  %3273 = vmax.xlane.f32.xlu0 %v11710_v56 }
 0x86e   : > { %7917 = vmatmul.mubr.msk.f32.gmra.mrb[94].mxu0 %vm844_vm0, %v9273_v15  ;;  %v9276_v15 = vld [vmem:[%s14221_s18 + $0x70] sm:$0xff] }
 0x86f   : > { %3271 = vmax.xlane.f32.xlu1 %v11712_v1  ;;  %7919 = vmatprep.mubr.msk.f32.mxu0 %vm844_vm0, %v9274_v23  ;;  %v9277_v23 = vld [vmem:[%s14221_s18 + $0x78] sm:$0xff] }
 0x870   : > { %v11724_v16 = vpop.eup %8962 }
 0x871   : > { %v11726_v20 = vpop.eup %8964  ;;  %3277 = vmax.xlane.f32.xlu0 %v11724_v16 }
 0x872   : > { %7920 = vmatmul.mubr.msk.f32.gmra.mrb[96].mxu0 %vm844_vm0, %v9275_v29  ;;  %v9280_v29 = vld [vmem:[#allocation5 + $0x10] sm:$0xff] }
 0x873   : > { %3275 = vmax.xlane.f32.xlu1 %v11726_v20  ;;  %7922 = vmatprep.mubr.msk.f32.mxu0 %vm844_vm0, %v9276_v15  ;;  %v9282_v15 = vld [vmem:[#allocation5 + $0x20] sm:$0xff] }
 0x876   : > { %7923 = vmatmul.mubr.msk.f32.gmra.mrb[98].mxu0 %vm844_vm0, %v9277_v23  ;;  %v9284_v23 = vld [vmem:[#allocation5 + $0x30] sm:$0xff] }
 0x877   : > { %8021 = vmatprep.mubr.msk.f32.mxu0 %vm844_vm0, %v9278_v7  ;;  %v9285_v7 = vld [vmem:[#allocation5 + $0x38] sm:$0xff] }
 0x87a   : > { %8022 = vmatmul.mubr.msk.f32.vlgmr.msra.gmra.mrb[100].mxu0 %vm844_vm0, %v9279_v17  ;;  %v9286_v17 = vld [vmem:[#allocation7] sm:$0xff] }
 0x87b   : > { %8024 = vmatprep.mubr.msk.f32.mxu0 %vm844_vm0, %v9280_v29 }
 0x87e   : > { %8025 = vmatmul.mubr.msk.f32.gmra.mrb[102].mxu0 %vm844_vm0, %v9281_v3 }
 0x87f   : > { %8027 = vmatprep.mubr.msk.f32.mxu0 %vm844_vm0, %v9282_v15  ;;  %v14386_v15 = vld [vmem:[#allocation85_spill] sm:$0xff] }
 0x882   : > { %8028 = vmatmul.mubr.msk.f32.gmra.mrb[104].mxu0 %vm844_vm0, %v9283_v46 }
 0x883   : > { %8030 = vmatprep.mubr.msk.f32.mxu0 %vm844_vm0, %v9284_v23 }
 0x886   : > { %8031 = vmatmul.mubr.msk.f32.gmra.mrb[106].mxu0 %vm844_vm0, %v9285_v7 }
 0x887   : > { %8049 = vmatprep.mubr.msk.f32.mxu0 %vm844_vm0, %v9286_v17 }
 0x8c2   : > { %v3218_v29 = vpop.xlane.xlu0 %3217 }
 0x8c3   : > { %6783 = vst [vmem:[%s10360_s7 + $0x188] sm:$0xff] %v3218_v29  ;;  %vm3312_vm6 = vcmp.eq.f32.partialorder %v11544_v21, %v3218_v29  ;;  %v3216_v3 = vpop.xlane.xlu1 %3215 }
 0x8c4   : > { %v11754_v9 = vsel %vm3312_vm6, %v14386_v15, 128  ;;  %6782 = vst [vmem:[%s10360_s7 + $0x180] sm:$0xff] %v3216_v3  ;;  %vm3311_vm7 = vcmp.eq.f32.partialorder %v11547_v0, %v3216_v3 }
 0x8c5   : > { %v11759_v46 = vsel %vm3311_vm7, %v14386_v15, 128  ;;  %v3390_v23 = vshra.s32 %v11754_v9, 16 }
 0x8c6   : > { %v3222_v7 = vpop.xlane.xlu0 %3221  ;;  %v3376_v29 = vshra.s32 %v11759_v46, 16 }
 0x8c7   : > { %6785 = vst [vmem:[%s10360_s7 + $0x198] sm:$0xff] %v3222_v7  ;;  %vm3314_vm8 = vcmp.eq.f32.partialorder %v11552_v45, %v3222_v7  ;;  %v3220_v17 = vpop.xlane.xlu1 %3219  ;;  %v11764_v21 = vcvt.s32.f32 %v3390_v23 }
 0x8c8   : > { %v11768_v54 = vsel %vm3314_vm8, %v14386_v15, 128  ;;  %6784 = vst [vmem:[%s10360_s7 + $0x190] sm:$0xff] %v3220_v17  ;;  %vm3313_vm9 = vcmp.eq.f32.partialorder %v11556_v34, %v3220_v17  ;;  %v11774_v62 = vcvt.s32.f32 %v3376_v29 }
 0x8c9   : > { %14387 = vst [vmem:[#allocation86_spill] sm:$0xff] %v11764_v21  ;;  %3393 = vmin.xlane.f32.xlu1 %v11764_v21  ;;  %v3418_v45 = vshra.s32 %v11768_v54, 16  ;;  %v11778_v23 = vsel %vm3313_vm9, %v14386_v15, 128 }
 0x8ca   : > { %v3226_v0 = vpop.xlane.xlu0 %3225  ;;  %14388 = vst [vmem:[#allocation87_spill] sm:$0xff] %v11774_v62  ;;  %14389 = vst [vmem:[#allocation88_spill] sm:$0xff] %v11778_v23  ;;  %v3404_v29 = vshra.s32 %v11778_v23, 16 }
 0x8cb   : > { %6787 = vst [vmem:[%s10360_s7 + $0x1a8] sm:$0xff] %v3226_v0  ;;  %v3224_v3 = vpop.xlane.xlu1 %3223  ;;  %vm3316_vm10 = vcmp.eq.f32.partialorder %v11562_v2, %v3226_v0  ;;  %v11784_v17 = vcvt.s32.f32 %v3418_v45 }
 0x8cc   : > { %6786 = vst [vmem:[%s10360_s7 + $0x1a0] sm:$0xff] %v3224_v3  ;;  %v11788_v21 = vsel %vm3316_vm10, %v14386_v15, 128  ;;  %vm3315_vm11 = vcmp.eq.f32.partialorder %v11566_v26, %v3224_v3  ;;  %v11794_v0 = vcvt.s32.f32 %v3404_v29 }
 0x8cd   : > { %3379 = vmin.xlane.f32.xlu1 %v11774_v62  ;;  %14390 = vst [vmem:[#allocation89_spill] sm:$0xff] %v11784_v17  ;;  %14391 = vst [vmem:[#allocation90_spill] sm:$0xff] %v11788_v21  ;;  %v3446_v62 = vshra.s32 %v11788_v21, 16  ;;  %v11798_v45 = vsel %vm3315_vm11, %v14386_v15, 128 }
 0x8ce   : > { %v3230_v34 = vpop.xlane.xlu0 %3229  ;;  %14392 = vst [vmem:[#allocation91_spill] sm:$0xff] %v11794_v0  ;;  %14393 = vst [vmem:[#allocation92_spill] sm:$0xff] %v11798_v45  ;;  %v3432_v29 = vshra.s32 %v11798_v45, 16 }
 0x8cf   : > { %6789 = vst [vmem:[%s10360_s7 + $0x1b8] sm:$0xff] %v3230_v34  ;;  %v3228_v7 = vpop.xlane.xlu1 %3227  ;;  %vm3318_vm12 = vcmp.eq.f32.partialorder %v11572_v53, %v3230_v34  ;;  %v11804_v3 = vcvt.s32.f32 %v3446_v62 }
 0x8d0   : > { %6788 = vst [vmem:[%s10360_s7 + $0x1b0] sm:$0xff] %v3228_v7  ;;  %v11808_v21 = vsel %vm3318_vm12, %v14386_v15, 128  ;;  %vm3317_vm13 = vcmp.eq.f32.partialorder %v11576_v52, %v3228_v7  ;;  %v11814_v34 = vcvt.s32.f32 %v3432_v29 }
 0x8d1   : > { %3421 = vmin.xlane.f32.xlu1 %v11784_v17  ;;  %14394 = vst [vmem:[#allocation93_spill] sm:$0xff] %v11804_v3  ;;  %14395 = vst [vmem:[#allocation94_spill] sm:$0xff] %v11808_v21  ;;  %v3474_v62 = vshra.s32 %v11808_v21, 16  ;;  %v11818_v45 = vsel %vm3317_vm13, %v14386_v15, 128 }
 0x8d2   : > { %v3234_v2 = vpop.xlane.xlu0 %3233  ;;  %14396 = vst [vmem:[#allocation95_spill] sm:$0xff] %v11814_v34  ;;  %14397 = vst [vmem:[#allocation96_spill] sm:$0xff] %v11818_v45  ;;  %v3460_v29 = vshra.s32 %v11818_v45, 16 }
 0x8d3   : > { %6791 = vst [vmem:[%s10360_s7 + $0x1c8] sm:$0xff] %v3234_v2  ;;  %vm3320_vm14 = vcmp.eq.f32.partialorder %v11582_v47, %v3234_v2  ;;  %v11824_v7 = vcvt.s32.f32 %v3474_v62 }
 0x8d4   : > { %v3232_v23 = vpop.xlane.xlu1 %3231  ;;  %v11828_v21 = vsel %vm3320_vm14, %v14386_v15, 128  ;;  %v11840_v2 = vcvt.s32.f32 %v3460_v29 }
 0x8d5   : > { %6790 = vst [vmem:[%s10360_s7 + $0x1c0] sm:$0xff] %v3232_v23  ;;  %3407 = vmin.xlane.f32.xlu1 %v11794_v0  ;;  %14398 = vst [vmem:[#allocation97_spill] sm:$0xff] %v11824_v7  ;;  %vm3319_vm15 = vcmp.eq.f32.partialorder %v11589_v63, %v3232_v23  ;;  %v3502_v62 = vshra.s32 %v11828_v21, 16 }
 0x8d6   : > { %v3238_v26 = vpop.xlane.xlu0 %3237  ;;  %14399 = vst [vmem:[#allocation98_spill] sm:$0xff] %v11828_v21  ;;  %14400 = vst [vmem:[#allocation99_spill] sm:$0xff] %v11840_v2  ;;  %v11844_v45 = vsel %vm3319_vm15, %v14386_v15, 128 }
 0x8d7   : > { %6793 = vst [vmem:[%s10360_s7 + $0x1d8] sm:$0xff] %v3238_v26  ;;  %14401 = vst [vmem:[#allocation100_spill] sm:$0xff] %v11844_v45  ;;  %vm3322_vm1 = vcmp.eq.f32.partialorder %v11592_v19, %v3238_v26  ;;  %v11856_v23 = vcvt.s32.f32 %v3502_v62  ;;  %v3488_v29 = vshra.s32 %v11844_v45, 16 }
 0x8d8   : > { %v3236_v17 = vpop.xlane.xlu1 %3235  ;;  %v11860_v21 = vsel %vm3322_vm1, %v14386_v15, 128 }
 0x8d9   : > { %6792 = vst [vmem:[%s10360_s7 + $0x1d0] sm:$0xff] %v3236_v17  ;;  %3449 = vmin.xlane.f32.xlu1 %v11804_v3  ;;  %14402 = vst [vmem:[#allocation101_spill] sm:$0xff] %v11856_v23  ;;  %vm3321_vm2 = vcmp.eq.f32.partialorder %v11597_v10, %v3236_v17  ;;  %v11872_v26 = vcvt.s32.f32 %v3488_v29  ;;  %v3530_v62 = vshra.s32 %v11860_v21, 16 }
 0x8da   : > { %v3242_v53 = vpop.xlane.xlu0 %3241  ;;  %14403 = vst [vmem:[#allocation102_spill] sm:$0xff] %v11860_v21  ;;  %v11876_v45 = vsel %vm3321_vm2, %v14386_v15, 128 }
 0x8db   : > { %6795 = vst [vmem:[%s10360_s7 + $0x1e8] sm:$0xff] %v3242_v53  ;;  %14404 = vst [vmem:[#allocation103_spill] sm:$0xff] %v11872_v26  ;;  %vm3324_vm3 = vcmp.eq.f32.partialorder %v11600_v43, %v3242_v53  ;;  %v11888_v17 = vcvt.s32.f32 %v3530_v62  ;;  %v3516_v29 = vshra.s32 %v11876_v45, 16 }
 0x8dc   : > { %v3240_v0 = vpop.xlane.xlu1 %3239  ;;  %14405 = vst [vmem:[#allocation104_spill] sm:$0xff] %v11876_v45  ;;  %v11892_v21 = vsel %vm3324_vm3, %v14386_v15, 128 }
 0x8dd   : > { %6794 = vst [vmem:[%s10360_s7 + $0x1e0] sm:$0xff] %v3240_v0  ;;  %3435 = vmin.xlane.f32.xlu1 %v11814_v34  ;;  %14406 = vst [vmem:[#allocation39_spill] sm:$0xff] %v11888_v17  ;;  %vm3323_vm4 = vcmp.eq.f32.partialorder %v11605_v41, %v3240_v0  ;;  %v11904_v53 = vcvt.s32.f32 %v3516_v29  ;;  %v3558_v62 = vshra.s32 %v11892_v21, 16 }
 0x8de   : > { %v3246_v52 = vpop.xlane.xlu0 %3245  ;;  %14407 = vst [vmem:[#allocation46_spill] sm:$0xff] %v11892_v21  ;;  %v11908_v45 = vsel %vm3323_vm4, %v14386_v15, 128 }
 0x8df   : > { %6797 = vst [vmem:[%s10360_s7 + $0x1f8] sm:$0xff] %v3246_v52  ;;  %14408 = vst [vmem:[#allocation47_spill] sm:$0xff] %v11904_v53  ;;  %vm3326_vm6 = vcmp.eq.f32.partialorder %v11608_v12, %v3246_v52  ;;  %v11920_v0 = vcvt.s32.f32 %v3558_v62  ;;  %v3544_v29 = vshra.s32 %v11908_v45, 16 }
 0x8e0   : > { %v11830_v3 = vpop.xlane.xlu1 %3243  ;;  %14409 = vst [vmem:[#allocation50_spill] sm:$0xff] %v11908_v45  ;;  %v11924_v21 = vsel %vm3326_vm6, %v14386_v15, 128 }
 0x8e1   : > { %6796 = vst [vmem:[%s10360_s7 + $0x1f0] sm:$0xff] %v11830_v3  ;;  %3477 = vmin.xlane.f32.xlu1 %v11824_v7  ;;  %14410 = vst [vmem:[#allocation51_spill] sm:$0xff] %v11920_v0  ;;  %vm3325_vm7 = vcmp.eq.f32.partialorder %v11613_v42, %v11830_v3  ;;  %v11937_v52 = vcvt.s32.f32 %v3544_v29  ;;  %v3586_v62 = vshra.s32 %v11924_v21, 16 }
 0x8e2   : > { %v11836_v47 = vpop.xlane.xlu0 %3249  ;;  %14411 = vst [vmem:[#allocation21_spill] sm:$0xff] %v11924_v21  ;;  %v11941_v45 = vsel %vm3325_vm7, %v14386_v15, 128 }
 0x8e3   : > { %6799 = vst [vmem:[%s10360_s7 + $0x208] sm:$0xff] %v11836_v47  ;;  %14412 = vst [vmem:[#allocation22_spill] sm:$0xff] %v11941_v45  ;;  %vm3328_vm8 = vcmp.eq.f32.partialorder %v11616_v25, %v11836_v47  ;;  %v11954_v3 = vcvt.s32.f32 %v3586_v62  ;;  %v3572_v29 = vshra.s32 %v11941_v45, 16 }
 0x8e4   : > { %v11846_v34 = vpop.xlane.xlu1 %3247  ;;  %v11958_v21 = vsel %vm3328_vm8, %v14386_v15, 128 }
 0x8e5   : > { %6798 = vst [vmem:[%s10360_s7 + $0x200] sm:$0xff] %v11846_v34  ;;  %3463 = vmin.xlane.f32.xlu1 %v11840_v2  ;;  %14413 = vst [vmem:[#allocation23_spill] sm:$0xff] %v11958_v21  ;;  %vm3327_vm9 = vcmp.eq.f32.partialorder %v11619_v61, %v11846_v34  ;;  %v11967_v25 = vcvt.s32.f32 %v3572_v29  ;;  %v3614_v47 = vshra.s32 %v11958_v21, 16 }
 0x8e6   : > { %v11852_v63 = vpop.xlane.xlu0 %3253  ;;  %v11971_v62 = vsel %vm3327_vm9, %v14386_v15, 128 }
 0x8e7   : > { %6801 = vst [vmem:[%s10360_s7 + $0x218] sm:$0xff] %v11852_v63  ;;  %vm3330_vm10 = vcmp.eq.f32.partialorder %v11624_v40, %v11852_v63  ;;  %v11976_v45 = vcvt.s32.f32 %v3614_v47  ;;  %v3600_v61 = vshra.s32 %v11971_v62, 16 }
 0x8e8   : > { %v11862_v7 = vpop.xlane.xlu1 %3251  ;;  %v11980_v34 = vsel %vm3330_vm10, %v14386_v15, 128 }
 0x8e9   : > { %6800 = vst [vmem:[%s10360_s7 + $0x210] sm:$0xff] %v11862_v7  ;;  %3505 = vmin.xlane.f32.xlu1 %v11856_v23  ;;  %vm3329_vm11 = vcmp.eq.f32.partialorder %v11628_v27, %v11862_v7  ;;  %v11985_v29 = vcvt.s32.f32 %v3600_v61  ;;  %v3642_v21 = vshra.s32 %v11980_v34, 16 }
 0x8ea   : > { %v11868_v19 = vpop.xlane.xlu0 %3257  ;;  %v11989_v40 = vsel %vm3329_vm11, %v14386_v15, 128 }
 0x8eb   : > { %6803 = vst [vmem:[%s10360_s7 + $0x228] sm:$0xff] %v11868_v19  ;;  %vm3332_vm12 = vcmp.eq.f32.partialorder %v11638_v60, %v11868_v19  ;;  %v11994_v63 = vcvt.s32.f32 %v3642_v21  ;;  %v3628_v47 = vshra.s32 %v11989_v40, 16 }
 0x8ec   : > { %v11878_v2 = vpop.xlane.xlu1 %3255  ;;  %v11998_v27 = vsel %vm3332_vm12, %v14386_v15, 128 }
 0x8ed   : > { %6802 = vst [vmem:[%s10360_s7 + $0x220] sm:$0xff] %v11878_v2  ;;  %3491 = vmin.xlane.f32.xlu1 %v11872_v26  ;;  %vm3331_vm13 = vcmp.eq.f32.partialorder %v11646_v4, %v11878_v2  ;;  %v12003_v7 = vcvt.s32.f32 %v3628_v47  ;;  %v3670_v61 = vshra.s32 %v11998_v27, 16 }
 0x8ee   : > { %v11884_v10 = vpop.xlane.xlu0 %3261  ;;  %v12007_v60 = vsel %vm3331_vm13, %v14386_v15, 128 }
 0x8ef   : > { %6805 = vst [vmem:[%s10360_s7 + $0x238] sm:$0xff] %v11884_v10  ;;  %vm3334_vm14 = vcmp.eq.f32.partialorder %v11656_v14, %v11884_v10  ;;  %v12012_v21 = vcvt.s32.f32 %v3670_v61  ;;  %v3656_v19 = vshra.s32 %v12007_v60, 16 }
 0x8f0   : > { %v11894_v23 = vpop.xlane.xlu1 %3259  ;;  %v12016_v4 = vsel %vm3334_vm14, %v14386_v15, 128 }
 0x8f1   : > { %6804 = vst [vmem:[%s10360_s7 + $0x230] sm:$0xff] %v11894_v23  ;;  %3533 = vmin.xlane.f32.xlu1 %v11888_v17  ;;  %vm3333_vm15 = vcmp.eq.f32.partialorder %v11664_v58, %v11894_v23  ;;  %v12021_v2 = vcvt.s32.f32 %v3656_v19  ;;  %v3698_v47 = vshra.s32 %v12016_v4, 16 }
 0x8f2   : > { %v11900_v43 = vpop.xlane.xlu0 %3265  ;;  %v12025_v14 = vsel %vm3333_vm15, %v14386_v15, 128 }
 0x8f3   : > { %6807 = vst [vmem:[%s10360_s7 + $0x248] sm:$0xff] %v11900_v43  ;;  %vm3336_vm1 = vcmp.eq.f32.partialorder %v11674_v59, %v11900_v43  ;;  %v12030_v10 = vcvt.s32.f32 %v3698_v47  ;;  %v3684_v61 = vshra.s32 %v12025_v14, 16 }
 0x8f4   : > { %v11910_v26 = vpop.xlane.xlu1 %3263  ;;  %v12034_v58 = vsel %vm3336_vm1, %v14386_v15, 128 }
 0x8f5   : > { %6806 = vst [vmem:[%s10360_s7 + $0x240] sm:$0xff] %v11910_v26  ;;  %3519 = vmin.xlane.f32.xlu1 %v11904_v53  ;;  %vm3335_vm2 = vcmp.eq.f32.partialorder %v11682_v55, %v11910_v26  ;;  %v12039_v23 = vcvt.s32.f32 %v3684_v61  ;;  %v3726_v19 = vshra.s32 %v12034_v58, 16 }
 0x8f6   : > { %v11916_v41 = vpop.xlane.xlu0 %3269  ;;  %v12043_v59 = vsel %vm3335_vm2, %v14386_v15, 128 }
 0x8f7   : > { %6809 = vst [vmem:[%s10360_s7 + $0x258] sm:$0xff] %v11916_v41  ;;  %14414 = vst [vmem:[#allocation24_spill] sm:$0xff] %v12043_v59  ;;  %vm3338_vm3 = vcmp.eq.f32.partialorder %v11692_v18, %v11916_v41  ;;  %v12048_v43 = vcvt.s32.f32 %v3726_v19  ;;  %v3712_v47 = vshra.s32 %v12043_v59, 16 }
 0x8f8   : > { %v11926_v17 = vpop.xlane.xlu1 %3267  ;;  %v12052_v55 = vsel %vm3338_vm3, %v14386_v15, 128 }
 0x8f9   : > { %6808 = vst [vmem:[%s10360_s7 + $0x250] sm:$0xff] %v11926_v17  ;;  %3561 = vmin.xlane.f32.xlu1 %v11920_v0  ;;  %14415 = vst [vmem:[#allocation25_spill] sm:$0xff] %v12052_v55  ;;  %vm3337_vm4 = vcmp.eq.f32.partialorder %v11698_v50, %v11926_v17  ;;  %v12057_v26 = vcvt.s32.f32 %v3712_v47  ;;  %v3754_v61 = vshra.s32 %v12052_v55, 16 }
 0x8fa   : > { %v11933_v12 = vpop.xlane.xlu0 %3273  ;;  %v12061_v18 = vsel %vm3337_vm4, %v14386_v15, 128 }
 0x8fb   : > { %6811 = vst [vmem:[%s10360_s7 + $0x268] sm:$0xff] %v11933_v12  ;;  %vm3340_vm6 = vcmp.eq.f32.partialorder %v11710_v56, %v11933_v12  ;;  %v12068_v17 = vcvt.s32.f32 %v3754_v61  ;;  %v3740_v47 = vshra.s32 %v12061_v18, 16 }
 0x8fc   : > { %v11943_v53 = vpop.xlane.xlu1 %3271  ;;  %v12072_v55 = vsel %vm3340_vm6, %v14386_v15, 128 }
 0x8fd   : > { %6810 = vst [vmem:[%s10360_s7 + $0x260] sm:$0xff] %v11943_v53  ;;  %3547 = vmin.xlane.f32.xlu1 %v11937_v52  ;;  %vm3339_vm7 = vcmp.eq.f32.partialorder %v11712_v1, %v11943_v53  ;;  %v12079_v61 = vcvt.s32.f32 %v3740_v47 }
 0x8fe   : > { %v11950_v42 = vpop.xlane.xlu0 %3277 }
 0x8ff   : > { %6813 = vst [vmem:[%s10360_s7 + $0x278] sm:$0xff] %v11950_v42  ;;  %vm3342_vm8 = vcmp.eq.f32.partialorder %v11724_v16, %v11950_v42 }
 0x900   : > { %v11960_v0 = vpop.xlane.xlu1 %3275 }
 0x901   : > { %6812 = vst [vmem:[%s10360_s7 + $0x270] sm:$0xff] %v11960_v0  ;;  %3589 = vmin.xlane.f32.xlu1 %v11954_v3  ;;  %vm3341_vm9 = vcmp.eq.f32.partialorder %v11726_v20, %v11960_v0 }
 0x905   : > { %3575 = vmin.xlane.f32.xlu1 %v11967_v25 }
 0x909   : > { %3617 = vmin.xlane.f32.xlu1 %v11976_v45 }
 0x90d   : > { %3603 = vmin.xlane.f32.xlu1 %v11985_v29 }
 0x911   : > { %3645 = vmin.xlane.f32.xlu1 %v11994_v63 }
 0x915   : > { %3631 = vmin.xlane.f32.xlu1 %v12003_v7 }
 0x919   : > { %3673 = vmin.xlane.f32.xlu1 %v12012_v21 }
 0x91d   : > { %3659 = vmin.xlane.f32.xlu1 %v12021_v2 }
 0x921   : > { %3701 = vmin.xlane.f32.xlu1 %v12030_v10 }
 0x925   : > { %3687 = vmin.xlane.f32.xlu1 %v12039_v23 }
 0x929   : > { %3729 = vmin.xlane.f32.xlu1 %v12048_v43 }
 0x92d   : > { %v7903_v41 = vpop.f32.mrb[84].mxu0  ;;  %3715 = vmin.xlane.f32.xlu1 %v12057_v26 }
 0x92e   : > { %v4211_v19 = vadd.f32 %v7903_v41, %v14319_v13  ;;  %v4205_v59 = vpop.f32.mrb[85].mxu0  ;;  %v12083_v13 = vsel %vm3339_vm7, %v14386_v15, 128 }
 0x92f   : > { %v4206_v50 = vadd.f32 %v4205_v59, %v14320_v22  ;;  %v3782_v22 = vshra.s32 %v12072_v55, 16 }
 0x930   : > { %8966 = vtanh.f32 %v4211_v19 }
 0x931   : > { %8968 = vtanh.f32 %v4206_v50  ;;  %v7906_v56 = vpop.f32.mrb[86].mxu0  ;;  %3757 = vmin.xlane.f32.xlu1 %v12068_v17  ;;  %v12090_v47 = vcvt.s32.f32 %v3782_v22 }
 0x932   : > { %v4221_v12 = vadd.f32 %v7906_v56, %v14321_v51  ;;  %v4215_v41 = vpop.f32.mrb[87].mxu0  ;;  %v3768_v56 = vshra.s32 %v12083_v13, 16 }
 0x933   : > { %v4216_v59 = vadd.f32 %v4215_v41, %v14322_v37  ;;  %v12094_v41 = vsel %vm3342_vm8, %v14386_v15, 128 }
 0x934   : > { %8970 = vtanh.f32 %v4221_v12 }
 0x935   : > { %8972 = vtanh.f32 %v4216_v59  ;;  %v7909_v1 = vpop.f32.mrb[88].mxu0  ;;  %3743 = vmin.xlane.f32.xlu1 %v12079_v61 }
 0x936   : > { %v4231_v53 = vadd.f32 %v7909_v1, %v14323_v6  ;;  %v4225_v19 = vpop.f32.mrb[89].mxu0 }
 0x937   : > { %v4226_v50 = vadd.f32 %v4225_v19, %v14324_v8  ;;  %v12101_v19 = vcvt.s32.f32 %v3768_v56  ;;  %v3810_v8 = vshra.s32 %v12094_v41, 16 }
 0x938   : > { %8974 = vtanh.f32 %v4231_v53  ;;  %v12105_v53 = vsel %vm3341_vm9, %v14386_v15, 128 }
 0x939   : > { %8976 = vtanh.f32 %v4226_v50  ;;  %v7912_v16 = vpop.f32.mrb[90].mxu0  ;;  %3785 = vmin.xlane.f32.xlu1 %v12090_v47 }
 0x93a   : > { %v8967_v42 = vpop.eup %8966  ;;  %v4241_v12 = vadd.f32 %v7912_v16, %v14325_v49  ;;  %v4235_v59 = vpop.f32.mrb[91].mxu0 }
 0x93b   : > { %v8969_v1 = vpop.eup %8968  ;;  %v4236_v22 = vadd.f32 %v4235_v59, %v14326_v38  ;;  %v12110_v59 = vcvt.s32.f32 %v3810_v8  ;;  %v3796_v38 = vshra.s32 %v12105_v53, 16 }
 0x93c   : > { %8978 = vtanh.f32 %v4241_v12  ;;  %v8389_v20 = vpack.c.bf16 %v8967_v42, %v8969_v1 }
 0x93d   : > { %8980 = vtanh.f32 %v4236_v22  ;;  %v7915_v0 = vpop.f32.mrb[92].mxu0  ;;  %3771 = vmin.xlane.f32.xlu1 %v12101_v19 }
 0x93e   : > { %v8971_v50 = vpop.eup %8970  ;;  %v4251_v16 = vadd.f32 %v7915_v0, %v14327_v11  ;;  %v4245_v49 = vpop.f32.mrb[93].mxu0  ;;  %8390 = vmatprep.subr.bf16.mxu1 %v8389_v20 }
 0x93f   : > { %v8973_v6 = vpop.eup %8972  ;;  %v4246_v56 = vadd.f32 %v4245_v49, %v14328_v36  ;;  %8392 = vmatpush3.bf16.msra.mxu1 %v8389_v20  ;;  %v12116_v49 = vcvt.s32.f32 %v3796_v38 }
 0x940   : > { %8982 = vtanh.f32 %v4251_v16  ;;  %v8393_v12 = vpack.c.bf16 %v8971_v50, %v8973_v6 }
 0x941   : > { %8984 = vtanh.f32 %v4246_v56  ;;  %v7918_v42 = vpop.f32.mrb[94].mxu0  ;;  %3813 = vmin.xlane.f32.xlu1 %v12110_v59 }
 0x942   : > { %v8975_v1 = vpop.eup %8974  ;;  %v4261_v22 = vadd.f32 %v7918_v42, %v14329_v57  ;;  %v4255_v0 = vpop.f32.mrb[95].mxu0  ;;  %8394 = vmatprep.subr.bf16.mxu1 %v8393_v12 }
 0x943   : > { %v8977_v11 = vpop.eup %8976  ;;  %v4256_v37 = vadd.f32 %v4255_v0, %v14330_v5  ;;  %8396 = vmatpush3.bf16.msra.mxu1 %v8393_v12 }
 0x944   : > { %8986 = vtanh.f32 %v4261_v22  ;;  %v8397_v8 = vpack.c.bf16 %v8975_v1, %v8977_v11 }
 0x945   : > { %8988 = vtanh.f32 %v4256_v37  ;;  %v7921_v20 = vpop.f32.mrb[96].mxu0  ;;  %3799 = vmin.xlane.f32.xlu1 %v12116_v49 }
 0x946   : > { %v8979_v6 = vpop.eup %8978  ;;  %v4271_v50 = vadd.f32 %v7921_v20, %v14331_v30  ;;  %v4265_v16 = vpop.f32.mrb[97].mxu0  ;;  %8398 = vmatprep.subr.bf16.mxu1 %v8397_v8 }
 0x947   : > { %v8981_v56 = vpop.eup %8980  ;;  %v4266_v42 = vadd.f32 %v4265_v16, %v14332_v24  ;;  %8400 = vmatpush3.bf16.msra.mxu1 %v8397_v8 }
 0x948   : > { %8990 = vtanh.f32 %v4271_v50  ;;  %v8401_v0 = vpack.c.bf16 %v8979_v6, %v8981_v56 }
 0x949   : > { %8992 = vtanh.f32 %v4266_v42  ;;  %v7924_v38 = vpop.f32.mrb[98].mxu0 }
 0x94a   : > { %v8983_v12 = vpop.eup %8982  ;;  %v4281_v11 = vadd.f32 %v7924_v38, %v14333_v35  ;;  %v4275_v37 = vpop.f32.mrb[99].mxu0  ;;  %8402 = vmatprep.subr.bf16.mxu1 %v8401_v0 }
 0x94b   : > { %v8985_v1 = vpop.eup %8984  ;;  %v4276_v22 = vadd.f32 %v4275_v37, %v14334_v31  ;;  %8404 = vmatpush3.bf16.msra.mxu1 %v8401_v0 }
 0x94c   : > { %8994 = vtanh.f32 %v4281_v11  ;;  %v8405_v20 = vpack.c.bf16 %v8983_v12, %v8985_v1  ;;  %v3389_v11 = vand.u32 65535, %v11754_v9 }
 0x94d   : > { %8996 = vtanh.f32 %v4276_v22  ;;  %v8023_v30 = vpop.f32.mrb[100].mxu0 }
 0x94e   : > { %v8987_v5 = vpop.eup %8986  ;;  %v5318_v8 = vadd.f32 %v8023_v30, %v14335_v32  ;;  %8406 = vmatprep.subr.bf16.mxu1 %v8405_v20  ;;  %v5312_v6 = vpop.f32.mrb[101].mxu0 }
 0x94f   : > { %v8989_v50 = vpop.eup %8988  ;;  %v5313_v16 = vadd.f32 %v5312_v6, %v14336_v33  ;;  %8408 = vmatpush3.bf16.msra.mxu1 %v8405_v20 }
 0x950   : > { %8998 = vtanh.f32 %v5318_v8  ;;  %v8409_v56 = vpack.c.bf16 %v8987_v5, %v8989_v50  ;;  %v3375_v8 = vand.u32 65535, %v11759_v46 }
 0x951   : > { %9000 = vtanh.f32 %v5313_v16  ;;  %v8026_v42 = vpop.f32.mrb[102].mxu0 }
 0x952   : > { %v8991_v38 = vpop.eup %8990  ;;  %v5328_v0 = vadd.f32 %v8026_v42, %v14337_v48  ;;  %8410 = vmatprep.subr.bf16.mxu1 %v8409_v56  ;;  %v5322_v12 = vpop.f32.mrb[103].mxu0  ;;  %v3391_v48 = vcvt.s32.f32 %v3389_v11  ;;  %v14417_v42 = vld [vmem:[#allocation27_spill] sm:$0xff] }
 0x953   : > { %v8993_v37 = vpop.eup %8992  ;;  %v5323_v30 = vadd.f32 %v5322_v12, %v14338_v28  ;;  %8412 = vmatpush3.bf16.msra.mxu1 %v8409_v56  ;;  %v14416_v28 = vld [vmem:[#allocation86_spill] sm:$0xff]  ;;  %v3417_v12 = vand.u32 65535, %v11768_v54 }
 0x954   : > { %9002 = vtanh.f32 %v5328_v0  ;;  %v8413_v32 = vpack.c.bf16 %v8991_v38, %v8993_v37  ;;  %v14418_v37 = vld [vmem:[#allocation28_spill] sm:$0xff] }
 0x955   : > { %9004 = vtanh.f32 %v5323_v30  ;;  %v8029_v33 = vpop.f32.mrb[104].mxu0 }
 0x956   : > { %v8995_v1 = vpop.eup %8994  ;;  %v5338_v5 = vadd.f32 %v8029_v33, %v14339_v39  ;;  %8414 = vmatprep.subr.bf16.mxu1 %v8413_v32  ;;  %v5332_v22 = vpop.f32.mrb[105].mxu0 }
 0x957   : > { %v12129_v20 = vpop.xlane.xlu1 %3393  ;;  %v8997_v6 = vpop.eup %8996  ;;  %v5333_v9 = vadd.f32 %v5332_v22, %v14340_v44  ;;  %8416 = vmatpush3.bf16.msra.mxu1 %v8413_v32  ;;  %v3377_v44 = vcvt.s32.f32 %v3375_v8  ;;  %v14419_v32 = vld [vmem:[#allocation87_spill] sm:$0xff]  ;;  %v9287_v22 = vld [vmem:[#allocation8 + $0x8] sm:$0xff]  ;;  %v14420_v8 = vld [vmem:[#allocation88_spill] sm:$0xff] }
 0x958   : > { %vm3395_vm10 = vcmp.eq.f32.partialorder %v14416_v28, %v12129_v20  ;;  %9006 = vtanh.f32 %v5338_v5  ;;  %v8417_v50 = vpack.c.bf16 %v8995_v1, %v8997_v6  ;;  %v3403_v6 = vand.u32 65535, %v14420_v8  ;;  %v9288_v28 = vld [vmem:[#allocation8 + $0x10] sm:$0xff]  ;;  %v14424_v8 = vld [vmem:[#allocation92_spill] sm:$0xff] }
 0x959   : > { %v3396_v16 = vsel %vm3395_vm10, %v3391_v48, inf  ;;  %9008 = vtanh.f32 %v5333_v9  ;;  %v8032_v39 = vpop.f32.mrb[106].mxu0  ;;  %v3419_v48 = vcvt.s32.f32 %v3417_v12 }
 0x95a   : > { %3397 = vmin.xlane.f32.xlu0 %v3396_v16  ;;  %v8999_v56 = vpop.eup %8998  ;;  %v5348_v38 = vadd.f32 %v8032_v39, %v14417_v42  ;;  %8418 = vmatprep.subr.bf16.mxu1 %v8417_v50  ;;  %v5342_v46 = vpop.f32.mrb[107].mxu0  ;;  %v9289_v42 = vld [vmem:[#allocation8 + $0x18] sm:$0xff] }
 0x95b   : > { %v12136_v0 = vpop.xlane.xlu1 %3379  ;;  %v9001_v11 = vpop.eup %9000  ;;  %6959 = vst [vmem:[%s10360_s7 + $0x3c8] sm:$0xff] %v8999_v56  ;;  %v5343_v30 = vadd.f32 %v5342_v46, %v14418_v37  ;;  %8420 = vmatpush3.bf16.msra.mxu1 %v8417_v50  ;;  %v14421_v50 = vld [vmem:[#allocation89_spill] sm:$0xff]  ;;  %v3405_v46 = vcvt.s32.f32 %v3403_v6  ;;  %v3431_v6 = vand.u32 65535, %v14424_v8 }
 0x95c   : > { %vm3381_vm11 = vcmp.eq.f32.partialorder %v14419_v32, %v12136_v0  ;;  %6958 = vst [vmem:[%s10360_s7 + $0x3c0] sm:$0xff] %v9001_v11  ;;  %9010 = vtanh.f32 %v5348_v38  ;;  %v8437_v33 = vpack.c.bf16 %v8999_v56, %v9001_v11  ;;  %v9290_v37 = vld [vmem:[#allocation8 + $0x20] sm:$0xff] }
 0x95d   : > { %v3382_v1 = vsel %vm3381_vm11, %v3377_v44, inf  ;;  %9012 = vtanh.f32 %v5343_v30  ;;  %v14422_v44 = vld [vmem:[#allocation90_spill] sm:$0xff]  ;;  %v14423_v30 = vld [vmem:[#allocation91_spill] sm:$0xff] }
 0x95e   : > { %3383 = vmin.xlane.f32.xlu0 %v3382_v1  ;;  %v9003_v5 = vpop.eup %9002  ;;  %7958 = vmatmul.mubr.f32.vlgmr.msra.gmra.mrb[60].mxu1 %v9287_v22  ;;  %v3445_v12 = vand.u32 65535, %v14422_v44  ;;  %v14426_v44 = vld [vmem:[#allocation94_spill] sm:$0xff] }
 0x95f   : > { %8438 = vmatprep.subr.bf16.mxu0 %v8437_v33  ;;  %v12144_v54 = vpop.xlane.xlu1 %3421  ;;  %v9005_v9 = vpop.eup %9004  ;;  %6961 = vst [vmem:[%s10360_s7 + $0x3d8] sm:$0xff] %v9003_v5  ;;  %7960 = vmatprep.mubr.f32.mxu1 %v9288_v28  ;;  %v9292_v28 = vld [vmem:[#allocation8 + $0x30] sm:$0xff] }
 0x960   : > { %8440 = vmatpush3.bf16.msra.mxu0 %v8437_v33  ;;  %vm3423_vm12 = vcmp.eq.f32.partialorder %v14421_v50, %v12144_v54  ;;  %6960 = vst [vmem:[%s10360_s7 + $0x3d0] sm:$0xff] %v9005_v9  ;;  %v8441_v16 = vpack.c.bf16 %v9003_v5, %v9005_v9  ;;  %v9291_v5 = vld [vmem:[#allocation8 + $0x28] sm:$0xff]  ;;  %v14425_v50 = vld [vmem:[#allocation93_spill] sm:$0xff] }
 0x961   : > { %v3424_v39 = vsel %vm3423_vm12, %v3419_v48, inf  ;;  %v3447_v48 = vcvt.s32.f32 %v3445_v12  ;;  %v3473_v12 = vand.u32 65535, %v14426_v44  ;;  %v14430_v44 = vld [vmem:[#allocation98_spill] sm:$0xff] }
 0x962   : > { %3425 = vmin.xlane.f32.xlu0 %v3424_v39  ;;  %v9007_v56 = vpop.eup %9006  ;;  %7961 = vmatmul.mubr.f32.gmra.mrb[62].mxu1 %v9289_v42 }
 0x963   : > { %8442 = vmatprep.subr.bf16.mxu0 %v8441_v16  ;;  %v12151_v38 = vpop.xlane.xlu1 %3407  ;;  %v9009_v11 = vpop.eup %9008  ;;  %6963 = vst [vmem:[%s10360_s7 + $0x3e8] sm:$0xff] %v9007_v56  ;;  %7963 = vmatprep.mubr.f32.mxu1 %v9290_v37  ;;  %v14427_v37 = vld [vmem:[#allocation95_spill] sm:$0xff] }
 0x964   : > { %8444 = vmatpush3.bf16.msra.mxu0 %v8441_v16  ;;  %vm3409_vm13 = vcmp.eq.f32.partialorder %v14423_v30, %v12151_v38  ;;  %6962 = vst [vmem:[%s10360_s7 + $0x3e0] sm:$0xff] %v9009_v11  ;;  %v8445_v32 = vpack.c.bf16 %v9007_v56, %v9009_v11  ;;  %v9293_v56 = vld [vmem:[#allocation8 + $0x38] sm:$0xff]  ;;  %v9294_v11 = vld [vmem:[#allocation8 + $0x40] sm:$0xff] }
 0x965   : > { %v3410_v33 = vsel %vm3409_vm13, %v3405_v46, inf  ;;  %v3433_v46 = vcvt.s32.f32 %v3431_v6  ;;  %v9297_v6 = vld [vmem:[#allocation8 + $0x50] sm:$0xff] }
 0x966   : > { %3411 = vmin.xlane.f32.xlu0 %v3410_v33  ;;  %v9011_v1 = vpop.eup %9010  ;;  %7964 = vmatmul.mubr.f32.gmra.mrb[64].mxu1 %v9291_v5  ;;  %v9296_v33 = vld [vmem:[#allocation7 + $0x8] sm:$0xff]  ;;  %v3475_v5 = vcvt.s32.f32 %v3473_v12  ;;  %v3501_v12 = vand.u32 65535, %v14430_v44  ;;  %v9308_v44 = vld [vmem:[#allocation7 + $0x38] sm:$0xff] }
 0x967   : > { %8446 = vmatprep.subr.bf16.mxu0 %v8445_v32  ;;  %v12158_v22 = vpop.xlane.xlu1 %3449  ;;  %v9013_v9 = vpop.eup %9012  ;;  %6965 = vst [vmem:[%s10360_s7 + $0x3f8] sm:$0xff] %v9011_v1  ;;  %7966 = vmatprep.mubr.f32.mxu1 %v9292_v28  ;;  %v14429_v28 = vld [vmem:[#allocation97_spill] sm:$0xff] }
 0x968   : > { %8448 = vmatpush3.bf16.msra.mxu0 %v8445_v32  ;;  %vm3451_vm14 = vcmp.eq.f32.partialorder %v14425_v50, %v12158_v22  ;;  %6964 = vst [vmem:[%s10360_s7 + $0x3f0] sm:$0xff] %v9013_v9  ;;  %v8449_v16 = vpack.c.bf16 %v9011_v1, %v9013_v9  ;;  %v9295_v32 = vld [vmem:[#allocation8 + $0x48] sm:$0xff]  ;;  %v9298_v9 = vld [vmem:[#allocation7 + $0x10] sm:$0xff] }
 0x969   : > { %v3452_v39 = vsel %vm3451_vm14, %v3447_v48, inf  ;;  %v14428_v48 = vld [vmem:[#allocation96_spill] sm:$0xff] }
 0x96a   : > { %3453 = vmin.xlane.f32.xlu0 %v3452_v39  ;;  %7967 = vmatmul.mubr.f32.gmra.mrb[66].mxu1 %v9293_v56  ;;  %v3459_v8 = vand.u32 65535, %v14428_v48  ;;  %v9300_v39 = vld [vmem:[#allocation7 + $0x18] sm:$0xff] }
 0x96b   : > { %8450 = vmatprep.subr.bf16.mxu0 %v8449_v16  ;;  %v12165_v42 = vpop.xlane.xlu1 %3435  ;;  %7969 = vmatprep.mubr.f32.mxu1 %v9294_v11  ;;  %v9301_v11 = vld [vmem:[#allocation8 + $0x60] sm:$0xff] }
 0x96c   : > { %8452 = vmatpush3.bf16.msra.mxu0 %v8449_v16  ;;  %vm3437_vm15 = vcmp.eq.f32.partialorder %v14427_v37, %v12165_v42  ;;  %v9299_v16 = vld [vmem:[#allocation8 + $0x58] sm:$0xff]  ;;  %v9302_v37 = vld [vmem:[#allocation7 + $0x20] sm:$0xff] }
 0x96d   : > { %v3438_v30 = vsel %vm3437_vm15, %v3433_v46, inf  ;;  %v3461_v46 = vcvt.s32.f32 %v3459_v8  ;;  %v3503_v8 = vcvt.s32.f32 %v3501_v12 }
 0x96e   : > { %3439 = vmin.xlane.f32.xlu0 %v3438_v30  ;;  %7970 = vmatmul.mubr.f32.gmra.mrb[68].mxu1 %v9295_v32  ;;  %v14431_v30 = vld [vmem:[#allocation99_spill] sm:$0xff] }
 0x96f   : > { %8050 = vmatmul.mubr.msk.f32.vlgmr.msra.gmra.mrb[108].mxu0 %vm844_vm0, %v9296_v33  ;;  %v12171_v1 = vpop.xlane.xlu1 %3477  ;;  %7972 = vmatprep.mubr.f32.mxu1 %v9297_v6  ;;  %v9303_v33 = vld [vmem:[#allocation8 + $0x68] sm:$0xff]  ;;  %v14432_v6 = vld [vmem:[#allocation100_spill] sm:$0xff] }
 0x970   : > { %8052 = vmatprep.mubr.msk.f32.mxu0 %vm844_vm0, %v9298_v9  ;;  %vm3479_vm1 = vcmp.eq.f32.partialorder %v14429_v28, %v12171_v1  ;;  %v3487_v9 = vand.u32 65535, %v14432_v6  ;;  %v9305_v28 = vld [vmem:[#allocation8 + $0x70] sm:$0xff]  ;;  %v9311_v6 = vld [vmem:[#allocation8 + $0x88] sm:$0xff] }
 0x971   : > { %v3480_v50 = vsel %vm3479_vm1, %v3475_v5, inf  ;;  %v9304_v5 = vld [vmem:[#allocation7 + $0x28] sm:$0xff] }
 0x972   : > { %3481 = vmin.xlane.f32.xlu0 %v3480_v50  ;;  %7973 = vmatmul.mubr.f32.gmra.mrb[70].mxu1 %v9299_v16  ;;  %v9306_v50 = vld [vmem:[#allocation7 + $0x30] sm:$0xff]  ;;  %v14433_v16 = vld [vmem:[#allocation101_spill] sm:$0xff]  ;;  %v3489_v12 = vcvt.s32.f32 %v3487_v9 }
 0x973   : > { %8053 = vmatmul.mubr.msk.f32.gmra.mrb[110].mxu0 %vm844_vm0, %v9300_v39  ;;  %v12178_v56 = vpop.xlane.xlu1 %3463  ;;  %7975 = vmatprep.mubr.f32.mxu1 %v9301_v11 }
 0x974   : > { %8055 = vmatprep.mubr.msk.f32.mxu0 %vm844_vm0, %v9302_v37  ;;  %vm3465_vm2 = vcmp.eq.f32.partialorder %v14431_v30, %v12178_v56  ;;  %v14434_v37 = vld [vmem:[#allocation102_spill] sm:$0xff] }
 0x975   : > { %v3466_v32 = vsel %vm3465_vm2, %v3461_v46, inf  ;;  %v9307_v46 = vld [vmem:[#allocation8 + $0x78] sm:$0xff]  ;;  %v3529_v30 = vand.u32 65535, %v14434_v37 }
 0x976   : > { %3467 = vmin.xlane.f32.xlu0 %v3466_v32  ;;  %7976 = vmatmul.mubr.f32.gmra.mrb[72].mxu1 %v9303_v33  ;;  %v9309_v32 = vld [vmem:[#allocation8 + $0x80] sm:$0xff]  ;;  %v14435_v33 = vld [vmem:[#allocation103_spill] sm:$0xff]  ;;  %v9313_v37 = vld [vmem:[#allocation8 + $0x98] sm:$0xff] }
 0x977   : > { %8056 = vmatmul.mubr.msk.f32.gmra.mrb[112].mxu0 %vm844_vm0, %v9304_v5  ;;  %v12185_v48 = vpop.xlane.xlu1 %3505  ;;  %7978 = vmatprep.mubr.f32.mxu1 %v9305_v28  ;;  %v9310_v5 = vld [vmem:[%s14221_s18] sm:$0xff]  ;;  %v3531_v9 = vcvt.s32.f32 %v3529_v30 }
 0x978   : > { %8058 = vmatprep.mubr.msk.f32.mxu0 %vm844_vm0, %v9306_v50  ;;  %vm3507_vm3 = vcmp.eq.f32.partialorder %v14433_v16, %v12185_v48  ;;  %v14436_v50 = vld [vmem:[#allocation104_spill] sm:$0xff]  ;;  %v14439_v30 = vld [vmem:[#allocation47_spill] sm:$0xff] }
 0x979   : > { %v3508_v39 = vsel %vm3507_vm3, %v3503_v8, inf  ;;  %v3515_v16 = vand.u32 65535, %v14436_v50  ;;  %v9315_v50 = vld [vmem:[#allocation8 + $0xa8] sm:$0xff] }
 0x97a   : > { %3509 = vmin.xlane.f32.xlu0 %v3508_v39  ;;  %7979 = vmatmul.mubr.f32.gmra.mrb[74].mxu1 %v9307_v46  ;;  %v9312_v39 = vld [vmem:[#allocation8 + $0x90] sm:$0xff] }
 0x97b   : > { %8059 = vmatmul.mubr.msk.f32.gmra.mrb[114].mxu0 %vm844_vm0, %v9308_v44  ;;  %v12192_v11 = vpop.xlane.xlu1 %3491  ;;  %7981 = vmatprep.mubr.f32.mxu1 %v9309_v32  ;;  %v14437_v46 = vld [vmem:[#allocation39_spill] sm:$0xff] }
 0x97c   : > { %vm3493_vm4 = vcmp.eq.f32.partialorder %v14435_v33, %v12192_v11  ;;  %8077 = vmatprep.mubr.msk.f32.mxu0 %vm844_vm0, %v9310_v5  ;;  %v14438_v33 = vld [vmem:[#allocation46_spill] sm:$0xff] }
 0x97d   : > { %v3494_v8 = vsel %vm3493_vm4, %v3489_v12, inf  ;;  %v3517_v12 = vcvt.s32.f32 %v3515_v16  ;;  %v3557_v5 = vand.u32 65535, %v14438_v33  ;;  %v14441_v16 = vld [vmem:[#allocation51_spill] sm:$0xff] }
 0x97e   : > { %3495 = vmin.xlane.f32.xlu0 %v3494_v8  ;;  %7982 = vmatmul.mubr.f32.gmra.mrb[76].mxu1 %v9311_v6  ;;  %v9314_v8 = vld [vmem:[#allocation8 + $0xa0] sm:$0xff] }
 0x97f   : > { %v12201_v28 = vpop.xlane.xlu1 %3533  ;;  %7984 = vmatprep.mubr.f32.mxu1 %v9312_v39 }
 0x980   : > { %vm3535_vm6 = vcmp.eq.f32.partialorder %v14437_v46, %v12201_v28  ;;  %v14440_v46 = vld [vmem:[#allocation50_spill] sm:$0xff] }
 0x981   : > { %v3536_v44 = vsel %vm3535_vm6, %v3531_v9, inf  ;;  %v3559_v9 = vcvt.s32.f32 %v3557_v5 }
 0x982   : > { %3537 = vmin.xlane.f32.xlu0 %v3536_v44  ;;  %7985 = vmatmul.mubr.f32.gmra.mrb[78].mxu1 %v9313_v37  ;;  %v3543_v44 = vand.u32 65535, %v14440_v46  ;;  %v9316_v37 = vld [vmem:[#allocation8 + $0xb0] sm:$0xff]  ;;  %v9319_v46 = vld [vmem:[#allocation8 + $0xc8] sm:$0xff] }
 0x983   : > { %v12206_v32 = vpop.xlane.xlu1 %3519  ;;  %7987 = vmatprep.mubr.f32.mxu1 %v9314_v8  ;;  %v9317_v8 = vld [vmem:[#allocation8 + $0xb8] sm:$0xff] }
 0x984   : > { %vm3521_vm7 = vcmp.eq.f32.partialorder %v14439_v30, %v12206_v32  ;;  %v14442_v30 = vld [vmem:[#allocation21_spill] sm:$0xff] }
 0x985   : > { %v3522_v6 = vsel %vm3521_vm7, %v3517_v12, inf  ;;  %v3545_v12 = vcvt.s32.f32 %v3543_v44 }
 0x986   : > { %3523 = vmin.xlane.f32.xlu0 %v3522_v6  ;;  %7988 = vmatmul.mubr.f32.gmra.mrb[80].mxu1 %v9315_v50  ;;  %v3585_v6 = vand.u32 65535, %v14442_v30  ;;  %v9318_v50 = vld [vmem:[#allocation8 + $0xc0] sm:$0xff]  ;;  %v9321_v30 = vld [vmem:[#allocation8 + $0xd8] sm:$0xff] }
 0x987   : > { %v12211_v39 = vpop.xlane.xlu1 %3561  ;;  %7990 = vmatprep.mubr.f32.mxu1 %v9316_v37 }
 0x988   : > { %vm3563_vm8 = vcmp.eq.f32.partialorder %v14441_v16, %v12211_v39  ;;  %v14443_v16 = vld [vmem:[#allocation22_spill] sm:$0xff] }
 0x989   : > { %v3564_v33 = vsel %vm3563_vm8, %v3559_v9, inf  ;;  %v3587_v9 = vcvt.s32.f32 %v3585_v6 }
 0x98a   : > { %3565 = vmin.xlane.f32.xlu0 %v3564_v33  ;;  %7991 = vmatmul.mubr.f32.gmra.mrb[82].mxu1 %v9317_v8  ;;  %v3571_v33 = vand.u32 65535, %v14443_v16  ;;  %v9320_v8 = vld [vmem:[#allocation8 + $0xd0] sm:$0xff]  ;;  %v9323_v16 = vld [vmem:[#allocation8 + $0xe8] sm:$0xff] }
 0x98b   : > { %v12216_v31 = vpop.xlane.xlu1 %3547  ;;  %7993 = vmatprep.mubr.f32.mxu1 %v9318_v50 }
 0x98c   : > { %vm3549_vm9 = vcmp.eq.f32.partialorder %v11937_v52, %v12216_v31  ;;  %v3573_v52 = vcvt.s32.f32 %v3571_v33 }
 0x98d   : > { %v3550_v5 = vsel %vm3549_vm9, %v3545_v12, inf  ;;  %v14444_v12 = vld [vmem:[#allocation23_spill] sm:$0xff] }
 0x98e   : > { %3551 = vmin.xlane.f32.xlu0 %v3550_v5  ;;  %7994 = vmatmul.mubr.f32.gmra.mrb[84].mxu1 %v9319_v46  ;;  %v3613_v5 = vand.u32 65535, %v14444_v12  ;;  %v9322_v46 = vld [vmem:[#allocation8 + $0xe0] sm:$0xff] }
 0x98f   : > { %v12221_v37 = vpop.xlane.xlu1 %3589  ;;  %7996 = vmatprep.mubr.f32.mxu1 %v9320_v8 }
 0x990   : > { %vm3591_vm10 = vcmp.eq.f32.partialorder %v11954_v3, %v12221_v37  ;;  %v3615_v3 = vcvt.s32.f32 %v3613_v5  ;;  %v9326_v5 = vld [vmem:[#allocation8] sm:$0xff] }
 0x991   : > { %v3592_v44 = vsel %vm3591_vm10, %v3587_v9, inf  ;;  %v3599_v9 = vand.u32 65535, %v11971_v62 }
 0x992   : > { %3593 = vmin.xlane.f32.xlu0 %v3592_v44  ;;  %7997 = vmatmul.mubr.f32.gmra.mrb[86].mxu1 %v9321_v30  ;;  %v9324_v44 = vld [vmem:[#allocation8 + $0xf0] sm:$0xff]  ;;  %v9325_v30 = vld [vmem:[#allocation8 + $0xf8] sm:$0xff] }
 0x993   : > { %v12226_v50 = vpop.xlane.xlu1 %3575  ;;  %7999 = vmatprep.mubr.f32.mxu1 %v9322_v46 }
 0x994   : > { %vm3577_vm11 = vcmp.eq.f32.partialorder %v11967_v25, %v12226_v50  ;;  %v3601_v25 = vcvt.s32.f32 %v3599_v9  ;;  %v3669_v9 = vand.u32 65535, %v11998_v27  ;;  %v3697_v27 = vand.u32 65535, %v12016_v4 }
 0x995   : > { %v3578_v6 = vsel %vm3577_vm11, %v3573_v52, inf  ;;  %v3641_v52 = vand.u32 65535, %v11980_v34  ;;  %v3725_v4 = vand.u32 65535, %v12034_v58 }
 0x996   : > { %3579 = vmin.xlane.f32.xlu0 %v3578_v6  ;;  %8000 = vmatmul.mubr.f32.gmra.mrb[88].mxu1 %v9323_v16 }
 0x997   : > { %v12231_v8 = vpop.xlane.xlu1 %3617  ;;  %8002 = vmatprep.mubr.f32.mxu1 %v9324_v44  ;;  %v3643_v6 = vcvt.s32.f32 %v3641_v52 }
 0x998   : > { %vm3619_vm12 = vcmp.eq.f32.partialorder %v11976_v45, %v12231_v8  ;;  %v3627_v45 = vand.u32 65535, %v11989_v40  ;;  %v3655_v40 = vand.u32 65535, %v12007_v60  ;;  %v3683_v60 = vand.u32 65535, %v12025_v14 }
 0x999   : > { %v3620_v33 = vsel %vm3619_vm12, %v3615_v3, inf }
 0x99a   : > { %3621 = vmin.xlane.f32.xlu0 %v3620_v33  ;;  %8003 = vmatmul.mubr.f32.gmra.mrb[90].mxu1 %v9325_v30  ;;  %v3629_v34 = vcvt.s32.f32 %v3627_v45  ;;  %v3671_v33 = vcvt.s32.f32 %v3669_v9 }
 0x99b   : > { %v12236_v12 = vpop.xlane.xlu1 %3603  ;;  %8133 = vmatprep.mubr.f32.mxu1 %v9326_v5  ;;  %v3699_v5 = vcvt.s32.f32 %v3697_v27 }
 0x99c   : > { %vm3605_vm13 = vcmp.eq.f32.partialorder %v11985_v29, %v12236_v12 }
 0x99d   : > { %v3606_v62 = vsel %vm3605_vm13, %v3601_v25, inf  ;;  %v3657_v25 = vcvt.s32.f32 %v3655_v40 }
 0x99e   : > { %3607 = vmin.xlane.f32.xlu0 %v3606_v62 }
 0x99f   : > { %v12241_v46 = vpop.xlane.xlu1 %3645 }
 0x9a0   : > { %vm3647_vm14 = vcmp.eq.f32.partialorder %v11994_v63, %v12241_v46 }
 0x9a1   : > { %v3648_v16 = vsel %vm3647_vm14, %v3643_v6, inf  ;;  %v3685_v6 = vcvt.s32.f32 %v3683_v60 }
 0x9a2   : > { %3649 = vmin.xlane.f32.xlu0 %v3648_v16  ;;  %v3727_v16 = vcvt.s32.f32 %v3725_v4 }
 0x9a3   : > { %v12246_v3 = vpop.xlane.xlu1 %3631 }
 0x9a4   : > { %vm3633_vm15 = vcmp.eq.f32.partialorder %v12003_v7, %v12246_v3 }
 0x9a5   : > { %v3634_v29 = vsel %vm3633_vm15, %v3629_v34, inf  ;;  %v14445_v34 = vld [vmem:[#allocation24_spill] sm:$0xff] }
 0x9a6   : > { %3635 = vmin.xlane.f32.xlu0 %v3634_v29  ;;  %v3711_v14 = vand.u32 65535, %v14445_v34 }
 0x9a7   : > { %v12251_v44 = vpop.xlane.xlu1 %3673 }
 0x9a8   : > { %vm3675_vm1 = vcmp.eq.f32.partialorder %v12012_v21, %v12251_v44  ;;  %v3713_v29 = vcvt.s32.f32 %v3711_v14 }
 0x9a9   : > { %v3676_v63 = vsel %vm3675_vm1, %v3671_v33, inf  ;;  %v14446_v33 = vld [vmem:[#allocation25_spill] sm:$0xff] }
 0x9aa   : > { %3677 = vmin.xlane.f32.xlu0 %v3676_v63  ;;  %v3753_v58 = vand.u32 65535, %v14446_v33 }
 0x9ab   : > { %v12256_v30 = vpop.xlane.xlu1 %3659 }
 0x9ac   : > { %vm3661_vm2 = vcmp.eq.f32.partialorder %v12021_v2, %v12256_v30  ;;  %v3755_v63 = vcvt.s32.f32 %v3753_v58 }
 0x9ad   : > { %v3662_v7 = vsel %vm3661_vm2, %v3657_v25, inf  ;;  %v3739_v25 = vand.u32 65535, %v12061_v18  ;;  %v3767_v18 = vand.u32 65535, %v12083_v13  ;;  %v3795_v13 = vand.u32 65535, %v12105_v53 }
 0x9ae   : > { %3663 = vmin.xlane.f32.xlu0 %v3662_v7  ;;  %v3386_v53 = vcvt.f32.s32 %v12136_v0 }
 0x9af   : > { %v12261_v52 = vpop.xlane.xlu1 %3701  ;;  %v3741_v7 = vcvt.s32.f32 %v3739_v25  ;;  %v3769_v4 = vcvt.s32.f32 %v3767_v18  ;;  %v3797_v14 = vcvt.s32.f32 %v3795_v13  ;;  %v3456_v18 = vcvt.f32.s32 %v12158_v22 }
 0x9b0   : > { %vm3703_vm3 = vcmp.eq.f32.partialorder %v12030_v10, %v12261_v52 }
 0x9b1   : > { %v3704_v21 = vsel %vm3703_vm3, %v3699_v5, inf  ;;  %v3781_v5 = vand.u32 65535, %v12072_v55  ;;  %v3809_v55 = vand.u32 65535, %v12094_v41 }
 0x9b2   : > { %3705 = vmin.xlane.f32.xlu0 %v3704_v21 }
 0x9b3   : > { %v12266_v62 = vpop.xlane.xlu1 %3687  ;;  %v3783_v21 = vcvt.s32.f32 %v3781_v5 }
 0x9b4   : > { %vm3689_vm4 = vcmp.eq.f32.partialorder %v12039_v23, %v12266_v62 }
 0x9b5   : > { %v3690_v2 = vsel %vm3689_vm4, %v3685_v6, inf }
 0x9b6   : > { %3691 = vmin.xlane.f32.xlu0 %v3690_v2 }
 0x9b7   : > { %v12271_v45 = vpop.xlane.xlu1 %3729 }
 0x9b8   : > { %vm3731_vm6 = vcmp.eq.f32.partialorder %v12048_v43, %v12271_v45 }
 0x9b9   : > { %v3732_v10 = vsel %vm3731_vm6, %v3727_v16, inf  ;;  %v3811_v16 = vcvt.s32.f32 %v3809_v55  ;;  %v3457_v55 = vshll.u32 %v3456_v18, 16  ;;  %v3526_v18 = vcvt.f32.s32 %v12206_v32 }
 0x9ba   : > { %3733 = vmin.xlane.f32.xlu0 %v3732_v10 }
 0x9bb   : > { %v12276_v9 = vpop.xlane.xlu1 %3715 }
 0x9bc   : > { %vm3717_vm7 = vcmp.eq.f32.partialorder %v12057_v26, %v12276_v9 }
 0x9bd   : > { %v3718_v23 = vsel %vm3717_vm7, %v3713_v29, inf }
 0x9be   : > { %3719 = vmin.xlane.f32.xlu0 %v3718_v23  ;;  %v3387_v23 = vshll.u32 %v3386_v53, 16 }
 0x9bf   : > { %v12281_v40 = vpop.xlane.xlu1 %3757 }
 0x9c0   : > { %vm3759_vm8 = vcmp.eq.f32.partialorder %v12068_v17, %v12281_v40 }
 0x9c1   : > { %v3760_v43 = vsel %vm3759_vm8, %v3755_v63, inf  ;;  %v3428_v63 = vcvt.f32.s32 %v12144_v54 }
 0x9c2   : > { %3761 = vmin.xlane.f32.xlu0 %v3760_v43 }
 0x9c3   : > { %v12286_v27 = vpop.xlane.xlu1 %3743 }
 0x9c4   : > { %vm3745_vm9 = vcmp.eq.f32.partialorder %v12079_v61, %v12286_v27 }
 0x9c5   : > { %v3746_v26 = vsel %vm3745_vm9, %v3741_v7, inf  ;;  %v3429_v7 = vshll.u32 %v3428_v63, 16 }
 0x9c6   : > { %3747 = vmin.xlane.f32.xlu0 %v3746_v26 }
 0x9c7   : > { %v12291_v60 = vpop.xlane.xlu1 %3785 }
 0x9c8   : > { %vm3787_vm10 = vcmp.eq.f32.partialorder %v12090_v47, %v12291_v60 }
 0x9c9   : > { %v3788_v17 = vsel %vm3787_vm10, %v3783_v21, inf }
 0x9ca   : > { %3789 = vmin.xlane.f32.xlu0 %v3788_v17 }
 0x9cb   : > { %v12296_v6 = vpop.xlane.xlu1 %3771 }
 0x9cc   : > { %vm3773_vm11 = vcmp.eq.f32.partialorder %v12101_v19, %v12296_v6  ;;  %v3400_v19 = vcvt.f32.s32 %v12129_v20  ;;  %v3414_v20 = vcvt.f32.s32 %v12151_v38 }
 0x9cd   : > { %v3774_v61 = vsel %vm3773_vm11, %v3769_v4, inf }
 0x9ce   : > { %3775 = vmin.xlane.f32.xlu0 %v3774_v61  ;;  %v3401_v29 = vshll.u32 %v3400_v19, 16  ;;  %v3415_v21 = vshll.u32 %v3414_v20, 16  ;;  %v3442_v61 = vcvt.f32.s32 %v12165_v42 }
 0x9cf   : > { %v12301_v2 = vpop.xlane.xlu1 %3813 }
 0x9d0   : > { %vm3815_vm12 = vcmp.eq.f32.partialorder %v12110_v59, %v12301_v2 }
 0x9d1   : > { %v3816_v47 = vsel %vm3815_vm12, %v3811_v16, inf }
 0x9d2   : > { %3817 = vmin.xlane.f32.xlu0 %v3816_v47  ;;  %v3443_v47 = vshll.u32 %v3442_v61, 16 }
 0x9d3   : > { %v12306_v34 = vpop.xlane.xlu1 %3799 }
 0x9d4   : > { %vm3801_vm13 = vcmp.eq.f32.partialorder %v12116_v49, %v12306_v34 }
 0x9d5   : > { %v3802_v41 = vsel %vm3801_vm13, %v3797_v14, inf  ;;  %v3484_v14 = vcvt.f32.s32 %v12171_v1 }
 0x9d6   : > { %3803 = vmin.xlane.f32.xlu0 %v3802_v41 }
 0x9e7   : > { %v3398_v10 = vpop.xlane.xlu0 %3397 }
 0x9e8   : > { %v3399_v33 = vcvt.f32.s32 %v3398_v10  ;;  %v3485_v10 = vshll.u32 %v3484_v14, 16 }
 0x9ea   : > { %v3402_v59 = vadd.s32 %v3401_v29, %v3399_v33  ;;  %v3470_v29 = vcvt.f32.s32 %v12178_v56 }
 0x9eb   : > { %v3384_v58 = vpop.xlane.xlu0 %3383 }
 0x9ec   : > { %6815 = vst.msk [vmem:[%s11399_s29 + $0x108] sm:$0xff] %vm2481_vm5, %v3402_v59  ;;  %v3385_v25 = vcvt.f32.s32 %v3384_v58  ;;  %v3471_v59 = vshll.u32 %v3470_v29, 16  ;;  %v3512_v58 = vcvt.f32.s32 %v12185_v48 }
 0x9ee   : > { %v3388_v49 = vadd.s32 %v3387_v23, %v3385_v25  ;;  %v3513_v25 = vshll.u32 %v3512_v58, 16  ;;  %v3624_v58 = vcvt.f32.s32 %v12231_v8 }
 0x9ef   : > { %v3426_v43 = vpop.xlane.xlu0 %3425 }
 0x9f0   : > { %6814 = vst.msk [vmem:[%s11399_s29 + $0x100] sm:$0xff] %vm2481_vm5, %v3388_v49  ;;  %v3427_v5 = vcvt.f32.s32 %v3426_v43  ;;  %v3498_v49 = vcvt.f32.s32 %v12192_v11 }
 0x9f2   : > { %v3430_v0 = vadd.s32 %v3429_v7, %v3427_v5  ;;  %v3499_v20 = vshll.u32 %v3498_v49, 16  ;;  %v3540_v5 = vcvt.f32.s32 %v12201_v28 }
 0x9f3   : > { %v3412_v26 = vpop.xlane.xlu0 %3411 }
 0x9f4   : > { %6817 = vst.msk [vmem:[%s11399_s29 + $0x118] sm:$0xff] %vm2481_vm5, %v3430_v0  ;;  %v3413_v54 = vcvt.f32.s32 %v3412_v26 }
 0x9f6   : > { %v3416_v17 = vadd.s32 %v3415_v21, %v3413_v54  ;;  %v3541_v21 = vshll.u32 %v3540_v5, 16 }
 0x9f7   : > { %v3454_v4 = vpop.xlane.xlu0 %3453 }
 0x9f8   : > { %6816 = vst.msk [vmem:[%s11399_s29 + $0x110] sm:$0xff] %vm2481_vm5, %v3416_v17  ;;  %v3455_v38 = vcvt.f32.s32 %v3454_v4  ;;  %v3527_v4 = vshll.u32 %v3526_v18, 16  ;;  %v14447_v18 = vld [vmem:[#allocation55_spill] sm:$0xff] }
 0x9fa   : > { %v3458_v16 = vadd.s32 %v3457_v55, %v3455_v38  ;;  %v3568_v55 = vcvt.f32.s32 %v12211_v39 }
 0x9fb   : > { %v3440_v13 = vpop.xlane.xlu0 %3439 }
 0x9fc   : > { %6819 = vst.msk [vmem:[%s11399_s29 + $0x128] sm:$0xff] %vm2481_vm5, %v3458_v16  ;;  %v3441_v22 = vcvt.f32.s32 %v3440_v13  ;;  %v3569_v16 = vshll.u32 %v3568_v55, 16  ;;  %v3554_v13 = vcvt.f32.s32 %v12216_v31  ;;  %v14448_v55 = vld [vmem:[#allocation53_spill] sm:$0xff] }
 0x9fe   : > { %v3444_v41 = vadd.s32 %v3443_v47, %v3441_v22  ;;  %v3555_v22 = vshll.u32 %v3554_v13, 16 }
 0x9ff   : > { %v3482_v19 = vpop.xlane.xlu0 %3481 }
 0xa00   : > { %6818 = vst.msk [vmem:[%s11399_s29 + $0x120] sm:$0xff] %vm2481_vm5, %v3444_v41  ;;  %v3483_v42 = vcvt.f32.s32 %v3482_v19  ;;  %v3596_v41 = vcvt.f32.s32 %v12221_v37 }
 0xa02   : > { %v3486_v53 = vadd.s32 %v3485_v10, %v3483_v42  ;;  %v3597_v29 = vshll.u32 %v3596_v41, 16  ;;  %v3582_v42 = vcvt.f32.s32 %v12226_v50 }
 0xa03   : > { %v3468_v33 = vpop.xlane.xlu0 %3467 }
 0xa04   : > { %6821 = vst.msk [vmem:[%s11399_s29 + $0x138] sm:$0xff] %vm2481_vm5, %v3486_v53  ;;  %v3469_v1 = vcvt.f32.s32 %v3468_v33 }
 0xa06   : > { %v3472_v23 = vadd.s32 %v3471_v59, %v3469_v1  ;;  %v3583_v59 = vshll.u32 %v3582_v42, 16 }
 0xa07   : > { %v3510_v63 = vpop.xlane.xlu0 %3509 }
 0xa08   : > { %6820 = vst.msk [vmem:[%s11399_s29 + $0x130] sm:$0xff] %vm2481_vm5, %v3472_v23  ;;  %v3511_v56 = vcvt.f32.s32 %v3510_v63  ;;  %v3625_v63 = vshll.u32 %v3624_v58, 16 }
 0xa0a   : > { %v3514_v43 = vadd.s32 %v3513_v25, %v3511_v56  ;;  %v3610_v25 = vcvt.f32.s32 %v12236_v12 }
 0xa0b   : > { %v3496_v7 = vpop.xlane.xlu0 %3495 }
 0xa0c   : > { %6823 = vst.msk [vmem:[%s11399_s29 + $0x148] sm:$0xff] %vm2481_vm5, %v3514_v43  ;;  %v3497_v48 = vcvt.f32.s32 %v3496_v7  ;;  %v3611_v43 = vshll.u32 %v3610_v25, 16  ;;  %v3652_v7 = vcvt.f32.s32 %v12241_v46  ;;  %v14453_v25 = vld [vmem:[#allocation61_spill] sm:$0xff] }
 0xa0e   : > { %v3500_v0 = vadd.s32 %v3499_v20, %v3497_v48  ;;  %v3653_v48 = vshll.u32 %v3652_v7, 16 }
 0xa0f   : > { %v3538_v26 = vpop.xlane.xlu0 %3537 }
 0xa10   : > { %6822 = vst.msk [vmem:[%s11399_s29 + $0x140] sm:$0xff] %vm2481_vm5, %v3500_v0  ;;  %v3539_v11 = vcvt.f32.s32 %v3538_v26  ;;  %v3638_v0 = vcvt.f32.s32 %v12246_v3 }
 0xa12   : > { %v3542_v54 = vadd.s32 %v3541_v21, %v3539_v11  ;;  %v3639_v46 = vshll.u32 %v3638_v0, 16 }
 0xa13   : > { %v3524_v17 = vpop.xlane.xlu0 %3523 }
 0xa14   : > { %6825 = vst.msk [vmem:[%s11399_s29 + $0x158] sm:$0xff] %vm2481_vm5, %v3542_v54  ;;  %v3525_v28 = vcvt.f32.s32 %v3524_v17 }
 0xa16   : > { %v3528_v61 = vadd.s32 %v3527_v4, %v3525_v28  ;;  %v3680_v4 = vcvt.f32.s32 %v12251_v44  ;;  %v14450_v44 = vld [vmem:[#allocation54_spill] sm:$0xff] }
 0xa17   : > { %v3566_v38 = vpop.xlane.xlu0 %3565 }
 0xa18   : > { %6824 = vst.msk [vmem:[%s11399_s29 + $0x150] sm:$0xff] %vm2481_vm5, %v3528_v61  ;;  %v3567_v32 = vcvt.f32.s32 %v3566_v38 }
 0xa1a   : > { %v3570_v47 = vadd.s32 %v3569_v16, %v3567_v32  ;;  %v14449_v16 = vld [vmem:[#allocation57_spill] sm:$0xff] }
 0xa1b   : > { %v3552_v14 = vpop.xlane.xlu0 %3551 }
 0xa1c   : > { %6827 = vst.msk [vmem:[%s11399_s29 + $0x168] sm:$0xff] %vm2481_vm5, %v3570_v47  ;;  %v3553_v39 = vcvt.f32.s32 %v3552_v14  ;;  %v3681_v14 = vshll.u32 %v3680_v4, 16 }
 0xa1e   : > { %v3556_v19 = vadd.s32 %v3555_v22, %v3553_v39  ;;  %v3666_v22 = vcvt.f32.s32 %v12256_v30  ;;  %v14452_v30 = vld [vmem:[#allocation56_spill] sm:$0xff] }
 0xa1f   : > { %v3594_v10 = vpop.xlane.xlu0 %3593 }
 0xa20   : > { %6826 = vst.msk [vmem:[%s11399_s29 + $0x160] sm:$0xff] %vm2481_vm5, %v3556_v19  ;;  %v3595_v31 = vcvt.f32.s32 %v3594_v10 }
 0xa22   : > { %v3598_v53 = vadd.s32 %v3597_v29, %v3595_v31  ;;  %v14451_v29 = vld [vmem:[#allocation59_spill] sm:$0xff] }
 0xa23   : > { %v3580_v33 = vpop.xlane.xlu0 %3579 }
 0xa24   : > { %6829 = vst.msk [vmem:[%s11399_s29 + $0x178] sm:$0xff] %vm2481_vm5, %v3598_v53  ;;  %v3581_v37 = vcvt.f32.s32 %v3580_v33  ;;  %v3667_v33 = vshll.u32 %v3666_v22, 16 }
 0xa26   : > { %v3584_v1 = vadd.s32 %v3583_v59, %v3581_v37  ;;  %v3708_v59 = vcvt.f32.s32 %v12261_v52  ;;  %v14454_v52 = vld [vmem:[#allocation58_spill] sm:$0xff] }
 0xa27   : > { %v3622_v23 = vpop.xlane.xlu0 %3621 }
 0xa28   : > { %6828 = vst.msk [vmem:[%s11399_s29 + $0x170] sm:$0xff] %vm2481_vm5, %v3584_v1  ;;  %v3623_v50 = vcvt.f32.s32 %v3622_v23  ;;  %v3709_v7 = vshll.u32 %v3708_v59, 16 }
 0xa2a   : > { %v3626_v49 = vadd.s32 %v3625_v63, %v3623_v50 }
 0xa2b   : > { %v3608_v56 = vpop.xlane.xlu0 %3607 }
 0xa2c   : > { %6831 = vst.msk [vmem:[%s11399_s29 + $0x188] sm:$0xff] %vm2481_vm5, %v3626_v49  ;;  %v3609_v8 = vcvt.f32.s32 %v3608_v56 }
 0xa2e   : > { %v3612_v20 = vadd.s32 %v3611_v43, %v3609_v8 }
 0xa2f   : > { %v3650_v5 = vpop.xlane.xlu0 %3649 }
 0xa30   : > { %6830 = vst.msk [vmem:[%s11399_s29 + $0x180] sm:$0xff] %vm2481_vm5, %v3612_v20  ;;  %v3651_v12 = vcvt.f32.s32 %v3650_v5  ;;  %v3694_v5 = vcvt.f32.s32 %v12266_v62  ;;  %v14457_v62 = vld [vmem:[#allocation60_spill] sm:$0xff] }
 0xa31   : > { %v7959_v21 = vpop.f32.mrb[60].mxu1 }
 0xa32   : > { %v3654_v26 = vadd.s32 %v3653_v48, %v3651_v12  ;;  %v4372_v11 = vadd.f32 %v7959_v21, %v14447_v18  ;;  %v4366_v54 = vpop.f32.mrb[61].mxu1  ;;  %v14455_v21 = vld [vmem:[#allocation63_spill] sm:$0xff] }
 0xa33   : > { %v3636_v17 = vpop.xlane.xlu0 %3635  ;;  %v4367_v28 = vadd.f32 %v4366_v54, %v14448_v55  ;;  %v14456_v54 = vld [vmem:[#allocation29_spill] sm:$0xff] }
 0xa34   : > { %6833 = vst.msk [vmem:[%s11399_s29 + $0x198] sm:$0xff] %vm2481_vm5, %v3654_v26  ;;  %v3637_v61 = vcvt.f32.s32 %v3636_v17  ;;  %9014 = vtanh.f32 %v4372_v11 }
 0xa35   : > { %9016 = vtanh.f32 %v4367_v28  ;;  %v7962_v38 = vpop.f32.mrb[62].mxu1 }
 0xa36   : > { %v3640_v3 = vadd.s32 %v3639_v46, %v3637_v61  ;;  %v4382_v13 = vadd.f32 %v7962_v38, %v14449_v16  ;;  %v4376_v32 = vpop.f32.mrb[63].mxu1 }
 0xa37   : > { %v3678_v47 = vpop.xlane.xlu0 %3677  ;;  %v4377_v41 = vadd.f32 %v4376_v32, %v14450_v44  ;;  %v3695_v32 = vshll.u32 %v3694_v5, 16 }
 0xa38   : > { %6832 = vst.msk [vmem:[%s11399_s29 + $0x190] sm:$0xff] %vm2481_vm5, %v3640_v3  ;;  %v3679_v39 = vcvt.f32.s32 %v3678_v47  ;;  %9018 = vtanh.f32 %v4382_v13  ;;  %v14458_v3 = vld [vmem:[#allocation30_spill] sm:$0xff]  ;;  %v3736_v47 = vcvt.f32.s32 %v12271_v45 }
 0xa39   : > { %9020 = vtanh.f32 %v4377_v41  ;;  %v7965_v10 = vpop.f32.mrb[64].mxu1  ;;  %v14461_v45 = vld [vmem:[#allocation62_spill] sm:$0xff] }
 0xa3a   : > { %v3682_v19 = vadd.s32 %v3681_v14, %v3679_v39  ;;  %v4392_v42 = vadd.f32 %v7965_v10, %v14451_v29  ;;  %v4386_v31 = vpop.f32.mrb[65].mxu1  ;;  %v14459_v10 = vld [vmem:[#allocation65_spill] sm:$0xff] }
 0xa3b   : > { %v3664_v53 = vpop.xlane.xlu0 %3663  ;;  %v4387_v58 = vadd.f32 %v4386_v31, %v14452_v30  ;;  %v14460_v31 = vld [vmem:[#allocation31_spill] sm:$0xff] }
 0xa3c   : > { %6835 = vst.msk [vmem:[%s11399_s29 + $0x1a8] sm:$0xff] %vm2481_vm5, %v3682_v19  ;;  %v3665_v37 = vcvt.f32.s32 %v3664_v53  ;;  %9022 = vtanh.f32 %v4392_v42 }
 0xa3d   : > { %9024 = vtanh.f32 %v4387_v58  ;;  %v7968_v23 = vpop.f32.mrb[66].mxu1 }
 0xa3e   : > { %v3668_v1 = vadd.s32 %v3667_v33, %v3665_v37  ;;  %v12381_v63 = vpop.eup %9014  ;;  %v4402_v50 = vadd.f32 %v7968_v23, %v14453_v25  ;;  %v4396_v49 = vpop.f32.mrb[67].mxu1 }
 0xa3f   : > { %v3706_v56 = vpop.xlane.xlu0 %3705  ;;  %v12384_v43 = vpop.eup %9016  ;;  %v4397_v8 = vadd.f32 %v4396_v49, %v14454_v52  ;;  %4559 = vmax.xlane.f32.xlu0 %v12381_v63  ;;  %v3737_v49 = vshll.u32 %v3736_v47, 16  ;;  %v3764_v47 = vcvt.f32.s32 %v12281_v40 }
 0xa40   : > { %6834 = vst.msk [vmem:[%s11399_s29 + $0x1a0] sm:$0xff] %vm2481_vm5, %v3668_v1  ;;  %v3707_v20 = vcvt.f32.s32 %v3706_v56  ;;  %9026 = vtanh.f32 %v4402_v50  ;;  %4557 = vmax.xlane.f32.xlu1 %v12384_v43  ;;  %v14462_v1 = vld [vmem:[#allocation32_spill] sm:$0xff]  ;;  %v3722_v56 = vcvt.f32.s32 %v12276_v9 }
 0xa41   : > { %9028 = vtanh.f32 %v4397_v8  ;;  %v7971_v0 = vpop.f32.mrb[68].mxu1 }
 0xa42   : > { %v3710_v48 = vadd.s32 %v3709_v7, %v3707_v20  ;;  %v8051_v12 = vpop.f32.mrb[108].mxu0  ;;  %v12392_v26 = vpop.eup %9018  ;;  %v4412_v11 = vadd.f32 %v7971_v0, %v14455_v21  ;;  %v14463_v0 = vld [vmem:[#allocation67_spill] sm:$0xff] }
 0xa43   : > { %v5440_v17 = vadd.f32 %v8051_v12, %v14456_v54  ;;  %v4406_v46 = vpop.f32.mrb[69].mxu1  ;;  %v5434_v4 = vpop.f32.mrb[109].mxu0  ;;  %4563 = vmax.xlane.f32.xlu0 %v12392_v26 }
 0xa44   : > { %v12396_v28 = vpop.eup %9020  ;;  %6837 = vst.msk [vmem:[%s11399_s29 + $0x1b8] sm:$0xff] %vm2481_vm5, %v3710_v48  ;;  %v4407_v61 = vadd.f32 %v4406_v46, %v14457_v62  ;;  %v5435_v38 = vadd.f32 %v5434_v4, %v14458_v3  ;;  %v3692_v13 = vpop.xlane.xlu0 %3691  ;;  %9030 = vtanh.f32 %v4412_v11  ;;  %v14464_v11 = vld [vmem:[#allocation33_spill] sm:$0xff]  ;;  %v14465_v4 = vld [vmem:[#allocation64_spill] sm:$0xff]  ;;  %v14466_v3 = vld [vmem:[#allocation34_spill] sm:$0xff] }
 0xa45   : > { %4561 = vmax.xlane.f32.xlu1 %v12396_v28  ;;  %v3693_v14 = vcvt.f32.s32 %v3692_v13  ;;  %9032 = vtanh.f32 %v5440_v17  ;;  %v7974_v22 = vpop.f32.mrb[70].mxu1 }
 0xa46   : > { %v8054_v41 = vpop.f32.mrb[110].mxu0  ;;  %v12405_v39 = vpop.eup %9022  ;;  %9034 = vtanh.f32 %v4407_v61  ;;  %v4422_v42 = vadd.f32 %v7974_v22, %v14459_v10 }
 0xa47   : > { %v3696_v19 = vadd.s32 %v3695_v32, %v3693_v14  ;;  %v5450_v53 = vadd.f32 %v8054_v41, %v14460_v31  ;;  %v4416_v33 = vpop.f32.mrb[71].mxu1  ;;  %v5444_v59 = vpop.f32.mrb[111].mxu0  ;;  %9036 = vtanh.f32 %v5435_v38  ;;  %4567 = vmax.xlane.f32.xlu0 %v12405_v39  ;;  %v3723_v32 = vshll.u32 %v3722_v56, 16  ;;  %v14467_v31 = vld [vmem:[#allocation69_spill] sm:$0xff] }
 0xa48   : > { %v12409_v58 = vpop.eup %9024  ;;  %v4417_v37 = vadd.f32 %v4416_v33, %v14461_v45  ;;  %v5445_v23 = vadd.f32 %v5444_v59, %v14462_v1  ;;  %v3734_v50 = vpop.xlane.xlu0 %3733  ;;  %9038 = vtanh.f32 %v4422_v42  ;;  %v14468_v33 = vld [vmem:[#allocation35_spill] sm:$0xff] }
 0xa49   : > { %6836 = vst.msk [vmem:[%s11399_s29 + $0x1b0] sm:$0xff] %vm2481_vm5, %v3696_v19  ;;  %4565 = vmax.xlane.f32.xlu1 %v12409_v58  ;;  %v3735_v7 = vcvt.f32.s32 %v3734_v50  ;;  %9040 = vtanh.f32 %v5450_v53  ;;  %v7977_v8 = vpop.f32.mrb[72].mxu1 }
 0xa4a   : > { %v8057_v20 = vpop.f32.mrb[112].mxu0  ;;  %v12418_v5 = vpop.eup %9026  ;;  %9042 = vtanh.f32 %v4417_v37  ;;  %v4432_v12 = vadd.f32 %v7977_v8, %v14463_v0 }
 0xa4b   : > { %v3738_v48 = vadd.s32 %v3737_v49, %v3735_v7  ;;  %v5460_v54 = vadd.f32 %v8057_v20, %v14464_v11  ;;  %v4426_v17 = vpop.f32.mrb[73].mxu1  ;;  %v5454_v9 = vpop.f32.mrb[113].mxu0  ;;  %9044 = vtanh.f32 %v5445_v23  ;;  %4571 = vmax.xlane.f32.xlu0 %v12418_v5  ;;  %v14469_v23 = vld [vmem:[#allocation66_spill] sm:$0xff]  ;;  %v14470_v49 = vld [vmem:[#allocation36_spill] sm:$0xff]  ;;  %v3765_v20 = vshll.u32 %v3764_v47, 16 }
 0xa4c   : > { %v12422_v46 = vpop.eup %9028  ;;  %v4427_v61 = vadd.f32 %v4426_v17, %v14465_v4  ;;  %v5455_v38 = vadd.f32 %v5454_v9, %v14466_v3  ;;  %v3720_v13 = vpop.xlane.xlu0 %3719  ;;  %9046 = vtanh.f32 %v4432_v12 }
 0xa4d   : > { %6839 = vst.msk [vmem:[%s11399_s29 + $0x1c8] sm:$0xff] %vm2481_vm5, %v3738_v48  ;;  %4569 = vmax.xlane.f32.xlu1 %v12422_v46  ;;  %v3721_v14 = vcvt.f32.s32 %v3720_v13  ;;  %9048 = vtanh.f32 %v5460_v54  ;;  %v7980_v22 = vpop.f32.mrb[74].mxu1  ;;  %v3750_v48 = vcvt.f32.s32 %v12286_v27  ;;  %v14472_v27 = vld [vmem:[#allocation68_spill] sm:$0xff] }
 0xa4e   : > { %v8060_v41 = vpop.f32.mrb[114].mxu0  ;;  %v12431_v19 = vpop.eup %9030  ;;  %9050 = vtanh.f32 %v4427_v61  ;;  %v4442_v53 = vadd.f32 %v7980_v22, %v14467_v31  ;;  %v14471_v61 = vld [vmem:[#allocation71_spill] sm:$0xff] }
 0xa4f   : > { %v3724_v42 = vadd.s32 %v3723_v32, %v3721_v14  ;;  %v5470_v59 = vadd.f32 %v8060_v41, %v14468_v33  ;;  %v4436_v37 = vpop.f32.mrb[75].mxu1  ;;  %v5464_v40 = vpop.f32.mrb[115].mxu0  ;;  %9052 = vtanh.f32 %v5455_v38  ;;  %4575 = vmax.xlane.f32.xlu0 %v12431_v19  ;;  %v3751_v41 = vshll.u32 %v3750_v48, 16 }
 0xa50   : > { %v9033_v1 = vpop.eup %9032  ;;  %v4437_v50 = vadd.f32 %v4436_v37, %v14469_v23  ;;  %v5465_v56 = vadd.f32 %v5464_v40, %v14470_v49  ;;  %v3762_v7 = vpop.xlane.xlu0 %3761  ;;  %9054 = vtanh.f32 %v4442_v53 }
 0xa51   : > { %v12438_v8 = vpop.eup %9034  ;;  %6838 = vst.msk [vmem:[%s11399_s29 + $0x1c0] sm:$0xff] %vm2481_vm5, %v3724_v42  ;;  %v3763_v12 = vcvt.f32.s32 %v3762_v7  ;;  %9056 = vtanh.f32 %v5470_v59  ;;  %v7983_v54 = vpop.f32.mrb[76].mxu1  ;;  %v3792_v42 = vcvt.f32.s32 %v12291_v60  ;;  %v14474_v7 = vld [vmem:[#allocation70_spill] sm:$0xff] }
 0xa52   : > { %v9037_v11 = vpop.eup %9036  ;;  %4573 = vmax.xlane.f32.xlu1 %v12438_v8  ;;  %9058 = vtanh.f32 %v4437_v50  ;;  %v4452_v3 = vadd.f32 %v7983_v54, %v14471_v61  ;;  %v4446_v38 = vpop.f32.mrb[77].mxu1  ;;  %v3778_v54 = vcvt.f32.s32 %v12296_v6 }
 0xa53   : > { %v12444_v17 = vpop.eup %9038  ;;  %v3766_v9 = vadd.s32 %v3765_v20, %v3763_v12  ;;  %v8453_v13 = vpack.c.bf16 %v9033_v1, %v9037_v11  ;;  %9060 = vtanh.f32 %v5465_v56  ;;  %v4447_v47 = vadd.f32 %v4446_v38, %v14472_v27  ;;  %v14473_v1 = vld [vmem:[#allocation73_spill] sm:$0xff] }
 0xa54   : > { %v9041_v32 = vpop.eup %9040  ;;  %4579 = vmax.xlane.f32.xlu0 %v12444_v17  ;;  %v3748_v14 = vpop.xlane.xlu0 %3747  ;;  %9062 = vtanh.f32 %v4452_v3  ;;  %v3793_v11 = vshll.u32 %v3792_v42, 16 }
 0xa55   : > { %v12449_v22 = vpop.eup %9042  ;;  %6841 = vst.msk [vmem:[%s11399_s29 + $0x1d8] sm:$0xff] %vm2481_vm5, %v3766_v9  ;;  %8454 = vmatprep.subr.bf16.mxu0 %v8453_v13  ;;  %v3749_v53 = vcvt.f32.s32 %v3748_v14  ;;  %9064 = vtanh.f32 %v4447_v47  ;;  %v7986_v59 = vpop.f32.mrb[78].mxu1  ;;  %v14475_v47 = vld [vmem:[#allocation75_spill] sm:$0xff] }
 0xa56   : > { %v9045_v33 = vpop.eup %9044  ;;  %8456 = vmatpush3.bf16.msra.mxu0 %v8453_v13  ;;  %4577 = vmax.xlane.f32.xlu1 %v12449_v22  ;;  %v4462_v50 = vadd.f32 %v7986_v59, %v14473_v1  ;;  %v4456_v49 = vpop.f32.mrb[79].mxu1 }
 0xa57   : > { %v12455_v37 = vpop.eup %9046  ;;  %v3752_v40 = vadd.s32 %v3751_v41, %v3749_v53  ;;  %v8457_v56 = vpack.c.bf16 %v9041_v32, %v9045_v33  ;;  %v4457_v20 = vadd.f32 %v4456_v49, %v14474_v7  ;;  %v14476_v53 = vld [vmem:[#allocation72_spill] sm:$0xff]  ;;  %v3820_v49 = vcvt.f32.s32 %v12301_v2 }
 0xa58   : > { %v9049_v60 = vpop.eup %9048  ;;  %4583 = vmax.xlane.f32.xlu0 %v12455_v37  ;;  %v3790_v48 = vpop.xlane.xlu0 %3789  ;;  %9066 = vtanh.f32 %v4462_v50  ;;  %v3779_v50 = vshll.u32 %v3778_v54, 16 }
 0xa59   : > { %v12460_v12 = vpop.eup %9050  ;;  %6840 = vst.msk [vmem:[%s11399_s29 + $0x1d0] sm:$0xff] %vm2481_vm5, %v3752_v40  ;;  %8458 = vmatprep.subr.bf16.mxu0 %v8457_v56  ;;  %v3791_v9 = vcvt.f32.s32 %v3790_v48  ;;  %9068 = vtanh.f32 %v4457_v20  ;;  %v7989_v38 = vpop.f32.mrb[80].mxu1 }
 0xa5a   : > { %v9053_v3 = vpop.eup %9052  ;;  %8460 = vmatpush3.bf16.msra.mxu0 %v8457_v56  ;;  %4581 = vmax.xlane.f32.xlu1 %v12460_v12  ;;  %v4472_v14 = vadd.f32 %v7989_v38, %v14475_v47  ;;  %v4466_v41 = vpop.f32.mrb[81].mxu1 }
 0xa5b   : > { %v12466_v13 = vpop.eup %9054  ;;  %v3794_v32 = vadd.s32 %v3793_v11, %v3791_v9  ;;  %v8461_v42 = vpack.c.bf16 %v9049_v60, %v9053_v3  ;;  %v4467_v33 = vadd.f32 %v4466_v41, %v14476_v53  ;;  %v14477_v9 = vld [vmem:[#allocation77_spill] sm:$0xff] }
 0xa5c   : > { %v9057_v6 = vpop.eup %9056  ;;  %4587 = vmax.xlane.f32.xlu0 %v12466_v13  ;;  %v3776_v59 = vpop.xlane.xlu0 %3775  ;;  %9070 = vtanh.f32 %v4472_v14 }
 0xa5d   : > { %v12471_v40 = vpop.eup %9058  ;;  %6843 = vst.msk [vmem:[%s11399_s29 + $0x1e8] sm:$0xff] %vm2481_vm5, %v3794_v32  ;;  %8462 = vmatprep.subr.bf16.mxu0 %v8461_v42  ;;  %v3777_v56 = vcvt.f32.s32 %v3776_v59  ;;  %9072 = vtanh.f32 %v4467_v33  ;;  %v7992_v60 = vpop.f32.mrb[82].mxu1  ;;  %v14478_v32 = vld [vmem:[#allocation74_spill] sm:$0xff]  ;;  %v3821_v59 = vshll.u32 %v3820_v49, 16 }
 0xa5e   : > { %v9061_v20 = vpop.eup %9060  ;;  %8464 = vmatpush3.bf16.msra.mxu0 %v8461_v42  ;;  %4585 = vmax.xlane.f32.xlu1 %v12471_v40  ;;  %v4482_v3 = vadd.f32 %v7992_v60, %v14477_v9  ;;  %v4476_v54 = vpop.f32.mrb[83].mxu1  ;;  %v3806_v42 = vcvt.f32.s32 %v12306_v34  ;;  %v14480_v34 = vld [vmem:[#allocation76_spill] sm:$0xff] }
 0xa5f   : > { %v12477_v48 = vpop.eup %9062  ;;  %v3780_v11 = vadd.s32 %v3779_v50, %v3777_v56  ;;  %v8465_v38 = vpack.c.bf16 %v9057_v6, %v9061_v20  ;;  %v4477_v14 = vadd.f32 %v4476_v54, %v14478_v32  ;;  %v14479_v20 = vld [vmem:[#allocation79_spill] sm:$0xff] }
 0xa60   : > { %v12480_v2 = vpop.eup %9064  ;;  %4591 = vmax.xlane.f32.xlu0 %v12477_v48  ;;  %v3818_v41 = vpop.xlane.xlu0 %3817  ;;  %9074 = vtanh.f32 %v4482_v3  ;;  %v3807_v3 = vshll.u32 %v3806_v42, 16 }
 0xa61   : > { %6842 = vst.msk [vmem:[%s11399_s29 + $0x1e0] sm:$0xff] %vm2481_vm5, %v3780_v11  ;;  %8466 = vmatprep.subr.bf16.mxu0 %v8465_v38  ;;  %v3819_v33 = vcvt.f32.s32 %v3818_v41  ;;  %9076 = vtanh.f32 %v4477_v14  ;;  %v7995_v6 = vpop.f32.mrb[84].mxu1 }
 0xa62   : > { %8468 = vmatpush3.bf16.msra.mxu0 %v8465_v38  ;;  %4589 = vmax.xlane.f32.xlu1 %v12480_v2  ;;  %v12488_v50 = vpop.eup %9066  ;;  %v4492_v60 = vadd.f32 %v7995_v6, %v14479_v20  ;;  %v4486_v54 = vpop.f32.mrb[85].mxu1  ;;  %v9327_v38 = vld [vmem:[%s14221_s18 + $0x8] sm:$0xff]  ;;  %v14481_v6 = vld [vmem:[#allocation81_spill] sm:$0xff] }
 0xa63   : > { %v3822_v56 = vadd.s32 %v3821_v59, %v3819_v33  ;;  %v12491_v49 = vpop.eup %9068  ;;  %v4487_v32 = vadd.f32 %v4486_v54, %v14480_v34  ;;  %v9328_v59 = vld [vmem:[%s14221_s18 + $0x10] sm:$0xff]  ;;  %v14486_v34 = vld [vmem:[#allocation82_spill] sm:$0xff] }
 0xa64   : > { %4595 = vmax.xlane.f32.xlu0 %v12488_v50  ;;  %v3804_v11 = vpop.xlane.xlu0 %3803  ;;  %9078 = vtanh.f32 %v4492_v60 }
 0xa65   : > { %6845 = vst.msk [vmem:[%s11399_s29 + $0x1f8] sm:$0xff] %vm2481_vm5, %v3822_v56  ;;  %8078 = vmatmul.mubr.msk.f32.vlgmr.msra.gmra.mrb[116].mxu0 %vm844_vm0, %v9327_v38  ;;  %v3805_v14 = vcvt.f32.s32 %v3804_v11  ;;  %9080 = vtanh.f32 %v4487_v32  ;;  %v7998_v41 = vpop.f32.mrb[86].mxu1  ;;  %v14482_v38 = vld [vmem:[#allocation78_spill] sm:$0xff] }
 0xa66   : > { %4593 = vmax.xlane.f32.xlu1 %v12491_v49  ;;  %8080 = vmatprep.mubr.msk.f32.mxu0 %vm844_vm0, %v9328_v59  ;;  %v12506_v42 = vpop.eup %9070  ;;  %v4502_v56 = vadd.f32 %v7998_v41, %v14481_v6  ;;  %v4496_v60 = vpop.f32.mrb[87].mxu1  ;;  %v9329_v32 = vld [vmem:[%s14221_s18 + $0x18] sm:$0xff]  ;;  %v14483_v59 = vld [vmem:[#allocation83_spill] sm:$0xff] }
 0xa67   : > { %v3808_v33 = vadd.s32 %v3807_v3, %v3805_v14  ;;  %v12509_v54 = vpop.eup %9072  ;;  %v4497_v11 = vadd.f32 %v4496_v60, %v14482_v38  ;;  %v9330_v14 = vld [vmem:[%s14221_s18 + $0x20] sm:$0xff]  ;;  %v14484_v38 = vld [vmem:[#allocation80_spill] sm:$0xff] }
 0xa68   : > { %4599 = vmax.xlane.f32.xlu0 %v12506_v42  ;;  %9082 = vtanh.f32 %v4502_v56 }
 0xa69   : > { %6844 = vst.msk [vmem:[%s11399_s29 + $0x1f0] sm:$0xff] %vm2481_vm5, %v3808_v33  ;;  %8081 = vmatmul.mubr.msk.f32.gmra.mrb[118].mxu0 %vm844_vm0, %v9329_v32  ;;  %9084 = vtanh.f32 %v4497_v11  ;;  %v8001_v3 = vpop.f32.mrb[88].mxu1  ;;  %v9331_v11 = vld [vmem:[%s14221_s18 + $0x28] sm:$0xff] }
 0xa6a   : > { %4597 = vmax.xlane.f32.xlu1 %v12509_v54  ;;  %8083 = vmatprep.mubr.msk.f32.mxu0 %vm844_vm0, %v9330_v14  ;;  %v12524_v41 = vpop.eup %9074  ;;  %v4512_v33 = vadd.f32 %v8001_v3, %v14483_v59  ;;  %v4506_v56 = vpop.f32.mrb[89].mxu1  ;;  %v9332_v3 = vld [vmem:[%s14221_s18 + $0x30] sm:$0xff] }
 0xa6b   : > { %v12527_v60 = vpop.eup %9076  ;;  %v4507_v6 = vadd.f32 %v4506_v56, %v14484_v38  ;;  %v14485_v56 = vld [vmem:[#allocation84_spill] sm:$0xff] }
 0xa6c   : > { %4603 = vmax.xlane.f32.xlu0 %v12524_v41  ;;  %9086 = vtanh.f32 %v4512_v33 }
 0xa6d   : > { %8084 = vmatmul.mubr.msk.f32.gmra.mrb[120].mxu0 %vm844_vm0, %v9331_v11  ;;  %9088 = vtanh.f32 %v4507_v6  ;;  %v8004_v32 = vpop.f32.mrb[90].mxu1  ;;  %v9333_v6 = vld [vmem:[%s14221_s18 + $0x38] sm:$0xff]  ;;  %v9334_v11 = vld [vmem:[%s14221_s18 + $0x40] sm:$0xff] }
 0xa6e   : > { %4601 = vmax.xlane.f32.xlu1 %v12527_v60  ;;  %8086 = vmatprep.mubr.msk.f32.mxu0 %vm844_vm0, %v9332_v3  ;;  %v12540_v14 = vpop.eup %9078  ;;  %v4522_v33 = vadd.f32 %v8004_v32, %v14485_v56  ;;  %v4516_v38 = vpop.f32.mrb[91].mxu1  ;;  %v9335_v3 = vld [vmem:[%s14221_s18 + $0x48] sm:$0xff] }
 0xa6f   : > { %v12543_v59 = vpop.eup %9080  ;;  %v4517_v20 = vadd.f32 %v4516_v38, %v14486_v34 }
 0xa70   : > { %4607 = vmax.xlane.f32.xlu0 %v12540_v14  ;;  %9090 = vtanh.f32 %v4522_v33 }
 0xa71   : > { %8087 = vmatmul.mubr.msk.f32.gmra.mrb[122].mxu0 %vm844_vm0, %v9333_v6  ;;  %9092 = vtanh.f32 %v4517_v20  ;;  %v9336_v20 = vld [vmem:[%s14221_s18 + $0x50] sm:$0xff] }
 0xa72   : > { %4605 = vmax.xlane.f32.xlu1 %v12543_v59  ;;  %8089 = vmatprep.mubr.msk.f32.mxu0 %vm844_vm0, %v9334_v11  ;;  %v12556_v32 = vpop.eup %9082  ;;  %v9337_v11 = vld [vmem:[%s14221_s18 + $0x58] sm:$0xff] }
 0xa73   : > { %14487 = vst [vmem:[#allocation26_spill] sm:$0xff] %v12556_v32  ;;  %v12558_v38 = vpop.eup %9084 }
 0xa74   : > { %14488 = vst [vmem:[#allocation17_spill] sm:$0xff] %v12558_v38  ;;  %4611 = vmax.xlane.f32.xlu0 %v12556_v32 }
 0xa75   : > { %8090 = vmatmul.mubr.msk.f32.gmra.mrb[124].mxu0 %vm844_vm0, %v9335_v3  ;;  %v9338_v3 = vld [vmem:[%s14221_s18 + $0x60] sm:$0xff] }
 0xa76   : > { %4609 = vmax.xlane.f32.xlu1 %v12558_v38  ;;  %8092 = vmatprep.mubr.msk.f32.mxu0 %vm844_vm0, %v9336_v20  ;;  %v12570_v33 = vpop.eup %9086 }
 0xa77   : > { %14489 = vst [vmem:[#allocation18_spill] sm:$0xff] %v12570_v33  ;;  %v12572_v6 = vpop.eup %9088 }
 0xa78   : > { %14490 = vst [vmem:[#allocation19_spill] sm:$0xff] %v12572_v6  ;;  %4615 = vmax.xlane.f32.xlu0 %v12570_v33  ;;  %v9339_v33 = vld [vmem:[%s14221_s18 + $0x68] sm:$0xff] }
 0xa79   : > { %8093 = vmatmul.mubr.msk.f32.gmra.mrb[126].mxu0 %vm844_vm0, %v9337_v11  ;;  %v9340_v11 = vld [vmem:[%s14221_s18 + $0x70] sm:$0xff] }
 0xa7a   : > { %4613 = vmax.xlane.f32.xlu1 %v12572_v6  ;;  %8095 = vmatprep.mubr.msk.f32.mxu0 %vm844_vm0, %v9338_v3  ;;  %v12584_v20 = vpop.eup %9090  ;;  %v9341_v3 = vld [vmem:[%s14221_s18 + $0x78] sm:$0xff] }
 0xa7b   : > { %14491 = vst [vmem:[#allocation20_spill] sm:$0xff] %v12584_v20  ;;  %v12586_v38 = vpop.eup %9092 }
 0xa7c   : > { %14492 = vst [vmem:[#allocation86_spill] sm:$0xff] %v12586_v38  ;;  %4619 = vmax.xlane.f32.xlu0 %v12584_v20 }
 0xa7d   : > { %8096 = vmatmul.mubr.msk.f32.gmra.mrb[128].mxu0 %vm844_vm0, %v9339_v33 }
 0xa7e   : > { %4617 = vmax.xlane.f32.xlu1 %v12586_v38  ;;  %8098 = vmatprep.mubr.msk.f32.mxu0 %vm844_vm0, %v9340_v11 }
 0xa81   : > { %8099 = vmatmul.mubr.msk.f32.gmra.mrb[130].mxu0 %vm844_vm0, %v9341_v3 }
 0xacc   : > { %v4560_v20 = vpop.xlane.xlu0 %4559 }
 0xacd   : > { %6887 = vst [vmem:[%s10360_s7 + $0x2c8] sm:$0xff] %v4560_v20  ;;  %vm4654_vm14 = vcmp.eq.f32.partialorder %v12381_v63, %v4560_v20  ;;  %v4558_v33 = vpop.xlane.xlu1 %4557 }
 0xace   : > { %v12605_v38 = vsel %vm4654_vm14, %v14386_v15, 128  ;;  %6886 = vst [vmem:[%s10360_s7 + $0x2c0] sm:$0xff] %v4558_v33  ;;  %vm4653_vm15 = vcmp.eq.f32.partialorder %v12384_v43, %v4558_v33 }
 0xacf   : > { %v12610_v11 = vsel %vm4653_vm15, %v14386_v15, 128  ;;  %v4732_v6 = vshra.s32 %v12605_v38, 16 }
 0xad0   : > { %v4564_v32 = vpop.xlane.xlu0 %4563  ;;  %v4718_v20 = vshra.s32 %v12610_v11, 16 }
 0xad1   : > { %6889 = vst [vmem:[%s10360_s7 + $0x2d8] sm:$0xff] %v4564_v32  ;;  %vm4656_vm0 = vcmp.eq.f32.partialorder %v12392_v26, %v4564_v32  ;;  %v12615_v63 = vcvt.s32.f32 %v4732_v6 }
 0xad2   : > { %v4562_v3 = vpop.xlane.xlu1 %4561  ;;  %v12619_v34 = vsel %vm4656_vm0, %v14386_v15, 128  ;;  %v12625_v56 = vcvt.s32.f32 %v4718_v20 }
 0xad3   : > { %6888 = vst [vmem:[%s10360_s7 + $0x2d0] sm:$0xff] %v4562_v3  ;;  %vm4655_vm1 = vcmp.eq.f32.partialorder %v12396_v28, %v4562_v3  ;;  %4735 = vmin.xlane.f32.xlu1 %v12615_v63  ;;  %v4760_v26 = vshra.s32 %v12619_v34, 16 }
 0xad4   : > { %v4568_v43 = vpop.xlane.xlu0 %4567  ;;  %v12629_v32 = vsel %vm4655_vm1, %v14386_v15, 128 }
 0xad5   : > { %6891 = vst [vmem:[%s10360_s7 + $0x2e8] sm:$0xff] %v4568_v43  ;;  %vm4658_vm2 = vcmp.eq.f32.partialorder %v12405_v39, %v4568_v43  ;;  %v12635_v3 = vcvt.s32.f32 %v4760_v26  ;;  %v4746_v20 = vshra.s32 %v12629_v32, 16 }
 0xad6   : > { %v4566_v33 = vpop.xlane.xlu1 %4565  ;;  %v12639_v9 = vsel %vm4658_vm2, %v14386_v15, 128 }
 0xad7   : > { %6890 = vst [vmem:[%s10360_s7 + $0x2e0] sm:$0xff] %v4566_v33  ;;  %4721 = vmin.xlane.f32.xlu1 %v12625_v56  ;;  %vm4657_vm3 = vcmp.eq.f32.partialorder %v12409_v58, %v4566_v33  ;;  %v12645_v43 = vcvt.s32.f32 %v4746_v20  ;;  %v4788_v53 = vshra.s32 %v12639_v9, 16 }
 0xad8   : > { %v4572_v28 = vpop.xlane.xlu0 %4571  ;;  %v12649_v26 = vsel %vm4657_vm3, %v14386_v15, 128 }
 0xad9   : > { %6893 = vst [vmem:[%s10360_s7 + $0x2f8] sm:$0xff] %v4572_v28  ;;  %vm4660_vm4 = vcmp.eq.f32.partialorder %v12418_v5, %v4572_v28  ;;  %v12655_v33 = vcvt.s32.f32 %v4788_v53  ;;  %v4774_v20 = vshra.s32 %v12649_v26, 16 }
 0xada   : > { %v4570_v6 = vpop.xlane.xlu1 %4569  ;;  %v12659_v7 = vsel %vm4660_vm4, %v14386_v15, 128 }
 0xadb   : > { %6892 = vst [vmem:[%s10360_s7 + $0x2f0] sm:$0xff] %v4570_v6  ;;  %4763 = vmin.xlane.f32.xlu1 %v12635_v3  ;;  %vm4659_vm6 = vcmp.eq.f32.partialorder %v12422_v46, %v4570_v6  ;;  %v12665_v28 = vcvt.s32.f32 %v4774_v20  ;;  %v4816_v53 = vshra.s32 %v12659_v7, 16 }
 0xadc   : > { %v4576_v39 = vpop.xlane.xlu0 %4575  ;;  %v12669_v27 = vsel %vm4659_vm6, %v14386_v15, 128 }
 0xadd   : > { %6895 = vst [vmem:[%s10360_s7 + $0x308] sm:$0xff] %v4576_v39  ;;  %vm4662_vm7 = vcmp.eq.f32.partialorder %v12431_v19, %v4576_v39  ;;  %v12675_v6 = vcvt.s32.f32 %v4816_v53  ;;  %v4802_v20 = vshra.s32 %v12669_v27, 16 }
 0xade   : > { %v12679_v23 = vsel %vm4662_vm7, %v14386_v15, 128 }
 0xadf   : > { %v4574_v47 = vpop.xlane.xlu1 %4573  ;;  %4749 = vmin.xlane.f32.xlu1 %v12645_v43  ;;  %v12691_v39 = vcvt.s32.f32 %v4802_v20  ;;  %v4844_v53 = vshra.s32 %v12679_v23, 16 }
 0xae0   : > { %6894 = vst [vmem:[%s10360_s7 + $0x300] sm:$0xff] %v4574_v47  ;;  %vm4661_vm8 = vcmp.eq.f32.partialorder %v12438_v8, %v4574_v47 }
 0xae1   : > { %v4580_v58 = vpop.xlane.xlu0 %4579  ;;  %v12695_v4 = vsel %vm4661_vm8, %v14386_v15, 128  ;;  %v12707_v47 = vcvt.s32.f32 %v4844_v53 }
 0xae2   : > { %6897 = vst [vmem:[%s10360_s7 + $0x318] sm:$0xff] %v4580_v58  ;;  %vm4664_vm9 = vcmp.eq.f32.partialorder %v12444_v17, %v4580_v58  ;;  %v4830_v20 = vshra.s32 %v12695_v4, 16 }
 0xae3   : > { %v4578_v1 = vpop.xlane.xlu1 %4577  ;;  %4791 = vmin.xlane.f32.xlu1 %v12655_v33  ;;  %v12711_v45 = vsel %vm4664_vm9, %v14386_v15, 128 }
 0xae4   : > { %6896 = vst [vmem:[%s10360_s7 + $0x310] sm:$0xff] %v4578_v1  ;;  %vm4663_vm10 = vcmp.eq.f32.partialorder %v12449_v22, %v4578_v1  ;;  %v12723_v58 = vcvt.s32.f32 %v4830_v20  ;;  %v4872_v53 = vshra.s32 %v12711_v45, 16 }
 0xae5   : > { %v4584_v5 = vpop.xlane.xlu0 %4583  ;;  %v12727_v62 = vsel %vm4663_vm10, %v14386_v15, 128 }
 0xae6   : > { %6899 = vst [vmem:[%s10360_s7 + $0x328] sm:$0xff] %v4584_v5  ;;  %vm4666_vm11 = vcmp.eq.f32.partialorder %v12455_v37, %v4584_v5  ;;  %v12739_v1 = vcvt.s32.f32 %v4872_v53  ;;  %v4858_v20 = vshra.s32 %v12727_v62, 16 }
 0xae7   : > { %v4582_v61 = vpop.xlane.xlu1 %4581  ;;  %4777 = vmin.xlane.f32.xlu1 %v12665_v28  ;;  %v12743_v52 = vsel %vm4666_vm11, %v14386_v15, 128 }
 0xae8   : > { %6898 = vst [vmem:[%s10360_s7 + $0x320] sm:$0xff] %v4582_v61  ;;  %vm4665_vm12 = vcmp.eq.f32.partialorder %v12460_v12, %v4582_v61  ;;  %v12755_v5 = vcvt.s32.f32 %v4858_v20  ;;  %v4900_v53 = vshra.s32 %v12743_v52, 16 }
 0xae9   : > { %v4588_v46 = vpop.xlane.xlu0 %4587  ;;  %v12759_v30 = vsel %vm4665_vm12, %v14386_v15, 128 }
 0xaea   : > { %6901 = vst [vmem:[%s10360_s7 + $0x338] sm:$0xff] %v4588_v46  ;;  %vm4668_vm13 = vcmp.eq.f32.partialorder %v12466_v13, %v4588_v46  ;;  %v12768_v12 = vcvt.s32.f32 %v4900_v53  ;;  %v4886_v20 = vshra.s32 %v12759_v30, 16 }
 0xaeb   : > { %v12681_v31 = vpop.xlane.xlu1 %4585  ;;  %4819 = vmin.xlane.f32.xlu1 %v12675_v6  ;;  %v12772_v44 = vsel %vm4668_vm13, %v14386_v15, 128 }
 0xaec   : > { %6900 = vst [vmem:[%s10360_s7 + $0x330] sm:$0xff] %v12681_v31  ;;  %vm4667_vm14 = vcmp.eq.f32.partialorder %v12471_v40, %v12681_v31  ;;  %v12779_v46 = vcvt.s32.f32 %v4886_v20  ;;  %v4928_v53 = vshra.s32 %v12772_v44, 16 }
 0xaed   : > { %v12687_v19 = vpop.xlane.xlu0 %4591 }
 0xaee   : > { %6903 = vst [vmem:[%s10360_s7 + $0x348] sm:$0xff] %v12687_v19  ;;  %vm4670_vm15 = vcmp.eq.f32.partialorder %v12477_v48, %v12687_v19  ;;  %v12790_v31 = vcvt.s32.f32 %v4928_v53 }
 0xaef   : > { %v12697_v0 = vpop.xlane.xlu1 %4589  ;;  %4805 = vmin.xlane.f32.xlu1 %v12691_v39  ;;  %v12794_v20 = vsel %vm4670_vm15, %v14386_v15, 128 }
 0xaf0   : > { %6902 = vst [vmem:[%s10360_s7 + $0x340] sm:$0xff] %v12697_v0  ;;  %vm4669_vm0 = vcmp.eq.f32.partialorder %v12480_v2, %v12697_v0 }
 0xaf1   : > { %v12703_v8 = vpop.xlane.xlu0 %4595  ;;  %v12804_v19 = vsel %vm4669_vm0, %v14386_v15, 128 }
 0xaf2   : > { %6905 = vst [vmem:[%s10360_s7 + $0x358] sm:$0xff] %v12703_v8  ;;  %vm4672_vm1 = vcmp.eq.f32.partialorder %v12488_v50, %v12703_v8 }
 0xaf3   : > { %v12713_v10 = vpop.xlane.xlu1 %4593  ;;  %4847 = vmin.xlane.f32.xlu1 %v12707_v47  ;;  %v12813_v0 = vsel %vm4672_vm1, %v14386_v15, 128 }
 0xaf4   : > { %6904 = vst [vmem:[%s10360_s7 + $0x350] sm:$0xff] %v12713_v10  ;;  %vm4671_vm2 = vcmp.eq.f32.partialorder %v12491_v49, %v12713_v10 }
 0xaf5   : > { %v12719_v17 = vpop.xlane.xlu0 %4599  ;;  %v12822_v50 = vsel %vm4671_vm2, %v14386_v15, 128 }
 0xaf6   : > { %6907 = vst [vmem:[%s10360_s7 + $0x368] sm:$0xff] %v12719_v17  ;;  %vm4674_vm3 = vcmp.eq.f32.partialorder %v12506_v42, %v12719_v17 }
 0xaf7   : > { %v12729_v21 = vpop.xlane.xlu1 %4597  ;;  %4833 = vmin.xlane.f32.xlu1 %v12723_v58  ;;  %v12831_v10 = vsel %vm4674_vm3, %v14386_v15, 128 }
 0xaf8   : > { %6906 = vst [vmem:[%s10360_s7 + $0x360] sm:$0xff] %v12729_v21  ;;  %vm4673_vm4 = vcmp.eq.f32.partialorder %v12509_v54, %v12729_v21 }
 0xaf9   : > { %v12735_v22 = vpop.xlane.xlu0 %4603  ;;  %v12840_v42 = vsel %vm4673_vm4, %v14386_v15, 128 }
 0xafa   : > { %6909 = vst [vmem:[%s10360_s7 + $0x378] sm:$0xff] %v12735_v22  ;;  %vm4676_vm6 = vcmp.eq.f32.partialorder %v12524_v41, %v12735_v22 }
 0xafb   : > { %v12745_v25 = vpop.xlane.xlu1 %4601  ;;  %4875 = vmin.xlane.f32.xlu1 %v12739_v1  ;;  %v12849_v21 = vsel %vm4676_vm6, %v14386_v15, 128 }
 0xafc   : > { %6908 = vst [vmem:[%s10360_s7 + $0x370] sm:$0xff] %v12745_v25  ;;  %14494 = vst [vmem:[#allocation28_spill] sm:$0xff] %v12849_v21  ;;  %vm4675_vm7 = vcmp.eq.f32.partialorder %v12527_v60, %v12745_v25 }
 0xafd   : > { %v12751_v37 = vpop.xlane.xlu0 %4607  ;;  %v12858_v41 = vsel %vm4675_vm7, %v14386_v15, 128 }
 0xafe   : > { %6911 = vst [vmem:[%s10360_s7 + $0x388] sm:$0xff] %v12751_v37  ;;  %14496 = vst [vmem:[#allocation88_spill] sm:$0xff] %v12858_v41  ;;  %vm4678_vm8 = vcmp.eq.f32.partialorder %v12540_v14, %v12751_v37 }
 0xaff   : > { %v12761_v29 = vpop.xlane.xlu1 %4605  ;;  %4861 = vmin.xlane.f32.xlu1 %v12755_v5  ;;  %v12867_v25 = vsel %vm4678_vm8, %v14386_v15, 128 }
 0xb00   : > { %6910 = vst [vmem:[%s10360_s7 + $0x380] sm:$0xff] %v12761_v29  ;;  %14498 = vst [vmem:[#allocation90_spill] sm:$0xff] %v12867_v25  ;;  %vm4677_vm9 = vcmp.eq.f32.partialorder %v12543_v59, %v12761_v29  ;;  %v14503_v59 = vld [vmem:[#allocation37_spill] sm:$0xff] }
 0xb01   : > { %v4612_v61 = vpop.xlane.xlu0 %4611  ;;  %v12876_v14 = vsel %vm4677_vm9, %v14386_v15, 128 }
 0xb02   : > { %6913 = vst [vmem:[%s10360_s7 + $0x398] sm:$0xff] %v4612_v61  ;;  %v12783_v61 = vsel %vm4667_vm14, %v14386_v15, 128  ;;  %14500 = vst [vmem:[#allocation92_spill] sm:$0xff] %v12876_v14 }
 0xb03   : > { %v4610_v16 = vpop.xlane.xlu1 %4609  ;;  %4903 = vmin.xlane.f32.xlu1 %v12768_v12  ;;  %v4914_v40 = vshra.s32 %v12783_v61, 16 }
 0xb04   : > { %6912 = vst [vmem:[%s10360_s7 + $0x390] sm:$0xff] %v4610_v16 }
 0xb05   : > { %v4616_v13 = vpop.xlane.xlu0 %4615  ;;  %v12800_v48 = vcvt.s32.f32 %v4914_v40  ;;  %v4984_v40 = vshra.s32 %v12813_v0, 16 }
 0xb06   : > { %6915 = vst [vmem:[%s10360_s7 + $0x3a8] sm:$0xff] %v4616_v13 }
 0xb07   : > { %v4614_v55 = vpop.xlane.xlu1 %4613  ;;  %4889 = vmin.xlane.f32.xlu1 %v12779_v46  ;;  %v12827_v8 = vcvt.s32.f32 %v4984_v40  ;;  %v5040_v40 = vshra.s32 %v12849_v21, 16 }
 0xb08   : > { %6914 = vst [vmem:[%s10360_s7 + $0x3a0] sm:$0xff] %v4614_v55  ;;  %v4956_v55 = vshra.s32 %v12794_v20, 16 }
 0xb09   : > { %v4620_v16 = vpop.xlane.xlu0 %4619  ;;  %v12863_v22 = vcvt.s32.f32 %v5040_v40 }
 0xb0a   : > { %6917 = vst [vmem:[%s10360_s7 + $0x3b8] sm:$0xff] %v4620_v16  ;;  %v12809_v53 = vcvt.s32.f32 %v4956_v55  ;;  %v4942_v16 = vshra.s32 %v12804_v19, 16  ;;  %v5012_v55 = vshra.s32 %v12831_v10, 16 }
 0xb0b   : > { %v4618_v13 = vpop.xlane.xlu1 %4617  ;;  %4931 = vmin.xlane.f32.xlu1 %v12790_v31  ;;  %14497 = vst [vmem:[#allocation89_spill] sm:$0xff] %v12863_v22 }
 0xb0c   : > { %6916 = vst [vmem:[%s10360_s7 + $0x3b0] sm:$0xff] %v4618_v13  ;;  %v12818_v2 = vcvt.s32.f32 %v4942_v16  ;;  %v4970_v13 = vshra.s32 %v12822_v50, 16  ;;  %v12845_v17 = vcvt.s32.f32 %v5012_v55  ;;  %v4998_v16 = vshra.s32 %v12840_v42, 16 }
 0xb0d   : > { %v5068_v55 = vshra.s32 %v12867_v25, 16  ;;  %v14504_v25 = vld [vmem:[#allocation38_spill] sm:$0xff] }
 0xb0e   : > { %v12836_v49 = vcvt.s32.f32 %v4970_v13  ;;  %14493 = vst [vmem:[#allocation27_spill] sm:$0xff] %v12845_v17  ;;  %v12854_v54 = vcvt.s32.f32 %v4998_v16  ;;  %v5026_v13 = vshra.s32 %v12858_v41, 16  ;;  %v5054_v16 = vshra.s32 %v12876_v14, 16  ;;  %v14505_v41 = vld [vmem:[#allocation40_spill] sm:$0xff] }
 0xb0f   : > { %4917 = vmin.xlane.f32.xlu1 %v12800_v48  ;;  %v12879_v37 = vcvt.s32.f32 %v5068_v55 }
 0xb10   : > { %14495 = vst [vmem:[#allocation87_spill] sm:$0xff] %v12854_v54  ;;  %v12872_v60 = vcvt.s32.f32 %v5026_v13  ;;  %v12883_v40 = vcvt.s32.f32 %v5054_v16 }
 0xb11   : > { %14501 = vst [vmem:[#allocation93_spill] sm:$0xff] %v12879_v37 }
 0xb12   : > { %14499 = vst [vmem:[#allocation91_spill] sm:$0xff] %v12872_v60  ;;  %14502 = vst [vmem:[#allocation94_spill] sm:$0xff] %v12883_v40 }
 0xb13   : > { %4959 = vmin.xlane.f32.xlu1 %v12809_v53 }
 0xb17   : > { %4945 = vmin.xlane.f32.xlu1 %v12818_v2 }
 0xb1b   : > { %4987 = vmin.xlane.f32.xlu1 %v12827_v8 }
 0xb1f   : > { %4973 = vmin.xlane.f32.xlu1 %v12836_v49 }
 0xb23   : > { %5015 = vmin.xlane.f32.xlu1 %v12845_v17 }
 0xb27   : > { %5001 = vmin.xlane.f32.xlu1 %v12854_v54 }
 0xb2b   : > { %5043 = vmin.xlane.f32.xlu1 %v12863_v22 }
 0xb2f   : > { %5029 = vmin.xlane.f32.xlu1 %v12872_v60 }
 0xb33   : > { %5071 = vmin.xlane.f32.xlu1 %v12879_v37  ;;  %v14506_v37 = vld [vmem:[#allocation41_spill] sm:$0xff] }
 0xb37   : > { %5057 = vmin.xlane.f32.xlu1 %v12883_v40  ;;  %v14507_v40 = vld [vmem:[#allocation42_spill] sm:$0xff] }
 0xb38   : > { %v8079_v29 = vpop.f32.mrb[116].mxu0 }
 0xb39   : > { %v5553_v13 = vadd.f32 %v8079_v29, %v14503_v59  ;;  %v5547_v18 = vpop.f32.mrb[117].mxu0 }
 0xb3a   : > { %v5548_v22 = vadd.f32 %v5547_v18, %v14504_v25  ;;  %v14508_v25 = vld [vmem:[#allocation43_spill] sm:$0xff] }
 0xb3b   : > { %9094 = vtanh.f32 %v5553_v13 }
 0xb3c   : > { %9096 = vtanh.f32 %v5548_v22  ;;  %v8082_v15 = vpop.f32.mrb[118].mxu0 }
 0xb3d   : > { %v5563_v55 = vadd.f32 %v8082_v15, %v14321_v51  ;;  %v5557_v60 = vpop.f32.mrb[119].mxu0  ;;  %v14509_v51 = vld [vmem:[#allocation44_spill] sm:$0xff] }
 0xb3e   : > { %v5558_v14 = vadd.f32 %v5557_v60, %v14505_v41 }
 0xb3f   : > { %9098 = vtanh.f32 %v5563_v55  ;;  %v14510_v55 = vld [vmem:[#allocation45_spill] sm:$0xff] }
 0xb40   : > { %9100 = vtanh.f32 %v5558_v14  ;;  %v8085_v16 = vpop.f32.mrb[120].mxu0 }
 0xb41   : > { %v5573_v54 = vadd.f32 %v8085_v16, %v14506_v37  ;;  %v5567_v21 = vpop.f32.mrb[121].mxu0 }
 0xb42   : > { %v5568_v17 = vadd.f32 %v5567_v21, %v14507_v40 }
 0xb43   : > { %9102 = vtanh.f32 %v5573_v54 }
 0xb44   : > { %9104 = vtanh.f32 %v5568_v17  ;;  %v8088_v29 = vpop.f32.mrb[122].mxu0 }
 0xb45   : > { %v9095_v18 = vpop.eup %9094  ;;  %v5583_v22 = vadd.f32 %v8088_v29, %v14508_v25  ;;  %v5577_v59 = vpop.f32.mrb[123].mxu0 }
 0xb46   : > { %v9097_v13 = vpop.eup %9096  ;;  %v5578_v15 = vadd.f32 %v5577_v59, %v14509_v51  ;;  %v14511_v59 = vld [vmem:[#allocation48_spill] sm:$0xff] }
 0xb47   : > { %9106 = vtanh.f32 %v5583_v22  ;;  %v8469_v41 = vpack.c.bf16 %v9095_v18, %v9097_v13 }
 0xb48   : > { %9108 = vtanh.f32 %v5578_v15  ;;  %v8091_v60 = vpop.f32.mrb[124].mxu0 }
 0xb49   : > { %v9099_v14 = vpop.eup %9098  ;;  %v5593_v37 = vadd.f32 %v8091_v60, %v14510_v55  ;;  %v5587_v16 = vpop.f32.mrb[125].mxu0  ;;  %8470 = vmatprep.subr.bf16.mxu1 %v8469_v41 }
 0xb4a   : > { %v9101_v21 = vpop.eup %9100  ;;  %v5588_v17 = vadd.f32 %v5587_v16, %v14328_v36  ;;  %8472 = vmatpush3.bf16.msra.mxu1 %v8469_v41  ;;  %v14512_v36 = vld [vmem:[#allocation49_spill] sm:$0xff] }
 0xb4b   : > { %9110 = vtanh.f32 %v5593_v37  ;;  %v8473_v54 = vpack.c.bf16 %v9099_v14, %v9101_v21 }
 0xb4c   : > { %9112 = vtanh.f32 %v5588_v17  ;;  %v8094_v40 = vpop.f32.mrb[126].mxu0 }
 0xb4d   : > { %v9103_v29 = vpop.eup %9102  ;;  %v5603_v25 = vadd.f32 %v8094_v40, %v14329_v57  ;;  %v5597_v22 = vpop.f32.mrb[127].mxu0  ;;  %8474 = vmatprep.subr.bf16.mxu1 %v8473_v54 }
 0xb4e   : > { %v9105_v18 = vpop.eup %9104  ;;  %v5598_v13 = vadd.f32 %v5597_v22, %v14511_v59  ;;  %8476 = vmatpush3.bf16.msra.mxu1 %v8473_v54 }
 0xb4f   : > { %9114 = vtanh.f32 %v5603_v25  ;;  %v8477_v51 = vpack.c.bf16 %v9103_v29, %v9105_v18  ;;  %v14513_v29 = vld [vmem:[#allocation52_spill] sm:$0xff] }
 0xb50   : > { %9116 = vtanh.f32 %v5598_v13  ;;  %v8097_v15 = vpop.f32.mrb[128].mxu0 }
 0xb51   : > { %v9107_v60 = vpop.eup %9106  ;;  %v5613_v41 = vadd.f32 %v8097_v15, %v14512_v36  ;;  %v5607_v55 = vpop.f32.mrb[129].mxu0  ;;  %8478 = vmatprep.subr.bf16.mxu1 %v8477_v51 }
 0xb52   : > { %v9109_v14 = vpop.eup %9108  ;;  %v5608_v37 = vadd.f32 %v5607_v55, %v14332_v24  ;;  %8480 = vmatpush3.bf16.msra.mxu1 %v8477_v51  ;;  %v4731_v51 = vand.u32 65535, %v12605_v38  ;;  %v4717_v55 = vand.u32 65535, %v12610_v11  ;;  %v9342_v11 = vld [vmem:[#allocation8 + $0x8] sm:$0xff] }
 0xb53   : > { %9118 = vtanh.f32 %v5613_v41  ;;  %v8481_v57 = vpack.c.bf16 %v9107_v60, %v9109_v14 }
 0xb54   : > { %9120 = vtanh.f32 %v5608_v37  ;;  %v8100_v16 = vpop.f32.mrb[130].mxu0  ;;  %v4733_v41 = vcvt.s32.f32 %v4731_v51  ;;  %v4773_v51 = vand.u32 65535, %v12649_v26 }
 0xb55   : > { %v9111_v21 = vpop.eup %9110  ;;  %v5623_v17 = vadd.f32 %v8100_v16, %v14333_v35  ;;  %v5617_v54 = vpop.f32.mrb[131].mxu0  ;;  %8482 = vmatprep.subr.bf16.mxu1 %v8481_v57  ;;  %v4719_v16 = vcvt.s32.f32 %v4717_v55  ;;  %v9349_v55 = vld [vmem:[#allocation8 + $0x40] sm:$0xff] }
 0xb56   : > { %v9113_v40 = vpop.eup %9112  ;;  %v5618_v25 = vadd.f32 %v5617_v54, %v14513_v29  ;;  %8484 = vmatpush3.bf16.msra.mxu1 %v8481_v57  ;;  %v9343_v29 = vld [vmem:[#allocation8 + $0x10] sm:$0xff] }
 0xb57   : > { %9122 = vtanh.f32 %v5623_v17  ;;  %v8485_v22 = vpack.c.bf16 %v9111_v21, %v9113_v40  ;;  %v4759_v21 = vand.u32 65535, %v12619_v34  ;;  %v4745_v40 = vand.u32 65535, %v12629_v32  ;;  %v9344_v34 = vld [vmem:[#allocation8 + $0x18] sm:$0xff] }
 0xb58   : > { %9124 = vtanh.f32 %v5618_v25 }
 0xb59   : > { %v9115_v18 = vpop.eup %9114  ;;  %8486 = vmatprep.subr.bf16.mxu1 %v8485_v22 }
 0xb5a   : > { %v9117_v24 = vpop.eup %9116  ;;  %8488 = vmatpush3.bf16.msra.mxu1 %v8485_v22 }
 0xb5b   : > { %v8489_v59 = vpack.c.bf16 %v9115_v18, %v9117_v24  ;;  %v4787_v18 = vand.u32 65535, %v12639_v9  ;;  %v9345_v24 = vld [vmem:[#allocation8 + $0x20] sm:$0xff] }
 0xb5d   : > { %v9119_v13 = vpop.eup %9118  ;;  %8490 = vmatprep.subr.bf16.mxu1 %v8489_v59 }
 0xb5e   : > { %v9121_v15 = vpop.eup %9120  ;;  %8492 = vmatpush3.bf16.msra.mxu1 %v8489_v59  ;;  %v9346_v59 = vld [vmem:[#allocation8 + $0x28] sm:$0xff] }
 0xb5f   : > { %v8493_v35 = vpack.c.bf16 %v9119_v13, %v9121_v15  ;;  %v9347_v15 = vld [vmem:[#allocation8 + $0x30] sm:$0xff] }
 0xb60   : > { %v12903_v36 = vpop.xlane.xlu1 %4735 }
 0xb61   : > { %v9123_v60 = vpop.eup %9122  ;;  %8494 = vmatprep.subr.bf16.mxu1 %v8493_v35  ;;  %vm4737_vm10 = vcmp.eq.f32.partialorder %v12615_v63, %v12903_v36  ;;  %v4761_v63 = vcvt.s32.f32 %v4759_v21  ;;  %v9352_v21 = vld [vmem:[#allocation8 + $0x58] sm:$0xff] }
 0xb62   : > { %v9125_v14 = vpop.eup %9124  ;;  %8496 = vmatpush3.bf16.msra.mxu1 %v8493_v35  ;;  %v4738_v57 = vsel %vm4737_vm10, %v4733_v41, inf  ;;  %v9348_v35 = vld [vmem:[#allocation8 + $0x38] sm:$0xff]  ;;  %v4815_v41 = vand.u32 65535, %v12659_v7 }
 0xb63   : > { %v8497_v37 = vpack.c.bf16 %v9123_v60, %v9125_v14  ;;  %4739 = vmin.xlane.f32.xlu0 %v4738_v57  ;;  %v9350_v14 = vld [vmem:[#allocation8 + $0x48] sm:$0xff]  ;;  %v4801_v57 = vand.u32 65535, %v12669_v27 }
 0xb64   : > { %v12908_v38 = vpop.xlane.xlu1 %4721 }
 0xb65   : > { %8498 = vmatprep.subr.bf16.mxu1 %v8497_v37  ;;  %vm4723_vm11 = vcmp.eq.f32.partialorder %v12625_v56, %v12908_v38  ;;  %v4747_v56 = vcvt.s32.f32 %v4745_v40  ;;  %v9354_v40 = vld [vmem:[#allocation8 + $0x68] sm:$0xff] }
 0xb66   : > { %8500 = vmatpush3.bf16.msra.mxu1 %v8497_v37  ;;  %v4724_v17 = vsel %vm4723_vm11, %v4719_v16, inf  ;;  %v9351_v16 = vld [vmem:[#allocation8 + $0x50] sm:$0xff] }
 0xb67   : > { %4725 = vmin.xlane.f32.xlu0 %v4724_v17 }
 0xb68   : > { %v12913_v54 = vpop.xlane.xlu1 %4763 }
 0xb69   : > { %8134 = vmatmul.mubr.f32.vlgmr.msra.gmra.mrb[92].mxu1 %v9342_v11  ;;  %vm4765_vm12 = vcmp.eq.f32.partialorder %v12635_v3, %v12913_v54  ;;  %v4789_v3 = vcvt.s32.f32 %v4787_v18  ;;  %v4843_v11 = vand.u32 65535, %v12679_v23 }
 0xb6a   : > { %8136 = vmatprep.mubr.f32.mxu1 %v9343_v29  ;;  %v4766_v25 = vsel %vm4765_vm12, %v4761_v63, inf  ;;  %v9353_v63 = vld [vmem:[#allocation8 + $0x60] sm:$0xff] }
 0xb6b   : > { %4767 = vmin.xlane.f32.xlu0 %v4766_v25  ;;  %v4829_v25 = vand.u32 65535, %v12695_v4 }
 0xb6c   : > { %v12918_v22 = vpop.xlane.xlu1 %4749 }
 0xb6d   : > { %8137 = vmatmul.mubr.f32.gmra.mrb[94].mxu1 %v9344_v34  ;;  %vm4751_vm13 = vcmp.eq.f32.partialorder %v12645_v43, %v12918_v22  ;;  %v4775_v43 = vcvt.s32.f32 %v4773_v51  ;;  %v9355_v34 = vld [vmem:[#allocation8 + $0x70] sm:$0xff]  ;;  %v4857_v51 = vand.u32 65535, %v12727_v62 }
 0xb6e   : > { %8139 = vmatprep.mubr.f32.mxu1 %v9345_v24  ;;  %v4752_v32 = vsel %vm4751_vm13, %v4747_v56, inf  ;;  %v9356_v56 = vld [vmem:[#allocation8 + $0x78] sm:$0xff]  ;;  %v4871_v24 = vand.u32 65535, %v12711_v45 }
 0xb6f   : > { %4753 = vmin.xlane.f32.xlu0 %v4752_v32  ;;  %v9357_v32 = vld [vmem:[#allocation8 + $0x80] sm:$0xff] }
 0xb70   : > { %v12923_v13 = vpop.xlane.xlu1 %4791 }
 0xb71   : > { %8140 = vmatmul.mubr.f32.gmra.mrb[96].mxu1 %v9346_v59  ;;  %vm4793_vm14 = vcmp.eq.f32.partialorder %v12655_v33, %v12923_v13  ;;  %v4817_v33 = vcvt.s32.f32 %v4815_v41  ;;  %v9358_v59 = vld [vmem:[#allocation8 + $0x88] sm:$0xff]  ;;  %v9361_v41 = vld [vmem:[#allocation8 + $0xa0] sm:$0xff] }
 0xb72   : > { %8142 = vmatprep.mubr.f32.mxu1 %v9347_v15  ;;  %v4794_v9 = vsel %vm4793_vm14, %v4789_v3, inf  ;;  %v9359_v15 = vld [vmem:[#allocation8 + $0x90] sm:$0xff] }
 0xb73   : > { %4795 = vmin.xlane.f32.xlu0 %v4794_v9  ;;  %v9360_v9 = vld [vmem:[#allocation8 + $0x98] sm:$0xff] }
 0xb74   : > { %v12928_v60 = vpop.xlane.xlu1 %4777 }
 0xb75   : > { %8143 = vmatmul.mubr.f32.gmra.mrb[98].mxu1 %v9348_v35  ;;  %vm4779_vm15 = vcmp.eq.f32.partialorder %v12665_v28, %v12928_v60  ;;  %v4803_v28 = vcvt.s32.f32 %v4801_v57  ;;  %v9364_v57 = vld [vmem:[#allocation8 + $0xb8] sm:$0xff] }
 0xb76   : > { %8145 = vmatprep.mubr.f32.mxu1 %v9349_v55  ;;  %v4780_v26 = vsel %vm4779_vm15, %v4775_v43, inf  ;;  %v4899_v43 = vand.u32 65535, %v12743_v52  ;;  %v9362_v55 = vld [vmem:[#allocation8 + $0xa8] sm:$0xff] }
 0xb77   : > { %4781 = vmin.xlane.f32.xlu0 %v4780_v26 }
 0xb78   : > { %v12933_v37 = vpop.xlane.xlu1 %4819 }
 0xb79   : > { %8146 = vmatmul.mubr.f32.gmra.mrb[100].mxu1 %v9350_v14  ;;  %vm4821_vm0 = vcmp.eq.f32.partialorder %v12675_v6, %v12933_v37  ;;  %v4845_v6 = vcvt.s32.f32 %v4843_v11  ;;  %v4885_v14 = vand.u32 65535, %v12759_v30 }
 0xb7a   : > { %8148 = vmatprep.mubr.f32.mxu1 %v9351_v16  ;;  %v4822_v7 = vsel %vm4821_vm0, %v4817_v33, inf  ;;  %v9363_v33 = vld [vmem:[#allocation8 + $0xb0] sm:$0xff] }
 0xb7b   : > { %4823 = vmin.xlane.f32.xlu0 %v4822_v7  ;;  %v4927_v7 = vand.u32 65535, %v12772_v44 }
 0xb7c   : > { %v12938_v17 = vpop.xlane.xlu1 %4805 }
 0xb7d   : > { %8149 = vmatmul.mubr.f32.gmra.mrb[102].mxu1 %v9352_v21  ;;  %vm4807_vm1 = vcmp.eq.f32.partialorder %v12691_v39, %v12938_v17  ;;  %v4831_v39 = vcvt.s32.f32 %v4829_v25  ;;  %v9365_v21 = vld [vmem:[#allocation8 + $0xc0] sm:$0xff]  ;;  %v4955_v25 = vand.u32 65535, %v12794_v20 }
 0xb7e   : > { %8151 = vmatprep.mubr.f32.mxu1 %v9353_v63  ;;  %v4808_v27 = vsel %vm4807_vm1, %v4803_v28, inf  ;;  %v9366_v28 = vld [vmem:[#allocation8 + $0xc8] sm:$0xff]  ;;  %v4913_v63 = vand.u32 65535, %v12783_v61 }
 0xb7f   : > { %4809 = vmin.xlane.f32.xlu0 %v4808_v27  ;;  %v9367_v27 = vld [vmem:[#allocation8 + $0xd0] sm:$0xff] }
 0xb80   : > { %v12943_v29 = vpop.xlane.xlu1 %4847 }
 0xb81   : > { %8152 = vmatmul.mubr.f32.gmra.mrb[104].mxu1 %v9354_v40  ;;  %vm4849_vm2 = vcmp.eq.f32.partialorder %v12707_v47, %v12943_v29  ;;  %v4873_v47 = vcvt.s32.f32 %v4871_v24  ;;  %v9368_v40 = vld [vmem:[#allocation8 + $0xd8] sm:$0xff]  ;;  %v9371_v24 = vld [vmem:[#allocation8 + $0xf0] sm:$0xff] }
 0xb82   : > { %8154 = vmatprep.mubr.f32.mxu1 %v9355_v34  ;;  %v4850_v23 = vsel %vm4849_vm2, %v4845_v6, inf  ;;  %v9369_v34 = vld [vmem:[#allocation8 + $0xe0] sm:$0xff] }
 0xb83   : > { %4851 = vmin.xlane.f32.xlu0 %v4850_v23  ;;  %v9370_v23 = vld [vmem:[#allocation8 + $0xe8] sm:$0xff] }
 0xb84   : > { %v12948_v18 = vpop.xlane.xlu1 %4833 }
 0xb85   : > { %8155 = vmatmul.mubr.f32.gmra.mrb[106].mxu1 %v9356_v56  ;;  %vm4835_vm3 = vcmp.eq.f32.partialorder %v12723_v58, %v12948_v18  ;;  %v4859_v58 = vcvt.s32.f32 %v4857_v51 }
 0xb86   : > { %8157 = vmatprep.mubr.f32.mxu1 %v9357_v32  ;;  %v4836_v4 = vsel %vm4835_vm3, %v4831_v39, inf  ;;  %v4941_v39 = vand.u32 65535, %v12804_v19  ;;  %v9372_v32 = vld [vmem:[#allocation8 + $0xf8] sm:$0xff] }
 0xb87   : > { %4837 = vmin.xlane.f32.xlu0 %v4836_v4 }
 0xb88   : > { %v12953_v3 = vpop.xlane.xlu1 %4875 }
 0xb89   : > { %8158 = vmatmul.mubr.f32.gmra.mrb[108].mxu1 %v9358_v59  ;;  %vm4877_vm4 = vcmp.eq.f32.partialorder %v12739_v1, %v12953_v3  ;;  %v4901_v1 = vcvt.s32.f32 %v4899_v43  ;;  %v4983_v59 = vand.u32 65535, %v12813_v0  ;;  %v5011_v0 = vand.u32 65535, %v12831_v10 }
 0xb8a   : > { %8160 = vmatprep.mubr.f32.mxu1 %v9359_v15  ;;  %v4878_v45 = vsel %vm4877_vm4, %v4873_v47, inf  ;;  %v4969_v15 = vand.u32 65535, %v12822_v50  ;;  %v4997_v50 = vand.u32 65535, %v12840_v42 }
 0xb8b   : > { %4879 = vmin.xlane.f32.xlu0 %v4878_v45  ;;  %v4985_v51 = vcvt.s32.f32 %v4983_v59  ;;  %v5013_v43 = vcvt.s32.f32 %v5011_v0  ;;  %v4728_v59 = vcvt.f32.s32 %v12908_v38 }
 0xb8c   : > { %v12958_v35 = vpop.xlane.xlu1 %4861 }
 0xb8d   : > { %8161 = vmatmul.mubr.f32.gmra.mrb[110].mxu1 %v9360_v9  ;;  %vm4863_vm6 = vcmp.eq.f32.partialorder %v12755_v5, %v12958_v35  ;;  %v4887_v5 = vcvt.s32.f32 %v4885_v14  ;;  %v4971_v9 = vcvt.s32.f32 %v4969_v15  ;;  %v14516_v14 = vld [vmem:[#allocation87_spill] sm:$0xff] }
 0xb8e   : > { %8163 = vmatprep.mubr.f32.mxu1 %v9361_v41  ;;  %v4864_v62 = vsel %vm4863_vm6, %v4859_v58, inf  ;;  %v14514_v41 = vld [vmem:[#allocation27_spill] sm:$0xff] }
 0xb8f   : > { %4865 = vmin.xlane.f32.xlu0 %v4864_v62 }
 0xb90   : > { %v12963_v26 = vpop.xlane.xlu1 %4903 }
 0xb91   : > { %8164 = vmatmul.mubr.f32.gmra.mrb[112].mxu1 %v9362_v55  ;;  %vm4905_vm7 = vcmp.eq.f32.partialorder %v12768_v12, %v12963_v26  ;;  %v4929_v12 = vcvt.s32.f32 %v4927_v7  ;;  %v4999_v55 = vcvt.s32.f32 %v4997_v50 }
 0xb92   : > { %8166 = vmatprep.mubr.f32.mxu1 %v9363_v33  ;;  %v4906_v52 = vsel %vm4905_vm7, %v4901_v1, inf  ;;  %v14515_v1 = vld [vmem:[#allocation28_spill] sm:$0xff] }
 0xb93   : > { %4907 = vmin.xlane.f32.xlu0 %v4906_v52  ;;  %v5039_v10 = vand.u32 65535, %v14515_v1  ;;  %v4798_v1 = vcvt.f32.s32 %v12923_v13 }
 0xb94   : > { %v12968_v16 = vpop.xlane.xlu1 %4889 }
 0xb95   : > { %8167 = vmatmul.mubr.f32.gmra.mrb[114].mxu1 %v9364_v57  ;;  %vm4891_vm8 = vcmp.eq.f32.partialorder %v12779_v46, %v12968_v16  ;;  %v4915_v46 = vcvt.s32.f32 %v4913_v63  ;;  %v5041_v52 = vcvt.s32.f32 %v5039_v10  ;;  %v14517_v57 = vld [vmem:[#allocation88_spill] sm:$0xff]  ;;  %v14520_v63 = vld [vmem:[#allocation91_spill] sm:$0xff] }
 0xb96   : > { %8169 = vmatprep.mubr.f32.mxu1 %v9365_v21  ;;  %v4892_v30 = vsel %vm4891_vm8, %v4887_v5, inf  ;;  %v5025_v42 = vand.u32 65535, %v14517_v57  ;;  %v14518_v5 = vld [vmem:[#allocation89_spill] sm:$0xff] }
 0xb97   : > { %4893 = vmin.xlane.f32.xlu0 %v4892_v30 }
 0xb98   : > { %v12973_v11 = vpop.xlane.xlu1 %4931  ;;  %v5027_v30 = vcvt.s32.f32 %v5025_v42 }
 0xb99   : > { %8170 = vmatmul.mubr.f32.gmra.mrb[116].mxu1 %v9366_v28  ;;  %vm4933_vm9 = vcmp.eq.f32.partialorder %v12790_v31, %v12973_v11  ;;  %v4957_v31 = vcvt.s32.f32 %v4955_v25  ;;  %v14519_v28 = vld [vmem:[#allocation90_spill] sm:$0xff] }
 0xb9a   : > { %8172 = vmatprep.mubr.f32.mxu1 %v9367_v27  ;;  %v4934_v44 = vsel %vm4933_vm9, %v4929_v12, inf  ;;  %v5067_v12 = vand.u32 65535, %v14519_v28 }
 0xb9b   : > { %4935 = vmin.xlane.f32.xlu0 %v4934_v44 }
 0xb9c   : > { %v12978_v6 = vpop.xlane.xlu1 %4917 }
 0xb9d   : > { %8173 = vmatmul.mubr.f32.gmra.mrb[118].mxu1 %v9368_v40  ;;  %vm4919_vm10 = vcmp.eq.f32.partialorder %v12800_v48, %v12978_v6  ;;  %v4943_v48 = vcvt.s32.f32 %v4941_v39  ;;  %v5069_v40 = vcvt.s32.f32 %v5067_v12  ;;  %v14523_v39 = vld [vmem:[#allocation94_spill] sm:$0xff] }
 0xb9e   : > { %8175 = vmatprep.mubr.f32.mxu1 %v9369_v34  ;;  %v4920_v61 = vsel %vm4919_vm10, %v4915_v46, inf  ;;  %v14521_v46 = vld [vmem:[#allocation92_spill] sm:$0xff]  ;;  %v14522_v34 = vld [vmem:[#allocation93_spill] sm:$0xff] }
 0xb9f   : > { %4921 = vmin.xlane.f32.xlu0 %v4920_v61  ;;  %v5053_v25 = vand.u32 65535, %v14521_v46 }
 0xba0   : > { %v12983_v56 = vpop.xlane.xlu1 %4959 }
 0xba1   : > { %8176 = vmatmul.mubr.f32.gmra.mrb[120].mxu1 %v9370_v23  ;;  %vm4961_vm11 = vcmp.eq.f32.partialorder %v12809_v53, %v12983_v56 }
 0xba2   : > { %8178 = vmatprep.mubr.f32.mxu1 %v9371_v24  ;;  %v4962_v20 = vsel %vm4961_vm11, %v4957_v31, inf  ;;  %v5055_v31 = vcvt.s32.f32 %v5053_v25  ;;  %v4854_v25 = vcvt.f32.s32 %v12943_v29 }
 0xba3   : > { %4963 = vmin.xlane.f32.xlu0 %v4962_v20  ;;  %v4742_v20 = vcvt.f32.s32 %v12903_v36  ;;  %v4756_v36 = vcvt.f32.s32 %v12918_v22 }
 0xba4   : > { %v12988_v4 = vpop.xlane.xlu1 %4945 }
 0xba5   : > { %8179 = vmatmul.mubr.f32.gmra.mrb[122].mxu1 %v9372_v32  ;;  %vm4947_vm12 = vcmp.eq.f32.partialorder %v12818_v2, %v12988_v4 }
 0xba6   : > { %v4948_v47 = vsel %vm4947_vm12, %v4943_v48, inf  ;;  %v4743_v48 = vshll.u32 %v4742_v20, 16 }
 0xba7   : > { %4949 = vmin.xlane.f32.xlu0 %v4948_v47 }
 0xba8   : > { %v12993_v19 = vpop.xlane.xlu1 %4987 }
 0xba9   : > { %vm4989_vm13 = vcmp.eq.f32.partialorder %v12827_v8, %v12993_v19 }
 0xbaa   : > { %v4990_v53 = vsel %vm4989_vm13, %v4985_v51, inf }
 0xbab   : > { %4991 = vmin.xlane.f32.xlu0 %v4990_v53  ;;  %v4729_v53 = vshll.u32 %v4728_v59, 16 }
 0xbac   : > { %v12998_v45 = vpop.xlane.xlu1 %4973 }
 0xbad   : > { %vm4975_vm14 = vcmp.eq.f32.partialorder %v12836_v49, %v12998_v45 }
 0xbae   : > { %v4976_v2 = vsel %vm4975_vm14, %v4971_v9, inf  ;;  %v4770_v9 = vcvt.f32.s32 %v12913_v54 }
 0xbaf   : > { %4977 = vmin.xlane.f32.xlu0 %v4976_v2 }
 0xbb0   : > { %v13003_v58 = vpop.xlane.xlu1 %5015  ;;  %v4771_v50 = vshll.u32 %v4770_v9, 16 }
 0xbb1   : > { %vm5017_vm15 = vcmp.eq.f32.partialorder %v14514_v41, %v13003_v58 }
 0xbb2   : > { %v5018_v8 = vsel %vm5017_vm15, %v5013_v43, inf }
 0xbb3   : > { %5019 = vmin.xlane.f32.xlu0 %v5018_v8 }
 0xbb4   : > { %v13008_v62 = vpop.xlane.xlu1 %5001 }
 0xbb5   : > { %vm5003_vm0 = vcmp.eq.f32.partialorder %v14516_v14, %v13008_v62 }
 0xbb6   : > { %v5004_v49 = vsel %vm5003_vm0, %v4999_v55, inf  ;;  %v4757_v55 = vshll.u32 %v4756_v36, 16 }
 0xbb7   : > { %5005 = vmin.xlane.f32.xlu0 %v5004_v49  ;;  %v4799_v49 = vshll.u32 %v4798_v1, 16  ;;  %v4938_v1 = vcvt.f32.s32 %v12973_v11 }
 0xbb8   : > { %v13013_v33 = vpop.xlane.xlu1 %5043 }
 0xbb9   : > { %vm5045_vm1 = vcmp.eq.f32.partialorder %v14518_v5, %v13013_v33 }
 0xbba   : > { %v5046_v7 = vsel %vm5045_vm1, %v5041_v52, inf  ;;  %v4784_v52 = vcvt.f32.s32 %v12928_v60 }
 0xbbb   : > { %5047 = vmin.xlane.f32.xlu0 %v5046_v7  ;;  %v4826_v7 = vcvt.f32.s32 %v12933_v37 }
 0xbbc   : > { %v13018_v21 = vpop.xlane.xlu1 %5029  ;;  %v4785_v5 = vshll.u32 %v4784_v52, 16 }
 0xbbd   : > { %vm5031_vm2 = vcmp.eq.f32.partialorder %v14520_v63, %v13018_v21  ;;  %v4827_v12 = vshll.u32 %v4826_v7, 16  ;;  %v4812_v63 = vcvt.f32.s32 %v12938_v17 }
 0xbbe   : > { %v5032_v27 = vsel %vm5031_vm2, %v5027_v30, inf }
 0xbbf   : > { %5033 = vmin.xlane.f32.xlu0 %v5032_v27  ;;  %v4813_v46 = vshll.u32 %v4812_v63, 16 }
 0xbc0   : > { %v13023_v44 = vpop.xlane.xlu1 %5071 }
 0xbc1   : > { %vm5073_vm3 = vcmp.eq.f32.partialorder %v14522_v34, %v13023_v44 }
 0xbc2   : > { %v5074_v61 = vsel %vm5073_vm3, %v5069_v40, inf }
 0xbc3   : > { %5075 = vmin.xlane.f32.xlu0 %v5074_v61 }
 0xbc4   : > { %v13028_v23 = vpop.xlane.xlu1 %5057 }
 0xbc5   : > { %vm5059_vm4 = vcmp.eq.f32.partialorder %v14523_v39, %v13028_v23  ;;  %v4840_v39 = vcvt.f32.s32 %v12948_v18 }
 0xbc6   : > { %v5060_v24 = vsel %vm5059_vm4, %v5055_v31, inf  ;;  %v4855_v31 = vshll.u32 %v4854_v25, 16  ;;  %v4980_v25 = vcvt.f32.s32 %v12998_v45 }
 0xbc7   : > { %5061 = vmin.xlane.f32.xlu0 %v5060_v24 }
 0xbf0   : > { %v4740_v32 = vpop.xlane.xlu0 %4739 }
 0xbf1   : > { %v4741_v47 = vcvt.f32.s32 %v4740_v32  ;;  %v4841_v32 = vshll.u32 %v4840_v39, 16 }
 0xbf3   : > { %v4744_v51 = vadd.s32 %v4743_v48, %v4741_v47  ;;  %v4882_v48 = vcvt.f32.s32 %v12953_v3 }
 0xbf4   : > { %v4726_v15 = vpop.xlane.xlu0 %4725 }
 0xbf5   : > { %6919 = vst.msk [vmem:[%s11399_s29 + $0x208] sm:$0xff] %vm2481_vm5, %v4744_v51  ;;  %v4727_v0 = vcvt.f32.s32 %v4726_v15  ;;  %v4883_v51 = vshll.u32 %v4882_v48, 16  ;;  %v4868_v15 = vcvt.f32.s32 %v12958_v35 }
 0xbf7   : > { %v4730_v2 = vadd.s32 %v4729_v53, %v4727_v0  ;;  %v4869_v0 = vshll.u32 %v4868_v15, 16 }
 0xbf8   : > { %v4768_v43 = vpop.xlane.xlu0 %4767 }
 0xbf9   : > { %6918 = vst.msk [vmem:[%s11399_s29 + $0x200] sm:$0xff] %vm2481_vm5, %v4730_v2  ;;  %v4769_v41 = vcvt.f32.s32 %v4768_v43  ;;  %v4910_v2 = vcvt.f32.s32 %v12963_v26 }
 0xbfb   : > { %v4772_v38 = vadd.s32 %v4771_v50, %v4769_v41  ;;  %v4911_v36 = vshll.u32 %v4910_v2, 16  ;;  %v4896_v41 = vcvt.f32.s32 %v12968_v16 }
 0xbfc   : > { %v4754_v8 = vpop.xlane.xlu0 %4753 }
 0xbfd   : > { %6921 = vst.msk [vmem:[%s11399_s29 + $0x218] sm:$0xff] %vm2481_vm5, %v4772_v38  ;;  %v4755_v54 = vcvt.f32.s32 %v4754_v8 }
 0xbff   : > { %v4758_v10 = vadd.s32 %v4757_v55, %v4755_v54  ;;  %v4897_v55 = vshll.u32 %v4896_v41, 16 }
 0xc00   : > { %v4796_v14 = vpop.xlane.xlu0 %4795 }
 0xc01   : > { %6920 = vst.msk [vmem:[%s11399_s29 + $0x210] sm:$0xff] %vm2481_vm5, %v4758_v10  ;;  %v4797_v22 = vcvt.f32.s32 %v4796_v14  ;;  %v4939_v14 = vshll.u32 %v4938_v1, 16 }
 0xc03   : > { %v4800_v57 = vadd.s32 %v4799_v49, %v4797_v22  ;;  %v4924_v49 = vcvt.f32.s32 %v12978_v6 }
 0xc04   : > { %v4782_v42 = vpop.xlane.xlu0 %4781 }
 0xc05   : > { %6923 = vst.msk [vmem:[%s11399_s29 + $0x228] sm:$0xff] %vm2481_vm5, %v4800_v57  ;;  %v4783_v13 = vcvt.f32.s32 %v4782_v42  ;;  %v4925_v57 = vshll.u32 %v4924_v49, 16  ;;  %v4966_v42 = vcvt.f32.s32 %v12983_v56 }
 0xc07   : > { %v4786_v30 = vadd.s32 %v4785_v5, %v4783_v13  ;;  %v4967_v13 = vshll.u32 %v4966_v42, 16 }
 0xc08   : > { %v4824_v28 = vpop.xlane.xlu0 %4823 }
 0xc09   : > { %6922 = vst.msk [vmem:[%s11399_s29 + $0x220] sm:$0xff] %vm2481_vm5, %v4786_v30  ;;  %v4825_v60 = vcvt.f32.s32 %v4824_v28  ;;  %v4952_v30 = vcvt.f32.s32 %v12988_v4 }
 0xc0b   : > { %v4828_v27 = vadd.s32 %v4827_v12, %v4825_v60  ;;  %v4953_v63 = vshll.u32 %v4952_v30, 16  ;;  %v4994_v60 = vcvt.f32.s32 %v12993_v19  ;;  %v4981_v19 = vshll.u32 %v4980_v25, 16  ;;  %v14532_v30 = vld [vmem:[#allocation63_spill] sm:$0xff] }
 0xc0c   : > { %v4810_v40 = vpop.xlane.xlu0 %4809 }
 0xc0d   : > { %6925 = vst.msk [vmem:[%s11399_s29 + $0x238] sm:$0xff] %vm2481_vm5, %v4828_v27  ;;  %v4811_v37 = vcvt.f32.s32 %v4810_v40 }
 0xc0f   : > { %v4814_v34 = vadd.s32 %v4813_v46, %v4811_v37  ;;  %v4995_v46 = vshll.u32 %v4994_v60, 16  ;;  %v5078_v60 = vcvt.f32.s32 %v13023_v44 }
 0xc10   : > { %v4852_v61 = vpop.xlane.xlu0 %4851 }
 0xc11   : > { %6924 = vst.msk [vmem:[%s11399_s29 + $0x230] sm:$0xff] %vm2481_vm5, %v4814_v34  ;;  %v4853_v17 = vcvt.f32.s32 %v4852_v61  ;;  %v14524_v61 = vld [vmem:[#allocation55_spill] sm:$0xff] }
 0xc13   : > { %v4856_v24 = vadd.s32 %v4855_v31, %v4853_v17 }
 0xc14   : > { %v4838_v20 = vpop.xlane.xlu0 %4837 }
 0xc15   : > { %6927 = vst.msk [vmem:[%s11399_s29 + $0x248] sm:$0xff] %vm2481_vm5, %v4856_v24  ;;  %v4839_v29 = vcvt.f32.s32 %v4838_v20  ;;  %v5022_v24 = vcvt.f32.s32 %v13003_v58  ;;  %v14525_v20 = vld [vmem:[#allocation53_spill] sm:$0xff]  ;;  %v14527_v58 = vld [vmem:[#allocation54_spill] sm:$0xff] }
 0xc17   : > { %v4842_v59 = vadd.s32 %v4841_v32, %v4839_v29 }
 0xc18   : > { %v4880_v47 = vpop.xlane.xlu0 %4879 }
 0xc19   : > { %6926 = vst.msk [vmem:[%s11399_s29 + $0x240] sm:$0xff] %vm2481_vm5, %v4842_v59  ;;  %v4881_v18 = vcvt.f32.s32 %v4880_v47  ;;  %v14526_v59 = vld [vmem:[#allocation57_spill] sm:$0xff] }
 0xc1b   : > { %v4884_v53 = vadd.s32 %v4883_v51, %v4881_v18  ;;  %v5023_v18 = vshll.u32 %v5022_v24, 16 }
 0xc1c   : > { %v4866_v9 = vpop.xlane.xlu0 %4865 }
 0xc1d   : > { %6929 = vst.msk [vmem:[%s11399_s29 + $0x258] sm:$0xff] %vm2481_vm5, %v4884_v53  ;;  %v4867_v3 = vcvt.f32.s32 %v4866_v9  ;;  %v5008_v53 = vcvt.f32.s32 %v13008_v62  ;;  %v14529_v62 = vld [vmem:[#allocation56_spill] sm:$0xff] }
 0xc1f   : > { %v4870_v43 = vadd.s32 %v4869_v0, %v4867_v3 }
 0xc20   : > { %v4908_v50 = vpop.xlane.xlu0 %4907 }
 0xc21   : > { %6928 = vst.msk [vmem:[%s11399_s29 + $0x250] sm:$0xff] %vm2481_vm5, %v4870_v43  ;;  %v4909_v35 = vcvt.f32.s32 %v4908_v50  ;;  %v14528_v43 = vld [vmem:[#allocation59_spill] sm:$0xff] }
 0xc23   : > { %v4912_v38 = vadd.s32 %v4911_v36, %v4909_v35  ;;  %v5009_v35 = vshll.u32 %v5008_v53, 16 }
 0xc24   : > { %v4894_v8 = vpop.xlane.xlu0 %4893 }
 0xc25   : > { %6931 = vst.msk [vmem:[%s11399_s29 + $0x268] sm:$0xff] %vm2481_vm5, %v4912_v38  ;;  %v4895_v26 = vcvt.f32.s32 %v4894_v8  ;;  %v5050_v38 = vcvt.f32.s32 %v13013_v33  ;;  %v5036_v33 = vcvt.f32.s32 %v13018_v21 }
 0xc27   : > { %v4898_v54 = vadd.s32 %v4897_v55, %v4895_v26 }
 0xc28   : > { %v4936_v10 = vpop.xlane.xlu0 %4935 }
 0xc29   : > { %6930 = vst.msk [vmem:[%s11399_s29 + $0x260] sm:$0xff] %vm2481_vm5, %v4898_v54  ;;  %v4937_v16 = vcvt.f32.s32 %v4936_v10  ;;  %v14530_v10 = vld [vmem:[#allocation61_spill] sm:$0xff] }
 0xc2b   : > { %v4940_v52 = vadd.s32 %v4939_v14, %v4937_v16 }
 0xc2c   : > { %v4922_v22 = vpop.xlane.xlu0 %4921 }
 0xc2d   : > { %6933 = vst.msk [vmem:[%s11399_s29 + $0x278] sm:$0xff] %vm2481_vm5, %v4940_v52  ;;  %v4923_v11 = vcvt.f32.s32 %v4922_v22  ;;  %v5051_v22 = vshll.u32 %v5050_v38, 16 }
 0xc2f   : > { %v4926_v5 = vadd.s32 %v4925_v57, %v4923_v11  ;;  %v14531_v57 = vld [vmem:[#allocation58_spill] sm:$0xff] }
 0xc30   : > { %v4964_v7 = vpop.xlane.xlu0 %4963 }
 0xc31   : > { %6932 = vst.msk [vmem:[%s11399_s29 + $0x270] sm:$0xff] %vm2481_vm5, %v4926_v5  ;;  %v4965_v6 = vcvt.f32.s32 %v4964_v7 }
 0xc33   : > { %v4968_v28 = vadd.s32 %v4967_v13, %v4965_v6 }
 0xc34   : > { %v4950_v12 = vpop.xlane.xlu0 %4949 }
 0xc35   : > { %6935 = vst.msk [vmem:[%s11399_s29 + $0x288] sm:$0xff] %vm2481_vm5, %v4968_v28  ;;  %v4951_v56 = vcvt.f32.s32 %v4950_v12 }
 0xc37   : > { %v4954_v27 = vadd.s32 %v4953_v63, %v4951_v56  ;;  %v5037_v63 = vshll.u32 %v5036_v33, 16  ;;  %v14533_v56 = vld [vmem:[#allocation60_spill] sm:$0xff] }
 0xc38   : > { %v4992_v40 = vpop.xlane.xlu0 %4991 }
 0xc39   : > { %6934 = vst.msk [vmem:[%s11399_s29 + $0x280] sm:$0xff] %vm2481_vm5, %v4954_v27  ;;  %v4993_v4 = vcvt.f32.s32 %v4992_v40 }
 0xc3b   : > { %v4996_v37 = vadd.s32 %v4995_v46, %v4993_v4 }
 0xc3c   : > { %v8135_v34 = vpop.f32.mrb[92].mxu1  ;;  %v4978_v17 = vpop.xlane.xlu0 %4977 }
 0xc3d   : > { %v5714_v31 = vadd.f32 %v8135_v34, %v14524_v61  ;;  %v5708_v39 = vpop.f32.mrb[93].mxu1  ;;  %6937 = vst.msk [vmem:[%s11399_s29 + $0x298] sm:$0xff] %vm2481_vm5, %v4996_v37  ;;  %v4979_v48 = vcvt.f32.s32 %v4978_v17  ;;  %v14534_v37 = vld [vmem:[#allocation65_spill] sm:$0xff]  ;;  %v5064_v17 = vcvt.f32.s32 %v13028_v23 }
 0xc3e   : > { %v5709_v32 = vadd.f32 %v5708_v39, %v14525_v20  ;;  %v5079_v39 = vshll.u32 %v5078_v60, 16  ;;  %v14545_v60 = vld [vmem:[#allocation72_spill] sm:$0xff] }
 0xc3f   : > { %9126 = vtanh.f32 %v5714_v31  ;;  %v4982_v45 = vadd.s32 %v4981_v19, %v4979_v48  ;;  %v14535_v19 = vld [vmem:[#allocation62_spill] sm:$0xff] }
 0xc40   : > { %9128 = vtanh.f32 %v5709_v32  ;;  %v8138_v29 = vpop.f32.mrb[94].mxu1  ;;  %v5020_v15 = vpop.xlane.xlu0 %5019 }
 0xc41   : > { %v5724_v47 = vadd.f32 %v8138_v29, %v14526_v59  ;;  %v5718_v51 = vpop.f32.mrb[95].mxu1  ;;  %6936 = vst.msk [vmem:[%s11399_s29 + $0x290] sm:$0xff] %vm2481_vm5, %v4982_v45  ;;  %v5021_v0 = vcvt.f32.s32 %v5020_v15  ;;  %v14536_v29 = vld [vmem:[#allocation67_spill] sm:$0xff]  ;;  %v5065_v15 = vshll.u32 %v5064_v17, 16 }
 0xc42   : > { %v5719_v9 = vadd.f32 %v5718_v51, %v14527_v58 }
 0xc43   : > { %9130 = vtanh.f32 %v5724_v47  ;;  %v5024_v2 = vadd.s32 %v5023_v18, %v5021_v0  ;;  %v14537_v18 = vld [vmem:[#allocation64_spill] sm:$0xff] }
 0xc44   : > { %9132 = vtanh.f32 %v5719_v9  ;;  %v8141_v3 = vpop.f32.mrb[96].mxu1  ;;  %v5006_v41 = vpop.xlane.xlu0 %5005 }
 0xc45   : > { %v5734_v50 = vadd.f32 %v8141_v3, %v14528_v43  ;;  %v5728_v36 = vpop.f32.mrb[97].mxu1  ;;  %6939 = vst.msk [vmem:[%s11399_s29 + $0x2a8] sm:$0xff] %vm2481_vm5, %v5024_v2  ;;  %v5007_v55 = vcvt.f32.s32 %v5006_v41  ;;  %v14538_v3 = vld [vmem:[#allocation69_spill] sm:$0xff]  ;;  %v14539_v41 = vld [vmem:[#allocation66_spill] sm:$0xff] }
 0xc46   : > { %v5729_v8 = vadd.f32 %v5728_v36, %v14529_v62 }
 0xc47   : > { %9134 = vtanh.f32 %v5734_v50  ;;  %v5010_v1 = vadd.s32 %v5009_v35, %v5007_v55 }
 0xc48   : > { %9136 = vtanh.f32 %v5729_v8  ;;  %v8144_v26 = vpop.f32.mrb[98].mxu1  ;;  %v5048_v16 = vpop.xlane.xlu0 %5047  ;;  %v14540_v8 = vld [vmem:[#allocation71_spill] sm:$0xff] }
 0xc49   : > { %v13103_v54 = vpop.eup %9126  ;;  %v5744_v14 = vadd.f32 %v8144_v26, %v14530_v10  ;;  %v5738_v49 = vpop.f32.mrb[99].mxu1  ;;  %6938 = vst.msk [vmem:[%s11399_s29 + $0x2a0] sm:$0xff] %vm2481_vm5, %v5010_v1  ;;  %v5049_v11 = vcvt.f32.s32 %v5048_v16  ;;  %v14541_v10 = vld [vmem:[#allocation68_spill] sm:$0xff] }
 0xc4a   : > { %v13106_v52 = vpop.eup %9128  ;;  %v5739_v42 = vadd.f32 %v5738_v49, %v14531_v57  ;;  %5901 = vmax.xlane.f32.xlu0 %v13103_v54 }
 0xc4b   : > { %9138 = vtanh.f32 %v5744_v14  ;;  %5899 = vmax.xlane.f32.xlu1 %v13106_v52  ;;  %v5052_v5 = vadd.s32 %v5051_v22, %v5049_v11  ;;  %v14542_v22 = vld [vmem:[#allocation73_spill] sm:$0xff]  ;;  %v14543_v11 = vld [vmem:[#allocation70_spill] sm:$0xff] }
 0xc4c   : > { %9140 = vtanh.f32 %v5739_v42  ;;  %v8147_v7 = vpop.f32.mrb[100].mxu1  ;;  %v5034_v21 = vpop.xlane.xlu0 %5033 }
 0xc4d   : > { %v13114_v13 = vpop.eup %9130  ;;  %v5754_v6 = vadd.f32 %v8147_v7, %v14532_v30  ;;  %v5748_v28 = vpop.f32.mrb[101].mxu1  ;;  %6941 = vst.msk [vmem:[%s11399_s29 + $0x2b8] sm:$0xff] %vm2481_vm5, %v5052_v5  ;;  %v5035_v40 = vcvt.f32.s32 %v5034_v21 }
 0xc4e   : > { %v13117_v12 = vpop.eup %9132  ;;  %v5749_v27 = vadd.f32 %v5748_v28, %v14533_v56  ;;  %5905 = vmax.xlane.f32.xlu0 %v13114_v13 }
 0xc4f   : > { %9142 = vtanh.f32 %v5754_v6  ;;  %5903 = vmax.xlane.f32.xlu1 %v13117_v12  ;;  %v5038_v46 = vadd.s32 %v5037_v63, %v5035_v40  ;;  %v14544_v6 = vld [vmem:[#allocation75_spill] sm:$0xff] }
 0xc50   : > { %9144 = vtanh.f32 %v5749_v27  ;;  %v8150_v25 = vpop.f32.mrb[102].mxu1  ;;  %v5076_v44 = vpop.xlane.xlu0 %5075 }
 0xc51   : > { %v13125_v4 = vpop.eup %9134  ;;  %v5764_v34 = vadd.f32 %v8150_v25, %v14534_v37  ;;  %v5758_v61 = vpop.f32.mrb[103].mxu1  ;;  %6940 = vst.msk [vmem:[%s11399_s29 + $0x2b0] sm:$0xff] %vm2481_vm5, %v5038_v46  ;;  %v5077_v20 = vcvt.f32.s32 %v5076_v44  ;;  %v14546_v46 = vld [vmem:[#allocation77_spill] sm:$0xff] }
 0xc52   : > { %v13128_v31 = vpop.eup %9136  ;;  %v5759_v24 = vadd.f32 %v5758_v61, %v14535_v19  ;;  %5909 = vmax.xlane.f32.xlu0 %v13125_v4  ;;  %v14547_v61 = vld [vmem:[#allocation74_spill] sm:$0xff]  ;;  %v14548_v19 = vld [vmem:[#allocation79_spill] sm:$0xff] }
 0xc53   : > { %9146 = vtanh.f32 %v5764_v34  ;;  %5907 = vmax.xlane.f32.xlu1 %v13128_v31  ;;  %v5080_v32 = vadd.s32 %v5079_v39, %v5077_v20 }
 0xc54   : > { %9148 = vtanh.f32 %v5759_v24  ;;  %v8153_v48 = vpop.f32.mrb[104].mxu1  ;;  %v5062_v23 = vpop.xlane.xlu0 %5061 }
 0xc55   : > { %v13136_v45 = vpop.eup %9138  ;;  %v5774_v59 = vadd.f32 %v8153_v48, %v14536_v29  ;;  %v5768_v47 = vpop.f32.mrb[105].mxu1  ;;  %6943 = vst.msk [vmem:[%s11399_s29 + $0x2c8] sm:$0xff] %vm2481_vm5, %v5080_v32  ;;  %v5063_v58 = vcvt.f32.s32 %v5062_v23  ;;  %v14549_v48 = vld [vmem:[#allocation76_spill] sm:$0xff]  ;;  %v14550_v23 = vld [vmem:[#allocation81_spill] sm:$0xff] }
 0xc56   : > { %v13139_v51 = vpop.eup %9140  ;;  %v5769_v53 = vadd.f32 %v5768_v47, %v14537_v18  ;;  %5913 = vmax.xlane.f32.xlu0 %v13136_v45 }
 0xc57   : > { %9150 = vtanh.f32 %v5774_v59  ;;  %5911 = vmax.xlane.f32.xlu1 %v13139_v51  ;;  %v5066_v9 = vadd.s32 %v5065_v15, %v5063_v58  ;;  %v14551_v58 = vld [vmem:[#allocation78_spill] sm:$0xff] }
 0xc58   : > { %9152 = vtanh.f32 %v5769_v53  ;;  %v8156_v0 = vpop.f32.mrb[106].mxu1 }
 0xc59   : > { %v13146_v2 = vpop.eup %9142  ;;  %v5784_v43 = vadd.f32 %v8156_v0, %v14538_v3  ;;  %v5778_v50 = vpop.f32.mrb[107].mxu1  ;;  %6942 = vst.msk [vmem:[%s11399_s29 + $0x2c0] sm:$0xff] %vm2481_vm5, %v5066_v9 }
 0xc5a   : > { %v13149_v36 = vpop.eup %9144  ;;  %v5779_v35 = vadd.f32 %v5778_v50, %v14539_v41  ;;  %5917 = vmax.xlane.f32.xlu0 %v13146_v2 }
 0xc5b   : > { %9154 = vtanh.f32 %v5784_v43  ;;  %5915 = vmax.xlane.f32.xlu1 %v13149_v36  ;;  %v14552_v43 = vld [vmem:[#allocation83_spill] sm:$0xff] }
 0xc5c   : > { %9156 = vtanh.f32 %v5779_v35  ;;  %v8159_v38 = vpop.f32.mrb[108].mxu1 }
 0xc5d   : > { %v13156_v62 = vpop.eup %9146  ;;  %v5794_v55 = vadd.f32 %v8159_v38, %v14540_v8  ;;  %v5788_v1 = vpop.f32.mrb[109].mxu1  ;;  %v14553_v38 = vld [vmem:[#allocation80_spill] sm:$0xff] }
 0xc5e   : > { %v13159_v26 = vpop.eup %9148  ;;  %v5789_v14 = vadd.f32 %v5788_v1, %v14541_v10  ;;  %5921 = vmax.xlane.f32.xlu0 %v13156_v62  ;;  %v14554_v10 = vld [vmem:[#allocation84_spill] sm:$0xff] }
 0xc5f   : > { %9158 = vtanh.f32 %v5794_v55  ;;  %5919 = vmax.xlane.f32.xlu1 %v13159_v26 }
 0xc60   : > { %9160 = vtanh.f32 %v5789_v14  ;;  %v8162_v49 = vpop.f32.mrb[110].mxu1 }
 0xc61   : > { %v13164_v16 = vpop.eup %9150  ;;  %v5804_v33 = vadd.f32 %v8162_v49, %v14542_v22  ;;  %v5798_v57 = vpop.f32.mrb[111].mxu1 }
 0xc62   : > { %v13167_v42 = vpop.eup %9152  ;;  %v5799_v5 = vadd.f32 %v5798_v57, %v14543_v11  ;;  %5925 = vmax.xlane.f32.xlu0 %v13164_v16 }
 0xc63   : > { %9162 = vtanh.f32 %v5804_v33  ;;  %5923 = vmax.xlane.f32.xlu1 %v13167_v42  ;;  %v14555_v33 = vld [vmem:[#allocation82_spill] sm:$0xff] }
 0xc64   : > { %9164 = vtanh.f32 %v5799_v5  ;;  %v8165_v7 = vpop.f32.mrb[112].mxu1 }
 0xc65   : > { %v13172_v30 = vpop.eup %9154  ;;  %v5814_v28 = vadd.f32 %v8165_v7, %v14544_v6  ;;  %v5808_v21 = vpop.f32.mrb[113].mxu1  ;;  %v9373_v7 = vld [vmem:[%s10360_s7 + $0x398] sm:$0xff]  ;;  %v14556_v6 = vld [vmem:[#allocation26_spill] sm:$0xff] }
 0xc66   : > { %v13175_v63 = vpop.eup %9156  ;;  %v5809_v56 = vadd.f32 %v5808_v21, %v14545_v60  ;;  %5929 = vmax.xlane.f32.xlu0 %v13172_v30  ;;  %vm4680_vm6 = vcmp.eq.f32.partialorder %v14556_v6, %v9373_v7  ;;  %v14557_v21 = vld [vmem:[#allocation17_spill] sm:$0xff] }
 0xc67   : > { %9166 = vtanh.f32 %v5814_v28  ;;  %5927 = vmax.xlane.f32.xlu1 %v13175_v63  ;;  %v9374_v28 = vld [vmem:[%s10360_s7 + $0x390] sm:$0xff] }
 0xc68   : > { %9168 = vtanh.f32 %v5809_v56  ;;  %v8168_v27 = vpop.f32.mrb[114].mxu1  ;;  %vm4679_vm7 = vcmp.eq.f32.partialorder %v14557_v21, %v9374_v28  ;;  %v14558_v56 = vld [vmem:[#allocation85_spill] sm:$0xff] }
 0xc69   : > { %v13180_v40 = vpop.eup %9158  ;;  %v5824_v25 = vadd.f32 %v8168_v27, %v14546_v46  ;;  %v5818_v37 = vpop.f32.mrb[115].mxu1  ;;  %v13233_v27 = vsel %vm4680_vm6, %v14558_v56, 128 }
 0xc6a   : > { %v13183_v34 = vpop.eup %9160  ;;  %v5819_v44 = vadd.f32 %v5818_v37, %v14547_v61  ;;  %5933 = vmax.xlane.f32.xlu0 %v13180_v40  ;;  %v9375_v37 = vld [vmem:[%s10360_s7 + $0x3a8] sm:$0xff] }
 0xc6b   : > { %9170 = vtanh.f32 %v5824_v25  ;;  %5931 = vmax.xlane.f32.xlu1 %v13183_v34  ;;  %v13238_v25 = vsel %vm4679_vm7, %v14558_v56, 128  ;;  %v14559_v61 = vld [vmem:[#allocation18_spill] sm:$0xff] }
 0xc6c   : > { %9172 = vtanh.f32 %v5819_v44  ;;  %v8171_v39 = vpop.f32.mrb[116].mxu1  ;;  %vm4682_vm8 = vcmp.eq.f32.partialorder %v14559_v61, %v9375_v37  ;;  %v9376_v44 = vld [vmem:[%s10360_s7 + $0x3a0] sm:$0xff] }
 0xc6d   : > { %v13188_v17 = vpop.eup %9162  ;;  %v5834_v24 = vadd.f32 %v8171_v39, %v14548_v19  ;;  %v5828_v20 = vpop.f32.mrb[117].mxu1  ;;  %v14560_v39 = vld [vmem:[#allocation19_spill] sm:$0xff]  ;;  %v5096_v19 = vshra.s32 %v13233_v27, 16 }
 0xc6e   : > { %v13191_v32 = vpop.eup %9164  ;;  %v5829_v29 = vadd.f32 %v5828_v20, %v14549_v48  ;;  %5937 = vmax.xlane.f32.xlu0 %v13188_v17  ;;  %vm4681_vm9 = vcmp.eq.f32.partialorder %v14560_v39, %v9376_v44  ;;  %v13250_v20 = vsel %vm4682_vm8, %v14558_v56, 128  ;;  %v5082_v48 = vshra.s32 %v13238_v25, 16 }
 0xc6f   : > { %9174 = vtanh.f32 %v5834_v24  ;;  %5935 = vmax.xlane.f32.xlu1 %v13191_v32 }
 0xc70   : > { %9176 = vtanh.f32 %v5829_v29  ;;  %v8174_v59 = vpop.f32.mrb[118].mxu1 }
 0xc71   : > { %v13196_v47 = vpop.eup %9166  ;;  %v5844_v15 = vadd.f32 %v8174_v59, %v14550_v23  ;;  %v5838_v18 = vpop.f32.mrb[119].mxu1  ;;  %v13256_v59 = vsel %vm4681_vm9, %v14558_v56, 128  ;;  %v9377_v23 = vld [vmem:[%s10360_s7 + $0x3b8] sm:$0xff] }
 0xc72   : > { %v13199_v53 = vpop.eup %9168  ;;  %v5839_v9 = vadd.f32 %v5838_v18, %v14551_v58  ;;  %5941 = vmax.xlane.f32.xlu0 %v13196_v47  ;;  %v9378_v18 = vld [vmem:[%s10360_s7 + $0x3b0] sm:$0xff]  ;;  %v14562_v58 = vld [vmem:[#allocation86_spill] sm:$0xff] }
 0xc73   : > { %9178 = vtanh.f32 %v5844_v15  ;;  %5939 = vmax.xlane.f32.xlu1 %v13199_v53  ;;  %v14561_v15 = vld [vmem:[#allocation20_spill] sm:$0xff]  ;;  %vm4683_vm11 = vcmp.eq.f32.partialorder %v14562_v58, %v9378_v18 }
 0xc74   : > { %9180 = vtanh.f32 %v5839_v9  ;;  %v8177_v0 = vpop.f32.mrb[120].mxu1  ;;  %vm4684_vm10 = vcmp.eq.f32.partialorder %v14561_v15, %v9377_v23  ;;  %v13264_v9 = vcvt.s32.f32 %v5096_v19 }
 0xc75   : > { %v13204_v3 = vpop.eup %9170  ;;  %v5854_v50 = vadd.f32 %v8177_v0, %v14552_v43  ;;  %v5848_v41 = vpop.f32.mrb[121].mxu1  ;;  %v5124_v0 = vshra.s32 %v13250_v20, 16  ;;  %v13268_v43 = vsel %vm4684_vm10, %v14558_v56, 128 }
 0xc76   : > { %v13207_v35 = vpop.eup %9172  ;;  %v5849_v8 = vadd.f32 %v5848_v41, %v14553_v38  ;;  %5945 = vmax.xlane.f32.xlu0 %v13204_v3  ;;  %v5110_v41 = vshra.s32 %v13256_v59, 16  ;;  %v13274_v38 = vsel %vm4683_vm11, %v14558_v56, 128 }
 0xc77   : > { %9182 = vtanh.f32 %v5854_v50  ;;  %5943 = vmax.xlane.f32.xlu1 %v13207_v35  ;;  %v13270_v50 = vcvt.s32.f32 %v5082_v48 }
 0xc78   : > { %9184 = vtanh.f32 %v5849_v8  ;;  %v8180_v55 = vpop.f32.mrb[122].mxu1  ;;  %v13278_v8 = vcvt.s32.f32 %v5124_v0 }
 0xc79   : > { %v13212_v1 = vpop.eup %9174  ;;  %v5864_v14 = vadd.f32 %v8180_v55, %v14554_v10  ;;  %v5858_v49 = vpop.f32.mrb[123].mxu1  ;;  %v5152_v55 = vshra.s32 %v13268_v43, 16  ;;  %v13281_v10 = vcvt.s32.f32 %v5110_v41 }
 0xc7a   : > { %v13215_v22 = vpop.eup %9176  ;;  %v5859_v57 = vadd.f32 %v5858_v49, %v14555_v33  ;;  %5949 = vmax.xlane.f32.xlu0 %v13212_v1 }
 0xc7b   : > { %9186 = vtanh.f32 %v5864_v14  ;;  %5947 = vmax.xlane.f32.xlu1 %v13215_v22  ;;  %v5138_v14 = vshra.s32 %v13274_v38, 16  ;;  %v13286_v49 = vcvt.s32.f32 %v5152_v55 }
 0xc7c   : > { %9188 = vtanh.f32 %v5859_v57 }
 0xc7d   : > { %v13220_v11 = vpop.eup %9178  ;;  %v13288_v33 = vcvt.s32.f32 %v5138_v14 }
 0xc7e   : > { %v13222_v5 = vpop.eup %9180  ;;  %5953 = vmax.xlane.f32.xlu0 %v13220_v11 }
 0xc7f   : > { %5951 = vmax.xlane.f32.xlu1 %v13222_v5 }
 0xc81   : > { %v13230_v60 = vpop.eup %9182 }
 0xc82   : > { %v13235_v46 = vpop.eup %9184  ;;  %5957 = vmax.xlane.f32.xlu0 %v13230_v60 }
 0xc83   : > { %5955 = vmax.xlane.f32.xlu1 %v13235_v46 }
 0xc85   : > { %v13247_v24 = vpop.eup %9186 }
 0xc86   : > { %v13253_v29 = vpop.eup %9188  ;;  %5961 = vmax.xlane.f32.xlu0 %v13247_v24 }
 0xc87   : > { %5959 = vmax.xlane.f32.xlu1 %v13253_v29 }
 0xc8a   : > { %5099 = vmin.xlane.f32.xlu0 %v13264_v9 }
 0xc8b   : > { %5085 = vmin.xlane.f32.xlu1 %v13270_v50 }
 0xc8e   : > { %5127 = vmin.xlane.f32.xlu0 %v13278_v8 }
 0xc8f   : > { %5113 = vmin.xlane.f32.xlu1 %v13281_v10 }
 0xc92   : > { %5155 = vmin.xlane.f32.xlu0 %v13286_v49 }
 0xc93   : > { %5141 = vmin.xlane.f32.xlu1 %v13288_v33 }
 0xcd7   : > { %v5902_v57 = vpop.xlane.xlu0 %5901 }
 0xcd8   : > { %6991 = vst [vmem:[%s10360_s7 + $0x408] sm:$0xff] %v5902_v57  ;;  %vm5996_vm12 = vcmp.eq.f32.partialorder %v13103_v54, %v5902_v57  ;;  %v5900_v7 = vpop.xlane.xlu1 %5899 }
 0xcd9   : > { %v13295_v6 = vsel %vm5996_vm12, %v14558_v56, 128  ;;  %6990 = vst [vmem:[%s10360_s7 + $0x400] sm:$0xff] %v5900_v7  ;;  %vm5995_vm13 = vcmp.eq.f32.partialorder %v13106_v52, %v5900_v7 }
 0xcda   : > { %v13300_v28 = vsel %vm5995_vm13, %v14558_v56, 128  ;;  %v6074_v21 = vshra.s32 %v13295_v6, 16 }
 0xcdb   : > { %v5906_v37 = vpop.xlane.xlu0 %5905  ;;  %v6060_v61 = vshra.s32 %v13300_v28, 16 }
 0xcdc   : > { %6993 = vst [vmem:[%s10360_s7 + $0x418] sm:$0xff] %v5906_v37  ;;  %vm5998_vm14 = vcmp.eq.f32.partialorder %v13114_v13, %v5906_v37  ;;  %v5904_v54 = vpop.xlane.xlu1 %5903  ;;  %v13306_v44 = vcvt.s32.f32 %v6074_v21 }
 0xcdd   : > { %v13309_v39 = vsel %vm5998_vm14, %v14558_v56, 128  ;;  %6992 = vst [vmem:[%s10360_s7 + $0x410] sm:$0xff] %v5904_v54  ;;  %vm5997_vm15 = vcmp.eq.f32.partialorder %v13117_v12, %v5904_v54  ;;  %v13313_v52 = vcvt.s32.f32 %v6060_v61 }
 0xcde   : > { %v13316_v19 = vsel %vm5997_vm15, %v14558_v56, 128  ;;  %6077 = vmin.xlane.f32.xlu0 %v13306_v44  ;;  %v6102_v48 = vshra.s32 %v13309_v39, 16 }
 0xcdf   : > { %6063 = vmin.xlane.f32.xlu1 %v13313_v52  ;;  %v5910_v13 = vpop.xlane.xlu0 %5909  ;;  %v6088_v23 = vshra.s32 %v13316_v19, 16 }
 0xce0   : > { %6995 = vst [vmem:[%s10360_s7 + $0x428] sm:$0xff] %v5910_v13  ;;  %vm6000_vm0 = vcmp.eq.f32.partialorder %v13125_v4, %v5910_v13  ;;  %v5908_v15 = vpop.xlane.xlu1 %5907  ;;  %v13324_v12 = vcvt.s32.f32 %v6102_v48 }
 0xce1   : > { %v13327_v18 = vsel %vm6000_vm0, %v14558_v56, 128  ;;  %6994 = vst [vmem:[%s10360_s7 + $0x420] sm:$0xff] %v5908_v15  ;;  %vm5999_vm1 = vcmp.eq.f32.partialorder %v13128_v31, %v5908_v15  ;;  %v13331_v58 = vcvt.s32.f32 %v6088_v23 }
 0xce2   : > { %v13334_v0 = vsel %vm5999_vm1, %v14558_v56, 128  ;;  %6105 = vmin.xlane.f32.xlu0 %v13324_v12  ;;  %v6130_v41 = vshra.s32 %v13327_v18, 16 }
 0xce3   : > { %6091 = vmin.xlane.f32.xlu1 %v13331_v58  ;;  %v5914_v4 = vpop.xlane.xlu0 %5913  ;;  %v6116_v55 = vshra.s32 %v13334_v0, 16 }
 0xce4   : > { %6997 = vst [vmem:[%s10360_s7 + $0x438] sm:$0xff] %v5914_v4  ;;  %vm6002_vm2 = vcmp.eq.f32.partialorder %v13136_v45, %v5914_v4  ;;  %v5912_v14 = vpop.xlane.xlu1 %5911  ;;  %v13342_v31 = vcvt.s32.f32 %v6130_v41 }
 0xce5   : > { %v13345_v57 = vsel %vm6002_vm2, %v14558_v56, 128  ;;  %6996 = vst [vmem:[%s10360_s7 + $0x430] sm:$0xff] %v5912_v14  ;;  %vm6001_vm3 = vcmp.eq.f32.partialorder %v13139_v51, %v5912_v14  ;;  %v13349_v7 = vcvt.s32.f32 %v6116_v55 }
 0xce6   : > { %v13352_v21 = vsel %vm6001_vm3, %v14558_v56, 128  ;;  %6133 = vmin.xlane.f32.xlu0 %v13342_v31  ;;  %v6158_v37 = vshra.s32 %v13345_v57, 16 }
 0xce7   : > { %6119 = vmin.xlane.f32.xlu1 %v13349_v7  ;;  %v5918_v45 = vpop.xlane.xlu0 %5917  ;;  %v6144_v61 = vshra.s32 %v13352_v21, 16 }
 0xce8   : > { %6999 = vst [vmem:[%s10360_s7 + $0x448] sm:$0xff] %v5918_v45  ;;  %vm6004_vm4 = vcmp.eq.f32.partialorder %v13146_v2, %v5918_v45  ;;  %v5916_v54 = vpop.xlane.xlu1 %5915  ;;  %v13360_v51 = vcvt.s32.f32 %v6158_v37 }
 0xce9   : > { %v13363_v48 = vsel %vm6004_vm4, %v14558_v56, 128  ;;  %6998 = vst [vmem:[%s10360_s7 + $0x440] sm:$0xff] %v5916_v54  ;;  %vm6003_vm6 = vcmp.eq.f32.partialorder %v13149_v36, %v5916_v54  ;;  %v13367_v13 = vcvt.s32.f32 %v6144_v61 }
 0xcea   : > { %v13370_v23 = vsel %vm6003_vm6, %v14558_v56, 128  ;;  %6161 = vmin.xlane.f32.xlu0 %v13360_v51  ;;  %v6186_v15 = vshra.s32 %v13363_v48, 16 }
 0xceb   : > { %6147 = vmin.xlane.f32.xlu1 %v13367_v13  ;;  %v5922_v2 = vpop.xlane.xlu0 %5921  ;;  %v6172_v41 = vshra.s32 %v13370_v23, 16 }
 0xcec   : > { %7001 = vst [vmem:[%s10360_s7 + $0x458] sm:$0xff] %v5922_v2  ;;  %vm6006_vm7 = vcmp.eq.f32.partialorder %v13156_v62, %v5922_v2  ;;  %v5920_v4 = vpop.xlane.xlu1 %5919  ;;  %v13378_v36 = vcvt.s32.f32 %v6186_v15 }
 0xced   : > { %v13381_v55 = vsel %vm6006_vm7, %v14558_v56, 128  ;;  %7000 = vst [vmem:[%s10360_s7 + $0x450] sm:$0xff] %v5920_v4  ;;  %vm6005_vm8 = vcmp.eq.f32.partialorder %v13159_v26, %v5920_v4  ;;  %v13385_v14 = vcvt.s32.f32 %v6172_v41 }
 0xcee   : > { %v6214_v37 = vshra.s32 %v13381_v55, 16  ;;  %v13389_v45 = vsel %vm6005_vm8, %v14558_v56, 128  ;;  %6189 = vmin.xlane.f32.xlu0 %v13378_v36 }
 0xcef   : > { %v6200_v62 = vshra.s32 %v13389_v45, 16  ;;  %6175 = vmin.xlane.f32.xlu1 %v13385_v14  ;;  %v5926_v61 = vpop.xlane.xlu0 %5925 }
 0xcf0   : > { %7003 = vst [vmem:[%s10360_s7 + $0x468] sm:$0xff] %v5926_v61  ;;  %vm6008_vm9 = vcmp.eq.f32.partialorder %v13164_v16, %v5926_v61  ;;  %v5924_v54 = vpop.xlane.xlu1 %5923  ;;  %v13396_v26 = vcvt.s32.f32 %v6214_v37 }
 0xcf1   : > { %v13399_v15 = vsel %vm6008_vm9, %v14558_v56, 128  ;;  %7002 = vst [vmem:[%s10360_s7 + $0x460] sm:$0xff] %v5924_v54  ;;  %vm6007_vm10 = vcmp.eq.f32.partialorder %v13167_v42, %v5924_v54  ;;  %v13403_v2 = vcvt.s32.f32 %v6200_v62 }
 0xcf2   : > { %14563 = vst [vmem:[#allocation95_spill] sm:$0xff] %v13396_v26  ;;  %v6242_v41 = vshra.s32 %v13399_v15, 16  ;;  %v13407_v4 = vsel %vm6007_vm10, %v14558_v56, 128  ;;  %6217 = vmin.xlane.f32.xlu0 %v13396_v26 }
 0xcf3   : > { %14564 = vst [vmem:[#allocation96_spill] sm:$0xff] %v13403_v2  ;;  %v6228_v16 = vshra.s32 %v13407_v4, 16  ;;  %6203 = vmin.xlane.f32.xlu1 %v13403_v2  ;;  %v5930_v37 = vpop.xlane.xlu0 %5929 }
 0xcf4   : > { %7005 = vst [vmem:[%s10360_s7 + $0x478] sm:$0xff] %v5930_v37  ;;  %vm6010_vm11 = vcmp.eq.f32.partialorder %v13172_v30, %v5930_v37  ;;  %v5928_v61 = vpop.xlane.xlu1 %5927  ;;  %v13414_v42 = vcvt.s32.f32 %v6242_v41 }
 0xcf5   : > { %v13417_v62 = vsel %vm6010_vm11, %v14558_v56, 128  ;;  %7004 = vst [vmem:[%s10360_s7 + $0x470] sm:$0xff] %v5928_v61  ;;  %vm6009_vm12 = vcmp.eq.f32.partialorder %v13175_v63, %v5928_v61  ;;  %v13421_v54 = vcvt.s32.f32 %v6228_v16 }
 0xcf6   : > { %14565 = vst [vmem:[#allocation97_spill] sm:$0xff] %v13414_v42  ;;  %v6270_v26 = vshra.s32 %v13417_v62, 16  ;;  %v13425_v2 = vsel %vm6009_vm12, %v14558_v56, 128  ;;  %6245 = vmin.xlane.f32.xlu0 %v13414_v42 }
 0xcf7   : > { %14566 = vst [vmem:[#allocation98_spill] sm:$0xff] %v13421_v54  ;;  %v6256_v30 = vshra.s32 %v13425_v2, 16  ;;  %6231 = vmin.xlane.f32.xlu1 %v13421_v54  ;;  %v5934_v41 = vpop.xlane.xlu0 %5933 }
 0xcf8   : > { %7007 = vst [vmem:[%s10360_s7 + $0x488] sm:$0xff] %v5934_v41  ;;  %vm6012_vm13 = vcmp.eq.f32.partialorder %v13180_v40, %v5934_v41  ;;  %v5932_v37 = vpop.xlane.xlu1 %5931  ;;  %v13432_v63 = vcvt.s32.f32 %v6270_v26 }
 0xcf9   : > { %v13435_v16 = vsel %vm6012_vm13, %v14558_v56, 128  ;;  %7006 = vst [vmem:[%s10360_s7 + $0x480] sm:$0xff] %v5932_v37  ;;  %vm6011_vm14 = vcmp.eq.f32.partialorder %v13183_v34, %v5932_v37  ;;  %v13439_v61 = vcvt.s32.f32 %v6256_v30 }
 0xcfa   : > { %14567 = vst [vmem:[#allocation99_spill] sm:$0xff] %v13432_v63  ;;  %v6298_v42 = vshra.s32 %v13435_v16, 16  ;;  %v13443_v54 = vsel %vm6011_vm14, %v14558_v56, 128  ;;  %6273 = vmin.xlane.f32.xlu0 %v13432_v63 }
 0xcfb   : > { %14568 = vst [vmem:[#allocation100_spill] sm:$0xff] %v13439_v61  ;;  %v6284_v40 = vshra.s32 %v13443_v54, 16  ;;  %6259 = vmin.xlane.f32.xlu1 %v13439_v61  ;;  %v5938_v26 = vpop.xlane.xlu0 %5937 }
 0xcfc   : > { %7009 = vst [vmem:[%s10360_s7 + $0x498] sm:$0xff] %v5938_v26  ;;  %vm6014_vm15 = vcmp.eq.f32.partialorder %v13188_v17, %v5938_v26  ;;  %v5936_v41 = vpop.xlane.xlu1 %5935  ;;  %v13450_v34 = vcvt.s32.f32 %v6298_v42 }
 0xcfd   : > { %v13453_v30 = vsel %vm6014_vm15, %v14558_v56, 128  ;;  %7008 = vst [vmem:[%s10360_s7 + $0x490] sm:$0xff] %v5936_v41  ;;  %vm6013_vm0 = vcmp.eq.f32.partialorder %v13191_v32, %v5936_v41  ;;  %v13457_v37 = vcvt.s32.f32 %v6284_v40 }
 0xcfe   : > { %14569 = vst [vmem:[#allocation101_spill] sm:$0xff] %v13450_v34  ;;  %v6326_v63 = vshra.s32 %v13453_v30, 16  ;;  %v13461_v61 = vsel %vm6013_vm0, %v14558_v56, 128  ;;  %6301 = vmin.xlane.f32.xlu0 %v13450_v34 }
 0xcff   : > { %14570 = vst [vmem:[#allocation102_spill] sm:$0xff] %v13457_v37  ;;  %v6312_v17 = vshra.s32 %v13461_v61, 16  ;;  %6287 = vmin.xlane.f32.xlu1 %v13457_v37  ;;  %v5942_v42 = vpop.xlane.xlu0 %5941 }
 0xd00   : > { %7011 = vst [vmem:[%s10360_s7 + $0x4a8] sm:$0xff] %v5942_v42  ;;  %vm6016_vm1 = vcmp.eq.f32.partialorder %v13196_v47, %v5942_v42  ;;  %v5940_v26 = vpop.xlane.xlu1 %5939  ;;  %v13468_v32 = vcvt.s32.f32 %v6326_v63 }
 0xd01   : > { %v13471_v40 = vsel %vm6016_vm1, %v14558_v56, 128  ;;  %7010 = vst [vmem:[%s10360_s7 + $0x4a0] sm:$0xff] %v5940_v26  ;;  %vm6015_vm2 = vcmp.eq.f32.partialorder %v13199_v53, %v5940_v26  ;;  %v13475_v41 = vcvt.s32.f32 %v6312_v17 }
 0xd02   : > { %14571 = vst [vmem:[#allocation103_spill] sm:$0xff] %v13468_v32  ;;  %v6354_v34 = vshra.s32 %v13471_v40, 16  ;;  %v13479_v37 = vsel %vm6015_vm2, %v14558_v56, 128  ;;  %6329 = vmin.xlane.f32.xlu0 %v13468_v32 }
 0xd03   : > { %14572 = vst [vmem:[#allocation104_spill] sm:$0xff] %v13475_v41  ;;  %v6340_v47 = vshra.s32 %v13479_v37, 16  ;;  %6315 = vmin.xlane.f32.xlu1 %v13475_v41  ;;  %v5946_v63 = vpop.xlane.xlu0 %5945 }
 0xd04   : > { %7013 = vst [vmem:[%s10360_s7 + $0x4b8] sm:$0xff] %v5946_v63  ;;  %vm6018_vm3 = vcmp.eq.f32.partialorder %v13204_v3, %v5946_v63  ;;  %v5944_v42 = vpop.xlane.xlu1 %5943  ;;  %v13486_v53 = vcvt.s32.f32 %v6354_v34 }
 0xd05   : > { %v13489_v17 = vsel %vm6018_vm3, %v14558_v56, 128  ;;  %7012 = vst [vmem:[%s10360_s7 + $0x4b0] sm:$0xff] %v5944_v42  ;;  %vm6017_vm4 = vcmp.eq.f32.partialorder %v13207_v35, %v5944_v42  ;;  %v13493_v26 = vcvt.s32.f32 %v6340_v47 }
 0xd06   : > { %14573 = vst [vmem:[#allocation39_spill] sm:$0xff] %v13486_v53  ;;  %v6382_v32 = vshra.s32 %v13489_v17, 16  ;;  %v13497_v41 = vsel %vm6017_vm4, %v14558_v56, 128  ;;  %6357 = vmin.xlane.f32.xlu0 %v13486_v53 }
 0xd07   : > { %14574 = vst [vmem:[#allocation46_spill] sm:$0xff] %v13493_v26  ;;  %v6368_v3 = vshra.s32 %v13497_v41, 16  ;;  %6343 = vmin.xlane.f32.xlu1 %v13493_v26  ;;  %v5950_v34 = vpop.xlane.xlu0 %5949 }
 0xd08   : > { %7015 = vst [vmem:[%s10360_s7 + $0x4c8] sm:$0xff] %v5950_v34  ;;  %vm6020_vm6 = vcmp.eq.f32.partialorder %v13212_v1, %v5950_v34  ;;  %v5948_v63 = vpop.xlane.xlu1 %5947  ;;  %v13504_v35 = vcvt.s32.f32 %v6382_v32 }
 0xd09   : > { %v13507_v47 = vsel %vm6020_vm6, %v14558_v56, 128  ;;  %7014 = vst [vmem:[%s10360_s7 + $0x4c0] sm:$0xff] %v5948_v63  ;;  %vm6019_vm7 = vcmp.eq.f32.partialorder %v13215_v22, %v5948_v63  ;;  %v13511_v42 = vcvt.s32.f32 %v6368_v3 }
 0xd0a   : > { %14575 = vst [vmem:[#allocation47_spill] sm:$0xff] %v13504_v35  ;;  %v6410_v53 = vshra.s32 %v13507_v47, 16  ;;  %v13515_v26 = vsel %vm6019_vm7, %v14558_v56, 128  ;;  %6385 = vmin.xlane.f32.xlu0 %v13504_v35 }
 0xd0b   : > { %14576 = vst [vmem:[#allocation50_spill] sm:$0xff] %v13511_v42  ;;  %v6396_v1 = vshra.s32 %v13515_v26, 16  ;;  %6371 = vmin.xlane.f32.xlu1 %v13511_v42  ;;  %v5954_v32 = vpop.xlane.xlu0 %5953 }
 0xd0c   : > { %7017 = vst [vmem:[%s10360_s7 + $0x4d8] sm:$0xff] %v5954_v32  ;;  %vm6022_vm8 = vcmp.eq.f32.partialorder %v13220_v11, %v5954_v32  ;;  %v5952_v34 = vpop.xlane.xlu1 %5951  ;;  %v13522_v22 = vcvt.s32.f32 %v6410_v53 }
 0xd0d   : > { %v13525_v3 = vsel %vm6022_vm8, %v14558_v56, 128  ;;  %7016 = vst [vmem:[%s10360_s7 + $0x4d0] sm:$0xff] %v5952_v34  ;;  %vm6021_vm9 = vcmp.eq.f32.partialorder %v13222_v5, %v5952_v34  ;;  %v13529_v63 = vcvt.s32.f32 %v6396_v1 }
 0xd0e   : > { %14577 = vst [vmem:[#allocation51_spill] sm:$0xff] %v13522_v22  ;;  %v6438_v35 = vshra.s32 %v13525_v3, 16  ;;  %v13533_v42 = vsel %vm6021_vm9, %v14558_v56, 128  ;;  %6413 = vmin.xlane.f32.xlu0 %v13522_v22 }
 0xd0f   : > { %14578 = vst [vmem:[#allocation21_spill] sm:$0xff] %v13529_v63  ;;  %14579 = vst [vmem:[#allocation22_spill] sm:$0xff] %v13533_v42  ;;  %v6424_v11 = vshra.s32 %v13533_v42, 16  ;;  %6399 = vmin.xlane.f32.xlu1 %v13529_v63  ;;  %v5958_v53 = vpop.xlane.xlu0 %5957 }
 0xd10   : > { %7019 = vst [vmem:[%s10360_s7 + $0x4e8] sm:$0xff] %v5958_v53  ;;  %vm6024_vm10 = vcmp.eq.f32.partialorder %v13230_v60, %v5958_v53  ;;  %v5956_v32 = vpop.xlane.xlu1 %5955  ;;  %v13540_v5 = vcvt.s32.f32 %v6438_v35 }
 0xd11   : > { %v13543_v1 = vsel %vm6024_vm10, %v14558_v56, 128  ;;  %7018 = vst [vmem:[%s10360_s7 + $0x4e0] sm:$0xff] %v5956_v32  ;;  %vm6023_vm11 = vcmp.eq.f32.partialorder %v13235_v46, %v5956_v32  ;;  %v13547_v34 = vcvt.s32.f32 %v6424_v11 }
 0xd12   : > { %14580 = vst [vmem:[#allocation23_spill] sm:$0xff] %v13540_v5  ;;  %v6466_v22 = vshra.s32 %v13543_v1, 16  ;;  %v13551_v63 = vsel %vm6023_vm11, %v14558_v56, 128  ;;  %6441 = vmin.xlane.f32.xlu0 %v13540_v5 }
 0xd13   : > { %14581 = vst [vmem:[#allocation24_spill] sm:$0xff] %v13547_v34  ;;  %v6452_v60 = vshra.s32 %v13551_v63, 16  ;;  %6427 = vmin.xlane.f32.xlu1 %v13547_v34  ;;  %v5962_v35 = vpop.xlane.xlu0 %5961 }
 0xd14   : > { %7021 = vst [vmem:[%s10360_s7 + $0x4f8] sm:$0xff] %v5962_v35  ;;  %vm6026_vm12 = vcmp.eq.f32.partialorder %v13247_v24, %v5962_v35  ;;  %v5960_v53 = vpop.xlane.xlu1 %5959  ;;  %v13558_v42 = vcvt.s32.f32 %v6466_v22  ;;  %v5095_v35 = vand.u32 65535, %v13233_v27 }
 0xd15   : > { %v13561_v46 = vsel %vm6026_vm12, %v14558_v56, 128  ;;  %7020 = vst [vmem:[%s10360_s7 + $0x4f0] sm:$0xff] %v5960_v53  ;;  %vm6025_vm13 = vcmp.eq.f32.partialorder %v13253_v29, %v5960_v53  ;;  %v13565_v11 = vcvt.s32.f32 %v6452_v60  ;;  %v5081_v60 = vand.u32 65535, %v13238_v25 }
 0xd16   : > { %14582 = vst [vmem:[#allocation25_spill] sm:$0xff] %v13558_v42  ;;  %v6494_v32 = vshra.s32 %v13561_v46, 16  ;;  %v13569_v5 = vsel %vm6025_vm13, %v14558_v56, 128  ;;  %6469 = vmin.xlane.f32.xlu0 %v13558_v42  ;;  %v5097_v27 = vcvt.s32.f32 %v5095_v35 }
 0xd17   : > { %14583 = vst [vmem:[#allocation29_spill] sm:$0xff] %v13565_v11  ;;  %v6480_v24 = vshra.s32 %v13569_v5, 16  ;;  %6455 = vmin.xlane.f32.xlu1 %v13565_v11  ;;  %v13574_v22 = vpop.xlane.xlu0 %5099  ;;  %v5083_v25 = vcvt.s32.f32 %v5081_v60 }
 0xd18   : > { %v13577_v34 = vpop.xlane.xlu1 %5085  ;;  %v13579_v29 = vcvt.s32.f32 %v6494_v32  ;;  %vm5101_vm14 = vcmp.eq.f32.partialorder %v13264_v9, %v13574_v22  ;;  %v5123_v32 = vand.u32 65535, %v13250_v20  ;;  %v5151_v20 = vand.u32 65535, %v13268_v43 }
 0xd19   : > { %v13582_v53 = vcvt.s32.f32 %v6480_v24  ;;  %vm5087_vm15 = vcmp.eq.f32.partialorder %v13270_v50, %v13577_v34  ;;  %v5109_v24 = vand.u32 65535, %v13256_v59  ;;  %v5102_v42 = vsel %vm5101_vm14, %v5097_v27, inf }
 0xd1a   : > { %6497 = vmin.xlane.f32.xlu0 %v13579_v29  ;;  %v5088_v9 = vsel %vm5087_vm15, %v5083_v25, inf  ;;  %v5125_v35 = vcvt.s32.f32 %v5123_v32  ;;  %v5137_v59 = vand.u32 65535, %v13274_v38  ;;  %v6073_v25 = vand.u32 65535, %v13295_v6 }
 0xd1b   : > { %14584 = vst [vmem:[#allocation30_spill] sm:$0xff] %v13582_v53  ;;  %6483 = vmin.xlane.f32.xlu1 %v13582_v53  ;;  %v13590_v56 = vpop.xlane.xlu0 %5127  ;;  %v5111_v60 = vcvt.s32.f32 %v5109_v24  ;;  %v6059_v38 = vand.u32 65535, %v13300_v28 }
 0xd1c   : > { %v13593_v11 = vpop.xlane.xlu1 %5113  ;;  %vm5129_vm0 = vcmp.eq.f32.partialorder %v13278_v8, %v13590_v56 }
 0xd1d   : > { %vm5115_vm1 = vcmp.eq.f32.partialorder %v13281_v10, %v13593_v11  ;;  %v5130_v27 = vsel %vm5129_vm0, %v5125_v35, inf  ;;  %v5153_v10 = vcvt.s32.f32 %v5151_v20  ;;  %v6061_v35 = vcvt.s32.f32 %v6059_v38 }
 0xd1e   : > { %5103 = vmin.xlane.f32.xlu0 %v5102_v42  ;;  %v5116_v8 = vsel %vm5115_vm1, %v5111_v60, inf  ;;  %v5139_v42 = vcvt.s32.f32 %v5137_v59  ;;  %v6087_v20 = vand.u32 65535, %v13316_v19  ;;  %v6115_v19 = vand.u32 65535, %v13334_v0 }
 0xd1f   : > { %5089 = vmin.xlane.f32.xlu1 %v5088_v9  ;;  %v13600_v50 = vpop.xlane.xlu0 %5155  ;;  %v6075_v9 = vcvt.s32.f32 %v6073_v25  ;;  %v6143_v0 = vand.u32 65535, %v13352_v21  ;;  %v6171_v21 = vand.u32 65535, %v13370_v23 }
 0xd20   : > { %v13603_v53 = vpop.xlane.xlu1 %5141  ;;  %vm5157_vm2 = vcmp.eq.f32.partialorder %v13286_v49, %v13600_v50  ;;  %v6101_v49 = vand.u32 65535, %v13309_v39  ;;  %v6129_v39 = vand.u32 65535, %v13327_v18  ;;  %v6157_v18 = vand.u32 65535, %v13345_v57 }
 0xd21   : > { %vm5143_vm3 = vcmp.eq.f32.partialorder %v13288_v33, %v13603_v53  ;;  %v5158_v32 = vsel %vm5157_vm2, %v5153_v10, inf  ;;  %v6185_v57 = vand.u32 65535, %v13363_v48  ;;  %v6173_v23 = vcvt.s32.f32 %v6171_v21 }
 0xd22   : > { %5131 = vmin.xlane.f32.xlu0 %v5130_v27  ;;  %v5144_v43 = vsel %vm5143_vm3, %v5139_v42, inf  ;;  %v6103_v59 = vcvt.s32.f32 %v6101_v49  ;;  %v6089_v27 = vcvt.s32.f32 %v6087_v20  ;;  %v6131_v42 = vcvt.s32.f32 %v6129_v39 }
 0xd23   : > { %5117 = vmin.xlane.f32.xlu1 %v5116_v8  ;;  %v6159_v38 = vcvt.s32.f32 %v6157_v18  ;;  %v6187_v48 = vcvt.s32.f32 %v6185_v57 }
 0xd26   : > { %5159 = vmin.xlane.f32.xlu0 %v5158_v32  ;;  %v6117_v32 = vcvt.s32.f32 %v6115_v19 }
 0xd27   : > { %5145 = vmin.xlane.f32.xlu1 %v5144_v43 }
 0xd6b   : > { %v13612_v24 = vpop.xlane.xlu0 %6077 }
 0xd6c   : > { %vm6079_vm4 = vcmp.eq.f32.partialorder %v13306_v44, %v13612_v24  ;;  %v13617_v33 = vpop.xlane.xlu1 %6063 }
 0xd6d   : > { %vm6065_vm6 = vcmp.eq.f32.partialorder %v13313_v52, %v13617_v33  ;;  %v6080_v60 = vsel %vm6079_vm4, %v6075_v9, inf  ;;  %v6145_v9 = vcvt.s32.f32 %v6143_v0 }
 0xd6e   : > { %6081 = vmin.xlane.f32.xlu0 %v6080_v60  ;;  %v6066_v6 = vsel %vm6065_vm6, %v6061_v35, inf  ;;  %v6213_v35 = vand.u32 65535, %v13381_v55  ;;  %v6199_v60 = vand.u32 65535, %v13389_v45  ;;  %v6241_v55 = vand.u32 65535, %v13399_v15 }
 0xd6f   : > { %6067 = vmin.xlane.f32.xlu1 %v6066_v6  ;;  %v13622_v28 = vpop.xlane.xlu0 %6105  ;;  %v6227_v45 = vand.u32 65535, %v13407_v4  ;;  %v6269_v15 = vand.u32 65535, %v13417_v62  ;;  %v6255_v4 = vand.u32 65535, %v13425_v2  ;;  %v6297_v62 = vand.u32 65535, %v13435_v16 }
 0xd70   : > { %vm6107_vm7 = vcmp.eq.f32.partialorder %v13324_v12, %v13622_v28  ;;  %v13627_v44 = vpop.xlane.xlu1 %6091  ;;  %v6215_v39 = vcvt.s32.f32 %v6213_v35  ;;  %v6201_v19 = vcvt.s32.f32 %v6199_v60  ;;  %v6243_v18 = vcvt.s32.f32 %v6241_v55  ;;  %v14591_v55 = vld [vmem:[#allocation101_spill] sm:$0xff] }
 0xd71   : > { %vm6093_vm8 = vcmp.eq.f32.partialorder %v13331_v58, %v13627_v44  ;;  %v6108_v52 = vsel %vm6107_vm7, %v6103_v59, inf  ;;  %v6271_v21 = vcvt.s32.f32 %v6269_v15  ;;  %v6283_v2 = vand.u32 65535, %v13443_v54  ;;  %v14593_v15 = vld [vmem:[#allocation103_spill] sm:$0xff] }
 0xd72   : > { %6109 = vmin.xlane.f32.xlu0 %v6108_v52  ;;  %v6094_v8 = vsel %vm6093_vm8, %v6089_v27, inf  ;;  %v14585_v27 = vld [vmem:[#allocation95_spill] sm:$0xff]  ;;  %v14586_v52 = vld [vmem:[#allocation96_spill] sm:$0xff]  ;;  %v6257_v35 = vcvt.s32.f32 %v6255_v4  ;;  %v6325_v16 = vand.u32 65535, %v13453_v30  ;;  %v6311_v54 = vand.u32 65535, %v13461_v61 }
 0xd73   : > { %6095 = vmin.xlane.f32.xlu1 %v6094_v8  ;;  %v13632_v10 = vpop.xlane.xlu0 %6133  ;;  %v6353_v30 = vand.u32 65535, %v13471_v40  ;;  %v6339_v61 = vand.u32 65535, %v13479_v37  ;;  %v6381_v40 = vand.u32 65535, %v13489_v17  ;;  %v6367_v37 = vand.u32 65535, %v13497_v41 }
 0xd74   : > { %vm6135_vm9 = vcmp.eq.f32.partialorder %v13342_v31, %v13632_v10  ;;  %v13637_v12 = vpop.xlane.xlu1 %6119  ;;  %v6313_v4 = vcvt.s32.f32 %v6311_v54  ;;  %v6409_v17 = vand.u32 65535, %v13507_v47  ;;  %v6395_v41 = vand.u32 65535, %v13515_v26 }
 0xd75   : > { %vm6121_vm10 = vcmp.eq.f32.partialorder %v13349_v7, %v13637_v12  ;;  %v6136_v58 = vsel %vm6135_vm9, %v6131_v42, inf  ;;  %v6369_v54 = vcvt.s32.f32 %v6367_v37  ;;  %v6437_v47 = vand.u32 65535, %v13525_v3  ;;  %v14602_v37 = vld [vmem:[#allocation23_spill] sm:$0xff] }
 0xd76   : > { %6137 = vmin.xlane.f32.xlu0 %v6136_v58  ;;  %v6122_v43 = vsel %vm6121_vm10, %v6117_v32, inf  ;;  %v14587_v32 = vld [vmem:[#allocation97_spill] sm:$0xff]  ;;  %v6229_v58 = vcvt.s32.f32 %v6227_v45  ;;  %v6285_v45 = vcvt.s32.f32 %v6283_v2  ;;  %v6341_v2 = vcvt.s32.f32 %v6339_v61 }
 0xd77   : > { %6123 = vmin.xlane.f32.xlu1 %v6122_v43  ;;  %v13642_v25 = vpop.xlane.xlu0 %6161  ;;  %v14588_v43 = vld [vmem:[#allocation98_spill] sm:$0xff]  ;;  %v6465_v3 = vand.u32 65535, %v13543_v1  ;;  %v6493_v1 = vand.u32 65535, %v13561_v46 }
 0xd78   : > { %vm6163_vm11 = vcmp.eq.f32.partialorder %v13360_v51, %v13642_v25  ;;  %v13647_v31 = vpop.xlane.xlu1 %6147 }
 0xd79   : > { %vm6149_vm12 = vcmp.eq.f32.partialorder %v13367_v13, %v13647_v31  ;;  %v6164_v7 = vsel %vm6163_vm11, %v6159_v38, inf }
 0xd7a   : > { %6165 = vmin.xlane.f32.xlu0 %v6164_v7  ;;  %v6150_v49 = vsel %vm6149_vm12, %v6145_v9, inf  ;;  %v14589_v7 = vld [vmem:[#allocation99_spill] sm:$0xff] }
 0xd7b   : > { %6151 = vmin.xlane.f32.xlu1 %v6150_v49  ;;  %v13653_v20 = vpop.xlane.xlu0 %6189 }
 0xd7c   : > { %vm6191_vm13 = vcmp.eq.f32.partialorder %v13378_v36, %v13653_v20  ;;  %v13658_v51 = vpop.xlane.xlu1 %6175 }
 0xd7d   : > { %vm6177_vm14 = vcmp.eq.f32.partialorder %v13385_v14, %v13658_v51  ;;  %v6192_v13 = vsel %vm6191_vm13, %v6187_v48, inf  ;;  %v14590_v48 = vld [vmem:[#allocation100_spill] sm:$0xff] }
 0xd7e   : > { %6193 = vmin.xlane.f32.xlu0 %v6192_v13  ;;  %v6178_v6 = vsel %vm6177_vm14, %v6173_v23, inf }
 0xd7f   : > { %6179 = vmin.xlane.f32.xlu1 %v6178_v6  ;;  %v13663_v59 = vpop.xlane.xlu0 %6217  ;;  %v6299_v6 = vcvt.s32.f32 %v6297_v62  ;;  %v14595_v62 = vld [vmem:[#allocation39_spill] sm:$0xff] }
 0xd80   : > { %vm6219_vm15 = vcmp.eq.f32.partialorder %v14585_v27, %v13663_v59  ;;  %v13668_v36 = vpop.xlane.xlu1 %6203  ;;  %v14592_v27 = vld [vmem:[#allocation102_spill] sm:$0xff] }
 0xd81   : > { %vm6205_vm0 = vcmp.eq.f32.partialorder %v14586_v52, %v13668_v36  ;;  %v6220_v14 = vsel %vm6219_vm15, %v6215_v39, inf }
 0xd82   : > { %6221 = vmin.xlane.f32.xlu0 %v6220_v14  ;;  %v6206_v8 = vsel %vm6205_vm0, %v6201_v19, inf }
 0xd83   : > { %6207 = vmin.xlane.f32.xlu1 %v6206_v8  ;;  %v13673_v42 = vpop.xlane.xlu0 %6245  ;;  %v6327_v8 = vcvt.s32.f32 %v6325_v16  ;;  %v14597_v16 = vld [vmem:[#allocation47_spill] sm:$0xff] }
 0xd84   : > { %vm6247_vm1 = vcmp.eq.f32.partialorder %v14587_v32, %v13673_v42  ;;  %v13678_v0 = vpop.xlane.xlu1 %6231  ;;  %v14594_v32 = vld [vmem:[#allocation104_spill] sm:$0xff] }
 0xd85   : > { %vm6233_vm2 = vcmp.eq.f32.partialorder %v14588_v43, %v13678_v0  ;;  %v6248_v38 = vsel %vm6247_vm1, %v6243_v18, inf }
 0xd86   : > { %6249 = vmin.xlane.f32.xlu0 %v6248_v38  ;;  %v6234_v57 = vsel %vm6233_vm2, %v6229_v58, inf }
 0xd87   : > { %6235 = vmin.xlane.f32.xlu1 %v6234_v57  ;;  %v13683_v9 = vpop.xlane.xlu0 %6273  ;;  %v6355_v57 = vcvt.s32.f32 %v6353_v30  ;;  %v14599_v30 = vld [vmem:[#allocation22_spill] sm:$0xff] }
 0xd88   : > { %vm6275_vm3 = vcmp.eq.f32.partialorder %v14589_v7, %v13683_v9  ;;  %v13688_v49 = vpop.xlane.xlu1 %6259  ;;  %v14596_v7 = vld [vmem:[#allocation46_spill] sm:$0xff]  ;;  %v6423_v26 = vand.u32 65535, %v14599_v30 }
 0xd89   : > { %vm6261_vm4 = vcmp.eq.f32.partialorder %v14590_v48, %v13688_v49  ;;  %v6276_v60 = vsel %vm6275_vm3, %v6271_v21, inf }
 0xd8a   : > { %6277 = vmin.xlane.f32.xlu0 %v6276_v60  ;;  %v6262_v23 = vsel %vm6261_vm4, %v6257_v35, inf }
 0xd8b   : > { %6263 = vmin.xlane.f32.xlu1 %v6262_v23  ;;  %v13693_v13 = vpop.xlane.xlu0 %6301  ;;  %v6383_v23 = vcvt.s32.f32 %v6381_v40  ;;  %v6439_v40 = vcvt.s32.f32 %v6437_v47  ;;  %v6495_v47 = vcvt.s32.f32 %v6493_v1 }
 0xd8c   : > { %vm6303_vm6 = vcmp.eq.f32.partialorder %v14591_v55, %v13693_v13  ;;  %v13698_v39 = vpop.xlane.xlu1 %6287  ;;  %v14598_v55 = vld [vmem:[#allocation50_spill] sm:$0xff] }
 0xd8d   : > { %vm6289_vm7 = vcmp.eq.f32.partialorder %v14592_v27, %v13698_v39  ;;  %v6304_v19 = vsel %vm6303_vm6, %v6299_v6, inf }
 0xd8e   : > { %6305 = vmin.xlane.f32.xlu0 %v6304_v19  ;;  %v6290_v52 = vsel %vm6289_vm7, %v6285_v45, inf }
 0xd8f   : > { %6291 = vmin.xlane.f32.xlu1 %v6290_v52  ;;  %v13703_v14 = vpop.xlane.xlu0 %6329  ;;  %v6411_v52 = vcvt.s32.f32 %v6409_v17 }
 0xd90   : > { %vm6331_vm8 = vcmp.eq.f32.partialorder %v14593_v15, %v13703_v14  ;;  %v13708_v18 = vpop.xlane.xlu1 %6315  ;;  %v6397_v15 = vcvt.s32.f32 %v6395_v41  ;;  %v14604_v41 = vld [vmem:[#allocation25_spill] sm:$0xff] }
 0xd91   : > { %vm6317_vm9 = vcmp.eq.f32.partialorder %v14594_v32, %v13708_v18  ;;  %v6332_v58 = vsel %vm6331_vm8, %v6327_v8, inf  ;;  %v14600_v8 = vld [vmem:[#allocation51_spill] sm:$0xff] }
 0xd92   : > { %6333 = vmin.xlane.f32.xlu0 %v6332_v58  ;;  %v6318_v43 = vsel %vm6317_vm9, %v6313_v4, inf  ;;  %v14601_v4 = vld [vmem:[#allocation21_spill] sm:$0xff] }
 0xd93   : > { %6319 = vmin.xlane.f32.xlu1 %v6318_v43  ;;  %v13713_v38 = vpop.xlane.xlu0 %6357 }
 0xd94   : > { %vm6359_vm10 = vcmp.eq.f32.partialorder %v14595_v62, %v13713_v38  ;;  %v13718_v21 = vpop.xlane.xlu1 %6343 }
 0xd95   : > { %vm6345_vm11 = vcmp.eq.f32.partialorder %v14596_v7, %v13718_v21  ;;  %v6360_v35 = vsel %vm6359_vm10, %v6355_v57, inf  ;;  %v6451_v57 = vand.u32 65535, %v13551_v63  ;;  %v14603_v7 = vld [vmem:[#allocation24_spill] sm:$0xff]  ;;  %v6479_v63 = vand.u32 65535, %v13569_v5 }
 0xd96   : > { %6361 = vmin.xlane.f32.xlu0 %v6360_v35  ;;  %v6346_v48 = vsel %vm6345_vm11, %v6341_v2, inf  ;;  %v6425_v2 = vcvt.s32.f32 %v6423_v26  ;;  %v5092_v26 = vcvt.f32.s32 %v13577_v34 }
 0xd97   : > { %6347 = vmin.xlane.f32.xlu1 %v6346_v48  ;;  %v13723_v60 = vpop.xlane.xlu0 %6385  ;;  %v6481_v30 = vcvt.s32.f32 %v6479_v63  ;;  %v5148_v63 = vcvt.f32.s32 %v13603_v53 }
 0xd98   : > { %vm6387_vm12 = vcmp.eq.f32.partialorder %v14597_v16, %v13723_v60  ;;  %v13728_v6 = vpop.xlane.xlu1 %6371 }
 0xd99   : > { %vm6373_vm13 = vcmp.eq.f32.partialorder %v14598_v55, %v13728_v6  ;;  %v6388_v45 = vsel %vm6387_vm12, %v6383_v23, inf  ;;  %v6467_v23 = vcvt.s32.f32 %v6465_v3  ;;  %v14605_v55 = vld [vmem:[#allocation29_spill] sm:$0xff] }
 0xd9a   : > { %6389 = vmin.xlane.f32.xlu0 %v6388_v45  ;;  %v6374_v27 = vsel %vm6373_vm13, %v6369_v54, inf  ;;  %v6453_v54 = vcvt.s32.f32 %v6451_v57  ;;  %v5120_v57 = vcvt.f32.s32 %v13593_v11 }
 0xd9b   : > { %6375 = vmin.xlane.f32.xlu1 %v6374_v27  ;;  %v13733_v19 = vpop.xlane.xlu0 %6413 }
 0xd9c   : > { %vm6415_vm14 = vcmp.eq.f32.partialorder %v14600_v8, %v13733_v19  ;;  %v13738_v61 = vpop.xlane.xlu1 %6399  ;;  %v14606_v8 = vld [vmem:[#allocation30_spill] sm:$0xff] }
 0xd9d   : > { %vm6401_vm15 = vcmp.eq.f32.partialorder %v14601_v4, %v13738_v61  ;;  %v6416_v32 = vsel %vm6415_vm14, %v6411_v52, inf  ;;  %v5106_v52 = vcvt.f32.s32 %v13574_v22  ;;  %v5134_v22 = vcvt.f32.s32 %v13590_v56 }
 0xd9e   : > { %6417 = vmin.xlane.f32.xlu0 %v6416_v32  ;;  %v6402_v58 = vsel %vm6401_vm15, %v6397_v15, inf  ;;  %v5121_v56 = vshll.u32 %v5120_v57, 16 }
 0xd9f   : > { %6403 = vmin.xlane.f32.xlu1 %v6402_v58  ;;  %v13743_v43 = vpop.xlane.xlu0 %6441  ;;  %v5107_v58 = vshll.u32 %v5106_v52, 16 }
 0xda0   : > { %vm6443_vm0 = vcmp.eq.f32.partialorder %v14602_v37, %v13743_v43  ;;  %v13748_v62 = vpop.xlane.xlu1 %6427 }
 0xda1   : > { %vm6429_vm1 = vcmp.eq.f32.partialorder %v14603_v7, %v13748_v62  ;;  %v6444_v35 = vsel %vm6443_vm0, %v6439_v40, inf  ;;  %v5093_v40 = vshll.u32 %v5092_v26, 16 }
 0xda2   : > { %6445 = vmin.xlane.f32.xlu0 %v6444_v35  ;;  %v6430_v48 = vsel %vm6429_vm1, %v6425_v2, inf  ;;  %v5135_v35 = vshll.u32 %v5134_v22, 16 }
 0xda3   : > { %6431 = vmin.xlane.f32.xlu1 %v6430_v48  ;;  %v13753_v17 = vpop.xlane.xlu0 %6469  ;;  %v5162_v48 = vcvt.f32.s32 %v13600_v50 }
 0xda4   : > { %vm6471_vm2 = vcmp.eq.f32.partialorder %v14604_v41, %v13753_v17  ;;  %v13758_v16 = vpop.xlane.xlu1 %6455 }
 0xda5   : > { %vm6457_vm3 = vcmp.eq.f32.partialorder %v14605_v55, %v13758_v16  ;;  %v6472_v45 = vsel %vm6471_vm2, %v6467_v23, inf  ;;  %v5163_v50 = vshll.u32 %v5162_v48, 16 }
 0xda6   : > { %6473 = vmin.xlane.f32.xlu0 %v6472_v45  ;;  %v6458_v27 = vsel %vm6457_vm3, %v6453_v54, inf }
 0xda7   : > { %6459 = vmin.xlane.f32.xlu1 %v6458_v27  ;;  %v13762_v46 = vpop.xlane.xlu0 %6497 }
 0xda8   : > { %vm6499_vm4 = vcmp.eq.f32.partialorder %v13579_v29, %v13762_v46  ;;  %v13767_v5 = vpop.xlane.xlu1 %6483 }
 0xda9   : > { %vm6485_vm6 = vcmp.eq.f32.partialorder %v14606_v8, %v13767_v5  ;;  %v6500_v15 = vsel %vm6499_vm4, %v6495_v47, inf  ;;  %v5149_v47 = vshll.u32 %v5148_v63, 16 }
 0xdaa   : > { %6501 = vmin.xlane.f32.xlu0 %v6500_v15  ;;  %v6486_v4 = vsel %vm6485_vm6, %v6481_v30, inf }
 0xdab   : > { %6487 = vmin.xlane.f32.xlu1 %v6486_v4  ;;  %v5104_v32 = vpop.xlane.xlu0 %5103 }
 0xdac   : > { %v5105_v3 = vcvt.f32.s32 %v5104_v32  ;;  %v5090_v29 = vpop.xlane.xlu1 %5089 }
 0xdad   : > { %v5091_v37 = vcvt.f32.s32 %v5090_v29 }
 0xdae   : > { %v5108_v34 = vadd.s32 %v5107_v58, %v5105_v3 }
 0xdaf   : > { %v5094_v2 = vadd.s32 %v5093_v40, %v5091_v37  ;;  %v5132_v7 = vpop.xlane.xlu0 %5131 }
 0xdb0   : > { %6945 = vst.msk [vmem:[%s11399_s29 + $0x2d8] sm:$0xff] %vm2481_vm5, %v5108_v34  ;;  %v5133_v1 = vcvt.f32.s32 %v5132_v7  ;;  %v5118_v23 = vpop.xlane.xlu1 %5117 }
 0xdb1   : > { %6944 = vst.msk [vmem:[%s11399_s29 + $0x2d0] sm:$0xff] %vm2481_vm5, %v5094_v2  ;;  %v5119_v11 = vcvt.f32.s32 %v5118_v23 }
 0xdb2   : > { %v5136_v41 = vadd.s32 %v5135_v35, %v5133_v1 }
 0xdb3   : > { %v5122_v54 = vadd.s32 %v5121_v56, %v5119_v11  ;;  %v5160_v55 = vpop.xlane.xlu0 %5159 }
 0xdb4   : > { %6947 = vst.msk [vmem:[%s11399_s29 + $0x2e8] sm:$0xff] %vm2481_vm5, %v5136_v41  ;;  %v5161_v45 = vcvt.f32.s32 %v5160_v55  ;;  %v5146_v27 = vpop.xlane.xlu1 %5145 }
 0xdb5   : > { %6946 = vst.msk [vmem:[%s11399_s29 + $0x2e0] sm:$0xff] %vm2481_vm5, %v5122_v54  ;;  %v5147_v53 = vcvt.f32.s32 %v5146_v27 }
 0xdb6   : > { %v5164_v52 = vadd.s32 %v5163_v50, %v5161_v45 }
 0xdb7   : > { %v5150_v30 = vadd.s32 %v5149_v47, %v5147_v53 }
 0xdb8   : > { %6949 = vst.msk [vmem:[%s11399_s29 + $0x2f8] sm:$0xff] %vm2481_vm5, %v5164_v52 }
 0xdb9   : > { %6948 = vst.msk [vmem:[%s11399_s29 + $0x2f0] sm:$0xff] %vm2481_vm5, %v5150_v30 }
 0xdba   : > { %9506 = shalt.err (!%p9503_p9)
}
 0xdbb   : > { %s9507_s7 = scalar_lea.hbm %s13793_s19, 20480  ;;  %s9511_s10 = scalar_lea.hbm %s14607_s26, 40960 }
 0xdbc   : > { %p9508_p0 = scmp.ne.s32.totalorder %s13793_s19, %s9507_s7  ;;  %p9512_p13 = scmp.lt.u32.totalorder %s13793_s19, %s14607_s26 }
 0xdbd   : > { %p9513_p6 = scmp.lt.u32.totalorder %s9511_s10, %s9507_s7  ;;  %p9515_p3 = scmp.lt.u32.totalorder %s9507_s7, %s13793_s19 }
 0xdbe   : > { %p9509_p11 = pnand %p9508_p0, %p9801_p5 }
 0xdbf   : > { %p9514_p10 = por %p9513_p6, %p9512_p13 }
 0xdc0   : > { %p9510_p8 = pneg %p9509_p11 }
 0xdc1   : > { %p9516_p7 = por %p9515_p3, %p9514_p10 }
 0xdc3   : > { %p9517_p12 = pnand %p9516_p7, %p9510_p8 }
 0xdc5   : > { %9520 = shalt.err (!%p9517_p12)
}
 0xdc6   : > { %s9580_s27 = smov 128   ;;  %s9581_s25 = smov 8   ;;  %v6084_v26 = vcvt.f32.s32 %v13612_v24  ;;  %v6070_v8 = vcvt.f32.s32 %v13617_v33  ;;  %v6112_v32 = vcvt.f32.s32 %v13622_v28  ;;  %v6098_v29 = vcvt.f32.s32 %v13627_v44 }
 0xdc7   : > { %8533 = dma.vmem_to_hbm [thread:$0]  (%p9801_p5), %s13795_s17, 20480, %s13793_s19, %s6541_s15, %s9580_s27, %s9580_s27, %s9581_s25   ;;  %v6140_v24 = vcvt.f32.s32 %v13632_v10  ;;  %v6126_v35 = vcvt.f32.s32 %v13637_v12  ;;  %v6168_v63 = vcvt.f32.s32 %v13642_v25  ;;  %v6154_v54 = vcvt.f32.s32 %v13647_v31 }
 0xdc8   : > { %v6085_v4 = vshll.u32 %v6084_v26, 16  ;;  %v6071_v3 = vshll.u32 %v6070_v8, 16  ;;  %v6113_v2 = vshll.u32 %v6112_v32, 16  ;;  %v6099_v28 = vshll.u32 %v6098_v29, 16 }
 0xdc9   : > { %v6141_v56 = vshll.u32 %v6140_v24, 16  ;;  %v6127_v41 = vshll.u32 %v6126_v35, 16  ;;  %v6169_v27 = vshll.u32 %v6168_v63, 16  ;;  %v6196_v47 = vcvt.f32.s32 %v13653_v20 }
 0xdca   : > { %v6155_v52 = vshll.u32 %v6154_v54, 16  ;;  %v6182_v30 = vcvt.f32.s32 %v13658_v51  ;;  %v6224_v32 = vcvt.f32.s32 %v13663_v59  ;;  %v6308_v54 = vcvt.f32.s32 %v13693_v13 }
 0xdfb   : > { %v6082_v15 = vpop.xlane.xlu0 %6081 }
 0xdfc   : > { %v6083_v58 = vcvt.f32.s32 %v6082_v15  ;;  %v6068_v22 = vpop.xlane.xlu1 %6067 }
 0xdfd   : > { %v6069_v40 = vcvt.f32.s32 %v6068_v22  ;;  %v6183_v22 = vshll.u32 %v6182_v30, 16 }
 0xdfe   : > { %v6086_v57 = vadd.s32 %v6085_v4, %v6083_v58  ;;  %v6197_v4 = vshll.u32 %v6196_v47, 16 }
 0xdff   : > { %v6072_v37 = vadd.s32 %v6071_v3, %v6069_v40  ;;  %v6110_v34 = vpop.xlane.xlu0 %6109  ;;  %v6210_v3 = vcvt.f32.s32 %v13668_v36 }
 0xe00   : > { %7023 = vst.msk [vmem:[%s11399_s29 + $0x308] sm:$0xff] %vm2481_vm5, %v6086_v57  ;;  %v6111_v33 = vcvt.f32.s32 %v6110_v34  ;;  %v6096_v7 = vpop.xlane.xlu1 %6095  ;;  %v6252_v34 = vcvt.f32.s32 %v13673_v42 }
 0xe01   : > { %7022 = vst.msk [vmem:[%s11399_s29 + $0x300] sm:$0xff] %vm2481_vm5, %v6072_v37  ;;  %v6097_v48 = vcvt.f32.s32 %v6096_v7  ;;  %v6225_v37 = vshll.u32 %v6224_v32, 16  ;;  %v6211_v24 = vshll.u32 %v6210_v3, 16  ;;  %v6364_v32 = vcvt.f32.s32 %v13713_v38 }
 0xe02   : > { %v6114_v44 = vadd.s32 %v6113_v2, %v6111_v33  ;;  %v6238_v33 = vcvt.f32.s32 %v13678_v0 }
 0xe03   : > { %v6100_v1 = vadd.s32 %v6099_v28, %v6097_v48  ;;  %v6138_v23 = vpop.xlane.xlu0 %6137  ;;  %v6253_v48 = vshll.u32 %v6252_v34, 16 }
 0xe04   : > { %7025 = vst.msk [vmem:[%s11399_s29 + $0x318] sm:$0xff] %vm2481_vm5, %v6114_v44  ;;  %v6139_v10 = vcvt.f32.s32 %v6138_v23  ;;  %v6124_v11 = vpop.xlane.xlu1 %6123  ;;  %v6280_v44 = vcvt.f32.s32 %v13683_v9  ;;  %v6239_v23 = vshll.u32 %v6238_v33, 16 }
 0xe05   : > { %7024 = vst.msk [vmem:[%s11399_s29 + $0x310] sm:$0xff] %vm2481_vm5, %v6100_v1  ;;  %v6125_v12 = vcvt.f32.s32 %v6124_v11 }
 0xe06   : > { %v6142_v55 = vadd.s32 %v6141_v56, %v6139_v10  ;;  %v6266_v56 = vcvt.f32.s32 %v13688_v49 }
 0xe07   : > { %v6128_v50 = vadd.s32 %v6127_v41, %v6125_v12  ;;  %v6166_v45 = vpop.xlane.xlu0 %6165  ;;  %v6281_v41 = vshll.u32 %v6280_v44, 16 }
 0xe08   : > { %7027 = vst.msk [vmem:[%s11399_s29 + $0x328] sm:$0xff] %vm2481_vm5, %v6142_v55  ;;  %v6167_v25 = vcvt.f32.s32 %v6166_v45  ;;  %v6152_v53 = vpop.xlane.xlu1 %6151  ;;  %v6267_v55 = vshll.u32 %v6266_v56, 16  ;;  %v6448_v56 = vcvt.f32.s32 %v13743_v43 }
 0xe09   : > { %7026 = vst.msk [vmem:[%s11399_s29 + $0x320] sm:$0xff] %vm2481_vm5, %v6128_v50  ;;  %v6153_v31 = vcvt.f32.s32 %v6152_v53  ;;  %v6294_v50 = vcvt.f32.s32 %v13698_v39  ;;  %v6336_v53 = vcvt.f32.s32 %v13703_v14 }
 0xe0a   : > { %v6170_v26 = vadd.s32 %v6169_v27, %v6167_v25  ;;  %v6309_v25 = vshll.u32 %v6308_v54, 16 }
 0xe0b   : > { %v6156_v8 = vadd.s32 %v6155_v52, %v6153_v31  ;;  %v6194_v15 = vpop.xlane.xlu0 %6193  ;;  %v6295_v30 = vshll.u32 %v6294_v50, 16  ;;  %v6322_v31 = vcvt.f32.s32 %v13708_v18 }
 0xe0c   : > { %7029 = vst.msk [vmem:[%s11399_s29 + $0x338] sm:$0xff] %vm2481_vm5, %v6170_v26  ;;  %v6195_v20 = vcvt.f32.s32 %v6194_v15  ;;  %v6180_v58 = vpop.xlane.xlu1 %6179 }
 0xe0d   : > { %7028 = vst.msk [vmem:[%s11399_s29 + $0x330] sm:$0xff] %vm2481_vm5, %v6156_v8  ;;  %v6181_v51 = vcvt.f32.s32 %v6180_v58  ;;  %v6323_v58 = vshll.u32 %v6322_v31, 16 }
 0xe0e   : > { %v6198_v29 = vadd.s32 %v6197_v4, %v6195_v20  ;;  %v6337_v4 = vshll.u32 %v6336_v53, 16  ;;  %v6504_v53 = vcvt.f32.s32 %v13762_v46 }
 0xe0f   : > { %v6184_v40 = vadd.s32 %v6183_v22, %v6181_v51  ;;  %v6222_v57 = vpop.xlane.xlu0 %6221  ;;  %v6350_v22 = vcvt.f32.s32 %v13718_v21 }
 0xe10   : > { %7031 = vst.msk [vmem:[%s11399_s29 + $0x348] sm:$0xff] %vm2481_vm5, %v6198_v29  ;;  %v6223_v59 = vcvt.f32.s32 %v6222_v57  ;;  %v6208_v2 = vpop.xlane.xlu1 %6207  ;;  %v6392_v57 = vcvt.f32.s32 %v13723_v60 }
 0xe11   : > { %7030 = vst.msk [vmem:[%s11399_s29 + $0x340] sm:$0xff] %vm2481_vm5, %v6184_v40  ;;  %v6209_v36 = vcvt.f32.s32 %v6208_v2  ;;  %v6365_v40 = vshll.u32 %v6364_v32, 16  ;;  %v6351_v34 = vshll.u32 %v6350_v22, 16 }
 0xe12   : > { %v6226_v7 = vadd.s32 %v6225_v37, %v6223_v59  ;;  %v6378_v59 = vcvt.f32.s32 %v13728_v6 }
 0xe13   : > { %v6212_v28 = vadd.s32 %v6211_v24, %v6209_v36  ;;  %v6250_v35 = vpop.xlane.xlu0 %6249  ;;  %v6393_v36 = vshll.u32 %v6392_v57, 16 }
 0xe14   : > { %7033 = vst.msk [vmem:[%s11399_s29 + $0x358] sm:$0xff] %vm2481_vm5, %v6226_v7  ;;  %v6251_v42 = vcvt.f32.s32 %v6250_v35  ;;  %v6236_v1 = vpop.xlane.xlu1 %6235  ;;  %v6420_v7 = vcvt.f32.s32 %v13733_v19  ;;  %v6379_v35 = vshll.u32 %v6378_v59, 16 }
 0xe15   : > { %7032 = vst.msk [vmem:[%s11399_s29 + $0x350] sm:$0xff] %vm2481_vm5, %v6212_v28  ;;  %v6237_v0 = vcvt.f32.s32 %v6236_v1 }
 0xe16   : > { %v6254_v63 = vadd.s32 %v6253_v48, %v6251_v42  ;;  %v6406_v48 = vcvt.f32.s32 %v13738_v61 }
 0xe17   : > { %v6240_v10 = vadd.s32 %v6239_v23, %v6237_v0  ;;  %v6278_v11 = vpop.xlane.xlu0 %6277  ;;  %v6421_v23 = vshll.u32 %v6420_v7, 16 }
 0xe18   : > { %7035 = vst.msk [vmem:[%s11399_s29 + $0x368] sm:$0xff] %vm2481_vm5, %v6254_v63  ;;  %v6279_v9 = vcvt.f32.s32 %v6278_v11  ;;  %v6264_v12 = vpop.xlane.xlu1 %6263  ;;  %v6407_v63 = vshll.u32 %v6406_v48, 16 }
 0xe19   : > { %7034 = vst.msk [vmem:[%s11399_s29 + $0x360] sm:$0xff] %vm2481_vm5, %v6240_v10  ;;  %v6265_v49 = vcvt.f32.s32 %v6264_v12  ;;  %v6434_v10 = vcvt.f32.s32 %v13748_v62  ;;  %v6476_v12 = vcvt.f32.s32 %v13753_v17 }
 0xe1a   : > { %v6282_v45 = vadd.s32 %v6281_v41, %v6279_v9  ;;  %v6449_v9 = vshll.u32 %v6448_v56, 16 }
 0xe1b   : > { %v6268_v27 = vadd.s32 %v6267_v55, %v6265_v49  ;;  %v6306_v47 = vpop.xlane.xlu0 %6305  ;;  %v6435_v50 = vshll.u32 %v6434_v10, 16  ;;  %v6462_v49 = vcvt.f32.s32 %v13758_v16 }
 0xe1c   : > { %7037 = vst.msk [vmem:[%s11399_s29 + $0x378] sm:$0xff] %vm2481_vm5, %v6282_v45  ;;  %v6307_v13 = vcvt.f32.s32 %v6306_v47  ;;  %v6292_v52 = vpop.xlane.xlu1 %6291 }
 0xe1d   : > { %7036 = vst.msk [vmem:[%s11399_s29 + $0x370] sm:$0xff] %vm2481_vm5, %v6268_v27  ;;  %v6293_v39 = vcvt.f32.s32 %v6292_v52  ;;  %v6463_v52 = vshll.u32 %v6462_v49, 16 }
 0xe1e   : > { %v6310_v26 = vadd.s32 %v6309_v25, %v6307_v13  ;;  %v6477_v25 = vshll.u32 %v6476_v12, 16 }
 0xe1f   : > { %v6296_v8 = vadd.s32 %v6295_v30, %v6293_v39  ;;  %v6334_v15 = vpop.xlane.xlu0 %6333  ;;  %v6490_v30 = vcvt.f32.s32 %v13767_v5 }
 0xe20   : > { %7039 = vst.msk [vmem:[%s11399_s29 + $0x388] sm:$0xff] %vm2481_vm5, %v6310_v26  ;;  %v6335_v14 = vcvt.f32.s32 %v6334_v15  ;;  %v6320_v20 = vpop.xlane.xlu1 %6319 }
 0xe21   : > { %7038 = vst.msk [vmem:[%s11399_s29 + $0x380] sm:$0xff] %vm2481_vm5, %v6296_v8  ;;  %v6321_v18 = vcvt.f32.s32 %v6320_v20  ;;  %v6505_v8 = vshll.u32 %v6504_v53, 16 }
 0xe22   : > { %v6338_v3 = vadd.s32 %v6337_v4, %v6335_v14  ;;  %v6491_v4 = vshll.u32 %v6490_v30, 16 }
 0xe23   : > { %v6324_v51 = vadd.s32 %v6323_v58, %v6321_v18  ;;  %v6362_v29 = vpop.xlane.xlu0 %6361 }
 0xe24   : > { %7041 = vst.msk [vmem:[%s11399_s29 + $0x398] sm:$0xff] %vm2481_vm5, %v6338_v3  ;;  %v6363_v38 = vcvt.f32.s32 %v6362_v29  ;;  %v6348_v37 = vpop.xlane.xlu1 %6347 }
 0xe25   : > { %7040 = vst.msk [vmem:[%s11399_s29 + $0x390] sm:$0xff] %vm2481_vm5, %v6324_v51  ;;  %v6349_v21 = vcvt.f32.s32 %v6348_v37 }
 0xe26   : > { %v6366_v2 = vadd.s32 %v6365_v40, %v6363_v38 }
 0xe27   : > { %v6352_v24 = vadd.s32 %v6351_v34, %v6349_v21  ;;  %v6390_v33 = vpop.xlane.xlu0 %6389 }
 0xe28   : > { %7043 = vst.msk [vmem:[%s11399_s29 + $0x3a8] sm:$0xff] %vm2481_vm5, %v6366_v2  ;;  %v6391_v60 = vcvt.f32.s32 %v6390_v33  ;;  %v6376_v28 = vpop.xlane.xlu1 %6375 }
 0xe29   : > { %7042 = vst.msk [vmem:[%s11399_s29 + $0x3a0] sm:$0xff] %vm2481_vm5, %v6352_v24  ;;  %v6377_v6 = vcvt.f32.s32 %v6376_v28 }
 0xe2a   : > { %v6394_v44 = vadd.s32 %v6393_v36, %v6391_v60 }
 0xe2b   : > { %v6380_v42 = vadd.s32 %v6379_v35, %v6377_v6  ;;  %v6418_v1 = vpop.xlane.xlu0 %6417 }
 0xe2c   : > { %7045 = vst.msk [vmem:[%s11399_s29 + $0x3b8] sm:$0xff] %vm2481_vm5, %v6394_v44  ;;  %v6419_v19 = vcvt.f32.s32 %v6418_v1  ;;  %v6404_v0 = vpop.xlane.xlu1 %6403 }
 0xe2d   : > { %7044 = vst.msk [vmem:[%s11399_s29 + $0x3b0] sm:$0xff] %vm2481_vm5, %v6380_v42  ;;  %v6405_v61 = vcvt.f32.s32 %v6404_v0 }
 0xe2e   : > { %v6422_v11 = vadd.s32 %v6421_v23, %v6419_v19 }
 0xe2f   : > { %v6408_v41 = vadd.s32 %v6407_v63, %v6405_v61  ;;  %v6446_v54 = vpop.xlane.xlu0 %6445 }
 0xe30   : > { %7047 = vst.msk [vmem:[%s11399_s29 + $0x3c8] sm:$0xff] %vm2481_vm5, %v6422_v11  ;;  %v6447_v43 = vcvt.f32.s32 %v6446_v54  ;;  %v6432_v55 = vpop.xlane.xlu1 %6431 }
 0xe31   : > { %7046 = vst.msk [vmem:[%s11399_s29 + $0x3c0] sm:$0xff] %vm2481_vm5, %v6408_v41  ;;  %v6433_v62 = vcvt.f32.s32 %v6432_v55 }
 0xe32   : > { %v6450_v45 = vadd.s32 %v6449_v9, %v6447_v43 }
 0xe33   : > { %v6436_v27 = vadd.s32 %v6435_v50, %v6433_v62  ;;  %v6474_v47 = vpop.xlane.xlu0 %6473 }
 0xe34   : > { %7049 = vst.msk [vmem:[%s11399_s29 + $0x3d8] sm:$0xff] %vm2481_vm5, %v6450_v45  ;;  %v6475_v17 = vcvt.f32.s32 %v6474_v47  ;;  %v6460_v13 = vpop.xlane.xlu1 %6459 }
 0xe35   : > { %7048 = vst.msk [vmem:[%s11399_s29 + $0x3d0] sm:$0xff] %vm2481_vm5, %v6436_v27  ;;  %v6461_v16 = vcvt.f32.s32 %v6460_v13 }
 0xe36   : > { %v6478_v31 = vadd.s32 %v6477_v25, %v6475_v17 }
 0xe37   : > { %v6464_v39 = vadd.s32 %v6463_v52, %v6461_v16  ;;  %v6502_v26 = vpop.xlane.xlu0 %6501 }
 0xe38   : > { %7051 = vst.msk [vmem:[%s11399_s29 + $0x3e8] sm:$0xff] %vm2481_vm5, %v6478_v31  ;;  %v6503_v46 = vcvt.f32.s32 %v6502_v26  ;;  %v6488_v15 = vpop.xlane.xlu1 %6487 }
 0xe39   : > { %7050 = vst.msk [vmem:[%s11399_s29 + $0x3e0] sm:$0xff] %vm2481_vm5, %v6464_v39  ;;  %v6489_v32 = vcvt.f32.s32 %v6488_v15 }
 0xe3a   : > { %v6506_v14 = vadd.s32 %v6505_v8, %v6503_v46 }
 0xe3b   : > { %v6492_v20 = vadd.s32 %v6491_v4, %v6489_v32 }
 0xe3c   : > { %7053 = vst.msk [vmem:[%s11399_s29 + $0x3f8] sm:$0xff] %vm2481_vm5, %v6506_v14 }
 0xe3d   : > { %7052 = vst.msk [vmem:[%s11399_s29 + $0x3f0] sm:$0xff] %vm2481_vm5, %v6492_v20 }
 0xe3e PF: > { %s14608_s12 = sld [smem:[#allocation15_spill]]  ;;  %s14609_s30 = sld [smem:[#allocation16_spill]] }
 0xe3f   : > { %p14611_p1 = scmp.ge.s32.totalorder %s9567_s24, 2 }
 0xe44   : > { %s6580_s17 = sand.u32 1, %s14608_s12   ;;  %p14610_p5 = scmp.ne.s32.totalorder %s14609_s30, 0 }
 0xe45   : > { %s6581_s19 = scalar_lea.sflag [#allocation4], %s6580_s17 }
 0xe46   : > { %p8550_p2 = pnand %p14611_p1, %p14610_p5 }
 0xe48   : > { %9550 = dma.done.wait (!%p8550_p2), %s6581_s19, 20480  }
 0xe49   : > { %9552 = vsyncadd (!%p8550_p2), %s6581_s19, 4294946816  ;;  %s14612_s15 = smov %s9787_s21  ;;  %p28_p4 = scmp.ge.s32.totalorder %s9787_s21, 4  }
 0xe4a   : > { %s14613_s21 = smov %s9559_s22  ;;  %s14614_s22 = smov %s9563_s23 }
 0xe4b   : > { %s14615_s23 = smov %s9797_s11  ;;  %s14616_s24 = smov %s14612_s15 }
 0xe4c   :  { %30 = sbr.rel (!%p28_p4) target bundleno = 12 (0xc), region = 139 }
 0xe53   :  { %6595 = vsyncpa [#allocation3], 1 }
 0xe54   :  { %6597 = vsyncpa [#allocation3 + $0x1], 1 }
 0xe55   :  { %6598 = vsyncpa [#allocation6], 1 }
 0xe56   :  { %6599 = vsyncpa [#allocation9], 1 }
 0xe57   :  { %6600 = vsyncpa [#allocation4], 1 }
 0xe58   :  { %6602 = vsyncpa [#allocation4 + $0x1], 1 }

</bundles_post_ra>
